<compile_context>
chip_gen: v7x
topology: tpu7x:2x2x1
jax: 0.10.0
libtpu: 0.0.40
codegen_flags: <defaults>
</compile_context>

<pallas_src>
import jax
import jax.numpy as jnp
from jax import lax
from jax.experimental import pallas as pl
from jax.experimental.pallas import tpu as pltpu

NHEAD = 4
_PARALLEL = pltpu.CompilerParams(dimension_semantics=("parallel",))
_VMEM = pl.BlockSpec(memory_space=pltpu.MemorySpace.VMEM)
_SMEM = pl.BlockSpec(memory_space=pltpu.MemorySpace.SMEM)


def _row_tile(m, cap=1024):
    """Largest row-tile <= cap that divides m (prefers multiples of 8)."""
    if m <= cap:
        return m
    for t in range(cap - cap % 8, 7, -8):
        if m % t == 0:
            return t
    for t in range(cap, 0, -1):
        if m % t == 0:
            return t
    return m


# ----------------------------------------------------------------------------
# Fused Pallas kernels
# ----------------------------------------------------------------------------
def matmul_bias(x, w, b):
    """y = x @ w + b   (used for the fused fwd+bwd GRU input projection)."""
    x = x.astype(jnp.float32)
    w = w.astype(jnp.float32)
    M, K = x.shape
    N = w.shape[1]
    bm = _row_tile(M)

    def kernel(x_ref, w_ref, b_ref, o_ref):
        o_ref[...] = (jnp.dot(x_ref[...], w_ref[...],
                              preferred_element_type=jnp.float32) + b_ref[...])

    return pl.pallas_call(
        kernel,
        out_shape=jax.ShapeDtypeStruct((M, N), jnp.float32),
        grid=(M // bm,),
        in_specs=[pl.BlockSpec((bm, K), lambda i: (i, 0)),
                  pl.BlockSpec((K, N), lambda i: (0, 0)),
                  pl.BlockSpec((1, N), lambda i: (0, 0))],
        out_specs=pl.BlockSpec((bm, N), lambda i: (i, 0)),
        compiler_params=_PARALLEL,
    )(x, w, b.reshape(1, N).astype(jnp.float32))


def matmul_bias_prelu(x, w, b, a):
    """PReLU(x @ w + b) with the scalar PReLU slope held in SMEM (input conv)."""
    x = x.astype(jnp.float32)
    w = w.astype(jnp.float32)
    M, K = x.shape
    N = w.shape[1]
    bm = _row_tile(M)

    def kernel(x_ref, w_ref, b_ref, a_ref, o_ref):
        y = jnp.dot(x_ref[...], w_ref[...],
                    preferred_element_type=jnp.float32) + b_ref[...]
        o_ref[...] = jnp.where(y >= 0.0, y, a_ref[0] * y)

    return pl.pallas_call(
        kernel,
        out_shape=jax.ShapeDtypeStruct((M, N), jnp.float32),
        grid=(M // bm,),
        in_specs=[pl.BlockSpec((bm, K), lambda i: (i, 0)),
                  pl.BlockSpec((K, N), lambda i: (0, 0)),
                  pl.BlockSpec((1, N), lambda i: (0, 0)),
                  _SMEM],
        out_specs=pl.BlockSpec((bm, N), lambda i: (i, 0)),
        compiler_params=_PARALLEL,
    )(x, w, b.reshape(1, N).astype(jnp.float32),
      a.reshape(1).astype(jnp.float32))


def ln_matmul_bias(x, gamma, beta, w, b, eps=1e-5):
    """LayerNorm(x) @ w + b   (fuses norm3 with the QKV projection)."""
    x = x.astype(jnp.float32)
    w = w.astype(jnp.float32)
    M, D = x.shape
    N = w.shape[1]
    bm = _row_tile(M)

    def kernel(x_ref, g_ref, bl_ref, w_ref, b_ref, o_ref):
        xv = x_ref[...]
        mu = jnp.mean(xv, axis=-1, keepdims=True)
        var = jnp.mean((xv - mu) ** 2, axis=-1, keepdims=True)
        xn = (xv - mu) * lax.rsqrt(var + eps) * g_ref[...] + bl_ref[...]
        o_ref[...] = jnp.dot(xn, w_ref[...],
                             preferred_element_type=jnp.float32) + b_ref[...]

    return pl.pallas_call(
        kernel,
        out_shape=jax.ShapeDtypeStruct((M, N), jnp.float32),
        grid=(M // bm,),
        in_specs=[pl.BlockSpec((bm, D), lambda i: (i, 0)),
                  pl.BlockSpec((1, D), lambda i: (0, 0)),
                  pl.BlockSpec((1, D), lambda i: (0, 0)),
                  pl.BlockSpec((D, N), lambda i: (0, 0)),
                  pl.BlockSpec((1, N), lambda i: (0, 0))],
        out_specs=pl.BlockSpec((bm, N), lambda i: (i, 0)),
        compiler_params=_PARALLEL,
    )(x, gamma.reshape(1, D).astype(jnp.float32),
      beta.reshape(1, D).astype(jnp.float32), w,
      b.reshape(1, N).astype(jnp.float32))


def matmul_residual_layernorm(x, w, b, resid, gamma, beta, eps=1e-5):
    """LayerNorm(resid + x @ w + b)   (attention out-proj + residual + norm1)."""
    x = x.astype(jnp.float32)
    w = w.astype(jnp.float32)
    M, K = x.shape
    N = w.shape[1]
    bm = _row_tile(M)

    def kernel(x_ref, w_ref, b_ref, r_ref, g_ref, bt_ref, o_ref):
        y = (jnp.dot(x_ref[...], w_ref[...], preferred_element_type=jnp.float32)
             + b_ref[...] + r_ref[...])
        mu = jnp.mean(y, axis=-1, keepdims=True)
        var = jnp.mean((y - mu) ** 2, axis=-1, keepdims=True)
        o_ref[...] = (y - mu) * lax.rsqrt(var + eps) * g_ref[...] + bt_ref[...]

    return pl.pallas_call(
        kernel,
        out_shape=jax.ShapeDtypeStruct((M, N), jnp.float32),
        grid=(M // bm,),
        in_specs=[pl.BlockSpec((bm, K), lambda i: (i, 0)),
                  pl.BlockSpec((K, N), lambda i: (0, 0)),
                  pl.BlockSpec((1, N), lambda i: (0, 0)),
                  pl.BlockSpec((bm, N), lambda i: (i, 0)),
                  pl.BlockSpec((1, N), lambda i: (0, 0)),
                  pl.BlockSpec((1, N), lambda i: (0, 0))],
        out_specs=pl.BlockSpec((bm, N), lambda i: (i, 0)),
        compiler_params=_PARALLEL,
    )(x, w, b.reshape(1, N).astype(jnp.float32), resid.astype(jnp.float32),
      gamma.reshape(1, N).astype(jnp.float32),
      beta.reshape(1, N).astype(jnp.float32))


def gru_lin2_norm(out_f, out_b, w_f, w_b, b, resid, gamma, beta, eps=1e-5):
    """LayerNorm(resid + relu(out_f) @ w_f + relu(out_b) @ w_b + b).

    Fuses the bidirectional-GRU concat (folded into split linear2 weights),
    the ReLU, linear2, the residual add and norm2 into one kernel."""
    M, H = out_f.shape
    N = w_f.shape[1]
    bm = _row_tile(M)

    def kernel(f_ref, bw_ref, wf_ref, wb_ref, b_ref, r_ref, g_ref, bt_ref, o_ref):
        y = (jnp.dot(jnp.maximum(f_ref[...], 0.0), wf_ref[...],
                     preferred_element_type=jnp.float32)
             + jnp.dot(jnp.maximum(bw_ref[...], 0.0), wb_ref[...],
                       preferred_element_type=jnp.float32)
             + b_ref[...] + r_ref[...])
        mu = jnp.mean(y, axis=-1, keepdims=True)
        var = jnp.mean((y - mu) ** 2, axis=-1, keepdims=True)
        o_ref[...] = (y - mu) * lax.rsqrt(var + eps) * g_ref[...] + bt_ref[...]

    return pl.pallas_call(
        kernel,
        out_shape=jax.ShapeDtypeStruct((M, N), jnp.float32),
        grid=(M // bm,),
        in_specs=[pl.BlockSpec((bm, H), lambda i: (i, 0)),
                  pl.BlockSpec((bm, H), lambda i: (i, 0)),
                  pl.BlockSpec((H, N), lambda i: (0, 0)),
                  pl.BlockSpec((H, N), lambda i: (0, 0)),
                  pl.BlockSpec((1, N), lambda i: (0, 0)),
                  pl.BlockSpec((bm, N), lambda i: (i, 0)),
                  pl.BlockSpec((1, N), lambda i: (0, 0)),
                  pl.BlockSpec((1, N), lambda i: (0, 0))],
        out_specs=pl.BlockSpec((bm, N), lambda i: (i, 0)),
        compiler_params=_PARALLEL,
    )(out_f.astype(jnp.float32), out_b.astype(jnp.float32),
      w_f.astype(jnp.float32), w_b.astype(jnp.float32),
      b.reshape(1, N).astype(jnp.float32), resid.astype(jnp.float32),
      gamma.reshape(1, N).astype(jnp.float32),
      beta.reshape(1, N).astype(jnp.float32))


def attention(qh, kh, vh, scale):
    """softmax(q*scale @ k^T) @ v over (BH, S, hd) head-batches."""
    qh = qh.astype(jnp.float32)
    kh = kh.astype(jnp.float32)
    vh = vh.astype(jnp.float32)
    BH, S, hd = qh.shape
    bb = _row_tile(BH, cap=512)

    def kernel(q_ref, k_ref, v_ref, o_ref):
        q = q_ref[...] * scale
        s = jnp.einsum('bqd,bkd->bqk', q, k_ref[...],
                       preferred_element_type=jnp.float32)
        m = jnp.max(s, axis=-1, keepdims=True)
        p = jnp.exp(s - m)
        denom = jnp.sum(p, axis=-1, keepdims=True)
        p = p * pl.reciprocal(denom, approx=True)     # divide on the EUP
        o_ref[...] = jnp.einsum('bqk,bkd->bqd', p, v_ref[...],
                                preferred_element_type=jnp.float32)

    spec = pl.BlockSpec((bb, S, hd), lambda i: (i, 0, 0))
    return pl.pallas_call(
        kernel,
        out_shape=jax.ShapeDtypeStruct((BH, S, hd), jnp.float32),
        grid=(BH // bb,),
        in_specs=[spec, spec, spec],
        out_specs=spec,
        compiler_params=_PARALLEL,
    )(qh, kh, vh)


def gru_bidir(xg, whh_f, whh_b, bhh_f, bhh_b):
    """Bidirectional GRU recurrence, both directions interleaved in one kernel.

    xg      : (T, 6, B, H)  precomputed input projections, gate/dir order
              (r_f, z_f, n_f, r_b, z_b, n_b)
    whh_*   : (H, 3H)       hidden weights per direction, gates concatenated (r|z|n)
    bhh_*   : (1, 3H)       hidden biases  per direction, gates concatenated (r|z|n)
    returns : out_f (T, B, H), out_b (T, B, H)
    """
    T, _, B, H = xg.shape

    def kernel(xg_ref, wf_ref, wb_ref, bf_ref, bb_ref, of_ref, ob_ref):
        def step(t, carry):
            h_f, h_b = carry
            tb = T - 1 - t
            gx_f = xg_ref[t]           # (6, B, H): forward gates at slots 0..2
            gx_b = xg_ref[tb]          # (6, B, H): backward gates at slots 3..5
            # one merged (B,H) @ (H,3H) hidden matmul per direction
            gh_f = jnp.dot(h_f, wf_ref[...],
                           preferred_element_type=jnp.float32) + bf_ref[...]
            gh_b = jnp.dot(h_b, wb_ref[...],
                           preferred_element_type=jnp.float32) + bb_ref[...]
            r_f = jax.nn.sigmoid(gx_f[0] + gh_f[:, :H])
            z_f = jax.nn.sigmoid(gx_f[1] + gh_f[:, H:2 * H])
            n_f = jnp.tanh(gx_f[2] + r_f * gh_f[:, 2 * H:])
            r_b = jax.nn.sigmoid(gx_b[3] + gh_b[:, :H])
            z_b = jax.nn.sigmoid(gx_b[4] + gh_b[:, H:2 * H])
            n_b = jnp.tanh(gx_b[5] + r_b * gh_b[:, 2 * H:])
            h_f = (1.0 - z_f) * n_f + z_f * h_f
            h_b = (1.0 - z_b) * n_b + z_b * h_b
            of_ref[t] = h_f
            ob_ref[tb] = h_b
            return (h_f, h_b)

        lax.fori_loop(0, T, step,
                      (jnp.zeros((B, H), jnp.float32),
                       jnp.zeros((B, H), jnp.float32)))

    # TODO(synk): for long sequences / large batches, switch xg/of/ob to
    # memory_space=pl.ANY and double-buffer time chunks with
    # pltpu.make_async_copy so the resident footprint stays within v7x VMEM.
    return pl.pallas_call(
        kernel,
        out_shape=(jax.ShapeDtypeStruct((T, B, H), jnp.float32),
                   jax.ShapeDtypeStruct((T, B, H), jnp.float32)),
        in_specs=[_VMEM] * 5,
        out_specs=(_VMEM, _VMEM),
    )(xg.astype(jnp.float32), whh_f.astype(jnp.float32),
      whh_b.astype(jnp.float32), bhh_f.astype(jnp.float32),
      bhh_b.astype(jnp.float32))


def combine_gn_out(base, row_cl, col_cl, gw_r, gb_r, gw_c, gb_c,
                   scalars, w_out, b_out, eps=1e-8):
    """Per-sample fusion of:
         GroupNorm(1,C)(row), GroupNorm(1,C)(col),
         combined = base + k1*row_n + k2*col_n,
         y = PReLU(combined) @ w_out + b_out
       base/row_cl/col_cl: (B, L, C) channels-last; scalars = [k1, k2, prelu_a]
       held in SMEM.  Returns (combined (B,L,C), y (B,L,O))."""
    B, L, C = base.shape
    O = w_out.shape[1]

    def kernel(b_ref, r_ref, c_ref, gwr_ref, gbr_ref, gwc_ref, gbc_ref,
               w_ref, bo_ref, s_ref, comb_ref, y_ref):
        r = r_ref[0]
        mu_r = jnp.mean(r)
        var_r = jnp.mean((r - mu_r) ** 2)
        rn = (r - mu_r) * lax.rsqrt(var_r + eps) * gwr_ref[...] + gbr_ref[...]
        c = c_ref[0]
        mu_c = jnp.mean(c)
        var_c = jnp.mean((c - mu_c) ** 2)
        cn = (c - mu_c) * lax.rsqrt(var_c + eps) * gwc_ref[...] + gbc_ref[...]
        comb = b_ref[0] + s_ref[0] * rn + s_ref[1] * cn
        comb_ref[0] = comb
        act = jnp.where(comb >= 0.0, comb, s_ref[2] * comb)
        y_ref[0] = jnp.dot(act, w_ref[...],
                           preferred_element_type=jnp.float32) + bo_ref[...]

    def full(shape):
        return pl.BlockSpec(shape, lambda i: (0, 0))

    return pl.pallas_call(
        kernel,
        out_shape=(jax.ShapeDtypeStruct((B, L, C), jnp.float32),
                   jax.ShapeDtypeStruct((B, L, O), jnp.float32)),
        grid=(B,),
        in_specs=[pl.BlockSpec((1, L, C), lambda i: (i, 0, 0)),
                  pl.BlockSpec((1, L, C), lambda i: (i, 0, 0)),
                  pl.BlockSpec((1, L, C), lambda i: (i, 0, 0)),
                  full((1, C)), full((1, C)), full((1, C)), full((1, C)),
                  full((C, O)), full((1, O)),
                  _SMEM],
        out_specs=(pl.BlockSpec((1, L, C), lambda i: (i, 0, 0)),
                   pl.BlockSpec((1, L, O), lambda i: (i, 0, 0))),
        compiler_params=_PARALLEL,
    )(base.astype(jnp.float32), row_cl.astype(jnp.float32),
      col_cl.astype(jnp.float32),
      gw_r.reshape(1, C).astype(jnp.float32), gb_r.reshape(1, C).astype(jnp.float32),
      gw_c.reshape(1, C).astype(jnp.float32), gb_c.reshape(1, C).astype(jnp.float32),
      w_out.astype(jnp.float32), b_out.reshape(1, O).astype(jnp.float32),
      scalars.astype(jnp.float32))


# ----------------------------------------------------------------------------
# TransformerEncoderLayer forward (composition of the fused kernels above)
# ----------------------------------------------------------------------------
def transformer_layer(src, p):
    """src: (S, B, D) -> (S, B, D). Matches the PyTorch TransformerEncoderLayer
    (norm3-pre attention, residual+norm1, bidirectional GRU, relu+linear2,
    residual+norm2).  Dropout layers are identity (p=0)."""
    S, B, D = src.shape
    H = 2 * D
    hd = D // NHEAD
    x2 = src.reshape(S * B, D)

    # norm3 + QKV projection fused.
    qkv = ln_matmul_bias(x2, p['norm3_g'], p['norm3_b'],
                         p['attn_in_w_t'], p['attn_in_b']).reshape(S, B, 3 * D)
    q, k, v = qkv[..., :D], qkv[..., D:2 * D], qkv[..., 2 * D:]

    def heads(t):
        return jnp.transpose(t.reshape(S, B * NHEAD, hd), (1, 0, 2))

    ah = attention(heads(q), heads(k), heads(v), float(hd) ** -0.5)
    attn = jnp.transpose(ah, (1, 0, 2)).reshape(S * B, D)

    # attention out-proj + residual + norm1 fused.
    x = matmul_residual_layernorm(attn, p['attn_out_w_t'], p['attn_out_b'],
                                  x2, p['norm1_g'], p['norm1_b'])

    # GRU input projections of both directions in one matmul; gate order (r,z,n).
    xg = matmul_bias(x, p['gru_wih_cat_t'], p['gru_bih_cat'])       # (S*B, 6H)
    xg = jnp.transpose(xg.reshape(S, B, 6, H), (0, 2, 1, 3))        # (S, 6, B, H)
    out_f, out_b = gru_bidir(xg, p['gru_whh_f'], p['gru_whh_b'],
                             p['gru_bhh_f'], p['gru_bhh_b'])

    # relu + linear2 + residual + norm2 fused (GRU concat folded into split weights).
    y = gru_lin2_norm(out_f.reshape(S * B, H), out_b.reshape(S * B, H),
                      p['lin2_w_f_t'], p['lin2_w_b_t'], p['lin2_b'],
                      x, p['norm2_g'], p['norm2_b'])
    return y.reshape(S, B, D)


# ----------------------------------------------------------------------------
# AIA_Transformer forward
# ----------------------------------------------------------------------------
def aia_transformer_forward(x_nchw, params):
    """x_nchw: (b, c, dim2, dim1) -> (output_i NCHW, [output_i, ...])."""
    b, c, dim2, dim1 = x_nchw.shape
    c2 = c // 2
    L = dim2 * dim1
    M = b * L

    # input: Conv2d(c, c//2, 1) + PReLU, fused (matmul on channels-last flatten).
    x_cl = jnp.transpose(x_nchw, (0, 2, 3, 1)).reshape(M, c)
    h = matmul_bias_prelu(x_cl, params['w_in'], params['b_in'], params['a_in'])
    out_nhwc = h.reshape(b, dim2, dim1, c2)

    scalars = jnp.stack([params['k1'], params['k2'], params['a_out']])
    outputs = []
    for layer in params['layers']:
        # row path: seq = dim1, batch = b*dim2
        row_in = jnp.transpose(out_nhwc, (2, 0, 1, 3)).reshape(dim1, b * dim2, c2)
        row_out = transformer_layer(row_in, layer['row'])
        row_cl = jnp.transpose(row_out.reshape(dim1, b, dim2, c2),
                               (1, 2, 0, 3)).reshape(b, L, c2)

        # col path: seq = dim2, batch = b*dim1
        col_in = jnp.transpose(out_nhwc, (1, 0, 2, 3)).reshape(dim2, b * dim1, c2)
        col_out = transformer_layer(col_in, layer['col'])
        col_cl = jnp.transpose(col_out.reshape(dim2, b, dim1, c2),
                               (1, 0, 2, 3)).reshape(b, L, c2)

        # GroupNorm(row) + GroupNorm(col) + k1/k2 combine + PReLU + output conv, fused.
        comb, y = combine_gn_out(out_nhwc.reshape(b, L, c2), row_cl, col_cl,
                                 layer['row_gn_w'], layer['row_gn_b'],
                                 layer['col_gn_w'], layer['col_gn_b'],
                                 scalars, params['w_out'], params['b_out'])
        out_nhwc = comb.reshape(b, dim2, dim1, c2)
        o_sz = params['w_out'].shape[1]
        y_nchw = jnp.transpose(y.reshape(b, dim2, dim1, o_sz), (0, 3, 1, 2))
        outputs.append(y_nchw)

    return outputs[-1], outputs


# ----------------------------------------------------------------------------
# Deterministic parameter initialization (shapes map 1:1 onto the PyTorch module)
# ----------------------------------------------------------------------------
def _u(key, shape, scale):
    return jax.random.uniform(key, shape, jnp.float32, -scale, scale)


def init_encoder_layer(key, D):
    H = 2 * D
    ks = jax.random.split(key, 19)
    sD = 1.0 / (D ** 0.5)
    sH = 1.0 / (H ** 0.5)
    s4D = 1.0 / ((4 * D) ** 0.5)
    return {
        'attn_in_w_t': _u(ks[0], (D, 3 * D), sD),
        'attn_in_b': _u(ks[1], (3 * D,), sD),
        'attn_out_w_t': _u(ks[2], (D, D), sD),
        'attn_out_b': _u(ks[3], (D,), sD),
        'norm1_g': 1.0 + 0.1 * jax.random.normal(ks[4], (D,), jnp.float32),
        'norm1_b': 0.1 * jax.random.normal(ks[5], (D,), jnp.float32),
        'norm2_g': 1.0 + 0.1 * jax.random.normal(ks[6], (D,), jnp.float32),
        'norm2_b': 0.1 * jax.random.normal(ks[7], (D,), jnp.float32),
        'norm3_g': 1.0 + 0.1 * jax.random.normal(ks[8], (D,), jnp.float32),
        'norm3_b': 0.1 * jax.random.normal(ks[9], (D,), jnp.float32),
        # GRU: input-proj weights of both directions concatenated (gate order r,z,n),
        # hidden weights/biases per direction with gates concatenated along columns.
        'gru_wih_cat_t': _u(ks[10], (D, 6 * H), sH),
        'gru_bih_cat': _u(ks[11], (6 * H,), sH),
        'gru_whh_f': _u(ks[12], (H, 3 * H), sH),
        'gru_whh_b': _u(ks[13], (H, 3 * H), sH),
        'gru_bhh_f': _u(ks[14], (1, 3 * H), sH),
        'gru_bhh_b': _u(ks[15], (1, 3 * H), sH),
        # linear2 split into forward/backward halves so the GRU concat is never stored.
        'lin2_w_f_t': _u(ks[16], (H, D), s4D),
        'lin2_w_b_t': _u(ks[17], (H, D), s4D),
        'lin2_b': _u(ks[18], (D,), s4D),
    }


def init_params(key, input_size, output_size, num_layers=1):
    c2 = input_size // 2
    ks = jax.random.split(key, 4 + num_layers)
    s_in = 1.0 / (input_size ** 0.5)
    s_out = 1.0 / (c2 ** 0.5)
    params = {
        'w_in': _u(ks[0], (input_size, c2), s_in),
        'b_in': _u(ks[1], (c2,), s_in),
        'a_in': jnp.array(0.25, jnp.float32),          # nn.PReLU default
        'a_out': jnp.array(0.25, jnp.float32),
        'w_out': _u(ks[2], (c2, output_size), s_out),
        'b_out': _u(ks[3], (output_size,), s_out),
        'k1': jnp.array(1.0, jnp.float32),
        'k2': jnp.array(1.0, jnp.float32),
        'layers': [],
    }
    for i in range(num_layers):
        lk = jax.random.split(ks[4 + i], 4)
        params['layers'].append({
            'row': init_encoder_layer(lk[0], c2),
            'col': init_encoder_layer(lk[1], c2),
            'row_gn_w': 1.0 + 0.1 * jax.random.normal(lk[2], (c2,), jnp.float32),
            'row_gn_b': jnp.zeros((c2,), jnp.float32),
            'col_gn_w': 1.0 + 0.1 * jax.random.normal(lk[3], (c2,), jnp.float32),
            'col_gn_b': jnp.zeros((c2,), jnp.float32),
        })
    return params


# ----------------------------------------------------------------------------
if __name__ == "__main__":
    key = jax.random.PRNGKey(0)
    kx, kp = jax.random.split(key)

    # (b, c, dim2, dim1) like the module; c2 = 64 keeps every in-kernel gate
    # slice 128-lane aligned (GRU hidden dim H = 128).
    batch, input_size, output_size = 2, 128, 64
    dim2, dim1 = 8, 8
    x = jax.random.normal(kx, (batch, input_size, dim2, dim1), jnp.float32)
    params = init_params(kp, input_size, output_size, num_layers=1)

    fwd = jax.jit(aia_transformer_forward)
    out_i, out_list = fwd(x, params)
    out_i = jax.block_until_ready(out_i)

    assert out_i.shape == (batch, output_size, dim2, dim1), out_i.shape
    assert len(out_list) == 1
    assert bool(jnp.isfinite(out_i).all())
    print("KERNEL_OK")
</pallas_src>

<mosaic_0001>
module attributes {stable_mosaic.version = 11 : i64} {
  func.func @kernel(%arg0: i32, %arg1: memref<128x64xf32, #tpu.memory_space<vmem>>, %arg2: memref<1x64xf32, #tpu.memory_space<vmem>>, %arg3: memref<1x64xf32, #tpu.memory_space<vmem>>, %arg4: memref<64x192xf32, #tpu.memory_space<vmem>>, %arg5: memref<1x192xf32, #tpu.memory_space<vmem>>, %arg6: memref<128x192xf32, #tpu.memory_space<vmem>>) attributes {dimension_semantics = [#tpu.dimension_semantics<parallel>], iteration_bounds = array<i64: 1>, scalar_prefetch = 0 : i64, scratch_operands = 0 : i64, tpu.core_type = #tpu.core_type<tc>, window_params = [{transform_indices = @transform_0, window_bounds = array<i64: 128, 64>}, {pipeline_mode = #tpu.pipeline_mode<synchronous>, transform_indices = @transform_1, window_bounds = array<i64: 1, 64>}, {pipeline_mode = #tpu.pipeline_mode<synchronous>, transform_indices = @transform_2, window_bounds = array<i64: 1, 64>}, {pipeline_mode = #tpu.pipeline_mode<synchronous>, transform_indices = @transform_3, window_bounds = array<i64: 64, 192>}, {pipeline_mode = #tpu.pipeline_mode<synchronous>, transform_indices = @transform_4, window_bounds = array<i64: 1, 192>}, {transform_indices = @transform_5, window_bounds = array<i64: 128, 192>}]} {
    %c0 = arith.constant 0 : index
    %c0_0 = arith.constant 0 : index
    %0 = vector.load %arg1[%c0, %c0_0] : memref<128x64xf32, #tpu.memory_space<vmem>>, vector<128x64xf32>
    %cst = arith.constant dense<0.000000e+00> : vector<128xf32>
    %1 = vector.multi_reduction <add>, %0, %cst [1] : vector<128x64xf32> to vector<128xf32>
    %2 = vector.shape_cast %1 : vector<128xf32> to vector<128x1xf32>
    %cst_1 = arith.constant 6.400000e+01 : f32
    %3 = vector.broadcast %cst_1 : f32 to vector<128x1xf32>
    %4 = arith.divf %2, %3 : vector<128x1xf32>
    %5 = vector.broadcast %4 : vector<128x1xf32> to vector<128x64xf32>
    %6 = arith.subf %0, %5 : vector<128x64xf32>
    %7 = arith.mulf %6, %6 : vector<128x64xf32>
    %cst_2 = arith.constant dense<0.000000e+00> : vector<128xf32>
    %8 = vector.multi_reduction <add>, %7, %cst_2 [1] : vector<128x64xf32> to vector<128xf32>
    %9 = vector.shape_cast %8 : vector<128xf32> to vector<128x1xf32>
    %cst_3 = arith.constant 6.400000e+01 : f32
    %10 = vector.broadcast %cst_3 : f32 to vector<128x1xf32>
    %11 = arith.divf %9, %10 : vector<128x1xf32>
    %12 = vector.broadcast %4 : vector<128x1xf32> to vector<128x64xf32>
    %13 = arith.subf %0, %12 : vector<128x64xf32>
    %cst_4 = arith.constant 9.99999974E-6 : f32
    %14 = vector.broadcast %cst_4 : f32 to vector<128x1xf32>
    %15 = arith.addf %11, %14 : vector<128x1xf32>
    %16 = math.rsqrt %15 : vector<128x1xf32>
    %17 = vector.broadcast %16 : vector<128x1xf32> to vector<128x64xf32>
    %18 = arith.mulf %13, %17 : vector<128x64xf32>
    %c0_5 = arith.constant 0 : index
    %c0_6 = arith.constant 0 : index
    %19 = vector.load %arg2[%c0_5, %c0_6] : memref<1x64xf32, #tpu.memory_space<vmem>>, vector<1x64xf32>
    %20 = vector.broadcast %19 : vector<1x64xf32> to vector<128x64xf32>
    %21 = arith.mulf %18, %20 : vector<128x64xf32>
    %c0_7 = arith.constant 0 : index
    %c0_8 = arith.constant 0 : index
    %22 = vector.load %arg3[%c0_7, %c0_8] : memref<1x64xf32, #tpu.memory_space<vmem>>, vector<1x64xf32>
    %23 = vector.broadcast %22 : vector<1x64xf32> to vector<128x64xf32>
    %24 = arith.addf %21, %23 : vector<128x64xf32>
    %c0_9 = arith.constant 0 : index
    %c0_10 = arith.constant 0 : index
    %25 = vector.load %arg4[%c0_9, %c0_10] : memref<64x192xf32, #tpu.memory_space<vmem>>, vector<64x192xf32>
    %cst_11 = arith.constant dense<0.000000e+00> : vector<128x192xf32>
    %26 = tpu.matmul %24, %25, %cst_11 {dimension_numbers = #tpu.dot_dimension_numbers<[1], [0], [0], [1], [0, 0, 1, 1], [], []>} : vector<128x64xf32>, vector<64x192xf32>, vector<128x192xf32> -> vector<128x192xf32>
    %c0_12 = arith.constant 0 : index
    %c0_13 = arith.constant 0 : index
    %27 = vector.load %arg5[%c0_12, %c0_13] : memref<1x192xf32, #tpu.memory_space<vmem>>, vector<1x192xf32>
    %28 = vector.broadcast %27 : vector<1x192xf32> to vector<128x192xf32>
    %29 = arith.addf %26, %28 : vector<128x192xf32>
    %c0_14 = arith.constant 0 : index
    %c0_15 = arith.constant 0 : index
    %30 = vector.load %arg6[%c0_14, %c0_15] : memref<128x192xf32, #tpu.memory_space<vmem>>, vector<128x192xf32>
    tpu.vector_store %arg6[%c0_14, %c0_15], %29 {strides = array<i32>} : memref<128x192xf32, #tpu.memory_space<vmem>>, vector<128x192xf32>,
    return
  }
  func.func @transform_0(%arg0: i32) -> (i32, i32) {
    %c0_i32 = arith.constant 0 : i32
    %c0_i32_0 = arith.constant 0 : i32
    return %arg0, %c0_i32 : i32, i32
  }
  func.func @transform_1(%arg0: i32) -> (i32, i32) {
    %c0_i32 = arith.constant 0 : i32
    %c0_i32_0 = arith.constant 0 : i32
    %c0_i32_1 = arith.constant 0 : i32
    return %c0_i32, %c0_i32_0 : i32, i32
  }
  func.func @transform_2(%arg0: i32) -> (i32, i32) {
    %c0_i32 = arith.constant 0 : i32
    %c0_i32_0 = arith.constant 0 : i32
    %c0_i32_1 = arith.constant 0 : i32
    return %c0_i32, %c0_i32_0 : i32, i32
  }
  func.func @transform_3(%arg0: i32) -> (i32, i32) {
    %c0_i32 = arith.constant 0 : i32
    %c0_i32_0 = arith.constant 0 : i32
    %c0_i32_1 = arith.constant 0 : i32
    return %c0_i32, %c0_i32_0 : i32, i32
  }
  func.func @transform_4(%arg0: i32) -> (i32, i32) {
    %c0_i32 = arith.constant 0 : i32
    %c0_i32_0 = arith.constant 0 : i32
    %c0_i32_1 = arith.constant 0 : i32
    return %c0_i32, %c0_i32_0 : i32, i32
  }
  func.func @transform_5(%arg0: i32) -> (i32, i32) {
    %c0_i32 = arith.constant 0 : i32
    %c0_i32_0 = arith.constant 0 : i32
    return %arg0, %c0_i32 : i32, i32
  }
}

module attributes {stable_mosaic.version = 11 : i64} {
  func.func @kernel(%arg0: i32, %arg1: memref<128x128xf32, #tpu.memory_space<vmem>>, %arg2: memref<128x64xf32, #tpu.memory_space<vmem>>, %arg3: memref<1x64xf32, #tpu.memory_space<vmem>>, %arg4: memref<1xf32, #tpu.memory_space<smem>>, %arg5: memref<128x64xf32, #tpu.memory_space<vmem>>) attributes {dimension_semantics = [#tpu.dimension_semantics<parallel>], iteration_bounds = array<i64: 1>, scalar_prefetch = 0 : i64, scratch_operands = 0 : i64, tpu.core_type = #tpu.core_type<tc>, window_params = [{transform_indices = @transform_0, window_bounds = array<i64: 128, 128>}, {pipeline_mode = #tpu.pipeline_mode<synchronous>, transform_indices = @transform_1, window_bounds = array<i64: 128, 64>}, {pipeline_mode = #tpu.pipeline_mode<synchronous>, transform_indices = @transform_2, window_bounds = array<i64: 1, 64>}, {transform_indices = @transform_3, window_bounds = array<i64: 1>}, {transform_indices = @transform_4, window_bounds = array<i64: 128, 64>}]} {
    %c0 = arith.constant 0 : index
    %c0_0 = arith.constant 0 : index
    %0 = vector.load %arg1[%c0, %c0_0] : memref<128x128xf32, #tpu.memory_space<vmem>>, vector<128x128xf32>
    %c0_1 = arith.constant 0 : index
    %c0_2 = arith.constant 0 : index
    %1 = vector.load %arg2[%c0_1, %c0_2] : memref<128x64xf32, #tpu.memory_space<vmem>>, vector<128x64xf32>
    %cst = arith.constant dense<0.000000e+00> : vector<128x64xf32>
    %2 = tpu.matmul %0, %1, %cst {dimension_numbers = #tpu.dot_dimension_numbers<[1], [0], [0], [1], [0, 0, 1, 1], [], []>} : vector<128x128xf32>, vector<128x64xf32>, vector<128x64xf32> -> vector<128x64xf32>
    %c0_3 = arith.constant 0 : index
    %c0_4 = arith.constant 0 : index
    %3 = vector.load %arg3[%c0_3, %c0_4] : memref<1x64xf32, #tpu.memory_space<vmem>>, vector<1x64xf32>
    %4 = vector.broadcast %3 : vector<1x64xf32> to vector<128x64xf32>
    %5 = arith.addf %2, %4 : vector<128x64xf32>
    %cst_5 = arith.constant 0.000000e+00 : f32
    %6 = vector.broadcast %cst_5 : f32 to vector<128x64xf32>
    %7 = arith.cmpf oge, %5, %6 : vector<128x64xf32>
    %c0_6 = arith.constant 0 : index
    %8 = memref.load %arg4[%c0_6] : memref<1xf32, #tpu.memory_space<smem>>
    %9 = vector.broadcast %8 : f32 to vector<128x64xf32>
    %10 = arith.mulf %9, %5 : vector<128x64xf32>
    %11 = arith.select %7, %5, %10 : vector<128x64xi1>, vector<128x64xf32>
    %c0_7 = arith.constant 0 : index
    %c0_8 = arith.constant 0 : index
    %12 = vector.load %arg5[%c0_7, %c0_8] : memref<128x64xf32, #tpu.memory_space<vmem>>, vector<128x64xf32>
    tpu.vector_store %arg5[%c0_7, %c0_8], %11 {strides = array<i32>} : memref<128x64xf32, #tpu.memory_space<vmem>>, vector<128x64xf32>,
    return
  }
  func.func @transform_0(%arg0: i32) -> (i32, i32) {
    %c0_i32 = arith.constant 0 : i32
    %c0_i32_0 = arith.constant 0 : i32
    return %arg0, %c0_i32 : i32, i32
  }
  func.func @transform_1(%arg0: i32) -> (i32, i32) {
    %c0_i32 = arith.constant 0 : i32
    %c0_i32_0 = arith.constant 0 : i32
    %c0_i32_1 = arith.constant 0 : i32
    return %c0_i32, %c0_i32_0 : i32, i32
  }
  func.func @transform_2(%arg0: i32) -> (i32, i32) {
    %c0_i32 = arith.constant 0 : i32
    %c0_i32_0 = arith.constant 0 : i32
    %c0_i32_1 = arith.constant 0 : i32
    return %c0_i32, %c0_i32_0 : i32, i32
  }
  func.func @transform_3(%arg0: i32) -> i32 {
    %c0_i32 = arith.constant 0 : i32
    %c0_i32_0 = arith.constant 0 : i32
    return %c0_i32 : i32
  }
  func.func @transform_4(%arg0: i32) -> (i32, i32) {
    %c0_i32 = arith.constant 0 : i32
    %c0_i32_0 = arith.constant 0 : i32
    return %arg0, %c0_i32 : i32, i32
  }
}

module attributes {stable_mosaic.version = 11 : i64} {
  func.func @kernel(%arg0: i32, %arg1: memref<64x8x16xf32, #tpu.memory_space<vmem>>, %arg2: memref<64x8x16xf32, #tpu.memory_space<vmem>>, %arg3: memref<64x8x16xf32, #tpu.memory_space<vmem>>, %arg4: memref<64x8x16xf32, #tpu.memory_space<vmem>>) attributes {dimension_semantics = [#tpu.dimension_semantics<parallel>], iteration_bounds = array<i64: 1>, scalar_prefetch = 0 : i64, scratch_operands = 0 : i64, tpu.core_type = #tpu.core_type<tc>, window_params = [{transform_indices = @transform_0, window_bounds = array<i64: 64, 8, 16>}, {transform_indices = @transform_1, window_bounds = array<i64: 64, 8, 16>}, {transform_indices = @transform_2, window_bounds = array<i64: 64, 8, 16>}, {transform_indices = @transform_3, window_bounds = array<i64: 64, 8, 16>}]} {
    %c0 = arith.constant 0 : index
    %c0_0 = arith.constant 0 : index
    %c0_1 = arith.constant 0 : index
    %0 = vector.load %arg1[%c0, %c0_0, %c0_1] : memref<64x8x16xf32, #tpu.memory_space<vmem>>, vector<64x8x16xf32>
    %cst = arith.constant 2.500000e-01 : f32
    %1 = vector.broadcast %cst : f32 to vector<64x8x16xf32>
    %2 = arith.mulf %0, %1 : vector<64x8x16xf32>
    %c0_2 = arith.constant 0 : index
    %c0_3 = arith.constant 0 : index
    %c0_4 = arith.constant 0 : index
    %3 = vector.load %arg2[%c0_2, %c0_3, %c0_4] : memref<64x8x16xf32, #tpu.memory_space<vmem>>, vector<64x8x16xf32>
    "tpu.trace_start"() <{level = 10 : i32, message = "bqd,bkd->bqk"}> : () -> ()
    %cst_5 = arith.constant dense<0.000000e+00> : vector<64x8x8xf32>
    %4 = tpu.matmul %2, %3, %cst_5 {dimension_numbers = #tpu.dot_dimension_numbers<[2], [2], [1], [1], [0, 0, 0, 1, 1, 1], [0], [0]>} : vector<64x8x16xf32>, vector<64x8x16xf32>, vector<64x8x8xf32> -> vector<64x8x8xf32>
    "tpu.trace_stop"() : () -> ()
    %cst_6 = arith.constant dense<0xFF800000> : vector<64x8xf32>
    %5 = vector.multi_reduction <maximumf>, %4, %cst_6 [2] : vector<64x8x8xf32> to vector<64x8xf32>
    %6 = vector.shape_cast %5 : vector<64x8xf32> to vector<64x8x1xf32>
    %7 = vector.broadcast %6 : vector<64x8x1xf32> to vector<64x8x8xf32>
    %8 = arith.subf %4, %7 : vector<64x8x8xf32>
    %9 = math.exp %8 : vector<64x8x8xf32>
    %cst_7 = arith.constant dense<0.000000e+00> : vector<64x8xf32>
    %10 = vector.multi_reduction <add>, %9, %cst_7 [2] : vector<64x8x8xf32> to vector<64x8xf32>
    %11 = vector.shape_cast %10 : vector<64x8xf32> to vector<64x8x1xf32>
    %12 = tpu.reciprocal %11 {approx = true} : vector<64x8x1xf32> -> vector<64x8x1xf32>
    %13 = vector.broadcast %12 : vector<64x8x1xf32> to vector<64x8x8xf32>
    %14 = arith.mulf %9, %13 : vector<64x8x8xf32>
    %c0_8 = arith.constant 0 : index
    %c0_9 = arith.constant 0 : index
    %c0_10 = arith.constant 0 : index
    %15 = vector.load %arg3[%c0_8, %c0_9, %c0_10] : memref<64x8x16xf32, #tpu.memory_space<vmem>>, vector<64x8x16xf32>
    "tpu.trace_start"() <{level = 10 : i32, message = "bqk,bkd->bqd"}> : () -> ()
    %cst_11 = arith.constant dense<0.000000e+00> : vector<64x8x16xf32>
    %16 = tpu.matmul %14, %15, %cst_11 {dimension_numbers = #tpu.dot_dimension_numbers<[2], [1], [1], [2], [0, 0, 0, 1, 1, 2], [0], [0]>} : vector<64x8x8xf32>, vector<64x8x16xf32>, vector<64x8x16xf32> -> vector<64x8x16xf32>
    "tpu.trace_stop"() : () -> ()
    %c0_12 = arith.constant 0 : index
    %c0_13 = arith.constant 0 : index
    %c0_14 = arith.constant 0 : index
    %17 = vector.load %arg4[%c0_12, %c0_13, %c0_14] : memref<64x8x16xf32, #tpu.memory_space<vmem>>, vector<64x8x16xf32>
    tpu.vector_store %arg4[%c0_12, %c0_13, %c0_14], %16 {strides = array<i32>} : memref<64x8x16xf32, #tpu.memory_space<vmem>>, vector<64x8x16xf32>,
    return
  }
  func.func @transform_0(%arg0: i32) -> (i32, i32, i32) {
    %c0_i32 = arith.constant 0 : i32
    %c0_i32_0 = arith.constant 0 : i32
    %c0_i32_1 = arith.constant 0 : i32
    return %arg0, %c0_i32, %c0_i32_0 : i32, i32, i32
  }
  func.func @transform_1(%arg0: i32) -> (i32, i32, i32) {
    %c0_i32 = arith.constant 0 : i32
    %c0_i32_0 = arith.constant 0 : i32
    %c0_i32_1 = arith.constant 0 : i32
    return %arg0, %c0_i32, %c0_i32_0 : i32, i32, i32
  }
  func.func @transform_2(%arg0: i32) -> (i32, i32, i32) {
    %c0_i32 = arith.constant 0 : i32
    %c0_i32_0 = arith.constant 0 : i32
    %c0_i32_1 = arith.constant 0 : i32
    return %arg0, %c0_i32, %c0_i32_0 : i32, i32, i32
  }
  func.func @transform_3(%arg0: i32) -> (i32, i32, i32) {
    %c0_i32 = arith.constant 0 : i32
    %c0_i32_0 = arith.constant 0 : i32
    %c0_i32_1 = arith.constant 0 : i32
    return %arg0, %c0_i32, %c0_i32_0 : i32, i32, i32
  }
}

module attributes {stable_mosaic.version = 11 : i64} {
  func.func @kernel(%arg0: i32, %arg1: memref<128x64xf32, #tpu.memory_space<vmem>>, %arg2: memref<64x64xf32, #tpu.memory_space<vmem>>, %arg3: memref<1x64xf32, #tpu.memory_space<vmem>>, %arg4: memref<128x64xf32, #tpu.memory_space<vmem>>, %arg5: memref<1x64xf32, #tpu.memory_space<vmem>>, %arg6: memref<1x64xf32, #tpu.memory_space<vmem>>, %arg7: memref<128x64xf32, #tpu.memory_space<vmem>>) attributes {dimension_semantics = [#tpu.dimension_semantics<parallel>], iteration_bounds = array<i64: 1>, scalar_prefetch = 0 : i64, scratch_operands = 0 : i64, tpu.core_type = #tpu.core_type<tc>, window_params = [{transform_indices = @transform_0, window_bounds = array<i64: 128, 64>}, {pipeline_mode = #tpu.pipeline_mode<synchronous>, transform_indices = @transform_1, window_bounds = array<i64: 64, 64>}, {pipeline_mode = #tpu.pipeline_mode<synchronous>, transform_indices = @transform_2, window_bounds = array<i64: 1, 64>}, {transform_indices = @transform_3, window_bounds = array<i64: 128, 64>}, {pipeline_mode = #tpu.pipeline_mode<synchronous>, transform_indices = @transform_4, window_bounds = array<i64: 1, 64>}, {pipeline_mode = #tpu.pipeline_mode<synchronous>, transform_indices = @transform_5, window_bounds = array<i64: 1, 64>}, {transform_indices = @transform_6, window_bounds = array<i64: 128, 64>}]} {
    %c0 = arith.constant 0 : index
    %c0_0 = arith.constant 0 : index
    %0 = vector.load %arg1[%c0, %c0_0] : memref<128x64xf32, #tpu.memory_space<vmem>>, vector<128x64xf32>
    %c0_1 = arith.constant 0 : index
    %c0_2 = arith.constant 0 : index
    %1 = vector.load %arg2[%c0_1, %c0_2] : memref<64x64xf32, #tpu.memory_space<vmem>>, vector<64x64xf32>
    %cst = arith.constant dense<0.000000e+00> : vector<128x64xf32>
    %2 = tpu.matmul %0, %1, %cst {dimension_numbers = #tpu.dot_dimension_numbers<[1], [0], [0], [1], [0, 0, 1, 1], [], []>} : vector<128x64xf32>, vector<64x64xf32>, vector<128x64xf32> -> vector<128x64xf32>
    %c0_3 = arith.constant 0 : index
    %c0_4 = arith.constant 0 : index
    %3 = vector.load %arg3[%c0_3, %c0_4] : memref<1x64xf32, #tpu.memory_space<vmem>>, vector<1x64xf32>
    %4 = vector.broadcast %3 : vector<1x64xf32> to vector<128x64xf32>
    %5 = arith.addf %2, %4 : vector<128x64xf32>
    %c0_5 = arith.constant 0 : index
    %c0_6 = arith.constant 0 : index
    %6 = vector.load %arg4[%c0_5, %c0_6] : memref<128x64xf32, #tpu.memory_space<vmem>>, vector<128x64xf32>
    %7 = arith.addf %5, %6 : vector<128x64xf32>
    %cst_7 = arith.constant dense<0.000000e+00> : vector<128xf32>
    %8 = vector.multi_reduction <add>, %7, %cst_7 [1] : vector<128x64xf32> to vector<128xf32>
    %9 = vector.shape_cast %8 : vector<128xf32> to vector<128x1xf32>
    %cst_8 = arith.constant 6.400000e+01 : f32
    %10 = vector.broadcast %cst_8 : f32 to vector<128x1xf32>
    %11 = arith.divf %9, %10 : vector<128x1xf32>
    %12 = vector.broadcast %11 : vector<128x1xf32> to vector<128x64xf32>
    %13 = arith.subf %7, %12 : vector<128x64xf32>
    %14 = arith.mulf %13, %13 : vector<128x64xf32>
    %cst_9 = arith.constant dense<0.000000e+00> : vector<128xf32>
    %15 = vector.multi_reduction <add>, %14, %cst_9 [1] : vector<128x64xf32> to vector<128xf32>
    %16 = vector.shape_cast %15 : vector<128xf32> to vector<128x1xf32>
    %cst_10 = arith.constant 6.400000e+01 : f32
    %17 = vector.broadcast %cst_10 : f32 to vector<128x1xf32>
    %18 = arith.divf %16, %17 : vector<128x1xf32>
    %19 = vector.broadcast %11 : vector<128x1xf32> to vector<128x64xf32>
    %20 = arith.subf %7, %19 : vector<128x64xf32>
    %cst_11 = arith.constant 9.99999974E-6 : f32
    %21 = vector.broadcast %cst_11 : f32 to vector<128x1xf32>
    %22 = arith.addf %18, %21 : vector<128x1xf32>
    %23 = math.rsqrt %22 : vector<128x1xf32>
    %24 = vector.broadcast %23 : vector<128x1xf32> to vector<128x64xf32>
    %25 = arith.mulf %20, %24 : vector<128x64xf32>
    %c0_12 = arith.constant 0 : index
    %c0_13 = arith.constant 0 : index
    %26 = vector.load %arg5[%c0_12, %c0_13] : memref<1x64xf32, #tpu.memory_space<vmem>>, vector<1x64xf32>
    %27 = vector.broadcast %26 : vector<1x64xf32> to vector<128x64xf32>
    %28 = arith.mulf %25, %27 : vector<128x64xf32>
    %c0_14 = arith.constant 0 : index
    %c0_15 = arith.constant 0 : index
    %29 = vector.load %arg6[%c0_14, %c0_15] : memref<1x64xf32, #tpu.memory_space<vmem>>, vector<1x64xf32>
    %30 = vector.broadcast %29 : vector<1x64xf32> to vector<128x64xf32>
    %31 = arith.addf %28, %30 : vector<128x64xf32>
    %c0_16 = arith.constant 0 : index
    %c0_17 = arith.constant 0 : index
    %32 = vector.load %arg7[%c0_16, %c0_17] : memref<128x64xf32, #tpu.memory_space<vmem>>, vector<128x64xf32>
    tpu.vector_store %arg7[%c0_16, %c0_17], %31 {strides = array<i32>} : memref<128x64xf32, #tpu.memory_space<vmem>>, vector<128x64xf32>,
    return
  }
  func.func @transform_0(%arg0: i32) -> (i32, i32) {
    %c0_i32 = arith.constant 0 : i32
    %c0_i32_0 = arith.constant 0 : i32
    return %arg0, %c0_i32 : i32, i32
  }
  func.func @transform_1(%arg0: i32) -> (i32, i32) {
    %c0_i32 = arith.constant 0 : i32
    %c0_i32_0 = arith.constant 0 : i32
    %c0_i32_1 = arith.constant 0 : i32
    return %c0_i32, %c0_i32_0 : i32, i32
  }
  func.func @transform_2(%arg0: i32) -> (i32, i32) {
    %c0_i32 = arith.constant 0 : i32
    %c0_i32_0 = arith.constant 0 : i32
    %c0_i32_1 = arith.constant 0 : i32
    return %c0_i32, %c0_i32_0 : i32, i32
  }
  func.func @transform_3(%arg0: i32) -> (i32, i32) {
    %c0_i32 = arith.constant 0 : i32
    %c0_i32_0 = arith.constant 0 : i32
    return %arg0, %c0_i32 : i32, i32
  }
  func.func @transform_4(%arg0: i32) -> (i32, i32) {
    %c0_i32 = arith.constant 0 : i32
    %c0_i32_0 = arith.constant 0 : i32
    %c0_i32_1 = arith.constant 0 : i32
    return %c0_i32, %c0_i32_0 : i32, i32
  }
  func.func @transform_5(%arg0: i32) -> (i32, i32) {
    %c0_i32 = arith.constant 0 : i32
    %c0_i32_0 = arith.constant 0 : i32
    %c0_i32_1 = arith.constant 0 : i32
    return %c0_i32, %c0_i32_0 : i32, i32
  }
  func.func @transform_6(%arg0: i32) -> (i32, i32) {
    %c0_i32 = arith.constant 0 : i32
    %c0_i32_0 = arith.constant 0 : i32
    return %arg0, %c0_i32 : i32, i32
  }
}

module attributes {stable_mosaic.version = 11 : i64} {
  func.func @kernel(%arg0: i32, %arg1: memref<128x64xf32, #tpu.memory_space<vmem>>, %arg2: memref<64x768xf32, #tpu.memory_space<vmem>>, %arg3: memref<1x768xf32, #tpu.memory_space<vmem>>, %arg4: memref<128x768xf32, #tpu.memory_space<vmem>>) attributes {dimension_semantics = [#tpu.dimension_semantics<parallel>], iteration_bounds = array<i64: 1>, scalar_prefetch = 0 : i64, scratch_operands = 0 : i64, tpu.core_type = #tpu.core_type<tc>, window_params = [{transform_indices = @transform_0, window_bounds = array<i64: 128, 64>}, {pipeline_mode = #tpu.pipeline_mode<synchronous>, transform_indices = @transform_1, window_bounds = array<i64: 64, 768>}, {pipeline_mode = #tpu.pipeline_mode<synchronous>, transform_indices = @transform_2, window_bounds = array<i64: 1, 768>}, {transform_indices = @transform_3, window_bounds = array<i64: 128, 768>}]} {
    %c0 = arith.constant 0 : index
    %c0_0 = arith.constant 0 : index
    %0 = vector.load %arg1[%c0, %c0_0] : memref<128x64xf32, #tpu.memory_space<vmem>>, vector<128x64xf32>
    %c0_1 = arith.constant 0 : index
    %c0_2 = arith.constant 0 : index
    %1 = vector.load %arg2[%c0_1, %c0_2] : memref<64x768xf32, #tpu.memory_space<vmem>>, vector<64x768xf32>
    %cst = arith.constant dense<0.000000e+00> : vector<128x768xf32>
    %2 = tpu.matmul %0, %1, %cst {dimension_numbers = #tpu.dot_dimension_numbers<[1], [0], [0], [1], [0, 0, 1, 1], [], []>} : vector<128x64xf32>, vector<64x768xf32>, vector<128x768xf32> -> vector<128x768xf32>
    %c0_3 = arith.constant 0 : index
    %c0_4 = arith.constant 0 : index
    %3 = vector.load %arg3[%c0_3, %c0_4] : memref<1x768xf32, #tpu.memory_space<vmem>>, vector<1x768xf32>
    %4 = vector.broadcast %3 : vector<1x768xf32> to vector<128x768xf32>
    %5 = arith.addf %2, %4 : vector<128x768xf32>
    %c0_5 = arith.constant 0 : index
    %c0_6 = arith.constant 0 : index
    %6 = vector.load %arg4[%c0_5, %c0_6] : memref<128x768xf32, #tpu.memory_space<vmem>>, vector<128x768xf32>
    tpu.vector_store %arg4[%c0_5, %c0_6], %5 {strides = array<i32>} : memref<128x768xf32, #tpu.memory_space<vmem>>, vector<128x768xf32>,
    return
  }
  func.func @transform_0(%arg0: i32) -> (i32, i32) {
    %c0_i32 = arith.constant 0 : i32
    %c0_i32_0 = arith.constant 0 : i32
    return %arg0, %c0_i32 : i32, i32
  }
  func.func @transform_1(%arg0: i32) -> (i32, i32) {
    %c0_i32 = arith.constant 0 : i32
    %c0_i32_0 = arith.constant 0 : i32
    %c0_i32_1 = arith.constant 0 : i32
    return %c0_i32, %c0_i32_0 : i32, i32
  }
  func.func @transform_2(%arg0: i32) -> (i32, i32) {
    %c0_i32 = arith.constant 0 : i32
    %c0_i32_0 = arith.constant 0 : i32
    %c0_i32_1 = arith.constant 0 : i32
    return %c0_i32, %c0_i32_0 : i32, i32
  }
  func.func @transform_3(%arg0: i32) -> (i32, i32) {
    %c0_i32 = arith.constant 0 : i32
    %c0_i32_0 = arith.constant 0 : i32
    return %arg0, %c0_i32 : i32, i32
  }
}

module attributes {stable_mosaic.version = 11 : i64} {
  func.func @kernel(%arg0: memref<8x6x16x128xf32, #tpu.memory_space<vmem>>, %arg1: memref<128x384xf32, #tpu.memory_space<vmem>>, %arg2: memref<128x384xf32, #tpu.memory_space<vmem>>, %arg3: memref<1x384xf32, #tpu.memory_space<vmem>>, %arg4: memref<1x384xf32, #tpu.memory_space<vmem>>, %arg5: memref<8x16x128xf32, #tpu.memory_space<vmem>>, %arg6: memref<8x16x128xf32, #tpu.memory_space<vmem>>) attributes {dimension_semantics = [], scalar_prefetch = 0 : i64, scratch_operands = 0 : i64, tpu.core_type = #tpu.core_type<tc>} {
    %cst = arith.constant 0.000000e+00 : f32
    %0 = vector.broadcast %cst : f32 to vector<16x128xf32>
    %cst_0 = arith.constant 0.000000e+00 : f32
    %1 = vector.broadcast %cst_0 : f32 to vector<16x128xf32>
    %c0_i32 = arith.constant 0 : i32
    %c8_i32 = arith.constant 8 : i32
    %2 = arith.addi %c0_i32, %c8_i32 : i32
    %c1_i32 = arith.constant 1 : i32
    %3:2 = scf.for %arg7 = %c0_i32 to %2 step %c1_i32 iter_args(%arg8 = %0, %arg9 = %1) -> (vector<16x128xf32>, vector<16x128xf32>)  : i32 {
      %c7_i32 = arith.constant 7 : i32
      %4 = arith.subi %c7_i32, %arg7 : i32
      %5 = arith.index_cast %arg7 : i32 to index
      %c0 = arith.constant 0 : index
      %c0_2 = arith.constant 0 : index
      %c0_3 = arith.constant 0 : index
      %6 = vector.load %arg0[%5, %c0, %c0_2, %c0_3] : memref<8x6x16x128xf32, #tpu.memory_space<vmem>>, vector<1x6x16x128xf32>
      %7 = vector.shape_cast %6 : vector<1x6x16x128xf32> to vector<6x16x128xf32>
      %8 = arith.index_cast %4 : i32 to index
      %c0_4 = arith.constant 0 : index
      %c0_5 = arith.constant 0 : index
      %c0_6 = arith.constant 0 : index
      %9 = vector.load %arg0[%8, %c0_4, %c0_5, %c0_6] : memref<8x6x16x128xf32, #tpu.memory_space<vmem>>, vector<1x6x16x128xf32>
      %10 = vector.shape_cast %9 : vector<1x6x16x128xf32> to vector<6x16x128xf32>
      %c0_7 = arith.constant 0 : index
      %c0_8 = arith.constant 0 : index
      %11 = vector.load %arg1[%c0_7, %c0_8] : memref<128x384xf32, #tpu.memory_space<vmem>>, vector<128x384xf32>
      %cst_9 = arith.constant dense<0.000000e+00> : vector<16x384xf32>
      %12 = tpu.matmul %arg8, %11, %cst_9 {dimension_numbers = #tpu.dot_dimension_numbers<[1], [0], [0], [1], [0, 0, 1, 1], [], []>} : vector<16x128xf32>, vector<128x384xf32>, vector<16x384xf32> -> vector<16x384xf32>
      %c0_10 = arith.constant 0 : index
      %c0_11 = arith.constant 0 : index
      %13 = vector.load %arg3[%c0_10, %c0_11] : memref<1x384xf32, #tpu.memory_space<vmem>>, vector<1x384xf32>
      %14 = vector.broadcast %13 : vector<1x384xf32> to vector<16x384xf32>
      %15 = arith.addf %12, %14 : vector<16x384xf32>
      %c0_12 = arith.constant 0 : index
      %c0_13 = arith.constant 0 : index
      %16 = vector.load %arg2[%c0_12, %c0_13] : memref<128x384xf32, #tpu.memory_space<vmem>>, vector<128x384xf32>
      %cst_14 = arith.constant dense<0.000000e+00> : vector<16x384xf32>
      %17 = tpu.matmul %arg9, %16, %cst_14 {dimension_numbers = #tpu.dot_dimension_numbers<[1], [0], [0], [1], [0, 0, 1, 1], [], []>} : vector<16x128xf32>, vector<128x384xf32>, vector<16x384xf32> -> vector<16x384xf32>
      %c0_15 = arith.constant 0 : index
      %c0_16 = arith.constant 0 : index
      %18 = vector.load %arg4[%c0_15, %c0_16] : memref<1x384xf32, #tpu.memory_space<vmem>>, vector<1x384xf32>
      %19 = vector.broadcast %18 : vector<1x384xf32> to vector<16x384xf32>
      %20 = arith.addf %17, %19 : vector<16x384xf32>
      %21 = vector.extract_strided_slice %7 {offsets = [0, 0, 0], sizes = [1, 16, 128], strides = [1, 1, 1]} : vector<6x16x128xf32> to vector<1x16x128xf32>
      %22 = vector.shape_cast %21 : vector<1x16x128xf32> to vector<16x128xf32>
      %23 = vector.extract_strided_slice %15 {offsets = [0, 0], sizes = [16, 128], strides = [1, 1]} : vector<16x384xf32> to vector<16x128xf32>
      %24 = arith.addf %22, %23 : vector<16x128xf32>
      %25 = arith.negf %24 : vector<16x128xf32>
      %26 = math.exp %25 : vector<16x128xf32>
      %cst_17 = arith.constant 1.000000e+00 : f32
      %27 = vector.broadcast %cst_17 : f32 to vector<16x128xf32>
      %28 = arith.addf %27, %26 : vector<16x128xf32>
      %29 = arith.divf %27, %28 : vector<16x128xf32>
      %30 = vector.extract_strided_slice %7 {offsets = [1, 0, 0], sizes = [1, 16, 128], strides = [1, 1, 1]} : vector<6x16x128xf32> to vector<1x16x128xf32>
      %31 = vector.shape_cast %30 : vector<1x16x128xf32> to vector<16x128xf32>
      %32 = vector.extract_strided_slice %15 {offsets = [0, 128], sizes = [16, 128], strides = [1, 1]} : vector<16x384xf32> to vector<16x128xf32>
      %33 = arith.addf %31, %32 : vector<16x128xf32>
      %34 = arith.negf %33 : vector<16x128xf32>
      %35 = math.exp %34 : vector<16x128xf32>
      %cst_18 = arith.constant 1.000000e+00 : f32
      %36 = vector.broadcast %cst_18 : f32 to vector<16x128xf32>
      %37 = arith.addf %36, %35 : vector<16x128xf32>
      %38 = arith.divf %36, %37 : vector<16x128xf32>
      %39 = vector.extract_strided_slice %7 {offsets = [2, 0, 0], sizes = [1, 16, 128], strides = [1, 1, 1]} : vector<6x16x128xf32> to vector<1x16x128xf32>
      %40 = vector.shape_cast %39 : vector<1x16x128xf32> to vector<16x128xf32>
      %41 = vector.extract_strided_slice %15 {offsets = [0, 256], sizes = [16, 128], strides = [1, 1]} : vector<16x384xf32> to vector<16x128xf32>
      %42 = arith.mulf %29, %41 : vector<16x128xf32>
      %43 = arith.addf %40, %42 : vector<16x128xf32>
      %44 = math.tanh %43 : vector<16x128xf32>
      %45 = vector.extract_strided_slice %10 {offsets = [3, 0, 0], sizes = [1, 16, 128], strides = [1, 1, 1]} : vector<6x16x128xf32> to vector<1x16x128xf32>
      %46 = vector.shape_cast %45 : vector<1x16x128xf32> to vector<16x128xf32>
      %47 = vector.extract_strided_slice %20 {offsets = [0, 0], sizes = [16, 128], strides = [1, 1]} : vector<16x384xf32> to vector<16x128xf32>
      %48 = arith.addf %46, %47 : vector<16x128xf32>
      %49 = arith.negf %48 : vector<16x128xf32>
      %50 = math.exp %49 : vector<16x128xf32>
      %cst_19 = arith.constant 1.000000e+00 : f32
      %51 = vector.broadcast %cst_19 : f32 to vector<16x128xf32>
      %52 = arith.addf %51, %50 : vector<16x128xf32>
      %53 = arith.divf %51, %52 : vector<16x128xf32>
      %54 = vector.extract_strided_slice %10 {offsets = [4, 0, 0], sizes = [1, 16, 128], strides = [1, 1, 1]} : vector<6x16x128xf32> to vector<1x16x128xf32>
      %55 = vector.shape_cast %54 : vector<1x16x128xf32> to vector<16x128xf32>
      %56 = vector.extract_strided_slice %20 {offsets = [0, 128], sizes = [16, 128], strides = [1, 1]} : vector<16x384xf32> to vector<16x128xf32>
      %57 = arith.addf %55, %56 : vector<16x128xf32>
      %58 = arith.negf %57 : vector<16x128xf32>
      %59 = math.exp %58 : vector<16x128xf32>
      %cst_20 = arith.constant 1.000000e+00 : f32
      %60 = vector.broadcast %cst_20 : f32 to vector<16x128xf32>
      %61 = arith.addf %60, %59 : vector<16x128xf32>
      %62 = arith.divf %60, %61 : vector<16x128xf32>
      %63 = vector.extract_strided_slice %10 {offsets = [5, 0, 0], sizes = [1, 16, 128], strides = [1, 1, 1]} : vector<6x16x128xf32> to vector<1x16x128xf32>
      %64 = vector.shape_cast %63 : vector<1x16x128xf32> to vector<16x128xf32>
      %65 = vector.extract_strided_slice %20 {offsets = [0, 256], sizes = [16, 128], strides = [1, 1]} : vector<16x384xf32> to vector<16x128xf32>
      %66 = arith.mulf %53, %65 : vector<16x128xf32>
      %67 = arith.addf %64, %66 : vector<16x128xf32>
      %68 = math.tanh %67 : vector<16x128xf32>
      %cst_21 = arith.constant 1.000000e+00 : f32
      %69 = vector.broadcast %cst_21 : f32 to vector<16x128xf32>
      %70 = arith.subf %69, %38 : vector<16x128xf32>
      %71 = arith.mulf %70, %44 : vector<16x128xf32>
      %72 = arith.mulf %38, %arg8 : vector<16x128xf32>
      %73 = arith.addf %71, %72 : vector<16x128xf32>
      %cst_22 = arith.constant 1.000000e+00 : f32
      %74 = vector.broadcast %cst_22 : f32 to vector<16x128xf32>
      %75 = arith.subf %74, %62 : vector<16x128xf32>
      %76 = arith.mulf %75, %68 : vector<16x128xf32>
      %77 = arith.mulf %62, %arg9 : vector<16x128xf32>
      %78 = arith.addf %76, %77 : vector<16x128xf32>
      %79 = arith.index_cast %arg7 : i32 to index
      %c0_23 = arith.constant 0 : index
      %c0_24 = arith.constant 0 : index
      %80 = vector.load %arg5[%79, %c0_23, %c0_24] : memref<8x16x128xf32, #tpu.memory_space<vmem>>, vector<1x16x128xf32>
      %81 = vector.shape_cast %80 : vector<1x16x128xf32> to vector<16x128xf32>
      %82 = vector.shape_cast %73 : vector<16x128xf32> to vector<1x16x128xf32>
      tpu.vector_store %arg5[%79, %c0_23, %c0_24], %82 {strides = array<i32>} : memref<8x16x128xf32, #tpu.memory_space<vmem>>, vector<1x16x128xf32>,
      %83 = arith.index_cast %4 : i32 to index
      %c0_25 = arith.constant 0 : index
      %c0_26 = arith.constant 0 : index
      %84 = vector.load %arg6[%83, %c0_25, %c0_26] : memref<8x16x128xf32, #tpu.memory_space<vmem>>, vector<1x16x128xf32>
      %85 = vector.shape_cast %84 : vector<1x16x128xf32> to vector<16x128xf32>
      %86 = vector.shape_cast %78 : vector<16x128xf32> to vector<1x16x128xf32>
      tpu.vector_store %arg6[%83, %c0_25, %c0_26], %86 {strides = array<i32>} : memref<8x16x128xf32, #tpu.memory_space<vmem>>, vector<1x16x128xf32>,
      scf.yield %73, %78 : vector<16x128xf32>, vector<16x128xf32>
    }
    %c8_i32_1 = arith.constant 8 : i32
    return
  }
}

module attributes {stable_mosaic.version = 11 : i64} {
  func.func @kernel(%arg0: i32, %arg1: memref<128x128xf32, #tpu.memory_space<vmem>>, %arg2: memref<128x128xf32, #tpu.memory_space<vmem>>, %arg3: memref<128x64xf32, #tpu.memory_space<vmem>>, %arg4: memref<128x64xf32, #tpu.memory_space<vmem>>, %arg5: memref<1x64xf32, #tpu.memory_space<vmem>>, %arg6: memref<128x64xf32, #tpu.memory_space<vmem>>, %arg7: memref<1x64xf32, #tpu.memory_space<vmem>>, %arg8: memref<1x64xf32, #tpu.memory_space<vmem>>, %arg9: memref<128x64xf32, #tpu.memory_space<vmem>>) attributes {dimension_semantics = [#tpu.dimension_semantics<parallel>], iteration_bounds = array<i64: 1>, scalar_prefetch = 0 : i64, scratch_operands = 0 : i64, tpu.core_type = #tpu.core_type<tc>, window_params = [{transform_indices = @transform_0, window_bounds = array<i64: 128, 128>}, {transform_indices = @transform_1, window_bounds = array<i64: 128, 128>}, {pipeline_mode = #tpu.pipeline_mode<synchronous>, transform_indices = @transform_2, window_bounds = array<i64: 128, 64>}, {pipeline_mode = #tpu.pipeline_mode<synchronous>, transform_indices = @transform_3, window_bounds = array<i64: 128, 64>}, {pipeline_mode = #tpu.pipeline_mode<synchronous>, transform_indices = @transform_4, window_bounds = array<i64: 1, 64>}, {transform_indices = @transform_5, window_bounds = array<i64: 128, 64>}, {pipeline_mode = #tpu.pipeline_mode<synchronous>, transform_indices = @transform_6, window_bounds = array<i64: 1, 64>}, {pipeline_mode = #tpu.pipeline_mode<synchronous>, transform_indices = @transform_7, window_bounds = array<i64: 1, 64>}, {transform_indices = @transform_8, window_bounds = array<i64: 128, 64>}]} {
    %c0 = arith.constant 0 : index
    %c0_0 = arith.constant 0 : index
    %0 = vector.load %arg1[%c0, %c0_0] : memref<128x128xf32, #tpu.memory_space<vmem>>, vector<128x128xf32>
    %cst = arith.constant 0.000000e+00 : f32
    %1 = vector.broadcast %cst : f32 to vector<128x128xf32>
    %2 = arith.maximumf %0, %1 : vector<128x128xf32>
    %c0_1 = arith.constant 0 : index
    %c0_2 = arith.constant 0 : index
    %3 = vector.load %arg3[%c0_1, %c0_2] : memref<128x64xf32, #tpu.memory_space<vmem>>, vector<128x64xf32>
    %cst_3 = arith.constant dense<0.000000e+00> : vector<128x64xf32>
    %4 = tpu.matmul %2, %3, %cst_3 {dimension_numbers = #tpu.dot_dimension_numbers<[1], [0], [0], [1], [0, 0, 1, 1], [], []>} : vector<128x128xf32>, vector<128x64xf32>, vector<128x64xf32> -> vector<128x64xf32>
    %c0_4 = arith.constant 0 : index
    %c0_5 = arith.constant 0 : index
    %5 = vector.load %arg2[%c0_4, %c0_5] : memref<128x128xf32, #tpu.memory_space<vmem>>, vector<128x128xf32>
    %cst_6 = arith.constant 0.000000e+00 : f32
    %6 = vector.broadcast %cst_6 : f32 to vector<128x128xf32>
    %7 = arith.maximumf %5, %6 : vector<128x128xf32>
    %c0_7 = arith.constant 0 : index
    %c0_8 = arith.constant 0 : index
    %8 = vector.load %arg4[%c0_7, %c0_8] : memref<128x64xf32, #tpu.memory_space<vmem>>, vector<128x64xf32>
    %cst_9 = arith.constant dense<0.000000e+00> : vector<128x64xf32>
    %9 = tpu.matmul %7, %8, %cst_9 {dimension_numbers = #tpu.dot_dimension_numbers<[1], [0], [0], [1], [0, 0, 1, 1], [], []>} : vector<128x128xf32>, vector<128x64xf32>, vector<128x64xf32> -> vector<128x64xf32>
    %10 = arith.addf %4, %9 : vector<128x64xf32>
    %c0_10 = arith.constant 0 : index
    %c0_11 = arith.constant 0 : index
    %11 = vector.load %arg5[%c0_10, %c0_11] : memref<1x64xf32, #tpu.memory_space<vmem>>, vector<1x64xf32>
    %12 = vector.broadcast %11 : vector<1x64xf32> to vector<128x64xf32>
    %13 = arith.addf %10, %12 : vector<128x64xf32>
    %c0_12 = arith.constant 0 : index
    %c0_13 = arith.constant 0 : index
    %14 = vector.load %arg6[%c0_12, %c0_13] : memref<128x64xf32, #tpu.memory_space<vmem>>, vector<128x64xf32>
    %15 = arith.addf %13, %14 : vector<128x64xf32>
    %cst_14 = arith.constant dense<0.000000e+00> : vector<128xf32>
    %16 = vector.multi_reduction <add>, %15, %cst_14 [1] : vector<128x64xf32> to vector<128xf32>
    %17 = vector.shape_cast %16 : vector<128xf32> to vector<128x1xf32>
    %cst_15 = arith.constant 6.400000e+01 : f32
    %18 = vector.broadcast %cst_15 : f32 to vector<128x1xf32>
    %19 = arith.divf %17, %18 : vector<128x1xf32>
    %20 = vector.broadcast %19 : vector<128x1xf32> to vector<128x64xf32>
    %21 = arith.subf %15, %20 : vector<128x64xf32>
    %22 = arith.mulf %21, %21 : vector<128x64xf32>
    %cst_16 = arith.constant dense<0.000000e+00> : vector<128xf32>
    %23 = vector.multi_reduction <add>, %22, %cst_16 [1] : vector<128x64xf32> to vector<128xf32>
    %24 = vector.shape_cast %23 : vector<128xf32> to vector<128x1xf32>
    %cst_17 = arith.constant 6.400000e+01 : f32
    %25 = vector.broadcast %cst_17 : f32 to vector<128x1xf32>
    %26 = arith.divf %24, %25 : vector<128x1xf32>
    %27 = vector.broadcast %19 : vector<128x1xf32> to vector<128x64xf32>
    %28 = arith.subf %15, %27 : vector<128x64xf32>
    %cst_18 = arith.constant 9.99999974E-6 : f32
    %29 = vector.broadcast %cst_18 : f32 to vector<128x1xf32>
    %30 = arith.addf %26, %29 : vector<128x1xf32>
    %31 = math.rsqrt %30 : vector<128x1xf32>
    %32 = vector.broadcast %31 : vector<128x1xf32> to vector<128x64xf32>
    %33 = arith.mulf %28, %32 : vector<128x64xf32>
    %c0_19 = arith.constant 0 : index
    %c0_20 = arith.constant 0 : index
    %34 = vector.load %arg7[%c0_19, %c0_20] : memref<1x64xf32, #tpu.memory_space<vmem>>, vector<1x64xf32>
    %35 = vector.broadcast %34 : vector<1x64xf32> to vector<128x64xf32>
    %36 = arith.mulf %33, %35 : vector<128x64xf32>
    %c0_21 = arith.constant 0 : index
    %c0_22 = arith.constant 0 : index
    %37 = vector.load %arg8[%c0_21, %c0_22] : memref<1x64xf32, #tpu.memory_space<vmem>>, vector<1x64xf32>
    %38 = vector.broadcast %37 : vector<1x64xf32> to vector<128x64xf32>
    %39 = arith.addf %36, %38 : vector<128x64xf32>
    %c0_23 = arith.constant 0 : index
    %c0_24 = arith.constant 0 : index
    %40 = vector.load %arg9[%c0_23, %c0_24] : memref<128x64xf32, #tpu.memory_space<vmem>>, vector<128x64xf32>
    tpu.vector_store %arg9[%c0_23, %c0_24], %39 {strides = array<i32>} : memref<128x64xf32, #tpu.memory_space<vmem>>, vector<128x64xf32>,
    return
  }
  func.func @transform_0(%arg0: i32) -> (i32, i32) {
    %c0_i32 = arith.constant 0 : i32
    %c0_i32_0 = arith.constant 0 : i32
    return %arg0, %c0_i32 : i32, i32
  }
  func.func @transform_1(%arg0: i32) -> (i32, i32) {
    %c0_i32 = arith.constant 0 : i32
    %c0_i32_0 = arith.constant 0 : i32
    return %arg0, %c0_i32 : i32, i32
  }
  func.func @transform_2(%arg0: i32) -> (i32, i32) {
    %c0_i32 = arith.constant 0 : i32
    %c0_i32_0 = arith.constant 0 : i32
    %c0_i32_1 = arith.constant 0 : i32
    return %c0_i32, %c0_i32_0 : i32, i32
  }
  func.func @transform_3(%arg0: i32) -> (i32, i32) {
    %c0_i32 = arith.constant 0 : i32
    %c0_i32_0 = arith.constant 0 : i32
    %c0_i32_1 = arith.constant 0 : i32
    return %c0_i32, %c0_i32_0 : i32, i32
  }
  func.func @transform_4(%arg0: i32) -> (i32, i32) {
    %c0_i32 = arith.constant 0 : i32
    %c0_i32_0 = arith.constant 0 : i32
    %c0_i32_1 = arith.constant 0 : i32
    return %c0_i32, %c0_i32_0 : i32, i32
  }
  func.func @transform_5(%arg0: i32) -> (i32, i32) {
    %c0_i32 = arith.constant 0 : i32
    %c0_i32_0 = arith.constant 0 : i32
    return %arg0, %c0_i32 : i32, i32
  }
  func.func @transform_6(%arg0: i32) -> (i32, i32) {
    %c0_i32 = arith.constant 0 : i32
    %c0_i32_0 = arith.constant 0 : i32
    %c0_i32_1 = arith.constant 0 : i32
    return %c0_i32, %c0_i32_0 : i32, i32
  }
  func.func @transform_7(%arg0: i32) -> (i32, i32) {
    %c0_i32 = arith.constant 0 : i32
    %c0_i32_0 = arith.constant 0 : i32
    %c0_i32_1 = arith.constant 0 : i32
    return %c0_i32, %c0_i32_0 : i32, i32
  }
  func.func @transform_8(%arg0: i32) -> (i32, i32) {
    %c0_i32 = arith.constant 0 : i32
    %c0_i32_0 = arith.constant 0 : i32
    return %arg0, %c0_i32 : i32, i32
  }
}

module attributes {stable_mosaic.version = 11 : i64} {
  func.func @kernel(%arg0: i32, %arg1: memref<1x64x64xf32, #tpu.memory_space<vmem>>, %arg2: memref<1x64x64xf32, #tpu.memory_space<vmem>>, %arg3: memref<1x64x64xf32, #tpu.memory_space<vmem>>, %arg4: memref<1x64xf32, #tpu.memory_space<vmem>>, %arg5: memref<1x64xf32, #tpu.memory_space<vmem>>, %arg6: memref<1x64xf32, #tpu.memory_space<vmem>>, %arg7: memref<1x64xf32, #tpu.memory_space<vmem>>, %arg8: memref<64x64xf32, #tpu.memory_space<vmem>>, %arg9: memref<1x64xf32, #tpu.memory_space<vmem>>, %arg10: memref<3xf32, #tpu.memory_space<smem>>, %arg11: memref<1x64x64xf32, #tpu.memory_space<vmem>>, %arg12: memref<1x64x64xf32, #tpu.memory_space<vmem>>) attributes {dimension_semantics = [#tpu.dimension_semantics<parallel>], iteration_bounds = array<i64: 2>, scalar_prefetch = 0 : i64, scratch_operands = 0 : i64, tpu.core_type = #tpu.core_type<tc>, window_params = [{transform_indices = @transform_0, window_bounds = array<i64: 1, 64, 64>}, {transform_indices = @transform_1, window_bounds = array<i64: 1, 64, 64>}, {transform_indices = @transform_2, window_bounds = array<i64: 1, 64, 64>}, {pipeline_mode = #tpu.pipeline_mode<synchronous>, transform_indices = @transform_3, window_bounds = array<i64: 1, 64>}, {pipeline_mode = #tpu.pipeline_mode<synchronous>, transform_indices = @transform_4, window_bounds = array<i64: 1, 64>}, {pipeline_mode = #tpu.pipeline_mode<synchronous>, transform_indices = @transform_5, window_bounds = array<i64: 1, 64>}, {pipeline_mode = #tpu.pipeline_mode<synchronous>, transform_indices = @transform_6, window_bounds = array<i64: 1, 64>}, {pipeline_mode = #tpu.pipeline_mode<synchronous>, transform_indices = @transform_7, window_bounds = array<i64: 64, 64>}, {pipeline_mode = #tpu.pipeline_mode<synchronous>, transform_indices = @transform_8, window_bounds = array<i64: 1, 64>}, {transform_indices = @transform_9, window_bounds = array<i64: 3>}, {transform_indices = @transform_10, window_bounds = array<i64: 1, 64, 64>}, {transform_indices = @transform_11, window_bounds = array<i64: 1, 64, 64>}]} {
    %c0 = arith.constant 0 : index
    %c0_0 = arith.constant 0 : index
    %c0_1 = arith.constant 0 : index
    %0 = vector.load %arg2[%c0, %c0_0, %c0_1] : memref<1x64x64xf32, #tpu.memory_space<vmem>>, vector<1x64x64xf32>
    %1 = vector.shape_cast %0 : vector<1x64x64xf32> to vector<64x64xf32>
    %2 = vector.shape_cast %1 : vector<64x64xf32> to vector<1x64x64xf32>
    %cst = arith.constant dense<0.000000e+00> : vector<1xf32>
    %3 = vector.multi_reduction <add>, %2, %cst [1, 2] : vector<1x64x64xf32> to vector<1xf32>
    %4 = vector.shape_cast %3 : vector<1xf32> to vector<1x1x1xf32>
    %5 = vector.extract %4[0, 0, 0] : f32 from vector<1x1x1xf32>
    %cst_2 = arith.constant 4.096000e+03 : f32
    %6 = arith.divf %5, %cst_2 : f32
    %7 = vector.broadcast %6 : f32 to vector<64x64xf32>
    %8 = arith.subf %1, %7 : vector<64x64xf32>
    %9 = arith.mulf %8, %8 : vector<64x64xf32>
    %10 = vector.shape_cast %9 : vector<64x64xf32> to vector<1x64x64xf32>
    %cst_3 = arith.constant dense<0.000000e+00> : vector<1xf32>
    %11 = vector.multi_reduction <add>, %10, %cst_3 [1, 2] : vector<1x64x64xf32> to vector<1xf32>
    %12 = vector.shape_cast %11 : vector<1xf32> to vector<1x1x1xf32>
    %13 = vector.extract %12[0, 0, 0] : f32 from vector<1x1x1xf32>
    %cst_4 = arith.constant 4.096000e+03 : f32
    %14 = arith.divf %13, %cst_4 : f32
    %15 = vector.broadcast %6 : f32 to vector<64x64xf32>
    %16 = arith.subf %1, %15 : vector<64x64xf32>
    %cst_5 = arith.constant 9.99999993E-9 : f32
    %17 = arith.addf %14, %cst_5 : f32
    %18 = math.rsqrt %17 : f32
    %19 = vector.broadcast %18 : f32 to vector<64x64xf32>
    %20 = arith.mulf %16, %19 : vector<64x64xf32>
    %c0_6 = arith.constant 0 : index
    %c0_7 = arith.constant 0 : index
    %21 = vector.load %arg4[%c0_6, %c0_7] : memref<1x64xf32, #tpu.memory_space<vmem>>, vector<1x64xf32>
    %22 = vector.broadcast %21 : vector<1x64xf32> to vector<64x64xf32>
    %23 = arith.mulf %20, %22 : vector<64x64xf32>
    %c0_8 = arith.constant 0 : index
    %c0_9 = arith.constant 0 : index
    %24 = vector.load %arg5[%c0_8, %c0_9] : memref<1x64xf32, #tpu.memory_space<vmem>>, vector<1x64xf32>
    %25 = vector.broadcast %24 : vector<1x64xf32> to vector<64x64xf32>
    %26 = arith.addf %23, %25 : vector<64x64xf32>
    %c0_10 = arith.constant 0 : index
    %c0_11 = arith.constant 0 : index
    %c0_12 = arith.constant 0 : index
    %27 = vector.load %arg3[%c0_10, %c0_11, %c0_12] : memref<1x64x64xf32, #tpu.memory_space<vmem>>, vector<1x64x64xf32>
    %28 = vector.shape_cast %27 : vector<1x64x64xf32> to vector<64x64xf32>
    %29 = vector.shape_cast %28 : vector<64x64xf32> to vector<1x64x64xf32>
    %cst_13 = arith.constant dense<0.000000e+00> : vector<1xf32>
    %30 = vector.multi_reduction <add>, %29, %cst_13 [1, 2] : vector<1x64x64xf32> to vector<1xf32>
    %31 = vector.shape_cast %30 : vector<1xf32> to vector<1x1x1xf32>
    %32 = vector.extract %31[0, 0, 0] : f32 from vector<1x1x1xf32>
    %cst_14 = arith.constant 4.096000e+03 : f32
    %33 = arith.divf %32, %cst_14 : f32
    %34 = vector.broadcast %33 : f32 to vector<64x64xf32>
    %35 = arith.subf %28, %34 : vector<64x64xf32>
    %36 = arith.mulf %35, %35 : vector<64x64xf32>
    %37 = vector.shape_cast %36 : vector<64x64xf32> to vector<1x64x64xf32>
    %cst_15 = arith.constant dense<0.000000e+00> : vector<1xf32>
    %38 = vector.multi_reduction <add>, %37, %cst_15 [1, 2] : vector<1x64x64xf32> to vector<1xf32>
    %39 = vector.shape_cast %38 : vector<1xf32> to vector<1x1x1xf32>
    %40 = vector.extract %39[0, 0, 0] : f32 from vector<1x1x1xf32>
    %cst_16 = arith.constant 4.096000e+03 : f32
    %41 = arith.divf %40, %cst_16 : f32
    %42 = vector.broadcast %33 : f32 to vector<64x64xf32>
    %43 = arith.subf %28, %42 : vector<64x64xf32>
    %cst_17 = arith.constant 9.99999993E-9 : f32
    %44 = arith.addf %41, %cst_17 : f32
    %45 = math.rsqrt %44 : f32
    %46 = vector.broadcast %45 : f32 to vector<64x64xf32>
    %47 = arith.mulf %43, %46 : vector<64x64xf32>
    %c0_18 = arith.constant 0 : index
    %c0_19 = arith.constant 0 : index
    %48 = vector.load %arg6[%c0_18, %c0_19] : memref<1x64xf32, #tpu.memory_space<vmem>>, vector<1x64xf32>
    %49 = vector.broadcast %48 : vector<1x64xf32> to vector<64x64xf32>
    %50 = arith.mulf %47, %49 : vector<64x64xf32>
    %c0_20 = arith.constant 0 : index
    %c0_21 = arith.constant 0 : index
    %51 = vector.load %arg7[%c0_20, %c0_21] : memref<1x64xf32, #tpu.memory_space<vmem>>, vector<1x64xf32>
    %52 = vector.broadcast %51 : vector<1x64xf32> to vector<64x64xf32>
    %53 = arith.addf %50, %52 : vector<64x64xf32>
    %c0_22 = arith.constant 0 : index
    %c0_23 = arith.constant 0 : index
    %c0_24 = arith.constant 0 : index
    %54 = vector.load %arg1[%c0_22, %c0_23, %c0_24] : memref<1x64x64xf32, #tpu.memory_space<vmem>>, vector<1x64x64xf32>
    %55 = vector.shape_cast %54 : vector<1x64x64xf32> to vector<64x64xf32>
    %c0_25 = arith.constant 0 : index
    %56 = memref.load %arg10[%c0_25] : memref<3xf32, #tpu.memory_space<smem>>
    %57 = vector.broadcast %56 : f32 to vector<64x64xf32>
    %58 = arith.mulf %57, %26 : vector<64x64xf32>
    %59 = arith.addf %55, %58 : vector<64x64xf32>
    %c1 = arith.constant 1 : index
    %60 = memref.load %arg10[%c1] : memref<3xf32, #tpu.memory_space<smem>>
    %61 = vector.broadcast %60 : f32 to vector<64x64xf32>
    %62 = arith.mulf %61, %53 : vector<64x64xf32>
    %63 = arith.addf %59, %62 : vector<64x64xf32>
    %c0_26 = arith.constant 0 : index
    %c0_27 = arith.constant 0 : index
    %c0_28 = arith.constant 0 : index
    %64 = vector.load %arg11[%c0_26, %c0_27, %c0_28] : memref<1x64x64xf32, #tpu.memory_space<vmem>>, vector<1x64x64xf32>
    %65 = vector.shape_cast %64 : vector<1x64x64xf32> to vector<64x64xf32>
    %66 = vector.shape_cast %63 : vector<64x64xf32> to vector<1x64x64xf32>
    tpu.vector_store %arg11[%c0_26, %c0_27, %c0_28], %66 {strides = array<i32>} : memref<1x64x64xf32, #tpu.memory_space<vmem>>, vector<1x64x64xf32>,
    %cst_29 = arith.constant 0.000000e+00 : f32
    %67 = vector.broadcast %cst_29 : f32 to vector<64x64xf32>
    %68 = arith.cmpf oge, %63, %67 : vector<64x64xf32>
    %c2 = arith.constant 2 : index
    %69 = memref.load %arg10[%c2] : memref<3xf32, #tpu.memory_space<smem>>
    %70 = vector.broadcast %69 : f32 to vector<64x64xf32>
    %71 = arith.mulf %70, %63 : vector<64x64xf32>
    %72 = arith.select %68, %63, %71 : vector<64x64xi1>, vector<64x64xf32>
    %c0_30 = arith.constant 0 : index
    %c0_31 = arith.constant 0 : index
    %73 = vector.load %arg8[%c0_30, %c0_31] : memref<64x64xf32, #tpu.memory_space<vmem>>, vector<64x64xf32>
    %cst_32 = arith.constant dense<0.000000e+00> : vector<64x64xf32>
    %74 = tpu.matmul %72, %73, %cst_32 {dimension_numbers = #tpu.dot_dimension_numbers<[1], [0], [0], [1], [0, 0, 1, 1], [], []>} : vector<64x64xf32>, vector<64x64xf32>, vector<64x64xf32> -> vector<64x64xf32>
    %c0_33 = arith.constant 0 : index
    %c0_34 = arith.constant 0 : index
    %75 = vector.load %arg9[%c0_33, %c0_34] : memref<1x64xf32, #tpu.memory_space<vmem>>, vector<1x64xf32>
    %76 = vector.broadcast %75 : vector<1x64xf32> to vector<64x64xf32>
    %77 = arith.addf %74, %76 : vector<64x64xf32>
    %c0_35 = arith.constant 0 : index
    %c0_36 = arith.constant 0 : index
    %c0_37 = arith.constant 0 : index
    %78 = vector.load %arg12[%c0_35, %c0_36, %c0_37] : memref<1x64x64xf32, #tpu.memory_space<vmem>>, vector<1x64x64xf32>
    %79 = vector.shape_cast %78 : vector<1x64x64xf32> to vector<64x64xf32>
    %80 = vector.shape_cast %77 : vector<64x64xf32> to vector<1x64x64xf32>
    tpu.vector_store %arg12[%c0_35, %c0_36, %c0_37], %80 {strides = array<i32>} : memref<1x64x64xf32, #tpu.memory_space<vmem>>, vector<1x64x64xf32>,
    return
  }
  func.func @transform_0(%arg0: i32) -> (i32, i32, i32) {
    %c0_i32 = arith.constant 0 : i32
    %c0_i32_0 = arith.constant 0 : i32
    %c0_i32_1 = arith.constant 0 : i32
    return %arg0, %c0_i32, %c0_i32_0 : i32, i32, i32
  }
  func.func @transform_1(%arg0: i32) -> (i32, i32, i32) {
    %c0_i32 = arith.constant 0 : i32
    %c0_i32_0 = arith.constant 0 : i32
    %c0_i32_1 = arith.constant 0 : i32
    return %arg0, %c0_i32, %c0_i32_0 : i32, i32, i32
  }
  func.func @transform_2(%arg0: i32) -> (i32, i32, i32) {
    %c0_i32 = arith.constant 0 : i32
    %c0_i32_0 = arith.constant 0 : i32
    %c0_i32_1 = arith.constant 0 : i32
    return %arg0, %c0_i32, %c0_i32_0 : i32, i32, i32
  }
  func.func @transform_3(%arg0: i32) -> (i32, i32) {
    %c0_i32 = arith.constant 0 : i32
    %c0_i32_0 = arith.constant 0 : i32
    %c0_i32_1 = arith.constant 0 : i32
    return %c0_i32, %c0_i32_0 : i32, i32
  }
  func.func @transform_4(%arg0: i32) -> (i32, i32) {
    %c0_i32 = arith.constant 0 : i32
    %c0_i32_0 = arith.constant 0 : i32
    %c0_i32_1 = arith.constant 0 : i32
    return %c0_i32, %c0_i32_0 : i32, i32
  }
  func.func @transform_5(%arg0: i32) -> (i32, i32) {
    %c0_i32 = arith.constant 0 : i32
    %c0_i32_0 = arith.constant 0 : i32
    %c0_i32_1 = arith.constant 0 : i32
    return %c0_i32, %c0_i32_0 : i32, i32
  }
  func.func @transform_6(%arg0: i32) -> (i32, i32) {
    %c0_i32 = arith.constant 0 : i32
    %c0_i32_0 = arith.constant 0 : i32
    %c0_i32_1 = arith.constant 0 : i32
    return %c0_i32, %c0_i32_0 : i32, i32
  }
  func.func @transform_7(%arg0: i32) -> (i32, i32) {
    %c0_i32 = arith.constant 0 : i32
    %c0_i32_0 = arith.constant 0 : i32
    %c0_i32_1 = arith.constant 0 : i32
    return %c0_i32, %c0_i32_0 : i32, i32
  }
  func.func @transform_8(%arg0: i32) -> (i32, i32) {
    %c0_i32 = arith.constant 0 : i32
    %c0_i32_0 = arith.constant 0 : i32
    %c0_i32_1 = arith.constant 0 : i32
    return %c0_i32, %c0_i32_0 : i32, i32
  }
  func.func @transform_9(%arg0: i32) -> i32 {
    %c0_i32 = arith.constant 0 : i32
    %c0_i32_0 = arith.constant 0 : i32
    return %c0_i32 : i32
  }
  func.func @transform_10(%arg0: i32) -> (i32, i32, i32) {
    %c0_i32 = arith.constant 0 : i32
    %c0_i32_0 = arith.constant 0 : i32
    %c0_i32_1 = arith.constant 0 : i32
    return %arg0, %c0_i32, %c0_i32_0 : i32, i32, i32
  }
  func.func @transform_11(%arg0: i32) -> (i32, i32, i32) {
    %c0_i32 = arith.constant 0 : i32
    %c0_i32_0 = arith.constant 0 : i32
    %c0_i32_1 = arith.constant 0 : i32
    return %arg0, %c0_i32, %c0_i32_0 : i32, i32, i32
  }
}

</mosaic_0001>

<bundles_post_ra>
// kernel: aia_transformer_forward.14
= control target key start
LH: loop header
LB: loop body
LE: loop exit
PB: predicated region body
PF: predicated region fallthrough
CT: control target
= control target key end

     0   :  { %vm252_vm0 = vcmask 523264   ;;  %s637_s1 = inlined_call_operand.vmem [shape: f32[128,64], index: 1, kind: input, shape index: {}]   ;;  %s638_s0 = inlined_call_operand.vmem [shape: f32[128,128], index: 0, kind: input, shape index: {}]   ;;  %s639_s2 = inlined_call_operand.vmem [shape: f32[1,64], index: 2, kind: input, shape index: {}]   ;;  %s640_s3 = inlined_call_operand.<no memory space> [shape: f32[1], index: 3, kind: input, shape index: {}]   ;;  %s641_s4 = inlined_call_operand.vmem [shape: f32[128,64], index: 4, kind: output, shape index: {}]  }
   0x1   :  { %v34_v0 = vld [vmem:[%s637_s1] sm:$0xff]  ;;  %v35_v1 = vld [vmem:[%s637_s1 + $0x8] sm:$0xff]  ;;  %v36_v2 = vld [vmem:[%s637_s1 + $0x10] sm:$0xff]  ;;  %v539_v42 = vstv %s640_s3 }
   0x2   :  { %v362_v3 = vpack.c.bf16 %v35_v1, %v34_v0  ;;  %v37_v4 = vld [vmem:[%s637_s1 + $0x18] sm:$0xff]  ;;  %v38_v6 = vld [vmem:[%s637_s1 + $0x20] sm:$0xff]  ;;  %v39_v7 = vld [vmem:[%s637_s1 + $0x28] sm:$0xff] }
   0x3   :  { %v366_v5 = vpack.c.bf16 %v37_v4, %v36_v2  ;;  %v370_v8 = vpack.c.bf16 %v39_v7, %v38_v6  ;;  %v18_v9 = vld [vmem:[%s638_s0] sm:$0xff]  ;;  %v40_v11 = vld [vmem:[%s637_s1 + $0x30] sm:$0xff]  ;;  %v41_v12 = vld [vmem:[%s637_s1 + $0x38] sm:$0xff] }
   0x4   :  { %363 = vmatprep.subr.bf16.mxu0 %v362_v3  ;;  %394 = vmatprep.subr.bf16.mxu1 %v362_v3  ;;  %v26_v10 = vld [vmem:[%s638_s0 + $0x40] sm:$0xff]  ;;  %v374_v13 = vpack.c.bf16 %v41_v12, %v40_v11  ;;  %v43_v15 = vld [vmem:[%s637_s1 + $0x48] sm:$0xff]  ;;  %v44_v17 = vld [vmem:[%s637_s1 + $0x50] sm:$0xff] }
   0x5   :  { %365 = vmatpush3.bf16.msra.mxu0 %v362_v3  ;;  %402 = vmatpush3.bf16.msra.mxu1 %v362_v3  ;;  %v42_v14 = vld [vmem:[%s637_s1 + $0x40] sm:$0xff]  ;;  %v45_v18 = vld [vmem:[%s637_s1 + $0x58] sm:$0xff]  ;;  %v47_v21 = vld [vmem:[%s637_s1 + $0x68] sm:$0xff] }
   0x6   :  { %367 = vmatprep.subr.bf16.mxu0 %v366_v5  ;;  %395 = vmatprep.subr.bf16.mxu1 %v366_v5  ;;  %v378_v16 = vpack.c.bf16 %v43_v15, %v42_v14  ;;  %v382_v19 = vpack.c.bf16 %v45_v18, %v44_v17  ;;  %v46_v20 = vld [vmem:[%s637_s1 + $0x60] sm:$0xff]  ;;  %v48_v23 = vld [vmem:[%s637_s1 + $0x70] sm:$0xff]  ;;  %v49_v24 = vld [vmem:[%s637_s1 + $0x78] sm:$0xff] }
   0x7   :  { %338 = vmatprep.mubr.f32.mxu0 %v18_v9  ;;  %350 = vmatprep.mubr.f32.mxu1 %v26_v10  ;;  %v386_v22 = vpack.c.bf16 %v47_v21, %v46_v20  ;;  %v390_v25 = vpack.c.bf16 %v49_v24, %v48_v23  ;;  %v19_v26 = vld [vmem:[%s638_s0 + $0x8] sm:$0xff]  ;;  %v20_v28 = vld [vmem:[%s638_s0 + $0x10] sm:$0xff]  ;;  %v21_v30 = vld [vmem:[%s638_s0 + $0x18] sm:$0xff] }
   0x8   :  { %v27_v27 = vld [vmem:[%s638_s0 + $0x48] sm:$0xff]  ;;  %v28_v29 = vld [vmem:[%s638_s0 + $0x50] sm:$0xff]  ;;  %v29_v31 = vld [vmem:[%s638_s0 + $0x58] sm:$0xff] }
   0x9   :  { %369 = vmatpush3.bf16.msra.mxu0 %v366_v5  ;;  %403 = vmatpush3.bf16.msra.mxu1 %v366_v5  ;;  %v22_v32 = vld [vmem:[%s638_s0 + $0x20] sm:$0xff]  ;;  %v23_v34 = vld [vmem:[%s638_s0 + $0x28] sm:$0xff]  ;;  %v24_v36 = vld [vmem:[%s638_s0 + $0x30] sm:$0xff] }
   0xa   :  { %371 = vmatprep.subr.bf16.mxu0 %v370_v8  ;;  %396 = vmatprep.subr.bf16.mxu1 %v370_v8  ;;  %v30_v33 = vld [vmem:[%s638_s0 + $0x60] sm:$0xff]  ;;  %v31_v35 = vld [vmem:[%s638_s0 + $0x68] sm:$0xff]  ;;  %v32_v37 = vld [vmem:[%s638_s0 + $0x70] sm:$0xff] }
   0xb   :  { %v25_v38 = vld [vmem:[%s638_s0 + $0x38] sm:$0xff]  ;;  %v534_v40 = vld [vmem:[%s639_s2] ss:$0 sm:$0xff] }
   0xc   :  { %v33_v39 = vld [vmem:[%s638_s0 + $0x78] sm:$0xff] }
   0xd   :  { %373 = vmatpush3.bf16.msra.mxu0 %v370_v8  ;;  %404 = vmatpush3.bf16.msra.mxu1 %v370_v8 }
   0xe   :  { %375 = vmatprep.subr.bf16.mxu0 %v374_v13  ;;  %397 = vmatprep.subr.bf16.mxu1 %v374_v13 }
  0x11   :  { %377 = vmatpush3.bf16.msra.mxu0 %v374_v13  ;;  %405 = vmatpush3.bf16.msra.mxu1 %v374_v13 }
  0x12   :  { %379 = vmatprep.subr.bf16.mxu0 %v378_v16  ;;  %398 = vmatprep.subr.bf16.mxu1 %v378_v16 }
  0x15   :  { %381 = vmatpush3.bf16.msra.mxu0 %v378_v16  ;;  %406 = vmatpush3.bf16.msra.mxu1 %v378_v16 }
  0x16   :  { %383 = vmatprep.subr.bf16.mxu0 %v382_v19  ;;  %399 = vmatprep.subr.bf16.mxu1 %v382_v19 }
  0x19   :  { %385 = vmatpush3.bf16.msra.mxu0 %v382_v19  ;;  %407 = vmatpush3.bf16.msra.mxu1 %v382_v19 }
  0x1a   :  { %387 = vmatprep.subr.bf16.mxu0 %v386_v22  ;;  %400 = vmatprep.subr.bf16.mxu1 %v386_v22 }
  0x1d   :  { %389 = vmatpush3.bf16.msra.mxu0 %v386_v22  ;;  %408 = vmatpush3.bf16.msra.mxu1 %v386_v22 }
  0x1e   :  { %391 = vmatprep.subr.bf16.mxu0 %v390_v25  ;;  %401 = vmatprep.subr.bf16.mxu1 %v390_v25 }
  0x21   :  { %393 = vmatpush3.bf16.msra.mxu0 %v390_v25  ;;  %409 = vmatpush3.bf16.msra.mxu1 %v390_v25 }
  0x24   :  { %339 = vmatmul.mubr.f32.vlgmr.msra.gmra.mrb[0].mxu0 %v19_v26  ;;  %351 = vmatmul.mubr.f32.vlgmr.msra.gmra.mrb[0].mxu1 %v27_v27 }
  0x25   :  { %341 = vmatprep.mubr.f32.mxu0 %v20_v28  ;;  %353 = vmatprep.mubr.f32.mxu1 %v28_v29 }
  0x28   :  { %342 = vmatmul.mubr.f32.gmra.mrb[2].mxu0 %v21_v30  ;;  %354 = vmatmul.mubr.f32.gmra.mrb[2].mxu1 %v29_v31 }
  0x29   :  { %344 = vmatprep.mubr.f32.mxu0 %v22_v32  ;;  %356 = vmatprep.mubr.f32.mxu1 %v30_v33 }
  0x2c   :  { %345 = vmatmul.mubr.f32.gmra.mrb[4].mxu0 %v23_v34  ;;  %357 = vmatmul.mubr.f32.gmra.mrb[4].mxu1 %v31_v35 }
  0x2d   :  { %347 = vmatprep.mubr.f32.mxu0 %v24_v36  ;;  %359 = vmatprep.mubr.f32.mxu1 %v32_v37 }
  0x30   :  { %348 = vmatmul.mubr.f32.gmra.mrb[6].mxu0 %v25_v38  ;;  %360 = vmatmul.mubr.f32.gmra.mrb[6].mxu1 %v33_v39 }
  0xf7   :  { %v340_v41 = vpop.f32.mrb[0].mxu0  ;;  %v352_v43 = vpop.f32.mrb[0].mxu1 }
  0xf8   :  { %v129_v44 = vadd.f32 %v340_v41, %v534_v40  ;;  %v169_v45 = vadd.f32 %v352_v43, %v534_v40  ;;  %v123_v46 = vpop.f32.mrb[1].mxu0  ;;  %v163_v47 = vpop.f32.mrb[1].mxu1 }
  0xf9   :  { %v124_v48 = vadd.f32 %v534_v40, %v123_v46  ;;  %v164_v49 = vadd.f32 %v534_v40, %v163_v47 }
  0xfa   :  { %vm203_vm1 = vcmp.ge.f32.partialorder %v129_v44, 0.0  ;;  %v221_v50 = vmul.f32 %v539_v42, %v129_v44  ;;  %vm211_vm2 = vcmp.ge.f32.partialorder %v169_v45, 0.0  ;;  %v229_v51 = vmul.f32 %v539_v42, %v169_v45 }
  0xfb   :  { %vm202_vm3 = vcmp.ge.f32.partialorder %v124_v48, 0.0  ;;  %v220_v52 = vmul.f32 %v539_v42, %v124_v48  ;;  %vm210_vm4 = vcmp.ge.f32.partialorder %v164_v49, 0.0  ;;  %v228_v53 = vmul.f32 %v539_v42, %v164_v49  ;;  %v343_v54 = vpop.f32.mrb[2].mxu0  ;;  %v355_v55 = vpop.f32.mrb[2].mxu1 }
  0xfc   :  { %v237_v56 = vsel %vm203_vm1, %v129_v44, %v221_v50  ;;  %v245_v57 = vsel %vm211_vm2, %v169_v45, %v229_v51  ;;  %v139_v58 = vadd.f32 %v343_v54, %v534_v40  ;;  %v179_v59 = vadd.f32 %v355_v55, %v534_v40  ;;  %v133_v60 = vpop.f32.mrb[3].mxu0  ;;  %v173_v61 = vpop.f32.mrb[3].mxu1 }
  0xfd   :  { %254 = vst.msk [vmem:[%s641_s4 + $0x8] sm:$0xff] %vm252_vm0, %v237_v56  ;;  %262 = vst.msk [vmem:[%s641_s4 + $0x48] sm:$0xff] %vm252_vm0, %v245_v57  ;;  %v236_v62 = vsel %vm202_vm3, %v124_v48, %v220_v52  ;;  %v244_v63 = vsel %vm210_vm4, %v164_v49, %v228_v53  ;;  %v134_v0 = vadd.f32 %v534_v40, %v133_v60 }
  0xfe   :  { %v174_v1 = vadd.f32 %v534_v40, %v173_v61  ;;  %253 = vst.msk [vmem:[%s641_s4] sm:$0xff] %vm252_vm0, %v236_v62  ;;  %261 = vst.msk [vmem:[%s641_s4 + $0x40] sm:$0xff] %vm252_vm0, %v244_v63  ;;  %vm205_vm5 = vcmp.ge.f32.partialorder %v139_v58, 0.0  ;;  %v223_v2 = vmul.f32 %v539_v42, %v139_v58  ;;  %vm213_vm6 = vcmp.ge.f32.partialorder %v179_v59, 0.0 }
  0xff   :  { %v231_v3 = vmul.f32 %v539_v42, %v179_v59  ;;  %vm204_vm7 = vcmp.ge.f32.partialorder %v134_v0, 0.0  ;;  %v222_v4 = vmul.f32 %v539_v42, %v134_v0  ;;  %v346_v6 = vpop.f32.mrb[4].mxu0  ;;  %v358_v7 = vpop.f32.mrb[4].mxu1 }
 0x100   :  { %vm212_vm8 = vcmp.ge.f32.partialorder %v174_v1, 0.0  ;;  %v230_v5 = vmul.f32 %v539_v42, %v174_v1  ;;  %v239_v8 = vsel %vm205_vm5, %v139_v58, %v223_v2  ;;  %v149_v10 = vadd.f32 %v346_v6, %v534_v40  ;;  %v143_v12 = vpop.f32.mrb[5].mxu0  ;;  %v183_v13 = vpop.f32.mrb[5].mxu1 }
 0x101   :  { %v247_v9 = vsel %vm213_vm6, %v179_v59, %v231_v3  ;;  %v189_v11 = vadd.f32 %v358_v7, %v534_v40  ;;  %256 = vst.msk [vmem:[%s641_s4 + $0x18] sm:$0xff] %vm252_vm0, %v239_v8  ;;  %v238_v14 = vsel %vm204_vm7, %v134_v0, %v222_v4  ;;  %v144_v16 = vadd.f32 %v534_v40, %v143_v12 }
 0x102   :  { %264 = vst.msk [vmem:[%s641_s4 + $0x58] sm:$0xff] %vm252_vm0, %v247_v9  ;;  %v246_v15 = vsel %vm212_vm8, %v174_v1, %v230_v5  ;;  %v184_v17 = vadd.f32 %v534_v40, %v183_v13  ;;  %255 = vst.msk [vmem:[%s641_s4 + $0x10] sm:$0xff] %vm252_vm0, %v238_v14  ;;  %vm207_vm9 = vcmp.ge.f32.partialorder %v149_v10, 0.0  ;;  %v225_v18 = vmul.f32 %v539_v42, %v149_v10 }
 0x103   :  { %263 = vst.msk [vmem:[%s641_s4 + $0x50] sm:$0xff] %vm252_vm0, %v246_v15  ;;  %vm215_vm10 = vcmp.ge.f32.partialorder %v189_v11, 0.0  ;;  %v233_v19 = vmul.f32 %v539_v42, %v189_v11  ;;  %vm206_vm11 = vcmp.ge.f32.partialorder %v144_v16, 0.0  ;;  %v224_v20 = vmul.f32 %v539_v42, %v144_v16  ;;  %v349_v22 = vpop.f32.mrb[6].mxu0  ;;  %v361_v23 = vpop.f32.mrb[6].mxu1 }
 0x104   :  { %vm214_vm12 = vcmp.ge.f32.partialorder %v184_v17, 0.0  ;;  %v232_v21 = vmul.f32 %v539_v42, %v184_v17  ;;  %v241_v24 = vsel %vm207_vm9, %v149_v10, %v225_v18  ;;  %v159_v26 = vadd.f32 %v349_v22, %v534_v40  ;;  %v153_v28 = vpop.f32.mrb[7].mxu0  ;;  %v193_v29 = vpop.f32.mrb[7].mxu1 }
 0x105   :  { %v249_v25 = vsel %vm215_vm10, %v189_v11, %v233_v19  ;;  %v199_v27 = vadd.f32 %v361_v23, %v534_v40  ;;  %258 = vst.msk [vmem:[%s641_s4 + $0x28] sm:$0xff] %vm252_vm0, %v241_v24  ;;  %v240_v30 = vsel %vm206_vm11, %v144_v16, %v224_v20  ;;  %v154_v32 = vadd.f32 %v534_v40, %v153_v28 }
 0x106   :  { %266 = vst.msk [vmem:[%s641_s4 + $0x68] sm:$0xff] %vm252_vm0, %v249_v25  ;;  %v248_v31 = vsel %vm214_vm12, %v184_v17, %v232_v21  ;;  %v194_v33 = vadd.f32 %v534_v40, %v193_v29  ;;  %257 = vst.msk [vmem:[%s641_s4 + $0x20] sm:$0xff] %vm252_vm0, %v240_v30  ;;  %vm209_vm13 = vcmp.ge.f32.partialorder %v159_v26, 0.0  ;;  %v227_v34 = vmul.f32 %v539_v42, %v159_v26 }
 0x107   :  { %265 = vst.msk [vmem:[%s641_s4 + $0x60] sm:$0xff] %vm252_vm0, %v248_v31  ;;  %vm217_vm14 = vcmp.ge.f32.partialorder %v199_v27, 0.0  ;;  %v235_v35 = vmul.f32 %v539_v42, %v199_v27  ;;  %vm208_vm15 = vcmp.ge.f32.partialorder %v154_v32, 0.0  ;;  %v226_v36 = vmul.f32 %v539_v42, %v154_v32 }
 0x108   :  { %vm216_vm1 = vcmp.ge.f32.partialorder %v194_v33, 0.0  ;;  %v234_v37 = vmul.f32 %v539_v42, %v194_v33  ;;  %v243_v38 = vsel %vm209_vm13, %v159_v26, %v227_v34 }
 0x109   :  { %v251_v39 = vsel %vm217_vm14, %v199_v27, %v235_v35  ;;  %260 = vst.msk [vmem:[%s641_s4 + $0x38] sm:$0xff] %vm252_vm0, %v243_v38  ;;  %v242_v40 = vsel %vm208_vm15, %v154_v32, %v226_v36 }
 0x10a   :  { %268 = vst.msk [vmem:[%s641_s4 + $0x78] sm:$0xff] %vm252_vm0, %v251_v39  ;;  %v250_v41 = vsel %vm216_vm1, %v194_v33, %v234_v37  ;;  %259 = vst.msk [vmem:[%s641_s4 + $0x30] sm:$0xff] %vm252_vm0, %v242_v40 }
 0x10b   :  { %267 = vst.msk [vmem:[%s641_s4 + $0x70] sm:$0xff] %vm252_vm0, %v250_v41 }

// kernel: aia_transformer_forward.21
= control target key start
LH: loop header
LB: loop body
LE: loop exit
PB: predicated region body
PF: predicated region fallthrough
CT: control target
= control target key end

     0   :  { %vm36_vm0 = vcmask 523264   ;;  %s1144_s0 = inlined_call_operand.vmem [shape: f32[128,64], index: 0, kind: input, shape index: {}]   ;;  %s1145_s3 = inlined_call_operand.vmem [shape: f32[64,192], index: 3, kind: input, shape index: {}]   ;;  %s1146_s1 = inlined_call_operand.vmem [shape: f32[1,64], index: 1, kind: input, shape index: {}]   ;;  %s1147_s2 = inlined_call_operand.vmem [shape: f32[1,64], index: 2, kind: input, shape index: {}]   ;;  %s1148_s4 = inlined_call_operand.vmem [shape: f32[1,192], index: 4, kind: input, shape index: {}]   ;;  %s1149_s5 = inlined_call_operand.vmem [shape: f32[128,192], index: 5, kind: output, shape index: {}]  }
   0x1   :  { %v20_v0 = vld [vmem:[%s1144_s0] sm:$0xff]  ;;  %v21_v1 = vld [vmem:[%s1144_s0 + $0x8] sm:$0xff]  ;;  %v22_v8 = vld [vmem:[%s1144_s0 + $0x10] sm:$0xff] }
   0x2   :  { %v28_v2 = vld [vmem:[%s1144_s0 + $0x40] sm:$0xff]  ;;  %v37_v3 = vsel %vm36_vm0, %v20_v0, 0.0  ;;  %v40_v4 = vsel %vm36_vm0, %v21_v1, 0.0  ;;  %v29_v5 = vld [vmem:[%s1144_s0 + $0x48] sm:$0xff]  ;;  %v30_v9 = vld [vmem:[%s1144_s0 + $0x50] sm:$0xff]  ;;  %v43_v10 = vsel %vm36_vm0, %v22_v8, 0.0 }
   0x3   :  { %38 = vadd.xlane.f32.xlu0 %v37_v3  ;;  %41 = vadd.xlane.f32.xlu1 %v40_v4  ;;  %v61_v6 = vsel %vm36_vm0, %v28_v2, 0.0  ;;  %v64_v7 = vsel %vm36_vm0, %v29_v5, 0.0  ;;  %v67_v11 = vsel %vm36_vm0, %v30_v9, 0.0  ;;  %v698_v12 = vld [vmem:[%s1144_s0 + $0x18] sm:$0xff]  ;;  %v712_v16 = vld [vmem:[%s1144_s0 + $0x20] sm:$0xff]  ;;  %v726_v20 = vld [vmem:[%s1144_s0 + $0x28] sm:$0xff] }
   0x4   :  { %v703_v13 = vld [vmem:[%s1144_s0 + $0x58] sm:$0xff]  ;;  %v46_v14 = vsel %vm36_vm0, %v698_v12, 0.0  ;;  %v717_v17 = vld [vmem:[%s1144_s0 + $0x60] sm:$0xff]  ;;  %v49_v18 = vsel %vm36_vm0, %v712_v16, 0.0  ;;  %v731_v21 = vld [vmem:[%s1144_s0 + $0x68] sm:$0xff]  ;;  %v52_v22 = vsel %vm36_vm0, %v726_v20, 0.0 }
   0x5   :  { %v70_v15 = vsel %vm36_vm0, %v703_v13, 0.0  ;;  %v73_v19 = vsel %vm36_vm0, %v717_v17, 0.0  ;;  %v76_v23 = vsel %vm36_vm0, %v731_v21, 0.0  ;;  %v740_v24 = vld [vmem:[%s1144_s0 + $0x30] sm:$0xff]  ;;  %v754_v28 = vld [vmem:[%s1144_s0 + $0x38] sm:$0xff] }
   0x6   :  { %v745_v25 = vld [vmem:[%s1144_s0 + $0x70] sm:$0xff]  ;;  %v55_v26 = vsel %vm36_vm0, %v740_v24, 0.0  ;;  %v759_v29 = vld [vmem:[%s1144_s0 + $0x78] sm:$0xff]  ;;  %v58_v30 = vsel %vm36_vm0, %v754_v28, 0.0 }
   0x7   :  { %62 = vadd.xlane.f32.xlu0 %v61_v6  ;;  %65 = vadd.xlane.f32.xlu1 %v64_v7  ;;  %v79_v27 = vsel %vm36_vm0, %v745_v25, 0.0  ;;  %v82_v31 = vsel %vm36_vm0, %v759_v29, 0.0 }
   0xb   :  { %44 = vadd.xlane.f32.xlu0 %v43_v10  ;;  %68 = vadd.xlane.f32.xlu1 %v67_v11 }
   0xf   :  { %47 = vadd.xlane.f32.xlu0 %v46_v14  ;;  %71 = vadd.xlane.f32.xlu1 %v70_v15 }
  0x13   :  { %50 = vadd.xlane.f32.xlu0 %v49_v18  ;;  %74 = vadd.xlane.f32.xlu1 %v73_v19 }
  0x17   :  { %53 = vadd.xlane.f32.xlu0 %v52_v22  ;;  %77 = vadd.xlane.f32.xlu1 %v76_v23 }
  0x1b   :  { %56 = vadd.xlane.f32.xlu0 %v55_v26  ;;  %80 = vadd.xlane.f32.xlu1 %v79_v27 }
  0x1f   :  { %59 = vadd.xlane.f32.xlu0 %v58_v30  ;;  %83 = vadd.xlane.f32.xlu1 %v82_v31 }
  0x90   :  { %v39_v32 = vpop.xlane.xlu0 %38  ;;  %v42_v33 = vpop.xlane.xlu1 %41 }
  0x91   :  { %v86_v34 = vmul.f32 0.015625, %v39_v32  ;;  %v87_v35 = vmul.f32 0.015625, %v42_v33 }
  0x93   :  { %v765_v36 = vsub.f32 %v20_v0, %v86_v34  ;;  %v767_v37 = vsub.f32 %v21_v1, %v87_v35  ;;  %v295_v35 = vld [vmem:[%s1145_s3 + $0x18] sm:$0xff] }
  0x94   :  { %v63_v38 = vpop.xlane.xlu0 %62  ;;  %v66_v39 = vpop.xlane.xlu1 %65 }
  0x95   :  { %v94_v40 = vmul.f32 0.015625, %v63_v38  ;;  %v95_v41 = vmul.f32 0.015625, %v66_v39  ;;  %v118_v42 = vmul.f32 %v765_v36, %v765_v36  ;;  %v119_v43 = vmul.f32 %v767_v37, %v767_v37  ;;  %v292_v39 = vld [vmem:[%s1145_s3] sm:$0xff] }
  0x97   :  { %v773_v44 = vsub.f32 %v28_v2, %v94_v40  ;;  %v775_v45 = vsub.f32 %v29_v5, %v95_v41  ;;  %v134_v46 = vsel %vm36_vm0, %v118_v42, 0.0  ;;  %v137_v49 = vsel %vm36_vm0, %v119_v43, 0.0  ;;  %v294_v40 = vld [vmem:[%s1145_s3 + $0x10] sm:$0xff] }
  0x98   :  { %135 = vadd.xlane.f32.xlu0 %v134_v46  ;;  %v45_v47 = vpop.xlane.xlu0 %44  ;;  %v69_v48 = vpop.xlane.xlu1 %68 }
  0x99   :  { %v88_v50 = vmul.f32 0.015625, %v45_v47  ;;  %v96_v51 = vmul.f32 0.015625, %v69_v48  ;;  %v126_v52 = vmul.f32 %v773_v44, %v773_v44  ;;  %v127_v53 = vmul.f32 %v775_v45, %v775_v45 }
  0x9b   :  { %v783_v54 = vsub.f32 %v22_v8, %v88_v50  ;;  %v785_v55 = vsub.f32 %v30_v9, %v96_v51  ;;  %v158_v56 = vsel %vm36_vm0, %v126_v52, 0.0  ;;  %v161_v59 = vsel %vm36_vm0, %v127_v53, 0.0  ;;  %v299_v53 = vld [vmem:[%s1145_s3 + $0x38] sm:$0xff] }
  0x9c   :  { %138 = vadd.xlane.f32.xlu0 %v137_v49  ;;  %159 = vadd.xlane.f32.xlu1 %v158_v56  ;;  %v48_v57 = vpop.xlane.xlu0 %47  ;;  %v72_v58 = vpop.xlane.xlu1 %71  ;;  %v585_v49 = vpack.c.bf16 %v294_v40, %v292_v39 }
  0x9d   :  { %v89_v60 = vmul.f32 0.015625, %v48_v57  ;;  %v97_v61 = vmul.f32 0.015625, %v72_v58  ;;  %v120_v62 = vmul.f32 %v783_v54, %v783_v54  ;;  %v128_v63 = vmul.f32 %v785_v55, %v785_v55  ;;  %v296_v57 = vld [vmem:[%s1145_s3 + $0x20] sm:$0xff]  ;;  %v298_v58 = vld [vmem:[%s1145_s3 + $0x30] sm:$0xff] }
  0x9f   :  { %v794_v0 = vsub.f32 %v698_v12, %v89_v60  ;;  %v797_v1 = vsub.f32 %v703_v13, %v97_v61  ;;  %v140_v2 = vsel %vm36_vm0, %v120_v62, 0.0  ;;  %v164_v5 = vsel %vm36_vm0, %v128_v63, 0.0 }
  0xa0   :  { %162 = vadd.xlane.f32.xlu1 %v161_v59  ;;  %141 = vadd.xlane.f32.xlu0 %v140_v2  ;;  %v51_v3 = vpop.xlane.xlu0 %50  ;;  %v75_v4 = vpop.xlane.xlu1 %74  ;;  %v589_v62 = vpack.c.bf16 %v298_v58, %v296_v57 }
  0xa1   :  { %v90_v6 = vmul.f32 0.015625, %v51_v3  ;;  %v98_v7 = vmul.f32 0.015625, %v75_v4  ;;  %v121_v8 = vmul.f32 %v794_v0, %v794_v0  ;;  %v129_v9 = vmul.f32 %v797_v1, %v797_v1 }
  0xa3   :  { %v806_v10 = vsub.f32 %v712_v16, %v90_v6  ;;  %v809_v11 = vsub.f32 %v717_v17, %v98_v7  ;;  %v143_v12 = vsel %vm36_vm0, %v121_v8, 0.0  ;;  %v167_v15 = vsel %vm36_vm0, %v129_v9, 0.0  ;;  %v302_v6 = vld [vmem:[%s1145_s3 + $0x50] sm:$0xff] }
  0xa4   :  { %165 = vadd.xlane.f32.xlu1 %v164_v5  ;;  %144 = vadd.xlane.f32.xlu0 %v143_v12  ;;  %v54_v13 = vpop.xlane.xlu0 %53  ;;  %v78_v14 = vpop.xlane.xlu1 %77  ;;  %v300_v5 = vld [vmem:[%s1145_s3 + $0x40] sm:$0xff]  ;;  %v305_v12 = vld [vmem:[%s1145_s3 + $0x68] sm:$0xff] }
  0xa5   :  { %v91_v18 = vmul.f32 0.015625, %v54_v13  ;;  %v99_v19 = vmul.f32 0.015625, %v78_v14  ;;  %v122_v22 = vmul.f32 %v806_v10, %v806_v10  ;;  %v130_v16 = vmul.f32 %v809_v11, %v809_v11  ;;  %v307_v13 = vld [vmem:[%s1145_s3 + $0x78] sm:$0xff] }
  0xa6   :  { %v593_v8 = vpack.c.bf16 %v302_v6, %v300_v5  ;;  %v595_v14 = vpack.c.bf16 %v307_v13, %v305_v12 }
  0xa7   :  { %v818_v23 = vsub.f32 %v726_v20, %v91_v18  ;;  %v821_v17 = vsub.f32 %v731_v21, %v99_v19  ;;  %v146_v26 = vsel %vm36_vm0, %v122_v22, 0.0  ;;  %v170_v31 = vsel %vm36_vm0, %v130_v16, 0.0  ;;  %v293_v21 = vld [vmem:[%s1145_s3 + $0x8] sm:$0xff]  ;;  %v306_v18 = vld [vmem:[%s1145_s3 + $0x70] sm:$0xff] }
  0xa8   :  { %168 = vadd.xlane.f32.xlu1 %v167_v15  ;;  %147 = vadd.xlane.f32.xlu0 %v146_v26  ;;  %v57_v27 = vpop.xlane.xlu0 %56  ;;  %v81_v30 = vpop.xlane.xlu1 %80  ;;  %v583_v38 = vpack.c.bf16 %v295_v35, %v293_v21  ;;  %v304_v15 = vld [vmem:[%s1145_s3 + $0x60] sm:$0xff]  ;;  %v640_v22 = vmov 0.0  }
  0xa9   :  { %v92_v32 = vmul.f32 0.015625, %v57_v27  ;;  %v100_v33 = vmul.f32 0.015625, %v81_v30  ;;  %v123_v34 = vmul.f32 %v818_v23, %v818_v23  ;;  %v131_v20 = vmul.f32 %v821_v17, %v821_v17  ;;  %432 = vmatprep.mubr.f32.mxu0 %v640_v22  ;;  %480 = vmatprep.mubr.f32.mxu1 %v640_v22 }
  0xaa   :  { %584 = vmatprep.subr.bf16.mxu0 %v583_v38  ;;  %599 = vmatprep.subr.bf16.mxu1 %v583_v38  ;;  %v597_v19 = vpack.c.bf16 %v306_v18, %v304_v15 }
  0xab   :  { %v842_v41 = vsub.f32 %v740_v24, %v92_v32  ;;  %v845_v42 = vsub.f32 %v745_v25, %v100_v33  ;;  %v149_v43 = vsel %vm36_vm0, %v123_v34, 0.0  ;;  %v173_v48 = vsel %vm36_vm0, %v131_v20, 0.0  ;;  %v297_v25 = vld [vmem:[%s1145_s3 + $0x28] sm:$0xff]  ;;  %586 = vmatpush1.bf16.msra.mxu0 %v585_v49  ;;  %603 = vmatpush1.bf16.msra.mxu1 %v585_v49 }
  0xac   :  { %171 = vadd.xlane.f32.xlu1 %v170_v31  ;;  %150 = vadd.xlane.f32.xlu0 %v149_v43  ;;  %v60_v46 = vpop.xlane.xlu0 %59  ;;  %v84_v47 = vpop.xlane.xlu1 %83  ;;  %v587_v56 = vpack.c.bf16 %v299_v53, %v297_v25 }
  0xad   :  { %v93_v50 = vmul.f32 0.015625, %v60_v46  ;;  %v101_v51 = vmul.f32 0.015625, %v84_v47  ;;  %v124_v52 = vmul.f32 %v842_v41, %v842_v41  ;;  %v132_v24 = vmul.f32 %v845_v42, %v845_v42 }
  0xae   :  { %588 = vmatprep.subr.bf16.mxu0 %v587_v56  ;;  %600 = vmatprep.subr.bf16.mxu1 %v587_v56 }
  0xaf   :  { %v866_v59 = vsub.f32 %v754_v28, %v93_v50  ;;  %v869_v60 = vsub.f32 %v759_v29, %v101_v51  ;;  %v152_v61 = vsel %vm36_vm0, %v124_v52, 0.0  ;;  %v176_v63 = vsel %vm36_vm0, %v132_v24, 0.0  ;;  %v301_v28 = vld [vmem:[%s1145_s3 + $0x48] sm:$0xff]  ;;  %v303_v29 = vld [vmem:[%s1145_s3 + $0x58] sm:$0xff]  ;;  %590 = vmatpush1.bf16.msra.mxu0 %v589_v62  ;;  %604 = vmatpush1.bf16.msra.mxu1 %v589_v62  ;;  %v908_v24 = vld [vmem:[%s1146_s1] ss:$0 sm:$0xff] }
  0xb0   :  { %174 = vadd.xlane.f32.xlu1 %v173_v48  ;;  %153 = vadd.xlane.f32.xlu0 %v152_v61  ;;  %v591_v4 = vpack.c.bf16 %v303_v29, %v301_v28  ;;  %v914_v61 = vld [vmem:[%s1147_s2] ss:$0 sm:$0xff] }
  0xb1   :  { %v125_v2 = vmul.f32 %v866_v59, %v866_v59  ;;  %v133_v3 = vmul.f32 %v869_v60, %v869_v60 }
  0xb2   :  { %592 = vmatprep.subr.bf16.mxu0 %v591_v4  ;;  %601 = vmatprep.subr.bf16.mxu1 %v591_v4 }
  0xb3   :  { %v155_v7 = vsel %vm36_vm0, %v125_v2, 0.0  ;;  %v179_v9 = vsel %vm36_vm0, %v133_v3, 0.0  ;;  %594 = vmatpush1.bf16.msra.mxu0 %v593_v8  ;;  %605 = vmatpush1.bf16.msra.mxu1 %v593_v8 }
  0xb4   :  { %177 = vadd.xlane.f32.xlu1 %v176_v63  ;;  %156 = vadd.xlane.f32.xlu0 %v155_v7 }
  0xb5   :  { %596 = vmatprep.subr.bf16.mxu0 %v595_v14  ;;  %602 = vmatprep.subr.bf16.mxu1 %v595_v14 }
  0xb7   :  { %598 = vmatpush1.bf16.msra.mxu0 %v597_v19  ;;  %606 = vmatpush1.bf16.msra.mxu1 %v597_v19 }
  0xb8   :  { %180 = vadd.xlane.f32.xlu1 %v179_v9 }
 0x125   :  { %v136_v16 = vpop.xlane.xlu0 %135 }
 0x126   :  { %v182_v26 = vmul.f32 0.015625, %v136_v16 }
 0x128   :  { %v198_v27 = vadd.f32 1e-05, %v182_v26 }
 0x129   :  { %v160_v30 = vpop.xlane.xlu1 %159  ;;  %v139_v31 = vpop.xlane.xlu0 %138 }
 0x12a   :  { %608 = vrsqrt.f32 %v198_v27  ;;  %v190_v32 = vmul.f32 0.015625, %v160_v30  ;;  %v183_v33 = vmul.f32 0.015625, %v139_v31 }
 0x12c   :  { %v206_v34 = vadd.f32 1e-05, %v190_v32  ;;  %v199_v20 = vadd.f32 1e-05, %v183_v33 }
 0x12d   :  { %v163_v21 = vpop.xlane.xlu1 %162  ;;  %v142_v35 = vpop.xlane.xlu0 %141 }
 0x12e   :  { %610 = vrsqrt.f32 %v206_v34  ;;  %v191_v38 = vmul.f32 0.015625, %v163_v21  ;;  %v184_v39 = vmul.f32 0.015625, %v142_v35 }
 0x12f   :  { %612 = vrsqrt.f32 %v199_v20 }
 0x130   :  { %v207_v40 = vadd.f32 1e-05, %v191_v38  ;;  %v200_v43 = vadd.f32 1e-05, %v184_v39 }
 0x131   :  { %v166_v46 = vpop.xlane.xlu1 %165  ;;  %v145_v47 = vpop.xlane.xlu0 %144 }
 0x132   :  { %614 = vrsqrt.f32 %v207_v40  ;;  %v192_v48 = vmul.f32 0.015625, %v166_v46  ;;  %v185_v49 = vmul.f32 0.015625, %v145_v47 }
 0x133   :  { %616 = vrsqrt.f32 %v200_v43 }
 0x134   :  { %v609_v50 = vpop.eup %608  ;;  %v208_v51 = vadd.f32 1e-05, %v192_v48  ;;  %v201_v52 = vadd.f32 1e-05, %v185_v49 }
 0x135   :  { %v169_v25 = vpop.xlane.xlu1 %168  ;;  %v148_v53 = vpop.xlane.xlu0 %147  ;;  %v230_v56 = vmul.f32 %v609_v50, %v765_v36 }
 0x136   :  { %618 = vrsqrt.f32 %v208_v51  ;;  %v193_v57 = vmul.f32 0.015625, %v169_v25  ;;  %v186_v58 = vmul.f32 0.015625, %v148_v53 }
 0x137   :  { %620 = vrsqrt.f32 %v201_v52  ;;  %v253_v62 = vmul.f32 %v908_v24, %v230_v56 }
 0x138   :  { %v611_v63 = vpop.eup %610  ;;  %v209_v2 = vadd.f32 1e-05, %v193_v57  ;;  %v202_v3 = vadd.f32 1e-05, %v186_v58 }
 0x139   :  { %v613_v28 = vpop.eup %612  ;;  %v172_v29 = vpop.xlane.xlu1 %171  ;;  %v276_v5 = vadd.f32 %v914_v61, %v253_v62  ;;  %v238_v36 = vmul.f32 %v611_v63, %v773_v44 }
 0x13a   :  { %v151_v4 = vpop.xlane.xlu0 %150  ;;  %622 = vrsqrt.f32 %v209_v2  ;;  %v194_v6 = vmul.f32 0.015625, %v172_v29  ;;  %v231_v8 = vmul.f32 %v613_v28, %v767_v37 }
 0x13b   :  { %v187_v7 = vmul.f32 0.015625, %v151_v4  ;;  %624 = vrsqrt.f32 %v202_v3  ;;  %567 = vmatmul.mubr.msk.f32.vlgmr.msra.gmra.mrb[0].mxu0 %vm36_vm0, %v276_v5  ;;  %v261_v9 = vmul.f32 %v908_v24, %v238_v36 }
 0x13c   :  { %v615_v12 = vpop.eup %614  ;;  %v210_v13 = vadd.f32 1e-05, %v194_v6  ;;  %438 = vmatprep.mubr.f32.mxu0 %v640_v22  ;;  %v254_v15 = vmul.f32 %v908_v24, %v231_v8 }
 0x13d   :  { %v203_v14 = vadd.f32 1e-05, %v187_v7  ;;  %v617_v18 = vpop.eup %616  ;;  %v175_v19 = vpop.xlane.xlu1 %174  ;;  %v284_v16 = vadd.f32 %v914_v61, %v261_v9  ;;  %v239_v26 = vmul.f32 %v615_v12, %v775_v45 }
 0x13e   :  { %v154_v44 = vpop.xlane.xlu0 %153  ;;  %626 = vrsqrt.f32 %v210_v13  ;;  %v195_v37 = vmul.f32 0.015625, %v175_v19  ;;  %v277_v30 = vadd.f32 %v914_v61, %v254_v15  ;;  %v232_v31 = vmul.f32 %v617_v18, %v783_v54 }
 0x13f   :  { %v188_v27 = vmul.f32 0.015625, %v154_v44  ;;  %628 = vrsqrt.f32 %v203_v14  ;;  %575 = vmatmul.mubr.msk.f32.vlgmr.msra.gmra.mrb[0].mxu1 %vm36_vm0, %v284_v16  ;;  %v262_v32 = vmul.f32 %v908_v24, %v239_v26 }
 0x140   :  { %v619_v33 = vpop.eup %618  ;;  %v211_v34 = vadd.f32 1e-05, %v195_v37  ;;  %568 = vmatmul.mubr.msk.f32.gmra.mrb[2].mxu0 %vm36_vm0, %v277_v30  ;;  %486 = vmatprep.mubr.f32.mxu1 %v640_v22  ;;  %v255_v38 = vmul.f32 %v908_v24, %v232_v31  ;;  %v310_v31 = vlaneseq }
 0x141   :  { %v204_v20 = vadd.f32 1e-05, %v188_v27  ;;  %v621_v45 = vpop.eup %620  ;;  %v178_v21 = vpop.xlane.xlu1 %177  ;;  %444 = vmatprep.mubr.f32.mxu0 %v640_v22  ;;  %v285_v39 = vadd.f32 %v914_v61, %v262_v32  ;;  %v240_v54 = vmul.f32 %v619_v33, %v785_v55 }
 0x142   :  { %v157_v35 = vpop.xlane.xlu0 %156  ;;  %630 = vrsqrt.f32 %v211_v34  ;;  %v196_v40 = vmul.f32 0.015625, %v178_v21  ;;  %v233_v46 = vmul.f32 %v621_v45, %v794_v0  ;;  %v278_v47 = vadd.f32 %v914_v61, %v255_v38 }
 0x143   :  { %v189_v43 = vmul.f32 0.015625, %v157_v35  ;;  %632 = vrsqrt.f32 %v204_v20  ;;  %576 = vmatmul.mubr.msk.f32.gmra.mrb[2].mxu1 %vm36_vm0, %v285_v39  ;;  %v263_v48 = vmul.f32 %v908_v24, %v240_v54  ;;  %v311_v32 = vshrl.u32 %v310_v31, 7 }
 0x144   :  { %v623_v49 = vpop.eup %622  ;;  %v212_v50 = vadd.f32 1e-05, %v196_v40  ;;  %492 = vmatprep.mubr.f32.mxu1 %v640_v22  ;;  %v256_v52 = vmul.f32 %v908_v24, %v233_v46  ;;  %569 = vmatmul.mubr.msk.f32.gmra.mrb[4].mxu0 %vm36_vm0, %v278_v47 }
 0x145   :  { %v205_v51 = vadd.f32 1e-05, %v189_v43  ;;  %v625_v55 = vpop.eup %624  ;;  %v181_v25 = vpop.xlane.xlu1 %180  ;;  %v286_v0 = vadd.f32 %v914_v61, %v263_v48  ;;  %v241_v53 = vmul.f32 %v623_v49, %v797_v1  ;;  %450 = vmatprep.mubr.f32.mxu0 %v640_v22  ;;  %v312_v33 = vsub.s32 0, %v311_v32 }
 0x146   :  { %634 = vrsqrt.f32 %v212_v50  ;;  %v197_v56 = vmul.f32 0.015625, %v181_v25  ;;  %v279_v57 = vadd.f32 %v914_v61, %v256_v52  ;;  %v234_v58 = vmul.f32 %v625_v55, %v806_v10 }
 0x147   :  { %636 = vrsqrt.f32 %v205_v51  ;;  %577 = vmatmul.mubr.msk.f32.gmra.mrb[4].mxu1 %vm36_vm0, %v286_v0  ;;  %v264_v62 = vmul.f32 %v908_v24, %v241_v53  ;;  %v316_v34 = vsub.s32 1, %v311_v32 }
 0x148   :  { %v627_v63 = vpop.eup %626  ;;  %v213_v2 = vadd.f32 1e-05, %v197_v56  ;;  %498 = vmatprep.mubr.f32.mxu1 %v640_v22  ;;  %v257_v3 = vmul.f32 %v908_v24, %v234_v58  ;;  %570 = vmatmul.mubr.msk.f32.gmra.mrb[6].mxu0 %vm36_vm0, %v279_v57 }
 0x149   :  { %v629_v1 = vpop.eup %628  ;;  %v287_v28 = vadd.f32 %v914_v61, %v264_v62  ;;  %v242_v29 = vmul.f32 %v627_v63, %v809_v11  ;;  %456 = vmatprep.mubr.f32.mxu0 %v640_v22 }
 0x14a   :  { %638 = vrsqrt.f32 %v213_v2  ;;  %v280_v10 = vadd.f32 %v914_v61, %v257_v3  ;;  %v235_v4 = vmul.f32 %v629_v1, %v818_v23 }
 0x14b   :  { %578 = vmatmul.mubr.msk.f32.gmra.mrb[6].mxu1 %vm36_vm0, %v287_v28  ;;  %v265_v5 = vmul.f32 %v908_v24, %v242_v29 }
 0x14c   :  { %v631_v36 = vpop.eup %630  ;;  %504 = vmatprep.mubr.f32.mxu1 %v640_v22  ;;  %v258_v6 = vmul.f32 %v908_v24, %v235_v4  ;;  %571 = vmatmul.mubr.msk.f32.gmra.mrb[8].mxu0 %vm36_vm0, %v280_v10 }
 0x14d   :  { %v633_v7 = vpop.eup %632  ;;  %v288_v11 = vadd.f32 %v914_v61, %v265_v5  ;;  %v243_v8 = vmul.f32 %v631_v36, %v821_v17  ;;  %462 = vmatprep.mubr.f32.mxu0 %v640_v22 }
 0x14e   :  { %v281_v23 = vadd.f32 %v914_v61, %v258_v6  ;;  %v236_v9 = vmul.f32 %v633_v7, %v842_v41 }
 0x14f   :  { %579 = vmatmul.mubr.msk.f32.gmra.mrb[8].mxu1 %vm36_vm0, %v288_v11  ;;  %v266_v12 = vmul.f32 %v908_v24, %v243_v8 }
 0x150   :  { %v635_v13 = vpop.eup %634  ;;  %510 = vmatprep.mubr.f32.mxu1 %v640_v22  ;;  %v259_v14 = vmul.f32 %v908_v24, %v236_v9  ;;  %572 = vmatmul.mubr.msk.f32.gmra.mrb[10].mxu0 %vm36_vm0, %v281_v23 }
 0x151   :  { %v637_v15 = vpop.eup %636  ;;  %v289_v17 = vadd.f32 %v914_v61, %v266_v12  ;;  %v244_v18 = vmul.f32 %v635_v13, %v845_v42  ;;  %468 = vmatprep.mubr.f32.mxu0 %v640_v22 }
 0x152   :  { %v282_v41 = vadd.f32 %v914_v61, %v259_v14  ;;  %v237_v19 = vmul.f32 %v637_v15, %v866_v59 }
 0x153   :  { %580 = vmatmul.mubr.msk.f32.gmra.mrb[10].mxu1 %vm36_vm0, %v289_v17  ;;  %v267_v44 = vmul.f32 %v908_v24, %v244_v18 }
 0x154   :  { %v639_v16 = vpop.eup %638  ;;  %516 = vmatprep.mubr.f32.mxu1 %v640_v22  ;;  %v260_v26 = vmul.f32 %v908_v24, %v237_v19  ;;  %573 = vmatmul.mubr.msk.f32.gmra.mrb[12].mxu0 %vm36_vm0, %v282_v41 }
 0x155   :  { %v290_v37 = vadd.f32 %v914_v61, %v267_v44  ;;  %v245_v42 = vmul.f32 %v639_v16, %v869_v60  ;;  %474 = vmatprep.mubr.f32.mxu0 %v640_v22  ;;  %v308_v60 = vld [vmem:[%s1148_s4] sm:$0x3] }
 0x156   :  { %v283_v27 = vadd.f32 %v914_v61, %v260_v26  ;;  %v996_v20 = vrot.slane %v308_v60, %v312_v33  ;;  %v998_v45 = vrot.slane %v308_v60, %v316_v34 }
 0x157   :  { %581 = vmatmul.mubr.msk.f32.gmra.mrb[12].mxu1 %vm36_vm0, %v290_v37  ;;  %v268_v59 = vmul.f32 %v908_v24, %v245_v42 }
 0x158   :  { %522 = vmatprep.mubr.f32.mxu1 %v640_v22  ;;  %574 = vmatmul.mubr.msk.f32.gmra.mrb[14].mxu0 %vm36_vm0, %v283_v27 }
 0x159   :  { %v291_v30 = vadd.f32 %v914_v61, %v268_v59 }
 0x15b   :  { %582 = vmatmul.mubr.msk.f32.gmra.mrb[14].mxu1 %vm36_vm0, %v291_v30 }
 0x20e   :  { %v434_v24 = vpop.f32.mrb[0].mxu0 }
 0x20f   :  { %v435_v22 = vadd.f32 %v434_v24, %v996_v20  ;;  %v436_v21 = vpop.f32.mrb[1].mxu0 }
 0x210   :  { %v437_v61 = vadd.f32 %v436_v21, %v998_v45 }
 0x211   :  { %529 = vst [vmem:[%s1149_s5] sm:$0xff] %v435_v22 }
 0x212   :  { %530 = vst.msk [vmem:[%s1149_s5 + $0x8] sm:$0xff] %vm36_vm0, %v437_v61  ;;  %v482_v35 = vpop.f32.mrb[0].mxu1 }
 0x213   :  { %v440_v38 = vpop.f32.mrb[2].mxu0  ;;  %v483_v39 = vadd.f32 %v482_v35, %v996_v20  ;;  %v484_v54 = vpop.f32.mrb[1].mxu1 }
 0x214   :  { %v441_v40 = vadd.f32 %v440_v38, %v996_v20  ;;  %v442_v43 = vpop.f32.mrb[3].mxu0  ;;  %v485_v46 = vadd.f32 %v484_v54, %v998_v45 }
 0x215   :  { %545 = vst [vmem:[%s1149_s5 + $0x80] sm:$0xff] %v483_v39  ;;  %v443_v47 = vadd.f32 %v442_v43, %v998_v45 }
 0x216   :  { %531 = vst [vmem:[%s1149_s5 + $0x10] sm:$0xff] %v441_v40  ;;  %546 = vst.msk [vmem:[%s1149_s5 + $0x88] sm:$0xff] %vm36_vm0, %v485_v46  ;;  %v488_v48 = vpop.f32.mrb[2].mxu1 }
 0x217   :  { %532 = vst.msk [vmem:[%s1149_s5 + $0x18] sm:$0xff] %vm36_vm0, %v443_v47  ;;  %v489_v49 = vadd.f32 %v488_v48, %v996_v20  ;;  %v490_v50 = vpop.f32.mrb[3].mxu1  ;;  %v446_v51 = vpop.f32.mrb[4].mxu0 }
 0x218   :  { %v491_v52 = vadd.f32 %v490_v50, %v998_v45  ;;  %v447_v55 = vadd.f32 %v446_v51, %v996_v20  ;;  %v448_v25 = vpop.f32.mrb[5].mxu0 }
 0x219   :  { %547 = vst [vmem:[%s1149_s5 + $0x90] sm:$0xff] %v489_v49  ;;  %v449_v0 = vadd.f32 %v448_v25, %v998_v45 }
 0x21a   :  { %548 = vst.msk [vmem:[%s1149_s5 + $0x98] sm:$0xff] %vm36_vm0, %v491_v52  ;;  %v494_v53 = vpop.f32.mrb[4].mxu1  ;;  %533 = vst [vmem:[%s1149_s5 + $0x20] sm:$0xff] %v447_v55 }
 0x21b   :  { %v495_v56 = vadd.f32 %v494_v53, %v996_v20  ;;  %v496_v57 = vpop.f32.mrb[5].mxu1  ;;  %534 = vst.msk [vmem:[%s1149_s5 + $0x28] sm:$0xff] %vm36_vm0, %v449_v0  ;;  %v452_v58 = vpop.f32.mrb[6].mxu0 }
 0x21c   :  { %v497_v62 = vadd.f32 %v496_v57, %v998_v45  ;;  %v453_v63 = vadd.f32 %v452_v58, %v996_v20  ;;  %v454_v2 = vpop.f32.mrb[7].mxu0 }
 0x21d   :  { %549 = vst [vmem:[%s1149_s5 + $0xa0] sm:$0xff] %v495_v56  ;;  %v455_v3 = vadd.f32 %v454_v2, %v998_v45 }
 0x21e   :  { %550 = vst.msk [vmem:[%s1149_s5 + $0xa8] sm:$0xff] %vm36_vm0, %v497_v62  ;;  %v500_v1 = vpop.f32.mrb[6].mxu1  ;;  %535 = vst [vmem:[%s1149_s5 + $0x30] sm:$0xff] %v453_v63 }
 0x21f   :  { %v501_v28 = vadd.f32 %v500_v1, %v996_v20  ;;  %v502_v29 = vpop.f32.mrb[7].mxu1  ;;  %536 = vst.msk [vmem:[%s1149_s5 + $0x38] sm:$0xff] %vm36_vm0, %v455_v3  ;;  %v458_v10 = vpop.f32.mrb[8].mxu0 }
 0x220   :  { %v503_v4 = vadd.f32 %v502_v29, %v998_v45  ;;  %v459_v5 = vadd.f32 %v458_v10, %v996_v20  ;;  %v460_v36 = vpop.f32.mrb[9].mxu0 }
 0x221   :  { %551 = vst [vmem:[%s1149_s5 + $0xb0] sm:$0xff] %v501_v28  ;;  %v461_v6 = vadd.f32 %v460_v36, %v998_v45 }
 0x222   :  { %552 = vst.msk [vmem:[%s1149_s5 + $0xb8] sm:$0xff] %vm36_vm0, %v503_v4  ;;  %v506_v7 = vpop.f32.mrb[8].mxu1  ;;  %537 = vst [vmem:[%s1149_s5 + $0x40] sm:$0xff] %v459_v5 }
 0x223   :  { %v507_v11 = vadd.f32 %v506_v7, %v996_v20  ;;  %v508_v8 = vpop.f32.mrb[9].mxu1  ;;  %538 = vst.msk [vmem:[%s1149_s5 + $0x48] sm:$0xff] %vm36_vm0, %v461_v6  ;;  %v464_v23 = vpop.f32.mrb[10].mxu0 }
 0x224   :  { %v509_v9 = vadd.f32 %v508_v8, %v998_v45  ;;  %v465_v12 = vadd.f32 %v464_v23, %v996_v20  ;;  %v466_v13 = vpop.f32.mrb[11].mxu0 }
 0x225   :  { %553 = vst [vmem:[%s1149_s5 + $0xc0] sm:$0xff] %v507_v11  ;;  %v467_v14 = vadd.f32 %v466_v13, %v998_v45 }
 0x226   :  { %554 = vst.msk [vmem:[%s1149_s5 + $0xc8] sm:$0xff] %vm36_vm0, %v509_v9  ;;  %v512_v15 = vpop.f32.mrb[10].mxu1  ;;  %539 = vst [vmem:[%s1149_s5 + $0x50] sm:$0xff] %v465_v12 }
 0x227   :  { %v513_v17 = vadd.f32 %v512_v15, %v996_v20  ;;  %v514_v18 = vpop.f32.mrb[11].mxu1  ;;  %540 = vst.msk [vmem:[%s1149_s5 + $0x58] sm:$0xff] %vm36_vm0, %v467_v14  ;;  %v470_v41 = vpop.f32.mrb[12].mxu0 }
 0x228   :  { %v515_v19 = vadd.f32 %v514_v18, %v998_v45  ;;  %v471_v44 = vadd.f32 %v470_v41, %v996_v20  ;;  %v472_v16 = vpop.f32.mrb[13].mxu0 }
 0x229   :  { %555 = vst [vmem:[%s1149_s5 + $0xd0] sm:$0xff] %v513_v17  ;;  %v473_v26 = vadd.f32 %v472_v16, %v998_v45 }
 0x22a   :  { %556 = vst.msk [vmem:[%s1149_s5 + $0xd8] sm:$0xff] %vm36_vm0, %v515_v19  ;;  %v518_v37 = vpop.f32.mrb[12].mxu1  ;;  %541 = vst [vmem:[%s1149_s5 + $0x60] sm:$0xff] %v471_v44 }
 0x22b   :  { %v519_v42 = vadd.f32 %v518_v37, %v996_v20  ;;  %v520_v27 = vpop.f32.mrb[13].mxu1  ;;  %542 = vst.msk [vmem:[%s1149_s5 + $0x68] sm:$0xff] %vm36_vm0, %v473_v26  ;;  %v476_v59 = vpop.f32.mrb[14].mxu0 }
 0x22c   :  { %v521_v30 = vadd.f32 %v520_v27, %v998_v45  ;;  %v477_v31 = vadd.f32 %v476_v59, %v996_v20  ;;  %v478_v32 = vpop.f32.mrb[15].mxu0 }
 0x22d   :  { %557 = vst [vmem:[%s1149_s5 + $0xe0] sm:$0xff] %v519_v42  ;;  %v479_v33 = vadd.f32 %v478_v32, %v998_v45 }
 0x22e   :  { %558 = vst.msk [vmem:[%s1149_s5 + $0xe8] sm:$0xff] %vm36_vm0, %v521_v30  ;;  %v524_v60 = vpop.f32.mrb[14].mxu1  ;;  %543 = vst [vmem:[%s1149_s5 + $0x70] sm:$0xff] %v477_v31 }
 0x22f   :  { %v525_v34 = vadd.f32 %v524_v60, %v996_v20  ;;  %v526_v24 = vpop.f32.mrb[15].mxu1  ;;  %544 = vst.msk [vmem:[%s1149_s5 + $0x78] sm:$0xff] %vm36_vm0, %v479_v33 }
 0x230   :  { %v527_v22 = vadd.f32 %v526_v24, %v998_v45 }
 0x231   :  { %559 = vst [vmem:[%s1149_s5 + $0xf0] sm:$0xff] %v525_v34 }
 0x232   :  { %560 = vst.msk [vmem:[%s1149_s5 + $0xf8] sm:$0xff] %vm36_vm0, %v527_v22 }

// kernel: aia_transformer_forward.23
= control target key start
LH: loop header
LB: loop body
LE: loop exit
PB: predicated region body
PF: predicated region fallthrough
CT: control target
= control target key end

     0   :  { %vm54_vm0 = vcmask 523264   ;;  %s1168_s1 = inlined_call_operand.vmem [shape: f32[64,64], index: 1, kind: input, shape index: {}]   ;;  %s1169_s0 = inlined_call_operand.vmem [shape: f32[128,64], index: 0, kind: input, shape index: {}]   ;;  %s1170_s2 = inlined_call_operand.vmem [shape: f32[1,64], index: 2, kind: input, shape index: {}]   ;;  %s1171_s3 = inlined_call_operand.vmem [shape: f32[128,64], index: 3, kind: input, shape index: {}]   ;;  %s1172_s4 = inlined_call_operand.vmem [shape: f32[1,64], index: 4, kind: input, shape index: {}]   ;;  %s1173_s5 = inlined_call_operand.vmem [shape: f32[1,64], index: 5, kind: input, shape index: {}]   ;;  %s1174_s6 = inlined_call_operand.vmem [shape: f32[128,64], index: 6, kind: output, shape index: {}]  }
   0x1   :  { %v39_v0 = vld [vmem:[%s1168_s1] sm:$0xff]  ;;  %v40_v1 = vld [vmem:[%s1168_s1 + $0x8] sm:$0xff]  ;;  %v41_v2 = vld [vmem:[%s1168_s1 + $0x10] sm:$0xff] }
   0x2   :  { %v638_v3 = vpack.c.bf16 %v40_v1, %v39_v0  ;;  %v42_v4 = vld [vmem:[%s1168_s1 + $0x18] sm:$0xff]  ;;  %v43_v6 = vld [vmem:[%s1168_s1 + $0x20] sm:$0xff]  ;;  %v44_v7 = vld [vmem:[%s1168_s1 + $0x28] sm:$0xff] }
   0x3   :  { %v642_v5 = vpack.c.bf16 %v42_v4, %v41_v2  ;;  %v23_v8 = vld [vmem:[%s1169_s0] sm:$0xff]  ;;  %v646_v10 = vpack.c.bf16 %v44_v7, %v43_v6  ;;  %v45_v11 = vld [vmem:[%s1168_s1 + $0x30] sm:$0xff]  ;;  %v46_v12 = vld [vmem:[%s1168_s1 + $0x38] sm:$0xff] }
   0x4   :  { %639 = vmatprep.subr.bf16.mxu0 %v638_v3  ;;  %654 = vmatprep.subr.bf16.mxu1 %v638_v3  ;;  %v31_v9 = vld [vmem:[%s1169_s0 + $0x40] sm:$0xff]  ;;  %v650_v13 = vpack.c.bf16 %v46_v12, %v45_v11  ;;  %v24_v14 = vld [vmem:[%s1169_s0 + $0x8] sm:$0xff]  ;;  %v25_v16 = vld [vmem:[%s1169_s0 + $0x10] sm:$0xff] }
   0x5   :  { %641 = vmatpush3.bf16.msra.mxu0 %v638_v3  ;;  %658 = vmatpush3.bf16.msra.mxu1 %v638_v3  ;;  %v32_v15 = vld [vmem:[%s1169_s0 + $0x48] sm:$0xff]  ;;  %v33_v17 = vld [vmem:[%s1169_s0 + $0x50] sm:$0xff]  ;;  %v26_v18 = vld [vmem:[%s1169_s0 + $0x18] sm:$0xff] }
   0x6   :  { %643 = vmatprep.subr.bf16.mxu0 %v642_v5  ;;  %655 = vmatprep.subr.bf16.mxu1 %v642_v5  ;;  %v34_v19 = vld [vmem:[%s1169_s0 + $0x58] sm:$0xff]  ;;  %v27_v20 = vld [vmem:[%s1169_s0 + $0x20] sm:$0xff]  ;;  %v28_v22 = vld [vmem:[%s1169_s0 + $0x28] sm:$0xff] }
   0x7   :  { %614 = vmatprep.mubr.msk.f32.mxu0 %vm54_vm0, %v23_v8  ;;  %626 = vmatprep.mubr.msk.f32.mxu1 %vm54_vm0, %v31_v9  ;;  %v35_v21 = vld [vmem:[%s1169_s0 + $0x60] sm:$0xff]  ;;  %v36_v23 = vld [vmem:[%s1169_s0 + $0x68] sm:$0xff]  ;;  %v29_v24 = vld [vmem:[%s1169_s0 + $0x30] sm:$0xff] }
   0x8   :  { %v37_v25 = vld [vmem:[%s1169_s0 + $0x70] sm:$0xff]  ;;  %v30_v26 = vld [vmem:[%s1169_s0 + $0x38] sm:$0xff]  ;;  %v820_v28 = vld [vmem:[%s1170_s2] ss:$0 sm:$0xff] }
   0x9   :  { %645 = vmatpush3.bf16.msra.mxu0 %v642_v5  ;;  %659 = vmatpush3.bf16.msra.mxu1 %v642_v5  ;;  %v38_v27 = vld [vmem:[%s1169_s0 + $0x78] sm:$0xff]  ;;  %v257_v31 = vld [vmem:[%s1171_s3 + $0x48] sm:$0xff]  ;;  %v248_v37 = vld [vmem:[%s1171_s3] sm:$0xff] }
   0xa   :  { %647 = vmatprep.subr.bf16.mxu0 %v646_v10  ;;  %656 = vmatprep.subr.bf16.mxu1 %v646_v10  ;;  %v249_v32 = vld [vmem:[%s1171_s3 + $0x8] sm:$0xff]  ;;  %v251_v44 = vld [vmem:[%s1171_s3 + $0x18] sm:$0xff]  ;;  %v256_v53 = vld [vmem:[%s1171_s3 + $0x40] sm:$0xff] }
   0xb   :  { %v259_v46 = vld [vmem:[%s1171_s3 + $0x58] sm:$0xff]  ;;  %v250_v1 = vld [vmem:[%s1171_s3 + $0x10] sm:$0xff]  ;;  %v253_v6 = vld [vmem:[%s1171_s3 + $0x28] sm:$0xff] }
   0xc   :  { %v258_v2 = vld [vmem:[%s1171_s3 + $0x50] sm:$0xff]  ;;  %v252_v7 = vld [vmem:[%s1171_s3 + $0x20] sm:$0xff] }
   0xd   :  { %649 = vmatpush3.bf16.msra.mxu0 %v646_v10  ;;  %660 = vmatpush3.bf16.msra.mxu1 %v646_v10 }
   0xe   :  { %651 = vmatprep.subr.bf16.mxu0 %v650_v13  ;;  %657 = vmatprep.subr.bf16.mxu1 %v650_v13 }
  0x11   :  { %653 = vmatpush3.bf16.msra.mxu0 %v650_v13  ;;  %661 = vmatpush3.bf16.msra.mxu1 %v650_v13 }
  0x14   :  { %615 = vmatmul.mubr.msk.f32.vlgmr.msra.gmra.mrb[0].mxu0 %vm54_vm0, %v24_v14  ;;  %627 = vmatmul.mubr.msk.f32.vlgmr.msra.gmra.mrb[0].mxu1 %vm54_vm0, %v32_v15 }
  0x15   :  { %617 = vmatprep.mubr.msk.f32.mxu0 %vm54_vm0, %v25_v16  ;;  %629 = vmatprep.mubr.msk.f32.mxu1 %vm54_vm0, %v33_v17 }
  0x18   :  { %618 = vmatmul.mubr.msk.f32.gmra.mrb[2].mxu0 %vm54_vm0, %v26_v18  ;;  %630 = vmatmul.mubr.msk.f32.gmra.mrb[2].mxu1 %vm54_vm0, %v34_v19  ;;  %v261_v19 = vld [vmem:[%s1171_s3 + $0x68] sm:$0xff] }
  0x19   :  { %620 = vmatprep.mubr.msk.f32.mxu0 %vm54_vm0, %v27_v20  ;;  %632 = vmatprep.mubr.msk.f32.mxu1 %vm54_vm0, %v35_v21  ;;  %v260_v20 = vld [vmem:[%s1171_s3 + $0x60] sm:$0xff] }
  0x1c   :  { %621 = vmatmul.mubr.msk.f32.gmra.mrb[4].mxu0 %vm54_vm0, %v28_v22  ;;  %633 = vmatmul.mubr.msk.f32.gmra.mrb[4].mxu1 %vm54_vm0, %v36_v23 }
  0x1d   :  { %623 = vmatprep.mubr.msk.f32.mxu0 %vm54_vm0, %v29_v24  ;;  %635 = vmatprep.mubr.msk.f32.mxu1 %vm54_vm0, %v37_v25 }
  0x20   :  { %624 = vmatmul.mubr.msk.f32.gmra.mrb[6].mxu0 %vm54_vm0, %v30_v26  ;;  %636 = vmatmul.mubr.msk.f32.gmra.mrb[6].mxu1 %vm54_vm0, %v38_v27 }
  0xe7   :  { %v616_v29 = vpop.f32.mrb[0].mxu0  ;;  %v628_v30 = vpop.f32.mrb[0].mxu1 }
  0xe8   :  { %v175_v33 = vadd.f32 %v616_v29, %v820_v28  ;;  %v215_v34 = vadd.f32 %v628_v30, %v820_v28  ;;  %v169_v35 = vpop.f32.mrb[1].mxu0  ;;  %v209_v36 = vpop.f32.mrb[1].mxu1  ;;  %v255_v30 = vld [vmem:[%s1171_s3 + $0x38] sm:$0xff] }
  0xe9   :  { %v170_v38 = vadd.f32 %v820_v28, %v169_v35  ;;  %v210_v41 = vadd.f32 %v820_v28, %v209_v36 }
  0xea   :  { %v834_v39 = vadd.f32 %v257_v31, %v215_v34  ;;  %v836_v40 = vadd.f32 %v249_v32, %v175_v33  ;;  %v254_v31 = vld [vmem:[%s1171_s3 + $0x30] sm:$0xff] }
  0xeb   :  { %v619_v42 = vpop.f32.mrb[2].mxu0  ;;  %v631_v43 = vpop.f32.mrb[2].mxu1  ;;  %v842_v45 = vadd.f32 %v248_v37, %v170_v38  ;;  %v860_v56 = vadd.f32 %v256_v53, %v210_v41  ;;  %v263_v38 = vld [vmem:[%s1171_s3 + $0x78] sm:$0xff]  ;;  %v262_v41 = vld [vmem:[%s1171_s3 + $0x70] sm:$0xff] }
  0xec   :  { %v185_v47 = vadd.f32 %v619_v42, %v820_v28  ;;  %v179_v48 = vpop.f32.mrb[3].mxu0  ;;  %v307_v49 = vsel %vm54_vm0, %v834_v39, 0.0  ;;  %v283_v50 = vsel %vm54_vm0, %v836_v40, 0.0  ;;  %v225_v51 = vadd.f32 %v631_v43, %v820_v28  ;;  %v219_v52 = vpop.f32.mrb[3].mxu1 }
  0xed   :  { %308 = vadd.xlane.f32.xlu1 %v307_v49  ;;  %284 = vadd.xlane.f32.xlu0 %v283_v50  ;;  %v180_v59 = vadd.f32 %v820_v28, %v179_v48  ;;  %v220_v60 = vadd.f32 %v820_v28, %v219_v52  ;;  %v280_v62 = vsel %vm54_vm0, %v842_v45, 0.0  ;;  %v304_v10 = vsel %vm54_vm0, %v860_v56, 0.0 }
  0xee   :  { %v856_v54 = vadd.f32 %v251_v44, %v185_v47  ;;  %v858_v55 = vadd.f32 %v259_v46, %v225_v51 }
  0xef   :  { %v622_v57 = vpop.f32.mrb[4].mxu0  ;;  %v634_v58 = vpop.f32.mrb[4].mxu1  ;;  %v886_v11 = vadd.f32 %v250_v1, %v180_v59  ;;  %v888_v12 = vadd.f32 %v258_v2, %v220_v60 }
  0xf0   :  { %v289_v61 = vsel %vm54_vm0, %v856_v54, 0.0  ;;  %v189_v63 = vpop.f32.mrb[5].mxu0  ;;  %v229_v0 = vpop.f32.mrb[5].mxu1  ;;  %v313_v3 = vsel %vm54_vm0, %v858_v55, 0.0  ;;  %v195_v4 = vadd.f32 %v622_v57, %v820_v28  ;;  %v235_v15 = vadd.f32 %v634_v58, %v820_v28 }
  0xf1   :  { %290 = vadd.xlane.f32.xlu1 %v289_v61  ;;  %281 = vadd.xlane.f32.xlu0 %v280_v62  ;;  %v190_v5 = vadd.f32 %v820_v28, %v189_v63  ;;  %v230_v16 = vadd.f32 %v820_v28, %v229_v0  ;;  %v286_v21 = vsel %vm54_vm0, %v886_v11, 0.0  ;;  %v310_v22 = vsel %vm54_vm0, %v888_v12, 0.0 }
  0xf2   :  { %v892_v17 = vadd.f32 %v253_v6, %v195_v4  ;;  %v906_v23 = vadd.f32 %v261_v19, %v235_v15 }
  0xf3   :  { %v625_v8 = vpop.f32.mrb[6].mxu0  ;;  %v637_v9 = vpop.f32.mrb[6].mxu1  ;;  %v894_v18 = vadd.f32 %v252_v7, %v190_v5  ;;  %v908_v24 = vadd.f32 %v260_v20, %v230_v16 }
  0xf4   :  { %v199_v13 = vpop.f32.mrb[7].mxu0  ;;  %v239_v14 = vpop.f32.mrb[7].mxu1  ;;  %v295_v25 = vsel %vm54_vm0, %v892_v17, 0.0  ;;  %v205_v27 = vadd.f32 %v625_v8, %v820_v28  ;;  %v319_v32 = vsel %vm54_vm0, %v906_v23, 0.0  ;;  %v245_v33 = vadd.f32 %v637_v9, %v820_v28 }
  0xf5   :  { %314 = vadd.xlane.f32.xlu1 %v313_v3  ;;  %305 = vadd.xlane.f32.xlu0 %v304_v10  ;;  %v292_v26 = vsel %vm54_vm0, %v894_v18, 0.0  ;;  %v200_v29 = vadd.f32 %v820_v28, %v199_v13  ;;  %v316_v34 = vsel %vm54_vm0, %v908_v24, 0.0  ;;  %v240_v35 = vadd.f32 %v820_v28, %v239_v14 }
  0xf6   :  { %v928_v36 = vadd.f32 %v255_v30, %v205_v27  ;;  %v942_v43 = vadd.f32 %v263_v38, %v245_v33 }
  0xf7   :  { %v930_v37 = vadd.f32 %v254_v31, %v200_v29  ;;  %v944_v44 = vadd.f32 %v262_v41, %v240_v35 }
  0xf8   :  { %v301_v42 = vsel %vm54_vm0, %v928_v36, 0.0  ;;  %v325_v46 = vsel %vm54_vm0, %v942_v43, 0.0 }
  0xf9   :  { %287 = vadd.xlane.f32.xlu1 %v286_v21  ;;  %311 = vadd.xlane.f32.xlu0 %v310_v22  ;;  %v298_v28 = vsel %vm54_vm0, %v930_v37, 0.0  ;;  %v322_v47 = vsel %vm54_vm0, %v944_v44, 0.0 }
  0xfd   :  { %296 = vadd.xlane.f32.xlu1 %v295_v25  ;;  %293 = vadd.xlane.f32.xlu0 %v292_v26 }
 0x101   :  { %320 = vadd.xlane.f32.xlu1 %v319_v32  ;;  %317 = vadd.xlane.f32.xlu0 %v316_v34 }
 0x105   :  { %302 = vadd.xlane.f32.xlu1 %v301_v42  ;;  %299 = vadd.xlane.f32.xlu0 %v298_v28 }
 0x109   :  { %326 = vadd.xlane.f32.xlu1 %v325_v46  ;;  %323 = vadd.xlane.f32.xlu0 %v322_v47 }
 0x17a   :  { %v309_v48 = vpop.xlane.xlu1 %308  ;;  %v285_v49 = vpop.xlane.xlu0 %284 }
 0x17b   :  { %v338_v50 = vmul.f32 0.015625, %v309_v48  ;;  %v330_v51 = vmul.f32 0.015625, %v285_v49 }
 0x17d   :  { %v951_v52 = vsub.f32 %v834_v39, %v338_v50  ;;  %v954_v53 = vsub.f32 %v836_v40, %v330_v51 }
 0x17e   :  { %v291_v57 = vpop.xlane.xlu1 %290  ;;  %v282_v58 = vpop.xlane.xlu0 %281 }
 0x17f   :  { %v332_v59 = vmul.f32 0.015625, %v291_v57  ;;  %v329_v60 = vmul.f32 0.015625, %v282_v58  ;;  %v362_v61 = vmul.f32 %v954_v53, %v954_v53  ;;  %v370_v39 = vmul.f32 %v951_v52, %v951_v52 }
 0x181   :  { %v959_v62 = vsub.f32 %v856_v54, %v332_v59  ;;  %v962_v63 = vsub.f32 %v842_v45, %v329_v60  ;;  %v380_v0 = vsel %vm54_vm0, %v362_v61, 0.0  ;;  %v404_v6 = vsel %vm54_vm0, %v370_v39, 0.0 }
 0x182   :  { %v315_v40 = vpop.xlane.xlu1 %314  ;;  %381 = vadd.xlane.f32.xlu1 %v380_v0  ;;  %v306_v1 = vpop.xlane.xlu0 %305 }
 0x183   :  { %v340_v2 = vmul.f32 0.015625, %v315_v40  ;;  %v337_v3 = vmul.f32 0.015625, %v306_v1  ;;  %v361_v4 = vmul.f32 %v962_v63, %v962_v63  ;;  %v364_v54 = vmul.f32 %v959_v62, %v959_v62 }
 0x185   :  { %v972_v5 = vsub.f32 %v858_v55, %v340_v2  ;;  %v975_v45 = vsub.f32 %v860_v56, %v337_v3  ;;  %v377_v7 = vsel %vm54_vm0, %v361_v4, 0.0  ;;  %v386_v15 = vsel %vm54_vm0, %v364_v54, 0.0 }
 0x186   :  { %405 = vadd.xlane.f32.xlu1 %v404_v6  ;;  %v288_v8 = vpop.xlane.xlu1 %287  ;;  %378 = vadd.xlane.f32.xlu0 %v377_v7  ;;  %v312_v9 = vpop.xlane.xlu0 %311 }
 0x187   :  { %v331_v10 = vmul.f32 0.015625, %v288_v8  ;;  %v339_v13 = vmul.f32 0.015625, %v312_v9  ;;  %v369_v14 = vmul.f32 %v975_v45, %v975_v45  ;;  %v372_v19 = vmul.f32 %v972_v5, %v972_v5 }
 0x189   :  { %v983_v55 = vsub.f32 %v886_v11, %v331_v10  ;;  %v986_v56 = vsub.f32 %v888_v12, %v339_v13  ;;  %v401_v16 = vsel %vm54_vm0, %v369_v14, 0.0  ;;  %v410_v29 = vsel %vm54_vm0, %v372_v19, 0.0 }
 0x18a   :  { %387 = vadd.xlane.f32.xlu1 %v386_v15  ;;  %v297_v20 = vpop.xlane.xlu1 %296  ;;  %402 = vadd.xlane.f32.xlu0 %v401_v16  ;;  %v294_v21 = vpop.xlane.xlu0 %293 }
 0x18b   :  { %v334_v22 = vmul.f32 0.015625, %v297_v20  ;;  %v333_v25 = vmul.f32 0.015625, %v294_v21  ;;  %v363_v26 = vmul.f32 %v983_v55, %v983_v55  ;;  %v371_v11 = vmul.f32 %v986_v56, %v986_v56 }
 0x18d   :  { %v996_v12 = vsub.f32 %v892_v17, %v334_v22  ;;  %v999_v27 = vsub.f32 %v894_v18, %v333_v25  ;;  %v383_v30 = vsel %vm54_vm0, %v363_v26, 0.0  ;;  %v407_v38 = vsel %vm54_vm0, %v371_v11, 0.0 }
 0x18e   :  { %411 = vadd.xlane.f32.xlu1 %v410_v29  ;;  %v321_v31 = vpop.xlane.xlu1 %320  ;;  %384 = vadd.xlane.f32.xlu0 %v383_v30  ;;  %v318_v32 = vpop.xlane.xlu0 %317 }
 0x18f   :  { %v342_v33 = vmul.f32 0.015625, %v321_v31  ;;  %v341_v34 = vmul.f32 0.015625, %v318_v32  ;;  %v366_v35 = vmul.f32 %v996_v12, %v996_v12  ;;  %v365_v42 = vmul.f32 %v999_v27, %v999_v27  ;;  %v1049_v32 = vld [vmem:[%s1172_s4] ss:$0 sm:$0xff] }
 0x191   :  { %v1007_v17 = vsub.f32 %v906_v23, %v342_v33  ;;  %v1010_v18 = vsub.f32 %v908_v24, %v341_v34  ;;  %v392_v41 = vsel %vm54_vm0, %v366_v35, 0.0  ;;  %v389_v57 = vsel %vm54_vm0, %v365_v42, 0.0  ;;  %v1055_v42 = vld [vmem:[%s1173_s5] ss:$0 sm:$0xff] }
 0x192   :  { %393 = vadd.xlane.f32.xlu1 %v392_v41  ;;  %v303_v28 = vpop.xlane.xlu1 %302  ;;  %408 = vadd.xlane.f32.xlu0 %v407_v38  ;;  %v300_v46 = vpop.xlane.xlu0 %299 }
 0x193   :  { %v336_v47 = vmul.f32 0.015625, %v303_v28  ;;  %v335_v48 = vmul.f32 0.015625, %v300_v46  ;;  %v374_v49 = vmul.f32 %v1007_v17, %v1007_v17  ;;  %v373_v23 = vmul.f32 %v1010_v18, %v1010_v18 }
 0x195   :  { %v1020_v24 = vsub.f32 %v928_v36, %v336_v47  ;;  %v1023_v50 = vsub.f32 %v930_v37, %v335_v48  ;;  %v416_v51 = vsel %vm54_vm0, %v374_v49, 0.0  ;;  %v413_v39 = vsel %vm54_vm0, %v373_v23, 0.0 }
 0x196   :  { %417 = vadd.xlane.f32.xlu1 %v416_v51  ;;  %v327_v58 = vpop.xlane.xlu1 %326  ;;  %390 = vadd.xlane.f32.xlu0 %v389_v57  ;;  %v324_v59 = vpop.xlane.xlu0 %323 }
 0x197   :  { %v344_v60 = vmul.f32 0.015625, %v327_v58  ;;  %v343_v61 = vmul.f32 0.015625, %v324_v59  ;;  %v368_v0 = vmul.f32 %v1020_v24, %v1020_v24  ;;  %v367_v1 = vmul.f32 %v1023_v50, %v1023_v50 }
 0x199   :  { %v1031_v36 = vsub.f32 %v942_v43, %v344_v60  ;;  %v1034_v37 = vsub.f32 %v944_v44, %v343_v61  ;;  %v398_v40 = vsel %vm54_vm0, %v368_v0, 0.0  ;;  %v395_v4 = vsel %vm54_vm0, %v367_v1, 0.0 }
 0x19a   :  { %399 = vadd.xlane.f32.xlu1 %v398_v40  ;;  %414 = vadd.xlane.f32.xlu0 %v413_v39 }
 0x19b   :  { %v376_v2 = vmul.f32 %v1031_v36, %v1031_v36  ;;  %v375_v43 = vmul.f32 %v1034_v37, %v1034_v37 }
 0x19d   :  { %v422_v3 = vsel %vm54_vm0, %v376_v2, 0.0  ;;  %v419_v44 = vsel %vm54_vm0, %v375_v43, 0.0 }
 0x19e   :  { %423 = vadd.xlane.f32.xlu1 %v422_v3  ;;  %396 = vadd.xlane.f32.xlu0 %v395_v4 }
 0x1a2   :  { %420 = vadd.xlane.f32.xlu0 %v419_v44 }
 0x20f   :  { %v382_v54 = vpop.xlane.xlu1 %381 }
 0x210   :  { %v426_v6 = vmul.f32 0.015625, %v382_v54 }
 0x212   :  { %v442_v7 = vadd.f32 1e-05, %v426_v6 }
 0x213   :  { %v406_v8 = vpop.xlane.xlu1 %405  ;;  %v379_v9 = vpop.xlane.xlu0 %378 }
 0x214   :  { %662 = vrsqrt.f32 %v442_v7  ;;  %v434_v10 = vmul.f32 0.015625, %v406_v8  ;;  %v425_v13 = vmul.f32 0.015625, %v379_v9 }
 0x216   :  { %v450_v14 = vadd.f32 1e-05, %v434_v10  ;;  %v441_v15 = vadd.f32 1e-05, %v425_v13 }
 0x217   :  { %v388_v16 = vpop.xlane.xlu1 %387  ;;  %v403_v19 = vpop.xlane.xlu0 %402 }
 0x218   :  { %664 = vrsqrt.f32 %v450_v14  ;;  %v428_v20 = vmul.f32 0.015625, %v388_v16  ;;  %v433_v21 = vmul.f32 0.015625, %v403_v19 }
 0x219   :  { %666 = vrsqrt.f32 %v441_v15 }
 0x21a   :  { %v444_v22 = vadd.f32 1e-05, %v428_v20  ;;  %v449_v25 = vadd.f32 1e-05, %v433_v21 }
 0x21b   :  { %v412_v26 = vpop.xlane.xlu1 %411  ;;  %v385_v11 = vpop.xlane.xlu0 %384 }
 0x21c   :  { %668 = vrsqrt.f32 %v444_v22  ;;  %v436_v29 = vmul.f32 0.015625, %v412_v26  ;;  %v427_v30 = vmul.f32 0.015625, %v385_v11 }
 0x21d   :  { %670 = vrsqrt.f32 %v449_v25 }
 0x21e   :  { %v663_v31 = vpop.eup %662  ;;  %v452_v33 = vadd.f32 1e-05, %v436_v29  ;;  %v443_v34 = vadd.f32 1e-05, %v427_v30 }
 0x21f   :  { %v474_v35 = vmul.f32 %v663_v31, %v954_v53  ;;  %v394_v38 = vpop.xlane.xlu1 %393  ;;  %v409_v41 = vpop.xlane.xlu0 %408 }
 0x220   :  { %672 = vrsqrt.f32 %v452_v33  ;;  %v430_v28 = vmul.f32 0.015625, %v394_v38  ;;  %v435_v46 = vmul.f32 0.015625, %v409_v41 }
 0x221   :  { %v497_v47 = vmul.f32 %v1049_v32, %v474_v35  ;;  %674 = vrsqrt.f32 %v443_v34 }
 0x222   :  { %v665_v48 = vpop.eup %664  ;;  %v446_v49 = vadd.f32 1e-05, %v430_v28  ;;  %v451_v23 = vadd.f32 1e-05, %v435_v46 }
 0x223   :  { %v667_v51 = vpop.eup %666  ;;  %v520_v57 = vadd.f32 %v1055_v42, %v497_v47  ;;  %v482_v53 = vmul.f32 %v665_v48, %v951_v52  ;;  %v418_v58 = vpop.xlane.xlu1 %417 }
 0x224   :  { %v391_v59 = vpop.xlane.xlu0 %390  ;;  %v473_v60 = vmul.f32 %v667_v51, %v962_v63  ;;  %676 = vrsqrt.f32 %v446_v49  ;;  %v438_v61 = vmul.f32 0.015625, %v418_v58 }
 0x225   :  { %v429_v0 = vmul.f32 0.015625, %v391_v59  ;;  %536 = vst.msk [vmem:[%s1174_s6 + $0x8] sm:$0xff] %vm54_vm0, %v520_v57  ;;  %v505_v39 = vmul.f32 %v1049_v32, %v482_v53  ;;  %678 = vrsqrt.f32 %v451_v23 }
 0x226   :  { %v669_v40 = vpop.eup %668  ;;  %v496_v1 = vmul.f32 %v1049_v32, %v473_v60  ;;  %v454_v2 = vadd.f32 1e-05, %v438_v61 }
 0x227   :  { %v445_v52 = vadd.f32 1e-05, %v429_v0  ;;  %v671_v3 = vpop.eup %670  ;;  %v528_v4 = vadd.f32 %v1055_v42, %v505_v39  ;;  %v476_v63 = vmul.f32 %v669_v40, %v959_v62  ;;  %v400_v43 = vpop.xlane.xlu1 %399 }
 0x228   :  { %v415_v44 = vpop.xlane.xlu0 %414  ;;  %v519_v54 = vadd.f32 %v1055_v42, %v496_v1  ;;  %v481_v6 = vmul.f32 %v671_v3, %v975_v45  ;;  %680 = vrsqrt.f32 %v454_v2  ;;  %v432_v7 = vmul.f32 0.015625, %v400_v43 }
 0x229   :  { %544 = vst.msk [vmem:[%s1174_s6 + $0x48] sm:$0xff] %vm54_vm0, %v528_v4  ;;  %v499_v8 = vmul.f32 %v1049_v32, %v476_v63  ;;  %682 = vrsqrt.f32 %v445_v52  ;;  %v437_v9 = vmul.f32 0.015625, %v415_v44 }
 0x22a   :  { %v673_v10 = vpop.eup %672  ;;  %535 = vst.msk [vmem:[%s1174_s6] sm:$0xff] %vm54_vm0, %v519_v54  ;;  %v504_v62 = vmul.f32 %v1049_v32, %v481_v6  ;;  %v448_v45 = vadd.f32 1e-05, %v432_v7 }
 0x22b   :  { %v675_v13 = vpop.eup %674  ;;  %v522_v14 = vadd.f32 %v1055_v42, %v499_v8  ;;  %v484_v15 = vmul.f32 %v673_v10, %v972_v5  ;;  %v453_v16 = vadd.f32 1e-05, %v437_v9  ;;  %v424_v19 = vpop.xlane.xlu1 %423 }
 0x22c   :  { %v397_v20 = vpop.xlane.xlu0 %396  ;;  %v527_v21 = vadd.f32 %v1055_v42, %v504_v62  ;;  %v475_v22 = vmul.f32 %v675_v13, %v983_v55  ;;  %684 = vrsqrt.f32 %v448_v45  ;;  %v440_v25 = vmul.f32 0.015625, %v424_v19 }
 0x22d   :  { %538 = vst.msk [vmem:[%s1174_s6 + $0x18] sm:$0xff] %vm54_vm0, %v522_v14  ;;  %v507_v26 = vmul.f32 %v1049_v32, %v484_v15  ;;  %686 = vrsqrt.f32 %v453_v16  ;;  %v431_v11 = vmul.f32 0.015625, %v397_v20 }
 0x22e   :  { %v677_v29 = vpop.eup %676  ;;  %543 = vst.msk [vmem:[%s1174_s6 + $0x40] sm:$0xff] %vm54_vm0, %v527_v21  ;;  %v498_v5 = vmul.f32 %v1049_v32, %v475_v22  ;;  %v456_v55 = vadd.f32 1e-05, %v440_v25 }
 0x22f   :  { %v679_v30 = vpop.eup %678  ;;  %v530_v31 = vadd.f32 %v1055_v42, %v507_v26  ;;  %v478_v33 = vmul.f32 %v677_v29, %v996_v12  ;;  %v447_v34 = vadd.f32 1e-05, %v431_v11 }
 0x230   :  { %v421_v35 = vpop.xlane.xlu0 %420  ;;  %v521_v38 = vadd.f32 %v1055_v42, %v498_v5  ;;  %v483_v41 = vmul.f32 %v679_v30, %v986_v56  ;;  %688 = vrsqrt.f32 %v456_v55 }
 0x231   :  { %v439_v28 = vmul.f32 0.015625, %v421_v35  ;;  %546 = vst.msk [vmem:[%s1174_s6 + $0x58] sm:$0xff] %vm54_vm0, %v530_v31  ;;  %v501_v46 = vmul.f32 %v1049_v32, %v478_v33  ;;  %690 = vrsqrt.f32 %v447_v34 }
 0x232   :  { %v681_v47 = vpop.eup %680  ;;  %537 = vst.msk [vmem:[%s1174_s6 + $0x10] sm:$0xff] %vm54_vm0, %v521_v38  ;;  %v506_v12 = vmul.f32 %v1049_v32, %v483_v41 }
 0x233   :  { %v455_v48 = vadd.f32 1e-05, %v439_v28  ;;  %v683_v56 = vpop.eup %682  ;;  %v524_v49 = vadd.f32 %v1055_v42, %v501_v46  ;;  %v486_v23 = vmul.f32 %v681_v47, %v1007_v17 }
 0x234   :  { %v529_v51 = vadd.f32 %v1055_v42, %v506_v12  ;;  %v477_v57 = vmul.f32 %v683_v56, %v999_v27 }
 0x235   :  { %692 = vrsqrt.f32 %v455_v48  ;;  %540 = vst.msk [vmem:[%s1174_s6 + $0x28] sm:$0xff] %vm54_vm0, %v524_v49  ;;  %v509_v53 = vmul.f32 %v1049_v32, %v486_v23 }
 0x236   :  { %v685_v58 = vpop.eup %684  ;;  %545 = vst.msk [vmem:[%s1174_s6 + $0x50] sm:$0xff] %vm54_vm0, %v529_v51  ;;  %v500_v17 = vmul.f32 %v1049_v32, %v477_v57 }
 0x237   :  { %v687_v59 = vpop.eup %686  ;;  %v532_v60 = vadd.f32 %v1055_v42, %v509_v53  ;;  %v480_v27 = vmul.f32 %v685_v58, %v1020_v24 }
 0x238   :  { %v523_v61 = vadd.f32 %v1055_v42, %v500_v17  ;;  %v485_v0 = vmul.f32 %v687_v59, %v1010_v18 }
 0x239   :  { %548 = vst.msk [vmem:[%s1174_s6 + $0x68] sm:$0xff] %vm54_vm0, %v532_v60  ;;  %v503_v39 = vmul.f32 %v1049_v32, %v480_v27 }
 0x23a   :  { %v689_v40 = vpop.eup %688  ;;  %539 = vst.msk [vmem:[%s1174_s6 + $0x20] sm:$0xff] %vm54_vm0, %v523_v61  ;;  %v508_v1 = vmul.f32 %v1049_v32, %v485_v0 }
 0x23b   :  { %v691_v24 = vpop.eup %690  ;;  %v526_v2 = vadd.f32 %v1055_v42, %v503_v39  ;;  %v488_v18 = vmul.f32 %v689_v40, %v1031_v36 }
 0x23c   :  { %v531_v52 = vadd.f32 %v1055_v42, %v508_v1  ;;  %v479_v3 = vmul.f32 %v691_v24, %v1023_v50 }
 0x23d   :  { %542 = vst.msk [vmem:[%s1174_s6 + $0x38] sm:$0xff] %vm54_vm0, %v526_v2  ;;  %v511_v4 = vmul.f32 %v1049_v32, %v488_v18 }
 0x23e   :  { %547 = vst.msk [vmem:[%s1174_s6 + $0x60] sm:$0xff] %vm54_vm0, %v531_v52  ;;  %v502_v43 = vmul.f32 %v1049_v32, %v479_v3 }
 0x23f   :  { %v693_v63 = vpop.eup %692  ;;  %v534_v36 = vadd.f32 %v1055_v42, %v511_v4 }
 0x240   :  { %v487_v44 = vmul.f32 %v693_v63, %v1034_v37  ;;  %v525_v50 = vadd.f32 %v1055_v42, %v502_v43 }
 0x241   :  { %550 = vst.msk [vmem:[%s1174_s6 + $0x78] sm:$0xff] %vm54_vm0, %v534_v36 }
 0x242   :  { %v510_v54 = vmul.f32 %v1049_v32, %v487_v44  ;;  %541 = vst.msk [vmem:[%s1174_s6 + $0x30] sm:$0xff] %vm54_vm0, %v525_v50 }
 0x244   :  { %v533_v6 = vadd.f32 %v1055_v42, %v510_v54 }
 0x246   :  { %549 = vst.msk [vmem:[%s1174_s6 + $0x70] sm:$0xff] %vm54_vm0, %v533_v6 }

// kernel: aia_transformer_forward.24
= control target key start
LH: loop header
LB: loop body
LE: loop exit
PB: predicated region body
PF: predicated region fallthrough
CT: control target
= control target key end

     0   :  { %v847_v3 = vmov 0.0   ;;  %vm110_vm0 = vcmask 523264   ;;  %s1626_s1 = inlined_call_operand.vmem [shape: f32[64,768], index: 1, kind: input, shape index: {}]   ;;  %s1627_s0 = inlined_call_operand.vmem [shape: f32[128,64], index: 0, kind: input, shape index: {}]   ;;  %s1628_s2 = inlined_call_operand.vmem [shape: f32[1,768], index: 2, kind: input, shape index: {}]   ;;  %s1629_s3 = inlined_call_operand.vmem [shape: f32[128,768], index: 3, kind: output, shape index: {}]  }
   0x1   :  { %v31_v0 = vld [vmem:[%s1626_s1 + $0x8] sm:$0xff]  ;;  %v37_v1 = vld [vmem:[%s1626_s1 + $0x38] sm:$0xff]  ;;  %v30_v2 = vld [vmem:[%s1626_s1] sm:$0xff]  ;;  %223 = vmatprep.mubr.f32.mxu0 %v847_v3  ;;  %271 = vmatprep.mubr.f32.mxu1 %v847_v3 }
   0x2   :  { %v790_v4 = vpack.c.bf16 %v37_v1, %v31_v0  ;;  %v36_v5 = vld [vmem:[%s1626_s1 + $0x30] sm:$0xff]  ;;  %v43_v6 = vld [vmem:[%s1626_s1 + $0x68] sm:$0xff]  ;;  %v49_v7 = vld [vmem:[%s1626_s1 + $0x98] sm:$0xff] }
   0x3   :  { %v792_v8 = vpack.c.bf16 %v36_v5, %v30_v2  ;;  %v794_v9 = vpack.c.bf16 %v49_v7, %v43_v6  ;;  %v42_v10 = vld [vmem:[%s1626_s1 + $0x60] sm:$0xff]  ;;  %v48_v11 = vld [vmem:[%s1626_s1 + $0x90] sm:$0xff]  ;;  %v55_v12 = vld [vmem:[%s1626_s1 + $0xc8] sm:$0xff] }
   0x4   :  { %791 = vmatprep.subr.bf16.mxu0 %v790_v4  ;;  %838 = vmatprep.subr.bf16.mxu1 %v790_v4  ;;  %v61_v13 = vld [vmem:[%s1626_s1 + $0xf8] sm:$0xff]  ;;  %v796_v14 = vpack.c.bf16 %v48_v11, %v42_v10  ;;  %v54_v16 = vld [vmem:[%s1626_s1 + $0xc0] sm:$0xff]  ;;  %v60_v17 = vld [vmem:[%s1626_s1 + $0xf0] sm:$0xff] }
   0x5   :  { %793 = vmatpush1.bf16.msra.mxu0 %v792_v8  ;;  %842 = vmatpush1.bf16.msra.mxu1 %v792_v8  ;;  %v798_v15 = vpack.c.bf16 %v61_v13, %v55_v12  ;;  %v67_v18 = vld [vmem:[%s1626_s1 + $0x128] sm:$0xff]  ;;  %v73_v19 = vld [vmem:[%s1626_s1 + $0x158] sm:$0xff]  ;;  %v800_v20 = vpack.c.bf16 %v60_v17, %v54_v16  ;;  %v66_v22 = vld [vmem:[%s1626_s1 + $0x120] sm:$0xff] }
   0x6   :  { %795 = vmatprep.subr.bf16.mxu0 %v794_v9  ;;  %839 = vmatprep.subr.bf16.mxu1 %v794_v9  ;;  %v802_v21 = vpack.c.bf16 %v73_v19, %v67_v18  ;;  %v72_v23 = vld [vmem:[%s1626_s1 + $0x150] sm:$0xff]  ;;  %v33_v24 = vld [vmem:[%s1626_s1 + $0x18] sm:$0xff]  ;;  %v39_v25 = vld [vmem:[%s1626_s1 + $0x48] sm:$0xff] }
   0x7   :  { %v35_v26 = vld [vmem:[%s1626_s1 + $0x28] sm:$0xff]  ;;  %v41_v27 = vld [vmem:[%s1626_s1 + $0x58] sm:$0xff]  ;;  %v804_v28 = vpack.c.bf16 %v72_v23, %v66_v22  ;;  %v32_v29 = vld [vmem:[%s1626_s1 + $0x10] sm:$0xff]  ;;  %v806_v30 = vpack.c.bf16 %v39_v25, %v33_v24 }
   0x8   :  { %v822_v31 = vpack.c.bf16 %v41_v27, %v35_v26  ;;  %v38_v32 = vld [vmem:[%s1626_s1 + $0x40] sm:$0xff]  ;;  %v40_v34 = vld [vmem:[%s1626_s1 + $0x50] sm:$0xff]  ;;  %v45_v35 = vld [vmem:[%s1626_s1 + $0x78] sm:$0xff]  ;;  %v80_v26 = vlaneseq }
   0x9   :  { %797 = vmatpush1.bf16.msra.mxu0 %v796_v14  ;;  %843 = vmatpush1.bf16.msra.mxu1 %v796_v14  ;;  %v34_v33 = vld [vmem:[%s1626_s1 + $0x20] sm:$0xff]  ;;  %v51_v36 = vld [vmem:[%s1626_s1 + $0xa8] sm:$0xff]  ;;  %v53_v38 = vld [vmem:[%s1626_s1 + $0xb8] sm:$0xff]  ;;  %v808_v41 = vpack.c.bf16 %v38_v32, %v32_v29 }
   0xa   :  { %799 = vmatprep.subr.bf16.mxu0 %v798_v15  ;;  %840 = vmatprep.subr.bf16.mxu1 %v798_v15  ;;  %v47_v37 = vld [vmem:[%s1626_s1 + $0x88] sm:$0xff]  ;;  %v957_v39 = vld [vmem:[%s1627_s0] sm:$0xff]  ;;  %v824_v42 = vpack.c.bf16 %v40_v34, %v34_v33  ;;  %v44_v43 = vld [vmem:[%s1626_s1 + $0x70] sm:$0xff]  ;;  %v810_v45 = vpack.c.bf16 %v51_v36, %v45_v35  ;;  %v1211_v27 = vshrl.u32 %v80_v26, 7 }
   0xb   :  { %v962_v40 = vld [vmem:[%s1627_s0 + $0x40] sm:$0xff]  ;;  %v826_v46 = vpack.c.bf16 %v53_v38, %v47_v37  ;;  %v52_v48 = vld [vmem:[%s1626_s1 + $0xb0] sm:$0xff]  ;;  %v57_v49 = vld [vmem:[%s1626_s1 + $0xd8] sm:$0xff] }
   0xc   :  { %v50_v44 = vld [vmem:[%s1626_s1 + $0xa0] sm:$0xff]  ;;  %v63_v50 = vld [vmem:[%s1626_s1 + $0x108] sm:$0xff]  ;;  %v65_v52 = vld [vmem:[%s1626_s1 + $0x118] sm:$0xff] }
   0xd   :  { %801 = vmatpush1.bf16.msra.mxu0 %v800_v20  ;;  %844 = vmatpush1.bf16.msra.mxu1 %v800_v20  ;;  %v46_v47 = vld [vmem:[%s1626_s1 + $0x80] sm:$0xff]  ;;  %v59_v51 = vld [vmem:[%s1626_s1 + $0xe8] sm:$0xff]  ;;  %v812_v55 = vpack.c.bf16 %v50_v44, %v44_v43  ;;  %v56_v57 = vld [vmem:[%s1626_s1 + $0xd0] sm:$0xff]  ;;  %v814_v59 = vpack.c.bf16 %v63_v50, %v57_v49 }
   0xe   :  { %803 = vmatprep.subr.bf16.mxu0 %v802_v21  ;;  %841 = vmatprep.subr.bf16.mxu1 %v802_v21  ;;  %v995_v53 = vld [vmem:[%s1627_s0 + $0x8] sm:$0xff]  ;;  %v828_v56 = vpack.c.bf16 %v52_v48, %v46_v47  ;;  %v62_v58 = vld [vmem:[%s1626_s1 + $0x100] sm:$0xff]  ;;  %v830_v60 = vpack.c.bf16 %v65_v52, %v59_v51  ;;  %v64_v62 = vld [vmem:[%s1626_s1 + $0x110] sm:$0xff] }
   0xf   :  { %v1000_v54 = vld [vmem:[%s1627_s0 + $0x48] sm:$0xff]  ;;  %v58_v61 = vld [vmem:[%s1626_s1 + $0xe0] sm:$0xff]  ;;  %v69_v63 = vld [vmem:[%s1626_s1 + $0x138] sm:$0xff]  ;;  %v816_v6 = vpack.c.bf16 %v62_v58, %v56_v57 }
  0x10   :  { %v75_v0 = vld [vmem:[%s1626_s1 + $0x168] sm:$0xff]  ;;  %v77_v2 = vld [vmem:[%s1626_s1 + $0x178] sm:$0xff]  ;;  %v1037_v4 = vld [vmem:[%s1627_s0 + $0x10] sm:$0xff]  ;;  %v832_v7 = vpack.c.bf16 %v64_v62, %v58_v61 }
  0x11   :  { %805 = vmatpush1.bf16.msra.mxu0 %v804_v28  ;;  %845 = vmatpush1.bf16.msra.mxu1 %v804_v28  ;;  %v71_v1 = vld [vmem:[%s1626_s1 + $0x148] sm:$0xff]  ;;  %v1042_v5 = vld [vmem:[%s1627_s0 + $0x50] sm:$0xff]  ;;  %v818_v9 = vpack.c.bf16 %v75_v0, %v69_v63  ;;  %v74_v11 = vld [vmem:[%s1626_s1 + $0x160] sm:$0xff]  ;;  %v82_v28 = vsub.s32 0, %v1211_v27 }
  0x12   :  { %807 = vmatprep.subr.bf16.mxu1 %v806_v30  ;;  %823 = vmatprep.subr.bf16.mxu0 %v822_v31  ;;  %v68_v8 = vld [vmem:[%s1626_s1 + $0x130] sm:$0xff]  ;;  %v834_v10 = vpack.c.bf16 %v77_v2, %v71_v1  ;;  %v70_v12 = vld [vmem:[%s1626_s1 + $0x140] sm:$0xff]  ;;  %v17_v14 = vld [vmem:[%s1627_s0 + $0x18] sm:$0xff]  ;;  %v86_v30 = vsub.s32 1, %v1211_v27 }
  0x13   :  { %v76_v13 = vld [vmem:[%s1626_s1 + $0x170] sm:$0xff]  ;;  %v1068_v15 = vld [vmem:[%s1627_s0 + $0x58] sm:$0xff]  ;;  %v820_v16 = vpack.c.bf16 %v74_v11, %v68_v8  ;;  %v18_v18 = vld [vmem:[%s1627_s0 + $0x20] sm:$0xff] }
  0x14   :  { %742 = vmatmul.mubr.msk.f32.vlgmr.msra.gmra.mrb[0].mxu0 %vm110_vm0, %v957_v39  ;;  %750 = vmatmul.mubr.msk.f32.vlgmr.msra.gmra.mrb[0].mxu1 %vm110_vm0, %v962_v40  ;;  %v836_v17 = vpack.c.bf16 %v76_v13, %v70_v12  ;;  %v1081_v19 = vld [vmem:[%s1627_s0 + $0x60] sm:$0xff]  ;;  %v19_v20 = vld [vmem:[%s1627_s0 + $0x28] sm:$0xff]  ;;  %v20_v22 = vld [vmem:[%s1627_s0 + $0x30] sm:$0xff] }
  0x15   :  { %809 = vmatpush1.bf16.msra.mxu1 %v808_v41  ;;  %825 = vmatpush1.bf16.msra.mxu0 %v824_v42  ;;  %v1094_v21 = vld [vmem:[%s1627_s0 + $0x68] sm:$0xff]  ;;  %v1107_v23 = vld [vmem:[%s1627_s0 + $0x70] sm:$0xff]  ;;  %v21_v24 = vld [vmem:[%s1627_s0 + $0x38] sm:$0xff] }
  0x16   :  { %229 = vmatprep.mubr.f32.mxu0 %v847_v3  ;;  %277 = vmatprep.mubr.f32.mxu1 %v847_v3  ;;  %v1120_v25 = vld [vmem:[%s1627_s0 + $0x78] sm:$0xff]  ;;  %v1217_v29 = vld [vmem:[%s1628_s2] sm:$0x3f] }
  0x17   :  { %811 = vmatprep.subr.bf16.mxu1 %v810_v45  ;;  %827 = vmatprep.subr.bf16.mxu0 %v826_v46  ;;  %v1224_v31 = vrot.slane %v1217_v29, %v86_v30  ;;  %v102_v30 = vsub.s32 5, %v1211_v27 }
  0x18   :  { %743 = vmatmul.mubr.msk.f32.gmra.mrb[2].mxu0 %vm110_vm0, %v995_v53  ;;  %751 = vmatmul.mubr.msk.f32.gmra.mrb[2].mxu1 %vm110_vm0, %v1000_v54 }
  0x19   :  { %235 = vmatprep.mubr.f32.mxu0 %v847_v3  ;;  %283 = vmatprep.mubr.f32.mxu1 %v847_v3 }
  0x1a   :  { %813 = vmatpush1.bf16.msra.mxu1 %v812_v55  ;;  %829 = vmatpush1.bf16.msra.mxu0 %v828_v56 }
  0x1b   :  { %815 = vmatprep.subr.bf16.mxu1 %v814_v59  ;;  %831 = vmatprep.subr.bf16.mxu0 %v830_v60 }
  0x1c   :  { %744 = vmatmul.mubr.msk.f32.gmra.mrb[4].mxu0 %vm110_vm0, %v1037_v4  ;;  %752 = vmatmul.mubr.msk.f32.gmra.mrb[4].mxu1 %vm110_vm0, %v1042_v5 }
  0x1d   :  { %241 = vmatprep.mubr.f32.mxu0 %v847_v3  ;;  %289 = vmatprep.mubr.f32.mxu1 %v847_v3 }
  0x1e   :  { %817 = vmatpush1.bf16.msra.mxu1 %v816_v6  ;;  %833 = vmatpush1.bf16.msra.mxu0 %v832_v7 }
  0x1f   :  { %819 = vmatprep.subr.bf16.mxu1 %v818_v9  ;;  %835 = vmatprep.subr.bf16.mxu0 %v834_v10 }
  0x20   :  { %745 = vmatmul.mubr.msk.f32.gmra.mrb[6].mxu0 %vm110_vm0, %v17_v14  ;;  %753 = vmatmul.mubr.msk.f32.gmra.mrb[6].mxu1 %vm110_vm0, %v1068_v15 }
  0x21   :  { %247 = vmatprep.mubr.f32.mxu0 %v847_v3  ;;  %295 = vmatprep.mubr.f32.mxu1 %v847_v3 }
  0x22   :  { %821 = vmatpush1.bf16.msra.mxu1 %v820_v16  ;;  %837 = vmatpush1.bf16.msra.mxu0 %v836_v17 }
  0x24   :  { %746 = vmatmul.mubr.msk.f32.gmra.mrb[8].mxu0 %vm110_vm0, %v18_v18  ;;  %754 = vmatmul.mubr.msk.f32.gmra.mrb[8].mxu1 %vm110_vm0, %v1081_v19 }
  0x25   :  { %253 = vmatprep.mubr.f32.mxu0 %v847_v3  ;;  %301 = vmatprep.mubr.f32.mxu1 %v847_v3 }
  0x28   :  { %747 = vmatmul.mubr.msk.f32.gmra.mrb[10].mxu0 %vm110_vm0, %v19_v20  ;;  %755 = vmatmul.mubr.msk.f32.gmra.mrb[10].mxu1 %vm110_vm0, %v1094_v21 }
  0x29   :  { %259 = vmatprep.mubr.f32.mxu0 %v847_v3  ;;  %307 = vmatprep.mubr.f32.mxu1 %v847_v3 }
  0x2c   :  { %748 = vmatmul.mubr.msk.f32.gmra.mrb[12].mxu0 %vm110_vm0, %v20_v22  ;;  %756 = vmatmul.mubr.msk.f32.gmra.mrb[12].mxu1 %vm110_vm0, %v1107_v23 }
  0x2d   :  { %265 = vmatprep.mubr.f32.mxu0 %v847_v3  ;;  %313 = vmatprep.mubr.f32.mxu1 %v847_v3 }
  0x30   :  { %749 = vmatmul.mubr.msk.f32.gmra.mrb[14].mxu0 %vm110_vm0, %v21_v24  ;;  %757 = vmatmul.mubr.msk.f32.gmra.mrb[14].mxu1 %vm110_vm0, %v1120_v25 }
  0x31   :  { %384 = vmatprep.mubr.f32.mxu1 %v847_v3  ;;  %545 = vmatprep.mubr.f32.mxu0 %v847_v3 }
  0x34   :  { %758 = vmatmul.mubr.msk.f32.vlgmr.msra.gmra.mrb[16].mxu1 %vm110_vm0, %v957_v39  ;;  %774 = vmatmul.mubr.msk.f32.vlgmr.msra.gmra.mrb[16].mxu0 %vm110_vm0, %v957_v39 }
  0x35   :  { %390 = vmatprep.mubr.f32.mxu1 %v847_v3  ;;  %551 = vmatprep.mubr.f32.mxu0 %v847_v3 }
  0x38   :  { %759 = vmatmul.mubr.msk.f32.gmra.mrb[18].mxu1 %vm110_vm0, %v995_v53  ;;  %775 = vmatmul.mubr.msk.f32.gmra.mrb[18].mxu0 %vm110_vm0, %v995_v53 }
  0x39   :  { %396 = vmatprep.mubr.f32.mxu1 %v847_v3  ;;  %557 = vmatprep.mubr.f32.mxu0 %v847_v3 }
  0x3c   :  { %760 = vmatmul.mubr.msk.f32.gmra.mrb[20].mxu1 %vm110_vm0, %v1037_v4  ;;  %776 = vmatmul.mubr.msk.f32.gmra.mrb[20].mxu0 %vm110_vm0, %v1037_v4 }
  0x3d   :  { %402 = vmatprep.mubr.f32.mxu1 %v847_v3  ;;  %563 = vmatprep.mubr.f32.mxu0 %v847_v3 }
  0x40   :  { %761 = vmatmul.mubr.msk.f32.gmra.mrb[22].mxu1 %vm110_vm0, %v17_v14  ;;  %777 = vmatmul.mubr.msk.f32.gmra.mrb[22].mxu0 %vm110_vm0, %v17_v14 }
  0x41   :  { %408 = vmatprep.mubr.f32.mxu1 %v847_v3  ;;  %569 = vmatprep.mubr.f32.mxu0 %v847_v3 }
  0x44   :  { %762 = vmatmul.mubr.msk.f32.gmra.mrb[24].mxu1 %vm110_vm0, %v18_v18  ;;  %778 = vmatmul.mubr.msk.f32.gmra.mrb[24].mxu0 %vm110_vm0, %v18_v18 }
  0x45   :  { %414 = vmatprep.mubr.f32.mxu1 %v847_v3  ;;  %575 = vmatprep.mubr.f32.mxu0 %v847_v3 }
  0x48   :  { %763 = vmatmul.mubr.msk.f32.gmra.mrb[26].mxu1 %vm110_vm0, %v19_v20  ;;  %779 = vmatmul.mubr.msk.f32.gmra.mrb[26].mxu0 %vm110_vm0, %v19_v20 }
  0x49   :  { %420 = vmatprep.mubr.f32.mxu1 %v847_v3  ;;  %581 = vmatprep.mubr.f32.mxu0 %v847_v3 }
  0x4c   :  { %764 = vmatmul.mubr.msk.f32.gmra.mrb[28].mxu1 %vm110_vm0, %v20_v22  ;;  %780 = vmatmul.mubr.msk.f32.gmra.mrb[28].mxu0 %vm110_vm0, %v20_v22 }
  0x4d   :  { %426 = vmatprep.mubr.f32.mxu1 %v847_v3  ;;  %587 = vmatprep.mubr.f32.mxu0 %v847_v3 }
  0x50   :  { %765 = vmatmul.mubr.msk.f32.gmra.mrb[30].mxu1 %vm110_vm0, %v21_v24  ;;  %781 = vmatmul.mubr.msk.f32.gmra.mrb[30].mxu0 %vm110_vm0, %v21_v24  ;;  %v98_v24 = vsub.s32 4, %v1211_v27 }
  0x51   :  { %432 = vmatprep.mubr.f32.mxu1 %v847_v3  ;;  %593 = vmatprep.mubr.f32.mxu0 %v847_v3 }
  0x54   :  { %766 = vmatmul.mubr.msk.f32.gmra.mrb[32].mxu1 %vm110_vm0, %v962_v40  ;;  %782 = vmatmul.mubr.msk.f32.gmra.mrb[32].mxu0 %vm110_vm0, %v962_v40 }
  0x55   :  { %438 = vmatprep.mubr.f32.mxu1 %v847_v3  ;;  %599 = vmatprep.mubr.f32.mxu0 %v847_v3 }
  0x58   :  { %767 = vmatmul.mubr.msk.f32.gmra.mrb[34].mxu1 %vm110_vm0, %v1000_v54  ;;  %783 = vmatmul.mubr.msk.f32.gmra.mrb[34].mxu0 %vm110_vm0, %v1000_v54 }
  0x59   :  { %444 = vmatprep.mubr.f32.mxu1 %v847_v3  ;;  %605 = vmatprep.mubr.f32.mxu0 %v847_v3 }
  0x5c   :  { %768 = vmatmul.mubr.msk.f32.gmra.mrb[36].mxu1 %vm110_vm0, %v1042_v5  ;;  %784 = vmatmul.mubr.msk.f32.gmra.mrb[36].mxu0 %vm110_vm0, %v1042_v5 }
  0x5d   :  { %450 = vmatprep.mubr.f32.mxu1 %v847_v3  ;;  %611 = vmatprep.mubr.f32.mxu0 %v847_v3 }
  0x60   :  { %769 = vmatmul.mubr.msk.f32.gmra.mrb[38].mxu1 %vm110_vm0, %v1068_v15  ;;  %785 = vmatmul.mubr.msk.f32.gmra.mrb[38].mxu0 %vm110_vm0, %v1068_v15 }
  0x61   :  { %456 = vmatprep.mubr.f32.mxu1 %v847_v3  ;;  %617 = vmatprep.mubr.f32.mxu0 %v847_v3 }
  0x64   :  { %770 = vmatmul.mubr.msk.f32.gmra.mrb[40].mxu1 %vm110_vm0, %v1081_v19  ;;  %786 = vmatmul.mubr.msk.f32.gmra.mrb[40].mxu0 %vm110_vm0, %v1081_v19 }
  0x65   :  { %462 = vmatprep.mubr.f32.mxu1 %v847_v3  ;;  %623 = vmatprep.mubr.f32.mxu0 %v847_v3 }
  0x68   :  { %771 = vmatmul.mubr.msk.f32.gmra.mrb[42].mxu1 %vm110_vm0, %v1094_v21  ;;  %787 = vmatmul.mubr.msk.f32.gmra.mrb[42].mxu0 %vm110_vm0, %v1094_v21 }
  0x69   :  { %468 = vmatprep.mubr.f32.mxu1 %v847_v3  ;;  %629 = vmatprep.mubr.f32.mxu0 %v847_v3 }
  0x6c   :  { %772 = vmatmul.mubr.msk.f32.gmra.mrb[44].mxu1 %vm110_vm0, %v1107_v23  ;;  %788 = vmatmul.mubr.msk.f32.gmra.mrb[44].mxu0 %vm110_vm0, %v1107_v23  ;;  %v90_v23 = vsub.s32 2, %v1211_v27 }
  0x6d   :  { %474 = vmatprep.mubr.f32.mxu1 %v847_v3  ;;  %635 = vmatprep.mubr.f32.mxu0 %v847_v3  ;;  %v1221_v3 = vrot.slane %v1217_v29, %v82_v28  ;;  %v94_v28 = vsub.s32 3, %v1211_v27 }
  0x70   :  { %773 = vmatmul.mubr.msk.f32.gmra.mrb[46].mxu1 %vm110_vm0, %v1120_v25  ;;  %789 = vmatmul.mubr.msk.f32.gmra.mrb[46].mxu0 %vm110_vm0, %v1120_v25 }
  0xe7   :  { %v225_v32 = vpop.f32.mrb[0].mxu0  ;;  %v273_v33 = vpop.f32.mrb[0].mxu1 }
  0xe8   :  { %v226_v34 = vadd.f32 %v225_v32, %v1221_v3  ;;  %v274_v35 = vadd.f32 %v273_v33, %v1221_v3  ;;  %v227_v36 = vpop.f32.mrb[1].mxu0  ;;  %v275_v37 = vpop.f32.mrb[1].mxu1 }
  0xe9   :  { %v228_v38 = vadd.f32 %v227_v36, %v1224_v31  ;;  %v276_v39 = vadd.f32 %v275_v37, %v1224_v31  ;;  %v1345_v37 = vrot.slane %v1217_v29, %v90_v23 }
  0xea   :  { %642 = vst [vmem:[%s1629_s3] sm:$0xff] %v226_v34  ;;  %690 = vst [vmem:[%s1629_s3 + $0x180] sm:$0xff] %v274_v35 }
  0xeb   :  { %643 = vst [vmem:[%s1629_s3 + $0x8] sm:$0xff] %v228_v38  ;;  %691 = vst [vmem:[%s1629_s3 + $0x188] sm:$0xff] %v276_v39  ;;  %v231_v40 = vpop.f32.mrb[2].mxu0  ;;  %v279_v41 = vpop.f32.mrb[2].mxu1  ;;  %v1348_v38 = vrot.slane %v1217_v29, %v98_v24 }
  0xec   :  { %v232_v42 = vadd.f32 %v231_v40, %v1221_v3  ;;  %v280_v43 = vadd.f32 %v279_v41, %v1221_v3  ;;  %v233_v44 = vpop.f32.mrb[3].mxu0  ;;  %v281_v45 = vpop.f32.mrb[3].mxu1  ;;  %v1353_v41 = vrot.slane %v1217_v29, %v94_v28 }
  0xed   :  { %v234_v46 = vadd.f32 %v233_v44, %v1224_v31  ;;  %v282_v47 = vadd.f32 %v281_v45, %v1224_v31 }
  0xee   :  { %648 = vst [vmem:[%s1629_s3 + $0x30] sm:$0xff] %v232_v42  ;;  %696 = vst [vmem:[%s1629_s3 + $0x1b0] sm:$0xff] %v280_v43  ;;  %v1356_v42 = vrot.slane %v1217_v29, %v102_v30 }
  0xef   :  { %649 = vst [vmem:[%s1629_s3 + $0x38] sm:$0xff] %v234_v46  ;;  %697 = vst [vmem:[%s1629_s3 + $0x1b8] sm:$0xff] %v282_v47  ;;  %v237_v48 = vpop.f32.mrb[4].mxu0  ;;  %v285_v49 = vpop.f32.mrb[4].mxu1 }
  0xf0   :  { %v238_v50 = vadd.f32 %v237_v48, %v1221_v3  ;;  %v286_v51 = vadd.f32 %v285_v49, %v1221_v3  ;;  %v239_v52 = vpop.f32.mrb[5].mxu0  ;;  %v287_v53 = vpop.f32.mrb[5].mxu1 }
  0xf1   :  { %v240_v54 = vadd.f32 %v239_v52, %v1224_v31  ;;  %v288_v55 = vadd.f32 %v287_v53, %v1224_v31 }
  0xf2   :  { %654 = vst [vmem:[%s1629_s3 + $0x60] sm:$0xff] %v238_v50  ;;  %702 = vst [vmem:[%s1629_s3 + $0x1e0] sm:$0xff] %v286_v51 }
  0xf3   :  { %655 = vst [vmem:[%s1629_s3 + $0x68] sm:$0xff] %v240_v54  ;;  %703 = vst [vmem:[%s1629_s3 + $0x1e8] sm:$0xff] %v288_v55  ;;  %v243_v56 = vpop.f32.mrb[6].mxu0  ;;  %v291_v57 = vpop.f32.mrb[6].mxu1 }
  0xf4   :  { %v244_v58 = vadd.f32 %v243_v56, %v1221_v3  ;;  %v292_v59 = vadd.f32 %v291_v57, %v1221_v3  ;;  %v245_v60 = vpop.f32.mrb[7].mxu0  ;;  %v293_v61 = vpop.f32.mrb[7].mxu1 }
  0xf5   :  { %v246_v62 = vadd.f32 %v245_v60, %v1224_v31  ;;  %v294_v63 = vadd.f32 %v293_v61, %v1224_v31 }
  0xf6   :  { %660 = vst [vmem:[%s1629_s3 + $0x90] sm:$0xff] %v244_v58  ;;  %708 = vst [vmem:[%s1629_s3 + $0x210] sm:$0xff] %v292_v59 }
  0xf7   :  { %661 = vst [vmem:[%s1629_s3 + $0x98] sm:$0xff] %v246_v62  ;;  %709 = vst [vmem:[%s1629_s3 + $0x218] sm:$0xff] %v294_v63  ;;  %v249_v0 = vpop.f32.mrb[8].mxu0  ;;  %v297_v1 = vpop.f32.mrb[8].mxu1 }
  0xf8   :  { %v250_v2 = vadd.f32 %v249_v0, %v1221_v3  ;;  %v298_v4 = vadd.f32 %v297_v1, %v1221_v3  ;;  %v251_v5 = vpop.f32.mrb[9].mxu0  ;;  %v299_v6 = vpop.f32.mrb[9].mxu1 }
  0xf9   :  { %v252_v7 = vadd.f32 %v251_v5, %v1224_v31  ;;  %v300_v8 = vadd.f32 %v299_v6, %v1224_v31 }
  0xfa   :  { %666 = vst [vmem:[%s1629_s3 + $0xc0] sm:$0xff] %v250_v2  ;;  %714 = vst [vmem:[%s1629_s3 + $0x240] sm:$0xff] %v298_v4 }
  0xfb   :  { %667 = vst [vmem:[%s1629_s3 + $0xc8] sm:$0xff] %v252_v7  ;;  %715 = vst [vmem:[%s1629_s3 + $0x248] sm:$0xff] %v300_v8  ;;  %v255_v9 = vpop.f32.mrb[10].mxu0  ;;  %v303_v10 = vpop.f32.mrb[10].mxu1 }
  0xfc   :  { %v256_v11 = vadd.f32 %v255_v9, %v1221_v3  ;;  %v304_v12 = vadd.f32 %v303_v10, %v1221_v3  ;;  %v257_v13 = vpop.f32.mrb[11].mxu0  ;;  %v305_v14 = vpop.f32.mrb[11].mxu1 }
  0xfd   :  { %v258_v15 = vadd.f32 %v257_v13, %v1224_v31  ;;  %v306_v16 = vadd.f32 %v305_v14, %v1224_v31 }
  0xfe   :  { %672 = vst [vmem:[%s1629_s3 + $0xf0] sm:$0xff] %v256_v11  ;;  %720 = vst [vmem:[%s1629_s3 + $0x270] sm:$0xff] %v304_v12 }
  0xff   :  { %673 = vst [vmem:[%s1629_s3 + $0xf8] sm:$0xff] %v258_v15  ;;  %721 = vst [vmem:[%s1629_s3 + $0x278] sm:$0xff] %v306_v16  ;;  %v261_v17 = vpop.f32.mrb[12].mxu0  ;;  %v309_v18 = vpop.f32.mrb[12].mxu1 }
 0x100   :  { %v262_v19 = vadd.f32 %v261_v17, %v1221_v3  ;;  %v310_v20 = vadd.f32 %v309_v18, %v1221_v3  ;;  %v263_v21 = vpop.f32.mrb[13].mxu0  ;;  %v311_v22 = vpop.f32.mrb[13].mxu1 }
 0x101   :  { %v264_v25 = vadd.f32 %v263_v21, %v1224_v31  ;;  %v312_v26 = vadd.f32 %v311_v22, %v1224_v31 }
 0x102   :  { %678 = vst [vmem:[%s1629_s3 + $0x120] sm:$0xff] %v262_v19  ;;  %726 = vst [vmem:[%s1629_s3 + $0x2a0] sm:$0xff] %v310_v20 }
 0x103   :  { %679 = vst [vmem:[%s1629_s3 + $0x128] sm:$0xff] %v264_v25  ;;  %727 = vst [vmem:[%s1629_s3 + $0x2a8] sm:$0xff] %v312_v26  ;;  %v267_v32 = vpop.f32.mrb[14].mxu0  ;;  %v315_v33 = vpop.f32.mrb[14].mxu1 }
 0x104   :  { %v268_v27 = vadd.f32 %v267_v32, %v1221_v3  ;;  %v316_v34 = vadd.f32 %v315_v33, %v1221_v3  ;;  %v269_v35 = vpop.f32.mrb[15].mxu0  ;;  %v317_v36 = vpop.f32.mrb[15].mxu1 }
 0x105   :  { %v270_v39 = vadd.f32 %v269_v35, %v1224_v31  ;;  %v318_v40 = vadd.f32 %v317_v36, %v1224_v31 }
 0x106   :  { %684 = vst [vmem:[%s1629_s3 + $0x150] sm:$0xff] %v268_v27  ;;  %732 = vst [vmem:[%s1629_s3 + $0x2d0] sm:$0xff] %v316_v34 }
 0x107   :  { %685 = vst [vmem:[%s1629_s3 + $0x158] sm:$0xff] %v270_v39  ;;  %733 = vst [vmem:[%s1629_s3 + $0x2d8] sm:$0xff] %v318_v40  ;;  %v386_v3 = vpop.f32.mrb[16].mxu1  ;;  %v547_v31 = vpop.f32.mrb[16].mxu0 }
 0x108   :  { %v387_v29 = vadd.f32 %v386_v3, %v1345_v37  ;;  %v548_v43 = vadd.f32 %v547_v31, %v1348_v38  ;;  %v388_v44 = vpop.f32.mrb[17].mxu1  ;;  %v549_v45 = vpop.f32.mrb[17].mxu0 }
 0x109   :  { %v389_v46 = vadd.f32 %v388_v44, %v1353_v41  ;;  %v550_v47 = vadd.f32 %v549_v45, %v1356_v42 }
 0x10a   :  { %644 = vst [vmem:[%s1629_s3 + $0x10] sm:$0xff] %v387_v29  ;;  %646 = vst [vmem:[%s1629_s3 + $0x20] sm:$0xff] %v548_v43 }
 0x10b   :  { %645 = vst [vmem:[%s1629_s3 + $0x18] sm:$0xff] %v389_v46  ;;  %647 = vst [vmem:[%s1629_s3 + $0x28] sm:$0xff] %v550_v47  ;;  %v392_v48 = vpop.f32.mrb[18].mxu1  ;;  %v553_v49 = vpop.f32.mrb[18].mxu0 }
 0x10c   :  { %v393_v50 = vadd.f32 %v392_v48, %v1345_v37  ;;  %v554_v51 = vadd.f32 %v553_v49, %v1348_v38  ;;  %v394_v52 = vpop.f32.mrb[19].mxu1  ;;  %v555_v53 = vpop.f32.mrb[19].mxu0 }
 0x10d   :  { %v395_v54 = vadd.f32 %v394_v52, %v1353_v41  ;;  %v556_v55 = vadd.f32 %v555_v53, %v1356_v42 }
 0x10e   :  { %650 = vst [vmem:[%s1629_s3 + $0x40] sm:$0xff] %v393_v50  ;;  %652 = vst [vmem:[%s1629_s3 + $0x50] sm:$0xff] %v554_v51 }
 0x10f   :  { %651 = vst [vmem:[%s1629_s3 + $0x48] sm:$0xff] %v395_v54  ;;  %653 = vst [vmem:[%s1629_s3 + $0x58] sm:$0xff] %v556_v55  ;;  %v398_v56 = vpop.f32.mrb[20].mxu1  ;;  %v559_v57 = vpop.f32.mrb[20].mxu0 }
 0x110   :  { %v399_v58 = vadd.f32 %v398_v56, %v1345_v37  ;;  %v560_v59 = vadd.f32 %v559_v57, %v1348_v38  ;;  %v400_v60 = vpop.f32.mrb[21].mxu1  ;;  %v561_v61 = vpop.f32.mrb[21].mxu0 }
 0x111   :  { %v401_v62 = vadd.f32 %v400_v60, %v1353_v41  ;;  %v562_v63 = vadd.f32 %v561_v61, %v1356_v42 }
 0x112   :  { %656 = vst [vmem:[%s1629_s3 + $0x70] sm:$0xff] %v399_v58  ;;  %658 = vst [vmem:[%s1629_s3 + $0x80] sm:$0xff] %v560_v59 }
 0x113   :  { %657 = vst [vmem:[%s1629_s3 + $0x78] sm:$0xff] %v401_v62  ;;  %659 = vst [vmem:[%s1629_s3 + $0x88] sm:$0xff] %v562_v63  ;;  %v404_v0 = vpop.f32.mrb[22].mxu1  ;;  %v565_v1 = vpop.f32.mrb[22].mxu0 }
 0x114   :  { %v405_v2 = vadd.f32 %v404_v0, %v1345_v37  ;;  %v566_v4 = vadd.f32 %v565_v1, %v1348_v38  ;;  %v406_v5 = vpop.f32.mrb[23].mxu1  ;;  %v567_v6 = vpop.f32.mrb[23].mxu0 }
 0x115   :  { %v407_v7 = vadd.f32 %v406_v5, %v1353_v41  ;;  %v568_v8 = vadd.f32 %v567_v6, %v1356_v42 }
 0x116   :  { %662 = vst [vmem:[%s1629_s3 + $0xa0] sm:$0xff] %v405_v2  ;;  %664 = vst [vmem:[%s1629_s3 + $0xb0] sm:$0xff] %v566_v4 }
 0x117   :  { %663 = vst [vmem:[%s1629_s3 + $0xa8] sm:$0xff] %v407_v7  ;;  %665 = vst [vmem:[%s1629_s3 + $0xb8] sm:$0xff] %v568_v8  ;;  %v410_v9 = vpop.f32.mrb[24].mxu1  ;;  %v571_v10 = vpop.f32.mrb[24].mxu0 }
 0x118   :  { %v411_v11 = vadd.f32 %v410_v9, %v1345_v37  ;;  %v572_v12 = vadd.f32 %v571_v10, %v1348_v38  ;;  %v412_v13 = vpop.f32.mrb[25].mxu1  ;;  %v573_v14 = vpop.f32.mrb[25].mxu0 }
 0x119   :  { %v413_v15 = vadd.f32 %v412_v13, %v1353_v41  ;;  %v574_v16 = vadd.f32 %v573_v14, %v1356_v42 }
 0x11a   :  { %668 = vst [vmem:[%s1629_s3 + $0xd0] sm:$0xff] %v411_v11  ;;  %670 = vst [vmem:[%s1629_s3 + $0xe0] sm:$0xff] %v572_v12 }
 0x11b   :  { %669 = vst [vmem:[%s1629_s3 + $0xd8] sm:$0xff] %v413_v15  ;;  %671 = vst [vmem:[%s1629_s3 + $0xe8] sm:$0xff] %v574_v16  ;;  %v416_v17 = vpop.f32.mrb[26].mxu1  ;;  %v577_v18 = vpop.f32.mrb[26].mxu0 }
 0x11c   :  { %v417_v19 = vadd.f32 %v416_v17, %v1345_v37  ;;  %v578_v20 = vadd.f32 %v577_v18, %v1348_v38  ;;  %v418_v21 = vpop.f32.mrb[27].mxu1  ;;  %v579_v22 = vpop.f32.mrb[27].mxu0 }
 0x11d   :  { %v419_v23 = vadd.f32 %v418_v21, %v1353_v41  ;;  %v580_v24 = vadd.f32 %v579_v22, %v1356_v42 }
 0x11e   :  { %674 = vst [vmem:[%s1629_s3 + $0x100] sm:$0xff] %v417_v19  ;;  %676 = vst [vmem:[%s1629_s3 + $0x110] sm:$0xff] %v578_v20 }
 0x11f   :  { %675 = vst [vmem:[%s1629_s3 + $0x108] sm:$0xff] %v419_v23  ;;  %677 = vst [vmem:[%s1629_s3 + $0x118] sm:$0xff] %v580_v24  ;;  %v422_v25 = vpop.f32.mrb[28].mxu1  ;;  %v583_v26 = vpop.f32.mrb[28].mxu0 }
 0x120   :  { %v423_v28 = vadd.f32 %v422_v25, %v1345_v37  ;;  %v584_v30 = vadd.f32 %v583_v26, %v1348_v38  ;;  %v424_v32 = vpop.f32.mrb[29].mxu1  ;;  %v585_v33 = vpop.f32.mrb[29].mxu0 }
 0x121   :  { %v425_v27 = vadd.f32 %v424_v32, %v1353_v41  ;;  %v586_v34 = vadd.f32 %v585_v33, %v1356_v42 }
 0x122   :  { %680 = vst [vmem:[%s1629_s3 + $0x130] sm:$0xff] %v423_v28  ;;  %682 = vst [vmem:[%s1629_s3 + $0x140] sm:$0xff] %v584_v30 }
 0x123   :  { %681 = vst [vmem:[%s1629_s3 + $0x138] sm:$0xff] %v425_v27  ;;  %683 = vst [vmem:[%s1629_s3 + $0x148] sm:$0xff] %v586_v34  ;;  %v428_v35 = vpop.f32.mrb[30].mxu1  ;;  %v589_v36 = vpop.f32.mrb[30].mxu0 }
 0x124   :  { %v429_v39 = vadd.f32 %v428_v35, %v1345_v37  ;;  %v590_v40 = vadd.f32 %v589_v36, %v1348_v38  ;;  %v430_v3 = vpop.f32.mrb[31].mxu1  ;;  %v591_v31 = vpop.f32.mrb[31].mxu0 }
 0x125   :  { %v431_v29 = vadd.f32 %v430_v3, %v1353_v41  ;;  %v592_v43 = vadd.f32 %v591_v31, %v1356_v42 }
 0x126   :  { %686 = vst [vmem:[%s1629_s3 + $0x160] sm:$0xff] %v429_v39  ;;  %688 = vst [vmem:[%s1629_s3 + $0x170] sm:$0xff] %v590_v40 }
 0x127   :  { %687 = vst [vmem:[%s1629_s3 + $0x168] sm:$0xff] %v431_v29  ;;  %689 = vst [vmem:[%s1629_s3 + $0x178] sm:$0xff] %v592_v43  ;;  %v434_v44 = vpop.f32.mrb[32].mxu1  ;;  %v595_v45 = vpop.f32.mrb[32].mxu0 }
 0x128   :  { %v435_v46 = vadd.f32 %v434_v44, %v1345_v37  ;;  %v596_v47 = vadd.f32 %v595_v45, %v1348_v38  ;;  %v436_v48 = vpop.f32.mrb[33].mxu1  ;;  %v597_v49 = vpop.f32.mrb[33].mxu0 }
 0x129   :  { %v437_v50 = vadd.f32 %v436_v48, %v1353_v41  ;;  %v598_v51 = vadd.f32 %v597_v49, %v1356_v42 }
 0x12a   :  { %692 = vst [vmem:[%s1629_s3 + $0x190] sm:$0xff] %v435_v46  ;;  %694 = vst [vmem:[%s1629_s3 + $0x1a0] sm:$0xff] %v596_v47 }
 0x12b   :  { %693 = vst [vmem:[%s1629_s3 + $0x198] sm:$0xff] %v437_v50  ;;  %695 = vst [vmem:[%s1629_s3 + $0x1a8] sm:$0xff] %v598_v51  ;;  %v440_v52 = vpop.f32.mrb[34].mxu1  ;;  %v601_v53 = vpop.f32.mrb[34].mxu0 }
 0x12c   :  { %v441_v54 = vadd.f32 %v440_v52, %v1345_v37  ;;  %v602_v55 = vadd.f32 %v601_v53, %v1348_v38  ;;  %v442_v56 = vpop.f32.mrb[35].mxu1  ;;  %v603_v57 = vpop.f32.mrb[35].mxu0 }
 0x12d   :  { %v443_v58 = vadd.f32 %v442_v56, %v1353_v41  ;;  %v604_v59 = vadd.f32 %v603_v57, %v1356_v42 }
 0x12e   :  { %698 = vst [vmem:[%s1629_s3 + $0x1c0] sm:$0xff] %v441_v54  ;;  %700 = vst [vmem:[%s1629_s3 + $0x1d0] sm:$0xff] %v602_v55 }
 0x12f   :  { %699 = vst [vmem:[%s1629_s3 + $0x1c8] sm:$0xff] %v443_v58  ;;  %701 = vst [vmem:[%s1629_s3 + $0x1d8] sm:$0xff] %v604_v59  ;;  %v446_v60 = vpop.f32.mrb[36].mxu1  ;;  %v607_v61 = vpop.f32.mrb[36].mxu0 }
 0x130   :  { %v447_v62 = vadd.f32 %v446_v60, %v1345_v37  ;;  %v608_v63 = vadd.f32 %v607_v61, %v1348_v38  ;;  %v448_v0 = vpop.f32.mrb[37].mxu1  ;;  %v609_v1 = vpop.f32.mrb[37].mxu0 }
 0x131   :  { %v449_v2 = vadd.f32 %v448_v0, %v1353_v41  ;;  %v610_v4 = vadd.f32 %v609_v1, %v1356_v42 }
 0x132   :  { %704 = vst [vmem:[%s1629_s3 + $0x1f0] sm:$0xff] %v447_v62  ;;  %706 = vst [vmem:[%s1629_s3 + $0x200] sm:$0xff] %v608_v63 }
 0x133   :  { %705 = vst [vmem:[%s1629_s3 + $0x1f8] sm:$0xff] %v449_v2  ;;  %707 = vst [vmem:[%s1629_s3 + $0x208] sm:$0xff] %v610_v4  ;;  %v452_v5 = vpop.f32.mrb[38].mxu1  ;;  %v613_v6 = vpop.f32.mrb[38].mxu0 }
 0x134   :  { %v453_v7 = vadd.f32 %v452_v5, %v1345_v37  ;;  %v614_v8 = vadd.f32 %v613_v6, %v1348_v38  ;;  %v454_v9 = vpop.f32.mrb[39].mxu1  ;;  %v615_v10 = vpop.f32.mrb[39].mxu0 }
 0x135   :  { %v455_v11 = vadd.f32 %v454_v9, %v1353_v41  ;;  %v616_v12 = vadd.f32 %v615_v10, %v1356_v42 }
 0x136   :  { %710 = vst [vmem:[%s1629_s3 + $0x220] sm:$0xff] %v453_v7  ;;  %712 = vst [vmem:[%s1629_s3 + $0x230] sm:$0xff] %v614_v8 }
 0x137   :  { %711 = vst [vmem:[%s1629_s3 + $0x228] sm:$0xff] %v455_v11  ;;  %713 = vst [vmem:[%s1629_s3 + $0x238] sm:$0xff] %v616_v12  ;;  %v458_v13 = vpop.f32.mrb[40].mxu1  ;;  %v619_v14 = vpop.f32.mrb[40].mxu0 }
 0x138   :  { %v459_v15 = vadd.f32 %v458_v13, %v1345_v37  ;;  %v620_v16 = vadd.f32 %v619_v14, %v1348_v38  ;;  %v460_v17 = vpop.f32.mrb[41].mxu1  ;;  %v621_v18 = vpop.f32.mrb[41].mxu0 }
 0x139   :  { %v461_v19 = vadd.f32 %v460_v17, %v1353_v41  ;;  %v622_v20 = vadd.f32 %v621_v18, %v1356_v42 }
 0x13a   :  { %716 = vst [vmem:[%s1629_s3 + $0x250] sm:$0xff] %v459_v15  ;;  %718 = vst [vmem:[%s1629_s3 + $0x260] sm:$0xff] %v620_v16 }
 0x13b   :  { %717 = vst [vmem:[%s1629_s3 + $0x258] sm:$0xff] %v461_v19  ;;  %719 = vst [vmem:[%s1629_s3 + $0x268] sm:$0xff] %v622_v20  ;;  %v464_v21 = vpop.f32.mrb[42].mxu1  ;;  %v625_v22 = vpop.f32.mrb[42].mxu0 }
 0x13c   :  { %v465_v23 = vadd.f32 %v464_v21, %v1345_v37  ;;  %v626_v24 = vadd.f32 %v625_v22, %v1348_v38  ;;  %v466_v25 = vpop.f32.mrb[43].mxu1  ;;  %v627_v26 = vpop.f32.mrb[43].mxu0 }
 0x13d   :  { %v467_v28 = vadd.f32 %v466_v25, %v1353_v41  ;;  %v628_v30 = vadd.f32 %v627_v26, %v1356_v42 }
 0x13e   :  { %722 = vst [vmem:[%s1629_s3 + $0x280] sm:$0xff] %v465_v23  ;;  %724 = vst [vmem:[%s1629_s3 + $0x290] sm:$0xff] %v626_v24 }
 0x13f   :  { %723 = vst [vmem:[%s1629_s3 + $0x288] sm:$0xff] %v467_v28  ;;  %725 = vst [vmem:[%s1629_s3 + $0x298] sm:$0xff] %v628_v30  ;;  %v470_v32 = vpop.f32.mrb[44].mxu1  ;;  %v631_v33 = vpop.f32.mrb[44].mxu0 }
 0x140   :  { %v471_v27 = vadd.f32 %v470_v32, %v1345_v37  ;;  %v632_v34 = vadd.f32 %v631_v33, %v1348_v38  ;;  %v472_v35 = vpop.f32.mrb[45].mxu1  ;;  %v633_v36 = vpop.f32.mrb[45].mxu0 }
 0x141   :  { %v473_v39 = vadd.f32 %v472_v35, %v1353_v41  ;;  %v634_v40 = vadd.f32 %v633_v36, %v1356_v42 }
 0x142   :  { %728 = vst [vmem:[%s1629_s3 + $0x2b0] sm:$0xff] %v471_v27  ;;  %730 = vst [vmem:[%s1629_s3 + $0x2c0] sm:$0xff] %v632_v34 }
 0x143   :  { %729 = vst [vmem:[%s1629_s3 + $0x2b8] sm:$0xff] %v473_v39  ;;  %731 = vst [vmem:[%s1629_s3 + $0x2c8] sm:$0xff] %v634_v40  ;;  %v476_v3 = vpop.f32.mrb[46].mxu1  ;;  %v637_v31 = vpop.f32.mrb[46].mxu0 }
 0x144   :  { %v477_v29 = vadd.f32 %v476_v3, %v1345_v37  ;;  %v638_v43 = vadd.f32 %v637_v31, %v1348_v38  ;;  %v478_v44 = vpop.f32.mrb[47].mxu1  ;;  %v639_v45 = vpop.f32.mrb[47].mxu0 }
 0x145   :  { %v479_v46 = vadd.f32 %v478_v44, %v1353_v41  ;;  %v640_v47 = vadd.f32 %v639_v45, %v1356_v42 }
 0x146   :  { %734 = vst [vmem:[%s1629_s3 + $0x2e0] sm:$0xff] %v477_v29  ;;  %736 = vst [vmem:[%s1629_s3 + $0x2f0] sm:$0xff] %v638_v43 }
 0x147   :  { %735 = vst [vmem:[%s1629_s3 + $0x2e8] sm:$0xff] %v479_v46  ;;  %737 = vst [vmem:[%s1629_s3 + $0x2f8] sm:$0xff] %v640_v47 }

// kernel: aia_transformer_forward.25
= control target key start
LH: loop header
LB: loop body
LE: loop exit
PB: predicated region body
PF: predicated region fallthrough
CT: control target
= control target key end

     0   :  { %v1009_v0 = vmov 0.0   ;;  %v1011_v1 = vmov 0.0   ;;  %v1013_v2 = vmov 0.0   ;;  %v1015_v3 = vmov 0.0   ;;  %s1017_s21 = smov 0   ;;  %s1404_s0 = inlined_call_operand.vmem [shape: f32[8,6,16,128], index: 0, kind: input, shape index: {}]   ;;  %s1405_s1 = inlined_call_operand.vmem [shape: f32[128,384], index: 1, kind: input, shape index: {}]   ;;  %s1406_s2 = inlined_call_operand.vmem [shape: f32[128,384], index: 2, kind: input, shape index: {}]   ;;  %s1407_s3 = inlined_call_operand.vmem [shape: f32[1,384], index: 3, kind: input, shape index: {}]   ;;  %s1408_s4 = inlined_call_operand.vmem [shape: f32[1,384], index: 4, kind: input, shape index: {}]   ;;  %s1409_s5 = inlined_call_operand.vmem [shape: f32[8,16,128], index: 5, kind: output, shape index: {0}]   ;;  %s1410_s6 = inlined_call_operand.vmem [shape: f32[8,16,128], index: 6, kind: output, shape index: {1}]  }
   0x1 LB: > { %v50_v4 = vld [vmem:[%s1405_s1 + $0x8] sm:$0xff]  ;;  %v53_v5 = vld [vmem:[%s1405_s1 + $0x20] sm:$0xff]  ;;  %v52_v8 = vld [vmem:[%s1405_s1 + $0x18] sm:$0xff]  ;;  %v973_v11 = vmov 0.0   ;;  %686 = vmatprep.mubr.f32.mxu1 %v967_v3  ;;  %s33_s30 = smul.u32 96, %s971_s21  ;;  %s32_s12 = ssub.s32 7, %s971_s21  ;;  %s971_s21 = sphi %s1017_s21, %s27_s21   ;;  %v967_v3 = vphi %v1015_v3, %v557_v3   ;;  %v963_v2 = vphi %v1013_v2, %v558_v2   ;;  %v959_v1 = vphi %v1011_v1, %v565_v1   ;;  %v955_v0 = vphi %v1009_v0, %v566_v0  }
   0x2   : > { %v49_v6 = vld [vmem:[%s1405_s1] sm:$0xff]  ;;  %v724_v7 = vpack.c.bf16 %v53_v5, %v50_v4  ;;  %v56_v9 = vld [vmem:[%s1405_s1 + $0x38] sm:$0xff]  ;;  %v59_v10 = vld [vmem:[%s1405_s1 + $0x50] sm:$0xff]  ;;  %178 = vmatprep.mubr.f32.mxu0 %v973_v11  ;;  %s41_s13 = smul.u32 96, %s32_s12  ;;  %s616_s19 = sshll.u32 %s971_s21, 4 }
   0x3   : > { %v726_v12 = vpack.c.bf16 %v52_v8, %v49_v6  ;;  %v728_v13 = vpack.c.bf16 %v59_v10, %v56_v9  ;;  %v55_v14 = vld [vmem:[%s1405_s1 + $0x30] sm:$0xff]  ;;  %v58_v15 = vld [vmem:[%s1405_s1 + $0x48] sm:$0xff]  ;;  %v65_v17 = vld [vmem:[%s1405_s1 + $0x80] sm:$0xff]  ;;  %s1345_s11 = scalar_lea.vmem %s1404_s0, %s33_s30  ;;  %s568_s23 = scalar_lea.vmem %s1409_s5, %s616_s19 }
   0x4   : > { %v62_v16 = vld [vmem:[%s1405_s1 + $0x68] sm:$0xff]  ;;  %725 = vmatprep.subr.bf16.mxu0 %v724_v7  ;;  %v730_v18 = vpack.c.bf16 %v58_v15, %v55_v14  ;;  %v61_v20 = vld [vmem:[%s1405_s1 + $0x60] sm:$0xff]  ;;  %v64_v21 = vld [vmem:[%s1405_s1 + $0x78] sm:$0xff]  ;;  %s1365_s18 = scalar_lea.vmem %s1404_s0, %s41_s13  ;;  %s617_s24 = sshll.u32 %s32_s12, 4 }
   0x5   : > { %727 = vmatpush1.bf16.msra.mxu0 %v726_v12  ;;  %v732_v19 = vpack.c.bf16 %v65_v17, %v62_v16  ;;  %v68_v22 = vld [vmem:[%s1405_s1 + $0x98] sm:$0xff]  ;;  %v71_v23 = vld [vmem:[%s1405_s1 + $0xb0] sm:$0xff]  ;;  %v734_v24 = vpack.c.bf16 %v64_v21, %v61_v20  ;;  %v70_v27 = vld [vmem:[%s1405_s1 + $0xa8] sm:$0xff]  ;;  %s572_s27 = scalar_lea.vmem %s1410_s6, %s617_s24  ;;  %s27_s21 = sadd.s32 1, %s971_s21  }
   0x6   : > { %729 = vmatprep.subr.bf16.mxu0 %v728_v13  ;;  %v67_v25 = vld [vmem:[%s1405_s1 + $0x90] sm:$0xff]  ;;  %v736_v26 = vpack.c.bf16 %v71_v23, %v68_v22  ;;  %v54_v29 = vld [vmem:[%s1405_s1 + $0x28] sm:$0xff]  ;;  %v77_v31 = vld [vmem:[%s1405_s1 + $0xe0] sm:$0xff]  ;;  %p24_p0 = scmp.ge.s32.totalorder %s27_s21, 8  }
   0x7   : > { %v51_v28 = vld [vmem:[%s1405_s1 + $0x10] sm:$0xff]  ;;  %v74_v30 = vld [vmem:[%s1405_s1 + $0xc8] sm:$0xff]  ;;  %v57_v33 = vld [vmem:[%s1405_s1 + $0x40] sm:$0xff]  ;;  %v738_v35 = vpack.c.bf16 %v70_v27, %v67_v25 }
   0x8   : > { %v756_v32 = vpack.c.bf16 %v54_v29, %v51_v28  ;;  %v60_v34 = vld [vmem:[%s1405_s1 + $0x58] sm:$0xff]  ;;  %v73_v36 = vld [vmem:[%s1405_s1 + $0xc0] sm:$0xff]  ;;  %v740_v38 = vpack.c.bf16 %v77_v31, %v74_v30  ;;  %v63_v40 = vld [vmem:[%s1405_s1 + $0x70] sm:$0xff] }
   0x9   : > { %731 = vmatpush1.bf16.msra.mxu0 %v730_v18  ;;  %v760_v37 = vpack.c.bf16 %v60_v34, %v57_v33  ;;  %v76_v39 = vld [vmem:[%s1405_s1 + $0xd8] sm:$0xff]  ;;  %v66_v41 = vld [vmem:[%s1405_s1 + $0x88] sm:$0xff]  ;;  %v83_v43 = vld [vmem:[%s1405_s1 + $0x110] sm:$0xff] }
   0xa   : > { %733 = vmatprep.subr.bf16.mxu0 %v732_v19  ;;  %757 = vmatprep.subr.bf16.mxu1 %v756_v32  ;;  %v80_v42 = vld [vmem:[%s1405_s1 + $0xf8] sm:$0xff]  ;;  %v764_v44 = vpack.c.bf16 %v66_v41, %v63_v40  ;;  %v69_v45 = vld [vmem:[%s1405_s1 + $0xa0] sm:$0xff]  ;;  %v742_v47 = vpack.c.bf16 %v76_v39, %v73_v36  ;;  %v79_v49 = vld [vmem:[%s1405_s1 + $0xf0] sm:$0xff] }
   0xb   : > { %759 = vmatpush3.bf16.msra.mxu1 %v756_v32  ;;  %v72_v46 = vld [vmem:[%s1405_s1 + $0xb8] sm:$0xff]  ;;  %v744_v48 = vpack.c.bf16 %v83_v43, %v80_v42  ;;  %v82_v50 = vld [vmem:[%s1405_s1 + $0x108] sm:$0xff]  ;;  %v89_v52 = vld [vmem:[%s1405_s1 + $0x140] sm:$0xff] }
   0xc   : > { %761 = vmatprep.subr.bf16.mxu1 %v760_v37  ;;  %v86_v51 = vld [vmem:[%s1405_s1 + $0x128] sm:$0xff]  ;;  %v768_v53 = vpack.c.bf16 %v72_v46, %v69_v45  ;;  %v75_v54 = vld [vmem:[%s1405_s1 + $0xd0] sm:$0xff]  ;;  %v746_v56 = vpack.c.bf16 %v82_v50, %v79_v49  ;;  %v85_v58 = vld [vmem:[%s1405_s1 + $0x120] sm:$0xff] }
   0xd   : > { %735 = vmatpush1.bf16.msra.mxu0 %v734_v24  ;;  %v78_v55 = vld [vmem:[%s1405_s1 + $0xe8] sm:$0xff]  ;;  %v748_v57 = vpack.c.bf16 %v89_v52, %v86_v51  ;;  %v88_v59 = vld [vmem:[%s1405_s1 + $0x138] sm:$0xff]  ;;  %v95_v61 = vld [vmem:[%s1405_s1 + $0x170] sm:$0xff] }
   0xe   : > { %737 = vmatprep.subr.bf16.mxu0 %v736_v26  ;;  %v92_v60 = vld [vmem:[%s1405_s1 + $0x158] sm:$0xff]  ;;  %v772_v62 = vpack.c.bf16 %v78_v55, %v75_v54  ;;  %v81_v63 = vld [vmem:[%s1405_s1 + $0x100] sm:$0xff]  ;;  %v750_v5 = vpack.c.bf16 %v88_v59, %v85_v58  ;;  %v91_v7 = vld [vmem:[%s1405_s1 + $0x150] sm:$0xff] }
   0xf   : > { %763 = vmatpush3.bf16.msra.mxu1 %v760_v37  ;;  %v84_v4 = vld [vmem:[%s1405_s1 + $0x118] sm:$0xff]  ;;  %v752_v6 = vpack.c.bf16 %v95_v61, %v92_v60  ;;  %v94_v8 = vld [vmem:[%s1405_s1 + $0x168] sm:$0xff]  ;;  %v270_v10 = vld [vmem:[%s1406_s2 + $0x20] sm:$0xff] }
  0x10   : > { %765 = vmatprep.subr.bf16.mxu1 %v764_v44  ;;  %v267_v9 = vld [vmem:[%s1406_s2 + $0x8] sm:$0xff]  ;;  %v776_v12 = vpack.c.bf16 %v84_v4, %v81_v63  ;;  %v87_v13 = vld [vmem:[%s1405_s1 + $0x130] sm:$0xff]  ;;  %v754_v15 = vpack.c.bf16 %v94_v8, %v91_v7  ;;  %v266_v17 = vld [vmem:[%s1406_s2] sm:$0xff] }
  0x11   : > { %739 = vmatpush1.bf16.msra.mxu0 %v738_v35  ;;  %v90_v14 = vld [vmem:[%s1405_s1 + $0x148] sm:$0xff]  ;;  %v788_v16 = vpack.c.bf16 %v270_v10, %v267_v9  ;;  %v269_v18 = vld [vmem:[%s1406_s2 + $0x18] sm:$0xff]  ;;  %v276_v20 = vld [vmem:[%s1406_s2 + $0x50] sm:$0xff] }
  0x12   : > { %741 = vmatprep.subr.bf16.mxu0 %v740_v38  ;;  %v273_v19 = vld [vmem:[%s1406_s2 + $0x38] sm:$0xff]  ;;  %v780_v21 = vpack.c.bf16 %v90_v14, %v87_v13  ;;  %v93_v22 = vld [vmem:[%s1405_s1 + $0x160] sm:$0xff]  ;;  %v790_v24 = vpack.c.bf16 %v269_v18, %v266_v17  ;;  %v272_v26 = vld [vmem:[%s1406_s2 + $0x30] sm:$0xff] }
  0x13   : > { %767 = vmatpush3.bf16.msra.mxu1 %v764_v44  ;;  %v96_v23 = vld [vmem:[%s1405_s1 + $0x178] sm:$0xff]  ;;  %v792_v25 = vpack.c.bf16 %v276_v20, %v273_v19  ;;  %v275_v27 = vld [vmem:[%s1406_s2 + $0x48] sm:$0xff]  ;;  %v282_v29 = vld [vmem:[%s1406_s2 + $0x80] sm:$0xff] }
  0x14   : > { %769 = vmatprep.subr.bf16.mxu1 %v768_v53  ;;  %v279_v28 = vld [vmem:[%s1406_s2 + $0x68] sm:$0xff]  ;;  %v784_v30 = vpack.c.bf16 %v96_v23, %v93_v22  ;;  %v268_v31 = vld [vmem:[%s1406_s2 + $0x10] sm:$0xff]  ;;  %v794_v33 = vpack.c.bf16 %v275_v27, %v272_v26  ;;  %v278_v35 = vld [vmem:[%s1406_s2 + $0x60] sm:$0xff] }
  0x15   : > { %743 = vmatpush1.bf16.msra.mxu0 %v742_v47  ;;  %v271_v32 = vld [vmem:[%s1406_s2 + $0x28] sm:$0xff]  ;;  %v796_v34 = vpack.c.bf16 %v282_v29, %v279_v28  ;;  %v281_v36 = vld [vmem:[%s1406_s2 + $0x78] sm:$0xff]  ;;  %v288_v38 = vld [vmem:[%s1406_s2 + $0xb0] sm:$0xff] }
  0x16   : > { %745 = vmatprep.subr.bf16.mxu0 %v744_v48  ;;  %v285_v37 = vld [vmem:[%s1406_s2 + $0x98] sm:$0xff]  ;;  %v820_v39 = vpack.c.bf16 %v271_v32, %v268_v31  ;;  %v274_v40 = vld [vmem:[%s1406_s2 + $0x40] sm:$0xff]  ;;  %v798_v42 = vpack.c.bf16 %v281_v36, %v278_v35  ;;  %v284_v44 = vld [vmem:[%s1406_s2 + $0x90] sm:$0xff]  ;;  %v99_v31 = vlaneseq }
  0x17   : > { %771 = vmatpush3.bf16.msra.mxu1 %v768_v53  ;;  %v277_v41 = vld [vmem:[%s1406_s2 + $0x58] sm:$0xff]  ;;  %v800_v43 = vpack.c.bf16 %v288_v38, %v285_v37  ;;  %v287_v45 = vld [vmem:[%s1406_s2 + $0xa8] sm:$0xff]  ;;  %v294_v47 = vld [vmem:[%s1406_s2 + $0xe0] sm:$0xff] }
  0x18   : > { %773 = vmatprep.subr.bf16.mxu1 %v772_v62  ;;  %v291_v46 = vld [vmem:[%s1406_s2 + $0xc8] sm:$0xff]  ;;  %v824_v48 = vpack.c.bf16 %v277_v41, %v274_v40  ;;  %v280_v49 = vld [vmem:[%s1406_s2 + $0x70] sm:$0xff]  ;;  %v802_v51 = vpack.c.bf16 %v287_v45, %v284_v44  ;;  %v290_v53 = vld [vmem:[%s1406_s2 + $0xc0] sm:$0xff]  ;;  %v1334_v32 = vshrl.u32 %v99_v31, 7 }
  0x19   : > { %747 = vmatpush1.bf16.msra.mxu0 %v746_v56  ;;  %v283_v50 = vld [vmem:[%s1406_s2 + $0x88] sm:$0xff]  ;;  %v804_v52 = vpack.c.bf16 %v294_v47, %v291_v46  ;;  %v293_v54 = vld [vmem:[%s1406_s2 + $0xd8] sm:$0xff]  ;;  %v300_v56 = vld [vmem:[%s1406_s2 + $0x110] sm:$0xff] }
  0x1a   : > { %749 = vmatprep.subr.bf16.mxu0 %v748_v57  ;;  %v297_v55 = vld [vmem:[%s1406_s2 + $0xf8] sm:$0xff]  ;;  %v828_v57 = vpack.c.bf16 %v283_v50, %v280_v49  ;;  %v286_v58 = vld [vmem:[%s1406_s2 + $0xa0] sm:$0xff]  ;;  %v806_v60 = vpack.c.bf16 %v293_v54, %v290_v53  ;;  %v299_v63 = vld [vmem:[%s1406_s2 + $0x108] sm:$0xff]  ;;  %v105_v35 = vsub.s32 1, %v1334_v32 }
  0x1b   : > { %775 = vmatpush3.bf16.msra.mxu1 %v772_v62  ;;  %v289_v59 = vld [vmem:[%s1406_s2 + $0xb8] sm:$0xff]  ;;  %v808_v61 = vpack.c.bf16 %v300_v56, %v297_v55  ;;  %v296_v62 = vld [vmem:[%s1406_s2 + $0xf0] sm:$0xff]  ;;  %v303_v4 = vld [vmem:[%s1406_s2 + $0x128] sm:$0xff] }
  0x1c   : > { %777 = vmatprep.subr.bf16.mxu1 %v776_v12  ;;  %v292_v7 = vld [vmem:[%s1406_s2 + $0xd0] sm:$0xff]  ;;  %v295_v8 = vld [vmem:[%s1406_s2 + $0xe8] sm:$0xff]  ;;  %v810_v9 = vpack.c.bf16 %v299_v63, %v296_v62  ;;  %v305_v13 = vld [vmem:[%s1406_s2 + $0x138] sm:$0xff] }
  0x1d   : > { %751 = vmatpush1.bf16.msra.mxu0 %v750_v5  ;;  %v306_v5 = vld [vmem:[%s1406_s2 + $0x140] sm:$0xff]  ;;  %v309_v14 = vld [vmem:[%s1406_s2 + $0x158] sm:$0xff]  ;;  %v311_v22 = vld [vmem:[%s1406_s2 + $0x168] sm:$0xff] }
  0x1e   : > { %753 = vmatprep.subr.bf16.mxu0 %v752_v6  ;;  %v832_v6 = vpack.c.bf16 %v289_v59, %v286_v58  ;;  %v812_v10 = vpack.c.bf16 %v306_v5, %v303_v4  ;;  %v298_v17 = vld [vmem:[%s1406_s2 + $0x100] sm:$0xff]  ;;  %v301_v18 = vld [vmem:[%s1406_s2 + $0x118] sm:$0xff]  ;;  %v36_v44 = vld [vmem:[%s1345_s11 + $0x8] sm:$0xff] }
  0x1f   : > { %779 = vmatpush3.bf16.msra.mxu1 %v776_v12  ;;  %v302_v12 = vld [vmem:[%s1406_s2 + $0x120] sm:$0xff]  ;;  %v840_v23 = vpack.c.bf16 %v301_v18, %v298_v17  ;;  %v313_v29 = vld [vmem:[%s1406_s2 + $0x178] sm:$0xff]  ;;  %v43_v18 = vld [vmem:[%s1365_s18 + $0x30] sm:$0xff] }
  0x20   : > { %781 = vmatprep.subr.bf16.mxu1 %v780_v21  ;;  %v814_v19 = vpack.c.bf16 %v305_v13, %v302_v12  ;;  %v310_v28 = vld [vmem:[%s1406_s2 + $0x160] sm:$0xff] }
  0x21   : > { %755 = vmatpush1.bf16.msra.mxu0 %v754_v15  ;;  %v312_v15 = vld [vmem:[%s1406_s2 + $0x170] sm:$0xff]  ;;  %v35_v37 = vld [vmem:[%s1345_s11] sm:$0xff] }
  0x22   : > { %789 = vmatprep.subr.bf16.mxu0 %v788_v16  ;;  %v836_v16 = vpack.c.bf16 %v295_v8, %v292_v7  ;;  %v816_v20 = vpack.c.bf16 %v312_v15, %v309_v14  ;;  %v1360_v7 = vld [vmem:[%s1408_s4] sm:$0x7] }
  0x23   : > { %783 = vmatpush3.bf16.msra.mxu1 %v780_v21  ;;  %v308_v21 = vld [vmem:[%s1406_s2 + $0x150] sm:$0xff]  ;;  %v39_v14 = vld [vmem:[%s1345_s11 + $0x20] sm:$0xff]  ;;  %v323_v17 = vrot.slane %v1360_v7, %v105_v35 }
  0x24   : > { %179 = vmatmul.mubr.f32.vlgmr.msra.gmra.mrb[0].mxu0 %v967_v3  ;;  %785 = vmatprep.subr.bf16.mxu1 %v784_v30  ;;  %v818_v26 = vpack.c.bf16 %v311_v22, %v308_v21 }
  0x25   : > { %791 = vmatpush1.bf16.msra.mxu0 %v790_v24  ;;  %184 = vmatprep.mubr.f32.mxu0 %v973_v11  ;;  %v304_v24 = vld [vmem:[%s1406_s2 + $0x130] sm:$0xff] }
  0x26   : > { %793 = vmatprep.subr.bf16.mxu0 %v792_v25  ;;  %v307_v25 = vld [vmem:[%s1406_s2 + $0x148] sm:$0xff] }
  0x27   : > { %787 = vmatpush3.bf16.msra.mxu1 %v784_v30  ;;  %v844_v27 = vpack.c.bf16 %v307_v25, %v304_v24  ;;  %v848_v30 = vpack.c.bf16 %v313_v29, %v310_v28  ;;  %v40_v24 = vld [vmem:[%s1345_s11 + $0x28] sm:$0xff]  ;;  %v45_v28 = vld [vmem:[%s1365_s18 + $0x40] sm:$0xff]  ;;  %v44_v29 = vld [vmem:[%s1365_s18 + $0x38] sm:$0xff] }
  0x28   : > { %185 = vmatmul.mubr.f32.gmra.mrb[2].mxu0 %v963_v2  ;;  %821 = vmatprep.subr.bf16.mxu1 %v820_v39 }
  0x29   : > { %795 = vmatpush1.bf16.msra.mxu0 %v794_v33  ;;  %395 = vmatprep.mubr.f32.mxu0 %v973_v11  ;;  %v101_v33 = vsub.s32 0, %v1334_v32 }
  0x2a   : > { %797 = vmatprep.subr.bf16.mxu0 %v796_v34  ;;  %687 = vmatmul.mubr.f32.vlgmr.msra.gmra.mrb[0].mxu1 %v963_v2  ;;  %v97_v34 = vld [vmem:[%s1407_s3] sm:$0x7] }
  0x2b   : > { %823 = vmatpush3.bf16.msra.mxu1 %v820_v39  ;;  %721 = vmatprep.mubr.f32.mxu1 %v959_v1  ;;  %v106_v36 = vrot.slane %v97_v34, %v105_v35  ;;  %v319_v12 = vrot.slane %v1360_v7, %v101_v33 }
  0x2c   : > { %825 = vmatprep.subr.bf16.mxu1 %v824_v48 }
  0x2d   : > { %799 = vmatpush1.bf16.msra.mxu0 %v798_v42 }
  0x2e   : > { %801 = vmatprep.subr.bf16.mxu0 %v800_v43  ;;  %v37_v43 = vld [vmem:[%s1345_s11 + $0x10] sm:$0xff] }
  0x2f   : > { %827 = vmatpush3.bf16.msra.mxu1 %v824_v48  ;;  %v38_v48 = vld [vmem:[%s1345_s11 + $0x18] sm:$0xff] }
  0x30   : > { %829 = vmatprep.subr.bf16.mxu1 %v828_v57 }
  0x31   : > { %803 = vmatpush1.bf16.msra.mxu0 %v802_v51 }
  0x32   : > { %805 = vmatprep.subr.bf16.mxu0 %v804_v52 }
  0x33   : > { %831 = vmatpush3.bf16.msra.mxu1 %v828_v57 }
  0x34   : > { %833 = vmatprep.subr.bf16.mxu1 %v832_v6 }
  0x35   : > { %807 = vmatpush1.bf16.msra.mxu0 %v806_v60 }
  0x36   : > { %809 = vmatprep.subr.bf16.mxu0 %v808_v61  ;;  %v109_v61 = vsub.s32 2, %v1334_v32 }
  0x37   : > { %835 = vmatpush3.bf16.msra.mxu1 %v832_v6 }
  0x38   : > { %837 = vmatprep.subr.bf16.mxu1 %v836_v16  ;;  %v110_v4 = vrot.slane %v97_v34, %v109_v61 }
  0x39   : > { %811 = vmatpush1.bf16.msra.mxu0 %v810_v9 }
  0x3a   : > { %813 = vmatprep.subr.bf16.mxu0 %v812_v10 }
  0x3b   : > { %839 = vmatpush3.bf16.msra.mxu1 %v836_v16 }
  0x3c   : > { %841 = vmatprep.subr.bf16.mxu1 %v840_v23 }
  0x3d   : > { %815 = vmatpush1.bf16.msra.mxu0 %v814_v19 }
  0x3e   : > { %817 = vmatprep.subr.bf16.mxu0 %v816_v20 }
  0x3f   : > { %843 = vmatpush3.bf16.msra.mxu1 %v840_v23 }
  0x40   : > { %845 = vmatprep.subr.bf16.mxu1 %v844_v27 }
  0x41   : > { %819 = vmatpush1.bf16.msra.mxu0 %v818_v26 }
  0x43   : > { %847 = vmatpush3.bf16.msra.mxu1 %v844_v27 }
  0x44   : > { %396 = vmatmul.mubr.f32.vlgmr.msra.gmra.mrb[4].mxu0 %v959_v1  ;;  %849 = vmatprep.subr.bf16.mxu1 %v848_v30 }
  0x45   : > { %401 = vmatprep.mubr.f32.mxu0 %v973_v11  ;;  %v102_v11 = vrot.slane %v97_v34, %v101_v33 }
  0x47   : > { %851 = vmatpush3.bf16.msra.mxu1 %v848_v30 }
  0x48   : > { %402 = vmatmul.mubr.f32.gmra.mrb[6].mxu0 %v955_v0 }
  0x4a   : > { %722 = vmatmul.mubr.f32.vlgmr.msra.gmra.mrb[2].mxu1 %v955_v0 }
  0xf7   : > { %v180_v38 = vpop.f32.mrb[0].mxu0 }
  0xf8   : > { %v181_v39 = vadd.f32 %v180_v38, %v102_v11  ;;  %v182_v40 = vpop.f32.mrb[1].mxu0  ;;  %v46_v38 = vld [vmem:[%s1365_s18 + $0x48] sm:$0xff] }
  0xf9   : > { %v183_v41 = vadd.f32 %v182_v40, %v106_v36 }
  0xfa   : > { %v483_v42 = vadd.f32 %v181_v39, %v35_v37 }
  0xfb   : > { %v186_v45 = vpop.f32.mrb[2].mxu0  ;;  %v497_v50 = vadd.f32 %v183_v41, %v37_v43 }
  0xfc   : > { %v608_v46 = vmul.f32 -1.442695, %v483_v42  ;;  %v187_v47 = vadd.f32 %v186_v45, %v102_v11  ;;  %v188_v49 = vpop.f32.mrb[3].mxu0 }
  0xfd   : > { %v189_v51 = vadd.f32 %v188_v49, %v106_v36  ;;  %v688_v55 = vpop.f32.mrb[0].mxu1  ;;  %v610_v56 = vmul.f32 -1.442695, %v497_v50 }
  0xfe   : > { %893 = vpow2.f32 %v608_v46  ;;  %v484_v52 = vadd.f32 %v187_v47, %v36_v44  ;;  %v257_v57 = vpop.f32.mrb[1].mxu1  ;;  %v263_v15 = vadd.f32 %v688_v55, %v110_v4 }
  0xff   : > { %v498_v53 = vadd.f32 %v189_v51, %v38_v48  ;;  %v258_v9 = vadd.f32 %v257_v57, %v110_v4 }
 0x100   : > { %v609_v54 = vmul.f32 -1.442695, %v484_v52 }
 0x101   : > { %v611_v58 = vmul.f32 -1.442695, %v498_v53 }
 0x102   : > { %895 = vpow2.f32 %v609_v54 }
 0x103   : > { %897 = vpow2.f32 %v610_v56 }
 0x104   : > { %899 = vpow2.f32 %v611_v58 }
 0x108   : > { %v894_v59 = vpop.eup %893 }
 0x109   : > { %v491_v60 = vadd.f32 1.0, %v894_v59  ;;  %v327_v59 = vrot.slane %v1360_v7, %v109_v61 }
 0x10b   : > { %901 = vrcp.f32 %v491_v60 }
 0x10c   : > { %v896_v62 = vpop.eup %895 }
 0x10d   : > { %v492_v63 = vadd.f32 1.0, %v896_v62  ;;  %v898_v5 = vpop.eup %897 }
 0x10e   : > { %v900_v6 = vpop.eup %899  ;;  %v505_v8 = vadd.f32 1.0, %v898_v5 }
 0x10f   : > { %903 = vrcp.f32 %v492_v63  ;;  %v506_v10 = vadd.f32 1.0, %v900_v6 }
 0x110   : > { %905 = vrcp.f32 %v505_v8 }
 0x111   : > { %907 = vrcp.f32 %v506_v10 }
 0x115   : > { %v902_v13 = vpop.eup %901 }
 0x116   : > { %v511_v16 = vmul.f32 %v902_v13, %v258_v9  ;;  %v47_v9 = vld [vmem:[%s1365_s18 + $0x50] sm:$0xff]  ;;  %v48_v13 = vld [vmem:[%s1365_s18 + $0x58] sm:$0xff] }
 0x117   : > { %v397_v19 = vpop.f32.mrb[4].mxu0 }
 0x118   : > { %v513_v20 = vadd.f32 %v511_v16, %v39_v14  ;;  %v398_v21 = vadd.f32 %v397_v19, %v319_v12  ;;  %v399_v22 = vpop.f32.mrb[5].mxu0 }
 0x119   : > { %v904_v23 = vpop.eup %903  ;;  %v400_v27 = vadd.f32 %v399_v22, %v323_v17 }
 0x11a   : > { %v512_v25 = vmul.f32 %v904_v23, %v263_v15  ;;  %909 = vtanh.f32 %v513_v20  ;;  %v517_v26 = vadd.f32 %v398_v21, %v43_v18  ;;  %v906_v39 = vpop.eup %905 }
 0x11b   : > { %v403_v30 = vpop.f32.mrb[6].mxu0  ;;  %v531_v36 = vadd.f32 %v400_v27, %v45_v28  ;;  %v908_v44 = vpop.eup %907  ;;  %v551_v46 = vsub.f32 1.0, %v906_v39  ;;  %v555_v48 = vmul.f32 %v967_v3, %v906_v39 }
 0x11c   : > { %v514_v31 = vadd.f32 %v512_v25, %v40_v24  ;;  %v612_v33 = vmul.f32 -1.442695, %v517_v26  ;;  %v404_v34 = vadd.f32 %v403_v30, %v319_v12  ;;  %v405_v35 = vpop.f32.mrb[7].mxu0  ;;  %v552_v49 = vsub.f32 1.0, %v908_v44 }
 0x11d   : > { %v406_v11 = vadd.f32 %v405_v35, %v323_v17  ;;  %v723_v41 = vpop.f32.mrb[2].mxu1  ;;  %v614_v45 = vmul.f32 -1.442695, %v531_v36  ;;  %v556_v52 = vmul.f32 %v963_v2, %v908_v44 }
 0x11e   : > { %911 = vtanh.f32 %v514_v31  ;;  %v518_v37 = vadd.f32 %v404_v34, %v44_v29  ;;  %v474_v43 = vpop.f32.mrb[3].mxu1  ;;  %v480_v8 = vadd.f32 %v723_v41, %v327_v59 }
 0x11f   : > { %913 = vpow2.f32 %v612_v33  ;;  %v532_v42 = vadd.f32 %v406_v11, %v46_v38  ;;  %v475_v4 = vadd.f32 %v474_v43, %v327_v59 }
 0x120   : > { %v613_v40 = vmul.f32 -1.442695, %v518_v37 }
 0x121   : > { %v615_v51 = vmul.f32 -1.442695, %v532_v42 }
 0x122   : > { %915 = vpow2.f32 %v613_v40 }
 0x123   : > { %917 = vpow2.f32 %v614_v45 }
 0x124   : > { %v910_v47 = vpop.eup %909  ;;  %919 = vpow2.f32 %v615_v51 }
 0x125   : > { %v553_v50 = vmul.f32 %v910_v47, %v551_v46 }
 0x127   : > { %v557_v3 = vadd.f32 %v555_v48, %v553_v50  }
 0x128   : > { %v912_v53 = vpop.eup %911 }
 0x129   : > { %v914_v54 = vpop.eup %913  ;;  %v554_v55 = vmul.f32 %v912_v53, %v552_v49  ;;  %569 = vst [vmem:[%s568_s23] sm:$0xff] %v557_v3 }
 0x12a   : > { %v525_v56 = vadd.f32 1.0, %v914_v54 }
 0x12b   : > { %v558_v2 = vadd.f32 %v556_v52, %v554_v55  }
 0x12c   : > { %v916_v57 = vpop.eup %915  ;;  %921 = vrcp.f32 %v525_v56 }
 0x12d   : > { %570 = vst [vmem:[%s568_s23 + $0x8] sm:$0xff] %v558_v2  ;;  %v526_v58 = vadd.f32 1.0, %v916_v57  ;;  %v918_v60 = vpop.eup %917 }
 0x12e   : > { %v920_v62 = vpop.eup %919  ;;  %v539_v63 = vadd.f32 1.0, %v918_v60 }
 0x12f   : > { %923 = vrcp.f32 %v526_v58  ;;  %v540_v6 = vadd.f32 1.0, %v920_v62 }
 0x130   : > { %925 = vrcp.f32 %v539_v63 }
 0x131   : > { %927 = vrcp.f32 %v540_v6 }
 0x136   : > { %v922_v5 = vpop.eup %921 }
 0x137   : > { %v545_v10 = vmul.f32 %v922_v5, %v475_v4 }
 0x139   : > { %v924_v12 = vpop.eup %923  ;;  %v547_v14 = vadd.f32 %v545_v10, %v47_v9 }
 0x13a   : > { %v546_v15 = vmul.f32 %v924_v12, %v480_v8  ;;  %v926_v61 = vpop.eup %925 }
 0x13b   : > { %929 = vtanh.f32 %v547_v14  ;;  %v928_v7 = vpop.eup %927  ;;  %v559_v16 = vsub.f32 1.0, %v926_v61  ;;  %v563_v18 = vmul.f32 %v959_v1, %v926_v61 }
 0x13c   : > { %v548_v32 = vadd.f32 %v546_v15, %v48_v13  ;;  %v560_v20 = vsub.f32 1.0, %v928_v7  ;;  %v564_v22 = vmul.f32 %v955_v0, %v928_v7 }
 0x13e   : > { %931 = vtanh.f32 %v548_v32 }
 0x145   : > { %v930_v17 = vpop.eup %929 }
 0x146   : > { %v561_v19 = vmul.f32 %v930_v17, %v559_v16 }
 0x147   :  { %26 = sbr.rel (!%p24_p0) target bundleno = 1 (0x1), region = 59 }
 0x148   : > { %v932_v21 = vpop.eup %931  ;;  %v565_v1 = vadd.f32 %v563_v18, %v561_v19  }
 0x149   : > { %v562_v23 = vmul.f32 %v932_v21, %v560_v20 }
 0x14a   : > { %573 = vst [vmem:[%s572_s27] sm:$0xff] %v565_v1 }
 0x14b   : > { %v566_v0 = vadd.f32 %v564_v22, %v562_v23  }
 0x14d   : > { %574 = vst [vmem:[%s572_s27 + $0x8] sm:$0xff] %v566_v0 }

// kernel: aia_transformer_forward.26
= control target key start
LH: loop header
LB: loop body
LE: loop exit
PB: predicated region body
PF: predicated region fallthrough
CT: control target
= control target key end

     0   :  { %vm470_vm0 = vcmask 523264   ;;  %s1625_s3 = inlined_call_operand.vmem [shape: f32[128,64], index: 3, kind: input, shape index: {}]   ;;  %s1626_s2 = inlined_call_operand.vmem [shape: f32[128,64], index: 2, kind: input, shape index: {}]   ;;  %s1627_s1 = inlined_call_operand.vmem [shape: f32[128,128], index: 1, kind: input, shape index: {}]   ;;  %s1628_s0 = inlined_call_operand.vmem [shape: f32[128,128], index: 0, kind: input, shape index: {}]   ;;  %s1629_s4 = inlined_call_operand.vmem [shape: f32[1,64], index: 4, kind: input, shape index: {}]   ;;  %s1630_s5 = inlined_call_operand.vmem [shape: f32[128,64], index: 5, kind: input, shape index: {}]   ;;  %s1631_s6 = inlined_call_operand.vmem [shape: f32[1,64], index: 6, kind: input, shape index: {}]   ;;  %s1632_s7 = inlined_call_operand.vmem [shape: f32[1,64], index: 7, kind: input, shape index: {}]   ;;  %s1633_s8 = inlined_call_operand.vmem [shape: f32[128,64], index: 8, kind: output, shape index: {}]  }
   0x1   :  { %v109_v0 = vld [vmem:[%s1625_s3] sm:$0xff]  ;;  %v110_v1 = vld [vmem:[%s1625_s3 + $0x8] sm:$0xff]  ;;  %v111_v5 = vld [vmem:[%s1625_s3 + $0x10] sm:$0xff] }
   0x2   :  { %v61_v2 = vld [vmem:[%s1626_s2] sm:$0xff]  ;;  %v925_v3 = vpack.c.bf16 %v110_v1, %v109_v0  ;;  %v62_v4 = vld [vmem:[%s1626_s2 + $0x8] sm:$0xff]  ;;  %v112_v6 = vld [vmem:[%s1625_s3 + $0x18] sm:$0xff] }
   0x3   :  { %v957_v7 = vpack.c.bf16 %v62_v4, %v61_v2  ;;  %v929_v8 = vpack.c.bf16 %v112_v6, %v111_v5  ;;  %v63_v9 = vld [vmem:[%s1626_s2 + $0x10] sm:$0xff]  ;;  %v64_v10 = vld [vmem:[%s1626_s2 + $0x18] sm:$0xff]  ;;  %v113_v11 = vld [vmem:[%s1625_s3 + $0x20] sm:$0xff] }
   0x4   :  { %926 = vmatprep.subr.bf16.mxu1 %v925_v3  ;;  %v961_v12 = vpack.c.bf16 %v64_v10, %v63_v9  ;;  %v114_v13 = vld [vmem:[%s1625_s3 + $0x28] sm:$0xff]  ;;  %v65_v14 = vld [vmem:[%s1626_s2 + $0x20] sm:$0xff]  ;;  %v115_v18 = vld [vmem:[%s1625_s3 + $0x30] sm:$0xff] }
   0x5   :  { %v66_v15 = vld [vmem:[%s1626_s2 + $0x28] sm:$0xff]  ;;  %958 = vmatprep.subr.bf16.mxu0 %v957_v7  ;;  %928 = vmatpush3.bf16.msra.mxu1 %v925_v3  ;;  %v933_v16 = vpack.c.bf16 %v114_v13, %v113_v11  ;;  %v116_v19 = vld [vmem:[%s1625_s3 + $0x38] sm:$0xff]  ;;  %v67_v20 = vld [vmem:[%s1626_s2 + $0x30] sm:$0xff] }
   0x6   :  { %960 = vmatpush3.bf16.msra.mxu0 %v957_v7  ;;  %930 = vmatprep.subr.bf16.mxu1 %v929_v8  ;;  %v965_v17 = vpack.c.bf16 %v66_v15, %v65_v14  ;;  %v68_v21 = vld [vmem:[%s1626_s2 + $0x38] sm:$0xff]  ;;  %v937_v22 = vpack.c.bf16 %v116_v19, %v115_v18  ;;  %v117_v24 = vld [vmem:[%s1625_s3 + $0x40] sm:$0xff]  ;;  %v118_v25 = vld [vmem:[%s1625_s3 + $0x48] sm:$0xff] }
   0x7   :  { %962 = vmatprep.subr.bf16.mxu0 %v961_v12  ;;  %v969_v23 = vpack.c.bf16 %v68_v21, %v67_v20  ;;  %v77_v26 = vld [vmem:[%s1627_s1] sm:$0xff]  ;;  %v70_v28 = vld [vmem:[%s1626_s2 + $0x48] sm:$0xff]  ;;  %v941_v32 = vpack.c.bf16 %v118_v25, %v117_v24  ;;  %v119_v34 = vld [vmem:[%s1625_s3 + $0x50] sm:$0xff] }
   0x8   :  { %v69_v27 = vld [vmem:[%s1626_s2 + $0x40] sm:$0xff]  ;;  %v93_v29 = vmax.f32 %v77_v26, 0.0  ;;  %v120_v35 = vld [vmem:[%s1625_s3 + $0x58] sm:$0xff]  ;;  %v71_v36 = vld [vmem:[%s1626_s2 + $0x50] sm:$0xff] }
   0x9   :  { %932 = vmatpush3.bf16.msra.mxu1 %v929_v8  ;;  %v29_v30 = vld [vmem:[%s1628_s0] sm:$0xff]  ;;  %v973_v33 = vpack.c.bf16 %v70_v28, %v69_v27  ;;  %v72_v37 = vld [vmem:[%s1626_s2 + $0x58] sm:$0xff]  ;;  %v945_v38 = vpack.c.bf16 %v120_v35, %v119_v34  ;;  %v122_v41 = vld [vmem:[%s1625_s3 + $0x68] sm:$0xff] }
   0xa   :  { %964 = vmatpush3.bf16.msra.mxu0 %v961_v12  ;;  %934 = vmatprep.subr.bf16.mxu1 %v933_v16  ;;  %v45_v31 = vmax.f32 %v29_v30, 0.0  ;;  %v977_v39 = vpack.c.bf16 %v72_v37, %v71_v36  ;;  %v121_v40 = vld [vmem:[%s1625_s3 + $0x60] sm:$0xff]  ;;  %v74_v43 = vld [vmem:[%s1626_s2 + $0x68] sm:$0xff]  ;;  %v123_v46 = vld [vmem:[%s1625_s3 + $0x70] sm:$0xff] }
   0xb   :  { %966 = vmatprep.subr.bf16.mxu0 %v965_v17  ;;  %845 = vmatprep.mubr.f32.mxu1 %v93_v29  ;;  %v73_v42 = vld [vmem:[%s1626_s2 + $0x60] sm:$0xff]  ;;  %v949_v44 = vpack.c.bf16 %v122_v41, %v121_v40  ;;  %v124_v47 = vld [vmem:[%s1625_s3 + $0x78] sm:$0xff]  ;;  %v75_v48 = vld [vmem:[%s1626_s2 + $0x70] sm:$0xff] }
   0xc   :  { %901 = vmatprep.mubr.f32.mxu0 %v45_v31  ;;  %v981_v45 = vpack.c.bf16 %v74_v43, %v73_v42  ;;  %v76_v49 = vld [vmem:[%s1626_s2 + $0x78] sm:$0xff]  ;;  %v953_v50 = vpack.c.bf16 %v124_v47, %v123_v46  ;;  %v78_v52 = vld [vmem:[%s1627_s1 + $0x8] sm:$0xff]  ;;  %v79_v54 = vld [vmem:[%s1627_s1 + $0x10] sm:$0xff] }
   0xd   :  { %936 = vmatpush3.bf16.msra.mxu1 %v933_v16  ;;  %v985_v51 = vpack.c.bf16 %v76_v49, %v75_v48  ;;  %v30_v53 = vld [vmem:[%s1628_s0 + $0x8] sm:$0xff]  ;;  %v31_v55 = vld [vmem:[%s1628_s0 + $0x10] sm:$0xff]  ;;  %v94_v56 = vmax.f32 %v78_v52, 0.0  ;;  %v95_v58 = vmax.f32 %v79_v54, 0.0  ;;  %v80_v59 = vld [vmem:[%s1627_s1 + $0x18] sm:$0xff] }
   0xe   :  { %968 = vmatpush3.bf16.msra.mxu0 %v965_v17  ;;  %938 = vmatprep.subr.bf16.mxu1 %v937_v22  ;;  %v46_v57 = vmax.f32 %v30_v53, 0.0  ;;  %v47_v60 = vmax.f32 %v31_v55, 0.0  ;;  %v32_v61 = vld [vmem:[%s1628_s0 + $0x18] sm:$0xff]  ;;  %v81_v62 = vld [vmem:[%s1627_s1 + $0x20] sm:$0xff]  ;;  %v96_v0 = vmax.f32 %v80_v59, 0.0  ;;  %v82_v3 = vld [vmem:[%s1627_s1 + $0x28] sm:$0xff] }
   0xf   :  { %970 = vmatprep.subr.bf16.mxu0 %v969_v23  ;;  %v33_v63 = vld [vmem:[%s1628_s0 + $0x20] sm:$0xff]  ;;  %v48_v1 = vmax.f32 %v32_v61, 0.0  ;;  %v97_v2 = vmax.f32 %v81_v62, 0.0  ;;  %v34_v5 = vld [vmem:[%s1628_s0 + $0x28] sm:$0xff]  ;;  %v83_v6 = vld [vmem:[%s1627_s1 + $0x30] sm:$0xff]  ;;  %v98_v8 = vmax.f32 %v82_v3, 0.0 }
  0x10   :  { %v49_v4 = vmax.f32 %v33_v63, 0.0  ;;  %v35_v7 = vld [vmem:[%s1628_s0 + $0x30] sm:$0xff]  ;;  %v50_v9 = vmax.f32 %v34_v5, 0.0  ;;  %v99_v10 = vmax.f32 %v83_v6, 0.0  ;;  %v84_v11 = vld [vmem:[%s1627_s1 + $0x38] sm:$0xff]  ;;  %v85_v14 = vld [vmem:[%s1627_s1 + $0x40] sm:$0xff] }
  0x11   :  { %940 = vmatpush3.bf16.msra.mxu1 %v937_v22  ;;  %v51_v12 = vmax.f32 %v35_v7, 0.0  ;;  %v36_v13 = vld [vmem:[%s1628_s0 + $0x38] sm:$0xff]  ;;  %v37_v15 = vld [vmem:[%s1628_s0 + $0x40] sm:$0xff]  ;;  %v100_v16 = vmax.f32 %v84_v11, 0.0  ;;  %v101_v18 = vmax.f32 %v85_v14, 0.0  ;;  %v86_v19 = vld [vmem:[%s1627_s1 + $0x48] sm:$0xff] }
  0x12   :  { %972 = vmatpush3.bf16.msra.mxu0 %v969_v23  ;;  %942 = vmatprep.subr.bf16.mxu1 %v941_v32  ;;  %v52_v17 = vmax.f32 %v36_v13, 0.0  ;;  %v53_v20 = vmax.f32 %v37_v15, 0.0  ;;  %v38_v21 = vld [vmem:[%s1628_s0 + $0x48] sm:$0xff]  ;;  %v87_v22 = vld [vmem:[%s1627_s1 + $0x50] sm:$0xff]  ;;  %v102_v24 = vmax.f32 %v86_v19, 0.0  ;;  %v88_v27 = vld [vmem:[%s1627_s1 + $0x58] sm:$0xff] }
  0x13   :  { %974 = vmatprep.subr.bf16.mxu0 %v973_v33  ;;  %v39_v23 = vld [vmem:[%s1628_s0 + $0x50] sm:$0xff]  ;;  %v54_v25 = vmax.f32 %v38_v21, 0.0  ;;  %v103_v26 = vmax.f32 %v87_v22, 0.0  ;;  %v40_v29 = vld [vmem:[%s1628_s0 + $0x58] sm:$0xff]  ;;  %v89_v30 = vld [vmem:[%s1627_s1 + $0x60] sm:$0xff] }
  0x14   :  { %v55_v28 = vmax.f32 %v39_v23, 0.0  ;;  %v41_v31 = vld [vmem:[%s1628_s0 + $0x60] sm:$0xff]  ;;  %v105_v34 = vmax.f32 %v89_v30, 0.0  ;;  %v90_v35 = vld [vmem:[%s1627_s1 + $0x68] sm:$0xff]  ;;  %v92_v43 = vld [vmem:[%s1627_s1 + $0x78] sm:$0xff] }
  0x15   :  { %944 = vmatpush3.bf16.msra.mxu1 %v941_v32  ;;  %v104_v32 = vmax.f32 %v88_v27, 0.0  ;;  %v57_v36 = vmax.f32 %v41_v31, 0.0  ;;  %v42_v37 = vld [vmem:[%s1628_s0 + $0x68] sm:$0xff]  ;;  %v106_v40 = vmax.f32 %v90_v35, 0.0  ;;  %v108_v46 = vmax.f32 %v92_v43, 0.0  ;;  %v438_v61 = vld [vmem:[%s1630_s5] sm:$0xff] }
  0x16   :  { %976 = vmatpush3.bf16.msra.mxu0 %v973_v33  ;;  %946 = vmatprep.subr.bf16.mxu1 %v945_v38  ;;  %v56_v33 = vmax.f32 %v40_v29, 0.0  ;;  %v58_v41 = vmax.f32 %v42_v37, 0.0  ;;  %v439_v55 = vld [vmem:[%s1630_s5 + $0x8] sm:$0xff]  ;;  %v442_v21 = vld [vmem:[%s1630_s5 + $0x20] sm:$0xff]  ;;  %v445_v30 = vld [vmem:[%s1630_s5 + $0x38] sm:$0xff] }
  0x17   :  { %978 = vmatprep.subr.bf16.mxu0 %v977_v39  ;;  %v443_v15 = vld [vmem:[%s1630_s5 + $0x28] sm:$0xff] }
  0x19   :  { %948 = vmatpush3.bf16.msra.mxu1 %v945_v38  ;;  %v91_v38 = vld [vmem:[%s1627_s1 + $0x70] sm:$0xff] }
  0x1a   :  { %980 = vmatpush3.bf16.msra.mxu0 %v977_v39  ;;  %950 = vmatprep.subr.bf16.mxu1 %v949_v44  ;;  %v43_v39 = vld [vmem:[%s1628_s0 + $0x70] sm:$0xff]  ;;  %v107_v42 = vmax.f32 %v91_v38, 0.0 }
  0x1b   :  { %982 = vmatprep.subr.bf16.mxu0 %v981_v45 }
  0x1d   :  { %952 = vmatpush3.bf16.msra.mxu1 %v949_v44  ;;  %v59_v44 = vmax.f32 %v43_v39, 0.0 }
  0x1e   :  { %984 = vmatpush3.bf16.msra.mxu0 %v981_v45  ;;  %954 = vmatprep.subr.bf16.mxu1 %v953_v50  ;;  %v44_v45 = vld [vmem:[%s1628_s0 + $0x78] sm:$0xff] }
  0x1f   :  { %986 = vmatprep.subr.bf16.mxu0 %v985_v51  ;;  %v60_v47 = vmax.f32 %v44_v45, 0.0  ;;  %v447_v45 = vld [vmem:[%s1630_s5 + $0x48] sm:$0xff] }
  0x21   :  { %956 = vmatpush3.bf16.msra.mxu1 %v953_v50  ;;  %v1277_v50 = vld [vmem:[%s1629_s4] ss:$0 sm:$0xff] }
  0x22   :  { %988 = vmatpush3.bf16.msra.mxu0 %v985_v51 }
  0x24   :  { %846 = vmatmul.mubr.f32.vlgmr.msra.gmra.mrb[0].mxu1 %v94_v56 }
  0x25   :  { %902 = vmatmul.mubr.f32.vlgmr.msra.gmra.mrb[0].mxu0 %v46_v57  ;;  %848 = vmatprep.mubr.f32.mxu1 %v95_v58 }
  0x26   :  { %904 = vmatprep.mubr.f32.mxu0 %v47_v60 }
  0x28   :  { %849 = vmatmul.mubr.f32.gmra.mrb[2].mxu1 %v96_v0 }
  0x29   :  { %905 = vmatmul.mubr.f32.gmra.mrb[2].mxu0 %v48_v1  ;;  %851 = vmatprep.mubr.f32.mxu1 %v97_v2  ;;  %v441_v2 = vld [vmem:[%s1630_s5 + $0x18] sm:$0xff] }
  0x2a   :  { %907 = vmatprep.mubr.f32.mxu0 %v49_v4 }
  0x2c   :  { %852 = vmatmul.mubr.f32.gmra.mrb[4].mxu1 %v98_v8 }
  0x2d   :  { %908 = vmatmul.mubr.f32.gmra.mrb[4].mxu0 %v50_v9  ;;  %854 = vmatprep.mubr.f32.mxu1 %v99_v10  ;;  %v440_v10 = vld [vmem:[%s1630_s5 + $0x10] sm:$0xff] }
  0x2e   :  { %910 = vmatprep.mubr.f32.mxu0 %v51_v12 }
  0x30   :  { %855 = vmatmul.mubr.f32.gmra.mrb[6].mxu1 %v100_v16 }
  0x31   :  { %911 = vmatmul.mubr.f32.gmra.mrb[6].mxu0 %v52_v17  ;;  %857 = vmatprep.mubr.f32.mxu1 %v101_v18 }
  0x32   :  { %913 = vmatprep.mubr.f32.mxu0 %v53_v20 }
  0x34   :  { %858 = vmatmul.mubr.f32.gmra.mrb[8].mxu1 %v102_v24 }
  0x35   :  { %914 = vmatmul.mubr.f32.gmra.mrb[8].mxu0 %v54_v25  ;;  %860 = vmatprep.mubr.f32.mxu1 %v103_v26 }
  0x36   :  { %916 = vmatprep.mubr.f32.mxu0 %v55_v28 }
  0x38   :  { %861 = vmatmul.mubr.f32.gmra.mrb[10].mxu1 %v104_v32 }
  0x39   :  { %917 = vmatmul.mubr.f32.gmra.mrb[10].mxu0 %v56_v33  ;;  %863 = vmatprep.mubr.f32.mxu1 %v105_v34  ;;  %v444_v34 = vld [vmem:[%s1630_s5 + $0x30] sm:$0xff] }
  0x3a   :  { %919 = vmatprep.mubr.f32.mxu0 %v57_v36 }
  0x3c   :  { %864 = vmatmul.mubr.f32.gmra.mrb[12].mxu1 %v106_v40 }
  0x3d   :  { %920 = vmatmul.mubr.f32.gmra.mrb[12].mxu0 %v58_v41  ;;  %866 = vmatprep.mubr.f32.mxu1 %v107_v42 }
  0x3e   :  { %922 = vmatprep.mubr.f32.mxu0 %v59_v44 }
  0x40   :  { %867 = vmatmul.mubr.f32.gmra.mrb[14].mxu1 %v108_v46 }
  0x41   :  { %923 = vmatmul.mubr.f32.gmra.mrb[14].mxu0 %v60_v47 }
  0xf7   :  { %v847_v48 = vpop.f32.mrb[0].mxu1 }
  0xf8   :  { %v903_v49 = vpop.f32.mrb[0].mxu0  ;;  %v191_v51 = vpop.f32.mrb[1].mxu1 }
  0xf9   :  { %v342_v52 = vadd.f32 %v903_v49, %v847_v48  ;;  %v336_v53 = vpop.f32.mrb[1].mxu0  ;;  %v446_v48 = vld [vmem:[%s1630_s5 + $0x40] sm:$0xff] }
  0xfa   :  { %v337_v54 = vadd.f32 %v336_v53, %v191_v51 }
  0xfb   :  { %v423_v56 = vadd.f32 %v1277_v50, %v342_v52  ;;  %v850_v57 = vpop.f32.mrb[2].mxu1 }
  0xfc   :  { %v422_v58 = vadd.f32 %v1277_v50, %v337_v54  ;;  %v906_v59 = vpop.f32.mrb[2].mxu0  ;;  %v201_v60 = vpop.f32.mrb[3].mxu1 }
  0xfd   :  { %v352_v62 = vadd.f32 %v906_v59, %v850_v57  ;;  %v346_v63 = vpop.f32.mrb[3].mxu0  ;;  %v1287_v0 = vadd.f32 %v439_v55, %v423_v56 }
  0xfe   :  { %v347_v1 = vadd.f32 %v346_v63, %v201_v60  ;;  %v1295_v6 = vadd.f32 %v438_v61, %v422_v58  ;;  %v449_v60 = vld [vmem:[%s1630_s5 + $0x58] sm:$0xff]  ;;  %v448_v63 = vld [vmem:[%s1630_s5 + $0x50] sm:$0xff] }
  0xff   :  { %v425_v3 = vadd.f32 %v1277_v50, %v352_v62  ;;  %v853_v4 = vpop.f32.mrb[4].mxu1  ;;  %v474_v5 = vsel %vm470_vm0, %v1287_v0, 0.0 }
 0x100   :  { %v424_v7 = vadd.f32 %v1277_v50, %v347_v1  ;;  %475 = vadd.xlane.f32.xlu0 %v474_v5  ;;  %v909_v8 = vpop.f32.mrb[4].mxu0  ;;  %v211_v9 = vpop.f32.mrb[5].mxu1  ;;  %v471_v19 = vsel %vm470_vm0, %v1295_v6, 0.0 }
 0x101   :  { %v362_v11 = vadd.f32 %v909_v8, %v853_v4  ;;  %v356_v12 = vpop.f32.mrb[5].mxu0  ;;  %v1301_v13 = vadd.f32 %v441_v2, %v425_v3 }
 0x102   :  { %v357_v14 = vadd.f32 %v356_v12, %v211_v9  ;;  %v1311_v20 = vadd.f32 %v440_v10, %v424_v7  ;;  %v451_v12 = vld [vmem:[%s1630_s5 + $0x68] sm:$0xff] }
 0x103   :  { %v427_v16 = vadd.f32 %v1277_v50, %v362_v11  ;;  %v856_v17 = vpop.f32.mrb[6].mxu1  ;;  %v480_v18 = vsel %vm470_vm0, %v1301_v13, 0.0 }
 0x104   :  { %v426_v22 = vadd.f32 %v1277_v50, %v357_v14  ;;  %481 = vadd.xlane.f32.xlu1 %v480_v18  ;;  %v912_v23 = vpop.f32.mrb[6].mxu0  ;;  %472 = vadd.xlane.f32.xlu0 %v471_v19  ;;  %v221_v24 = vpop.f32.mrb[7].mxu1  ;;  %v477_v33 = vsel %vm470_vm0, %v1311_v20, 0.0 }
 0x105   :  { %v372_v25 = vadd.f32 %v912_v23, %v856_v17  ;;  %v366_v26 = vpop.f32.mrb[7].mxu0  ;;  %v1317_v27 = vadd.f32 %v443_v15, %v427_v16  ;;  %v450_v16 = vld [vmem:[%s1630_s5 + $0x60] sm:$0xff] }
 0x106   :  { %v367_v28 = vadd.f32 %v366_v26, %v221_v24  ;;  %v1319_v29 = vadd.f32 %v442_v21, %v426_v22 }
 0x107   :  { %v429_v31 = vadd.f32 %v1277_v50, %v372_v25  ;;  %v859_v32 = vpop.f32.mrb[8].mxu1  ;;  %v486_v41 = vsel %vm470_vm0, %v1317_v27, 0.0 }
 0x108   :  { %v428_v35 = vadd.f32 %v1277_v50, %v367_v28  ;;  %v915_v36 = vpop.f32.mrb[8].mxu0  ;;  %478 = vadd.xlane.f32.xlu1 %v477_v33  ;;  %v231_v37 = vpop.f32.mrb[9].mxu1  ;;  %v483_v38 = vsel %vm470_vm0, %v1319_v29, 0.0 }
 0x109   :  { %v382_v39 = vadd.f32 %v915_v36, %v859_v32  ;;  %v376_v40 = vpop.f32.mrb[9].mxu0  ;;  %484 = vadd.xlane.f32.xlu0 %v483_v38  ;;  %v1335_v42 = vadd.f32 %v445_v30, %v429_v31  ;;  %v453_v30 = vld [vmem:[%s1630_s5 + $0x78] sm:$0xff]  ;;  %v452_v32 = vld [vmem:[%s1630_s5 + $0x70] sm:$0xff] }
 0x10a   :  { %v377_v43 = vadd.f32 %v376_v40, %v231_v37  ;;  %v1337_v44 = vadd.f32 %v444_v34, %v428_v35 }
 0x10b   :  { %v431_v46 = vadd.f32 %v1277_v50, %v382_v39  ;;  %v862_v47 = vpop.f32.mrb[10].mxu1  ;;  %v492_v56 = vsel %vm470_vm0, %v1335_v42, 0.0 }
 0x10c   :  { %v430_v49 = vadd.f32 %v1277_v50, %v377_v43  ;;  %v918_v51 = vpop.f32.mrb[10].mxu0  ;;  %487 = vadd.xlane.f32.xlu1 %v486_v41  ;;  %v241_v52 = vpop.f32.mrb[11].mxu1  ;;  %v489_v53 = vsel %vm470_vm0, %v1337_v44, 0.0 }
 0x10d   :  { %v392_v54 = vadd.f32 %v918_v51, %v862_v47  ;;  %v386_v55 = vpop.f32.mrb[11].mxu0  ;;  %490 = vadd.xlane.f32.xlu0 %v489_v53  ;;  %v1351_v57 = vadd.f32 %v447_v45, %v431_v46 }
 0x10e   :  { %v387_v58 = vadd.f32 %v386_v55, %v241_v52  ;;  %v1353_v59 = vadd.f32 %v446_v48, %v430_v49 }
 0x10f   :  { %v433_v61 = vadd.f32 %v1277_v50, %v392_v54  ;;  %v865_v62 = vpop.f32.mrb[12].mxu1  ;;  %v498_v8 = vsel %vm470_vm0, %v1351_v57, 0.0 }
 0x110   :  { %v432_v1 = vadd.f32 %v1277_v50, %v387_v58  ;;  %v921_v2 = vpop.f32.mrb[12].mxu0  ;;  %493 = vadd.xlane.f32.xlu1 %v492_v56  ;;  %v251_v3 = vpop.f32.mrb[13].mxu1  ;;  %v495_v4 = vsel %vm470_vm0, %v1353_v59, 0.0 }
 0x111   :  { %v402_v5 = vadd.f32 %v921_v2, %v865_v62  ;;  %v396_v7 = vpop.f32.mrb[13].mxu0  ;;  %496 = vadd.xlane.f32.xlu0 %v495_v4  ;;  %v1367_v9 = vadd.f32 %v449_v60, %v433_v61 }
 0x112   :  { %v397_v10 = vadd.f32 %v396_v7, %v251_v3  ;;  %v1369_v11 = vadd.f32 %v448_v63, %v432_v1 }
 0x113   :  { %v435_v14 = vadd.f32 %v1277_v50, %v402_v5  ;;  %v868_v15 = vpop.f32.mrb[14].mxu1  ;;  %v504_v24 = vsel %vm470_vm0, %v1367_v9, 0.0 }
 0x114   :  { %v434_v17 = vadd.f32 %v1277_v50, %v397_v10  ;;  %v924_v18 = vpop.f32.mrb[14].mxu0  ;;  %499 = vadd.xlane.f32.xlu1 %v498_v8  ;;  %v261_v19 = vpop.f32.mrb[15].mxu1  ;;  %v501_v21 = vsel %vm470_vm0, %v1369_v11, 0.0 }
 0x115   :  { %v412_v22 = vadd.f32 %v924_v18, %v868_v15  ;;  %v406_v23 = vpop.f32.mrb[15].mxu0  ;;  %502 = vadd.xlane.f32.xlu0 %v501_v21  ;;  %v1383_v25 = vadd.f32 %v451_v12, %v435_v14 }
 0x116   :  { %v407_v26 = vadd.f32 %v406_v23, %v261_v19  ;;  %v1385_v28 = vadd.f32 %v450_v16, %v434_v17 }
 0x117   :  { %v437_v31 = vadd.f32 %v1277_v50, %v412_v22  ;;  %v510_v35 = vsel %vm470_vm0, %v1383_v25, 0.0 }
 0x118   :  { %v436_v33 = vadd.f32 %v1277_v50, %v407_v26  ;;  %505 = vadd.xlane.f32.xlu1 %v504_v24  ;;  %v507_v34 = vsel %vm470_vm0, %v1385_v28, 0.0 }
 0x119   :  { %508 = vadd.xlane.f32.xlu0 %v507_v34  ;;  %v1399_v36 = vadd.f32 %v453_v30, %v437_v31 }
 0x11a   :  { %v1401_v37 = vadd.f32 %v452_v32, %v436_v33 }
 0x11b   :  { %v516_v50 = vsel %vm470_vm0, %v1399_v36, 0.0 }
 0x11c   :  { %511 = vadd.xlane.f32.xlu1 %v510_v35  ;;  %v513_v38 = vsel %vm470_vm0, %v1401_v37, 0.0 }
 0x11d   :  { %514 = vadd.xlane.f32.xlu0 %v513_v38 }
 0x120   :  { %517 = vadd.xlane.f32.xlu1 %v516_v50 }
 0x18d   :  { %v476_v39 = vpop.xlane.xlu0 %475 }
 0x18e   :  { %v521_v40 = vmul.f32 0.015625, %v476_v39 }
 0x190   :  { %v1408_v41 = vsub.f32 %v1287_v0, %v521_v40 }
 0x191   :  { %v482_v43 = vpop.xlane.xlu1 %481  ;;  %v473_v45 = vpop.xlane.xlu0 %472 }
 0x192   :  { %v523_v46 = vmul.f32 0.015625, %v482_v43  ;;  %v520_v47 = vmul.f32 0.015625, %v473_v45  ;;  %v553_v48 = vmul.f32 %v1408_v41, %v1408_v41 }
 0x194   :  { %v1413_v49 = vsub.f32 %v1301_v13, %v523_v46  ;;  %v1416_v51 = vsub.f32 %v1295_v6, %v520_v47  ;;  %v571_v52 = vsel %vm470_vm0, %v553_v48, 0.0 }
 0x195   :  { %572 = vadd.xlane.f32.xlu1 %v571_v52  ;;  %v479_v53 = vpop.xlane.xlu1 %478 }
 0x196   :  { %v522_v54 = vmul.f32 0.015625, %v479_v53  ;;  %v485_v0 = vpop.xlane.xlu0 %484  ;;  %v555_v55 = vmul.f32 %v1413_v49, %v1413_v49  ;;  %v552_v56 = vmul.f32 %v1416_v51, %v1416_v51 }
 0x197   :  { %v524_v58 = vmul.f32 0.015625, %v485_v0 }
 0x198   :  { %v1424_v60 = vsub.f32 %v1311_v20, %v522_v54  ;;  %v577_v13 = vsel %vm470_vm0, %v555_v55, 0.0  ;;  %v568_v6 = vsel %vm470_vm0, %v552_v56, 0.0 }
 0x199   :  { %v1429_v61 = vsub.f32 %v1319_v29, %v524_v58  ;;  %578 = vadd.xlane.f32.xlu1 %v577_v13  ;;  %v488_v62 = vpop.xlane.xlu1 %487  ;;  %569 = vadd.xlane.f32.xlu0 %v568_v6 }
 0x19a   :  { %v525_v63 = vmul.f32 0.015625, %v488_v62  ;;  %v491_v1 = vpop.xlane.xlu0 %490  ;;  %v554_v2 = vmul.f32 %v1424_v60, %v1424_v60 }
 0x19b   :  { %v526_v3 = vmul.f32 0.015625, %v491_v1  ;;  %v556_v5 = vmul.f32 %v1429_v61, %v1429_v61 }
 0x19c   :  { %v1434_v4 = vsub.f32 %v1317_v27, %v525_v63  ;;  %v574_v20 = vsel %vm470_vm0, %v554_v2, 0.0 }
 0x19d   :  { %v1440_v29 = vsub.f32 %v1337_v44, %v526_v3  ;;  %v494_v7 = vpop.xlane.xlu1 %493  ;;  %575 = vadd.xlane.f32.xlu0 %v574_v20  ;;  %v580_v16 = vsel %vm470_vm0, %v556_v5, 0.0 }
 0x19e   :  { %v527_v8 = vmul.f32 0.015625, %v494_v7  ;;  %v497_v10 = vpop.xlane.xlu0 %496  ;;  %v557_v12 = vmul.f32 %v1434_v4, %v1434_v4 }
 0x19f   :  { %v528_v14 = vmul.f32 0.015625, %v497_v10  ;;  %v558_v17 = vmul.f32 %v1440_v29, %v1440_v29 }
 0x1a0   :  { %v1445_v15 = vsub.f32 %v1335_v42, %v527_v8  ;;  %v583_v27 = vsel %vm470_vm0, %v557_v12, 0.0 }
 0x1a1   :  { %v1452_v44 = vsub.f32 %v1353_v59, %v528_v14  ;;  %584 = vadd.xlane.f32.xlu1 %v583_v27  ;;  %v500_v18 = vpop.xlane.xlu1 %499  ;;  %581 = vadd.xlane.f32.xlu0 %v580_v16  ;;  %v586_v26 = vsel %vm470_vm0, %v558_v17, 0.0 }
 0x1a2   :  { %v529_v19 = vmul.f32 0.015625, %v500_v18  ;;  %v503_v21 = vpop.xlane.xlu0 %502  ;;  %v559_v22 = vmul.f32 %v1445_v15, %v1445_v15 }
 0x1a3   :  { %v530_v42 = vmul.f32 0.015625, %v503_v21  ;;  %v560_v59 = vmul.f32 %v1452_v44, %v1452_v44  ;;  %v1506_v21 = vld [vmem:[%s1631_s6] ss:$0 sm:$0xff] }
 0x1a4   :  { %v1457_v23 = vsub.f32 %v1351_v57, %v529_v19  ;;  %v589_v24 = vsel %vm470_vm0, %v559_v22, 0.0 }
 0x1a5   :  { %v1464_v30 = vsub.f32 %v1369_v11, %v530_v42  ;;  %590 = vadd.xlane.f32.xlu1 %v589_v24  ;;  %v506_v31 = vpop.xlane.xlu1 %505  ;;  %587 = vadd.xlane.f32.xlu0 %v586_v26  ;;  %v592_v50 = vsel %vm470_vm0, %v560_v59, 0.0 }
 0x1a6   :  { %v531_v32 = vmul.f32 0.015625, %v506_v31  ;;  %v509_v33 = vpop.xlane.xlu0 %508  ;;  %v561_v34 = vmul.f32 %v1457_v23, %v1457_v23  ;;  %v1512_v31 = vld [vmem:[%s1632_s7] ss:$0 sm:$0xff] }
 0x1a7   :  { %v532_v57 = vmul.f32 0.015625, %v509_v33  ;;  %v562_v11 = vmul.f32 %v1464_v30, %v1464_v30 }
 0x1a8   :  { %v1469_v35 = vsub.f32 %v1367_v9, %v531_v32  ;;  %v595_v38 = vsel %vm470_vm0, %v561_v34, 0.0 }
 0x1a9   :  { %v1476_v39 = vsub.f32 %v1385_v28, %v532_v57  ;;  %596 = vadd.xlane.f32.xlu1 %v595_v38  ;;  %v512_v40 = vpop.xlane.xlu1 %511  ;;  %593 = vadd.xlane.f32.xlu0 %v592_v50  ;;  %v598_v52 = vsel %vm470_vm0, %v562_v11, 0.0 }
 0x1aa   :  { %v533_v43 = vmul.f32 0.015625, %v512_v40  ;;  %v515_v45 = vpop.xlane.xlu0 %514  ;;  %v563_v46 = vmul.f32 %v1469_v35, %v1469_v35 }
 0x1ab   :  { %v534_v9 = vmul.f32 0.015625, %v515_v45  ;;  %v564_v28 = vmul.f32 %v1476_v39, %v1476_v39 }
 0x1ac   :  { %v1481_v47 = vsub.f32 %v1383_v25, %v533_v43  ;;  %v601_v48 = vsel %vm470_vm0, %v563_v46, 0.0 }
 0x1ad   :  { %v1488_v53 = vsub.f32 %v1401_v37, %v534_v9  ;;  %602 = vadd.xlane.f32.xlu1 %v601_v48  ;;  %v518_v54 = vpop.xlane.xlu1 %517  ;;  %599 = vadd.xlane.f32.xlu0 %v598_v52  ;;  %v604_v58 = vsel %vm470_vm0, %v564_v28, 0.0 }
 0x1ae   :  { %v535_v0 = vmul.f32 0.015625, %v518_v54  ;;  %v565_v55 = vmul.f32 %v1481_v47, %v1481_v47 }
 0x1af   :  { %v566_v13 = vmul.f32 %v1488_v53, %v1488_v53 }
 0x1b0   :  { %v1493_v25 = vsub.f32 %v1399_v36, %v535_v0  ;;  %v607_v56 = vsel %vm470_vm0, %v565_v55, 0.0 }
 0x1b1   :  { %608 = vadd.xlane.f32.xlu1 %v607_v56  ;;  %605 = vadd.xlane.f32.xlu0 %v604_v58  ;;  %v610_v62 = vsel %vm470_vm0, %v566_v13, 0.0 }
 0x1b2   :  { %v567_v37 = vmul.f32 %v1493_v25, %v1493_v25 }
 0x1b4   :  { %v613_v6 = vsel %vm470_vm0, %v567_v37, 0.0 }
 0x1b5   :  { %614 = vadd.xlane.f32.xlu1 %v613_v6  ;;  %611 = vadd.xlane.f32.xlu0 %v610_v62 }
 0x222   :  { %v573_v36 = vpop.xlane.xlu1 %572 }
 0x223   :  { %v617_v63 = vmul.f32 0.015625, %v573_v36 }
 0x225   :  { %v633_v1 = vadd.f32 1e-05, %v617_v63 }
 0x226   :  { %v579_v2 = vpop.xlane.xlu1 %578  ;;  %v570_v3 = vpop.xlane.xlu0 %569 }
 0x227   :  { %1005 = vrsqrt.f32 %v633_v1  ;;  %v619_v20 = vmul.f32 0.015625, %v579_v2  ;;  %v616_v5 = vmul.f32 0.015625, %v570_v3 }
 0x229   :  { %v635_v7 = vadd.f32 1e-05, %v619_v20  ;;  %v632_v8 = vadd.f32 1e-05, %v616_v5 }
 0x22a   :  { %v576_v10 = vpop.xlane.xlu0 %575 }
 0x22b   :  { %1007 = vrsqrt.f32 %v635_v7  ;;  %v618_v12 = vmul.f32 0.015625, %v576_v10 }
 0x22c   :  { %1009 = vrsqrt.f32 %v632_v8 }
 0x22d   :  { %v634_v14 = vadd.f32 1e-05, %v618_v12 }
 0x22e   :  { %v585_v27 = vpop.xlane.xlu1 %584  ;;  %v582_v16 = vpop.xlane.xlu0 %581 }
 0x22f   :  { %1011 = vrsqrt.f32 %v634_v14  ;;  %v621_v17 = vmul.f32 0.015625, %v585_v27  ;;  %v620_v18 = vmul.f32 0.015625, %v582_v16 }
 0x231   :  { %v1006_v19 = vpop.eup %1005  ;;  %v637_v22 = vadd.f32 1e-05, %v621_v17  ;;  %v636_v42 = vadd.f32 1e-05, %v620_v18 }
 0x232   :  { %v665_v24 = vmul.f32 %v1006_v19, %v1408_v41  ;;  %v591_v26 = vpop.xlane.xlu1 %590  ;;  %v588_v59 = vpop.xlane.xlu0 %587 }
 0x233   :  { %1013 = vrsqrt.f32 %v637_v22  ;;  %v623_v32 = vmul.f32 0.015625, %v591_v26  ;;  %v622_v33 = vmul.f32 0.015625, %v588_v59 }
 0x234   :  { %v688_v34 = vmul.f32 %v1506_v21, %v665_v24  ;;  %1015 = vrsqrt.f32 %v636_v42 }
 0x235   :  { %v1008_v57 = vpop.eup %1007  ;;  %v639_v38 = vadd.f32 1e-05, %v623_v32  ;;  %v638_v50 = vadd.f32 1e-05, %v622_v33 }
 0x236   :  { %v1010_v11 = vpop.eup %1009  ;;  %v711_v40 = vadd.f32 %v1512_v31, %v688_v34  ;;  %v667_v41 = vmul.f32 %v1008_v57, %v1413_v49  ;;  %v597_v43 = vpop.xlane.xlu1 %596 }
 0x237   :  { %v594_v45 = vpop.xlane.xlu0 %593  ;;  %v664_v46 = vmul.f32 %v1010_v11, %v1416_v51  ;;  %1017 = vrsqrt.f32 %v639_v38  ;;  %v625_v9 = vmul.f32 0.015625, %v597_v43 }
 0x238   :  { %v624_v48 = vmul.f32 0.015625, %v594_v45  ;;  %727 = vst.msk [vmem:[%s1633_s8 + $0x8] sm:$0xff] %vm470_vm0, %v711_v40  ;;  %v690_v52 = vmul.f32 %v1506_v21, %v667_v41  ;;  %1019 = vrsqrt.f32 %v638_v50 }
 0x239   :  { %v1012_v28 = vpop.eup %1011  ;;  %v687_v54 = vmul.f32 %v1506_v21, %v664_v46  ;;  %v641_v0 = vadd.f32 1e-05, %v625_v9 }
 0x23a   :  { %v640_v49 = vadd.f32 1e-05, %v624_v48  ;;  %v713_v55 = vadd.f32 %v1512_v31, %v690_v52  ;;  %v666_v51 = vmul.f32 %v1012_v28, %v1424_v60  ;;  %v603_v56 = vpop.xlane.xlu1 %602 }
 0x23b   :  { %v600_v58 = vpop.xlane.xlu0 %599  ;;  %v710_v13 = vadd.f32 %v1512_v31, %v687_v54  ;;  %1021 = vrsqrt.f32 %v641_v0  ;;  %v627_v37 = vmul.f32 0.015625, %v603_v56 }
 0x23c   :  { %v626_v6 = vmul.f32 0.015625, %v600_v58  ;;  %729 = vst.msk [vmem:[%s1633_s8 + $0x18] sm:$0xff] %vm470_vm0, %v713_v55  ;;  %v689_v62 = vmul.f32 %v1506_v21, %v666_v51  ;;  %1023 = vrsqrt.f32 %v640_v49 }
 0x23d   :  { %v1014_v36 = vpop.eup %1013  ;;  %726 = vst.msk [vmem:[%s1633_s8] sm:$0xff] %vm470_vm0, %v710_v13  ;;  %v643_v60 = vadd.f32 1e-05, %v627_v37 }
 0x23e   :  { %v642_v63 = vadd.f32 1e-05, %v626_v6  ;;  %v1016_v1 = vpop.eup %1015  ;;  %v712_v2 = vadd.f32 %v1512_v31, %v689_v62  ;;  %v669_v3 = vmul.f32 %v1014_v36, %v1434_v4  ;;  %v609_v20 = vpop.xlane.xlu1 %608 }
 0x23f   :  { %v606_v5 = vpop.xlane.xlu0 %605  ;;  %v668_v7 = vmul.f32 %v1016_v1, %v1429_v61  ;;  %1025 = vrsqrt.f32 %v643_v60  ;;  %v629_v8 = vmul.f32 0.015625, %v609_v20 }
 0x240   :  { %v628_v10 = vmul.f32 0.015625, %v606_v5  ;;  %728 = vst.msk [vmem:[%s1633_s8 + $0x10] sm:$0xff] %vm470_vm0, %v712_v2  ;;  %v692_v12 = vmul.f32 %v1506_v21, %v669_v3  ;;  %1027 = vrsqrt.f32 %v642_v63 }
 0x241   :  { %v1018_v14 = vpop.eup %1017  ;;  %v691_v27 = vmul.f32 %v1506_v21, %v668_v7  ;;  %v645_v16 = vadd.f32 1e-05, %v629_v8 }
 0x242   :  { %v644_v4 = vadd.f32 1e-05, %v628_v10  ;;  %v1020_v17 = vpop.eup %1019  ;;  %v715_v18 = vadd.f32 %v1512_v31, %v692_v12  ;;  %v671_v61 = vmul.f32 %v1018_v14, %v1445_v15  ;;  %v615_v19 = vpop.xlane.xlu1 %614 }
 0x243   :  { %v612_v22 = vpop.xlane.xlu0 %611  ;;  %v714_v42 = vadd.f32 %v1512_v31, %v691_v27  ;;  %v670_v24 = vmul.f32 %v1020_v17, %v1440_v29  ;;  %1029 = vrsqrt.f32 %v645_v16  ;;  %v631_v26 = vmul.f32 0.015625, %v615_v19 }
 0x244   :  { %731 = vst.msk [vmem:[%s1633_s8 + $0x28] sm:$0xff] %vm470_vm0, %v715_v18  ;;  %v694_v59 = vmul.f32 %v1506_v21, %v671_v61  ;;  %1031 = vrsqrt.f32 %v644_v4  ;;  %v630_v32 = vmul.f32 0.015625, %v612_v22 }
 0x245   :  { %v1022_v33 = vpop.eup %1021  ;;  %730 = vst.msk [vmem:[%s1633_s8 + $0x20] sm:$0xff] %vm470_vm0, %v714_v42  ;;  %v693_v15 = vmul.f32 %v1506_v21, %v670_v24  ;;  %v647_v29 = vadd.f32 1e-05, %v631_v26 }
 0x246   :  { %v1024_v34 = vpop.eup %1023  ;;  %v717_v57 = vadd.f32 %v1512_v31, %v694_v59  ;;  %v673_v38 = vmul.f32 %v1022_v33, %v1457_v23  ;;  %v646_v50 = vadd.f32 1e-05, %v630_v32 }
 0x247   :  { %v716_v11 = vadd.f32 %v1512_v31, %v693_v15  ;;  %v672_v40 = vmul.f32 %v1024_v34, %v1452_v44  ;;  %1033 = vrsqrt.f32 %v647_v29 }
 0x248   :  { %733 = vst.msk [vmem:[%s1633_s8 + $0x38] sm:$0xff] %vm470_vm0, %v717_v57  ;;  %v696_v41 = vmul.f32 %v1506_v21, %v673_v38  ;;  %1035 = vrsqrt.f32 %v646_v50 }
 0x249   :  { %v1026_v43 = vpop.eup %1025  ;;  %732 = vst.msk [vmem:[%s1633_s8 + $0x30] sm:$0xff] %vm470_vm0, %v716_v11  ;;  %v695_v23 = vmul.f32 %v1506_v21, %v672_v40 }
 0x24a   :  { %v1028_v45 = vpop.eup %1027  ;;  %v719_v44 = vadd.f32 %v1512_v31, %v696_v41  ;;  %v675_v46 = vmul.f32 %v1026_v43, %v1469_v35 }
 0x24b   :  { %v718_v9 = vadd.f32 %v1512_v31, %v695_v23  ;;  %v674_v48 = vmul.f32 %v1028_v45, %v1464_v30 }
 0x24c   :  { %735 = vst.msk [vmem:[%s1633_s8 + $0x48] sm:$0xff] %vm470_vm0, %v719_v44  ;;  %v698_v52 = vmul.f32 %v1506_v21, %v675_v46 }
 0x24d   :  { %v1030_v28 = vpop.eup %1029  ;;  %734 = vst.msk [vmem:[%s1633_s8 + $0x40] sm:$0xff] %vm470_vm0, %v718_v9  ;;  %v697_v54 = vmul.f32 %v1506_v21, %v674_v48 }
 0x24e   :  { %v1032_v35 = vpop.eup %1031  ;;  %v721_v0 = vadd.f32 %v1512_v31, %v698_v52  ;;  %v677_v30 = vmul.f32 %v1030_v28, %v1481_v47 }
 0x24f   :  { %v720_v49 = vadd.f32 %v1512_v31, %v697_v54  ;;  %v676_v55 = vmul.f32 %v1032_v35, %v1476_v39 }
 0x250   :  { %737 = vst.msk [vmem:[%s1633_s8 + $0x58] sm:$0xff] %vm470_vm0, %v721_v0  ;;  %v700_v51 = vmul.f32 %v1506_v21, %v677_v30 }
 0x251   :  { %v1034_v56 = vpop.eup %1033  ;;  %736 = vst.msk [vmem:[%s1633_s8 + $0x50] sm:$0xff] %vm470_vm0, %v720_v49  ;;  %v699_v58 = vmul.f32 %v1506_v21, %v676_v55 }
 0x252   :  { %v1036_v47 = vpop.eup %1035  ;;  %v723_v13 = vadd.f32 %v1512_v31, %v700_v51  ;;  %v679_v39 = vmul.f32 %v1034_v56, %v1493_v25 }
 0x253   :  { %v722_v37 = vadd.f32 %v1512_v31, %v699_v58  ;;  %v678_v6 = vmul.f32 %v1036_v47, %v1488_v53 }
 0x254   :  { %739 = vst.msk [vmem:[%s1633_s8 + $0x68] sm:$0xff] %vm470_vm0, %v723_v13  ;;  %v702_v62 = vmul.f32 %v1506_v21, %v679_v39 }
 0x255   :  { %738 = vst.msk [vmem:[%s1633_s8 + $0x60] sm:$0xff] %vm470_vm0, %v722_v37  ;;  %v701_v36 = vmul.f32 %v1506_v21, %v678_v6 }
 0x256   :  { %v725_v25 = vadd.f32 %v1512_v31, %v702_v62 }
 0x257   :  { %v724_v60 = vadd.f32 %v1512_v31, %v701_v36 }
 0x258   :  { %741 = vst.msk [vmem:[%s1633_s8 + $0x78] sm:$0xff] %vm470_vm0, %v725_v25 }
 0x259   :  { %740 = vst.msk [vmem:[%s1633_s8 + $0x70] sm:$0xff] %vm470_vm0, %v724_v60 }

// kernel: aia_transformer_forward.27
= control target key start
LH: loop header
LB: loop body
LE: loop exit
PB: predicated region body
PF: predicated region fallthrough
CT: control target
= control target key end

     0   :  { %s1766_s0 = inlined_call_operand.vmem [shape: f32[2,64,64], index: 0, kind: input, shape index: {}]   ;;  %s1767_s1 = inlined_call_operand.vmem [shape: f32[2,64,64], index: 1, kind: input, shape index: {}]   ;;  %s1768_s2 = inlined_call_operand.vmem [shape: f32[2,64,64], index: 2, kind: input, shape index: {}]   ;;  %s1769_s3 = inlined_call_operand.vmem [shape: f32[1,64], index: 3, kind: input, shape index: {}]   ;;  %s1770_s4 = inlined_call_operand.vmem [shape: f32[1,64], index: 4, kind: input, shape index: {}]   ;;  %s1771_s5 = inlined_call_operand.vmem [shape: f32[1,64], index: 5, kind: input, shape index: {}]   ;;  %s1772_s6 = inlined_call_operand.vmem [shape: f32[1,64], index: 6, kind: input, shape index: {}]   ;;  %s1773_s7 = inlined_call_operand.vmem [shape: f32[64,64], index: 7, kind: input, shape index: {}]   ;;  %s1774_s8 = inlined_call_operand.vmem [shape: f32[1,64], index: 8, kind: input, shape index: {}]   ;;  %s1775_s9 = inlined_call_operand.vmem [shape: f32[3], index: 9, kind: input, shape index: {}]   ;;  %s1776_s10 = inlined_call_operand.hbm [shape: f32[2,64,64], index: 10, kind: output, shape index: {0}]   ;;  %s1777_s11 = inlined_call_operand.vmem [shape: f32[2,64,64], index: 11, kind: output, shape index: {1}]  }
   0x1   :  { %1778 = sst [smem:[#allocation8_spill]] %s1767_s1 }
   0x2   :  { %1779 = sst [smem:[#allocation9_spill]] %s1768_s2 }
   0x3   :  { %17 = vsyncpa [#allocation4], 0 }
   0x4   :  { %18 = vsyncpa [#allocation3], 0 }
   0x5   :  { %20 = vsyncpa [#allocation3 + $0x1], 0  ;;  %s1395_s17 = smov 0   ;;  %s1397_s18 = smov 0  }
   0x6   :  { %s1399_s19 = smov 0   ;;  %s1401_s20 = smov 0  }
   0x7 LB: > { %s1416_s21 = sadd.s32 4294967295, %s1329_s20   ;;  %s1072_s22 = sadd.s32 4294967294, %s1329_s20   ;;  %s1329_s20 = sphi %s1401_s20, %s1788_s20   ;;  %s1325_s19 = sphi %s1399_s19, %s1787_s19   ;;  %s1321_s18 = sphi %s1397_s18, %s1786_s18   ;;  %s1317_s17 = sphi %s1395_s17, %s1785_s17  }
   0x8   : > { %s1420_s23 = sadd.s32 1, %s1329_s20   ;;  %s258_s24 = sadd.s32 1, %s1325_s19 }
   0x9   : > { %s255_s25 = ssub.s32 %s1329_s20, %s1420_s23  ;;  %p268_p0 = scmp.ne.s32.totalorder %s1325_s19, %s1321_s18 }
   0xa   : > { %p256_p1 = scmp.eq.s32.totalorder %s255_s25, 0  ;;  %p269_p2 = scmp.eq.s32.totalorder %s1416_s21, 1 }
   0xb   : > { %p274_p3 = scmp.ne.s32.totalorder %s1321_s18, %s1317_s17  ;;  %p275_p4 = scmp.eq.s32.totalorder %s1072_s22, 1 }
   0xc   : > { %s1431_s26 = scalar_select %p256_p1, %s1325_s19, %s258_s24  }
   0xd   : > { %p1433_p5 = por %p269_p2, %p268_p0  ;;  %p1437_p6 = por %p275_p4, %p274_p3 }
   0xe   : > { %p1073_p7 = scmp.ge.s32.totalorder %s1329_s20, 1  ;;  %p308_p8 = scmp.lt.s32.totalorder %s1329_s20, 3 }
   0xf   : > { %p1206_p9 = scmp.eq.s32.totalorder %s1416_s21, 0  ;;  %s339_s13 = sshll.u32 %s1775_s9, 4  ;;  %s340_s13 = int_to_ptr.vmem [resolvable:$true] %s339_s13 }
  0x10   : > { %p1444_p10 = pnand %p1073_p7, %p308_p8  ;;  %s1248_s14 = scalar_lea.vmem %s340_s13, 16 }
  0x11   : > { %p1249_p13 = scmp.ne.s32.totalorder %s340_s13, %s1248_s14  ;;  %p1256_p3 = scmp.lt.s32.totalorder %s340_s13, %s340_s13 }
  0x12   : > { %p1198_p11 = pneg %p1444_p10  ;;  %p1257_p4 = scmp.lt.s32.totalorder %s1248_s14, %s1248_s14 }
  0x14   : > { %p1199_p12 = pnand %p1206_p9, %p1198_p11  ;;  %p1258_p7 = por %p1257_p4, %p1256_p3 }
  0x16   : > { %p1250_p0 = pneg %p1199_p12 }
  0x18   : > { %p1251_p1 = pnand %p1250_p0, %p1249_p13 }
  0x1a   : > { %p1252_p2 = pneg %p1251_p1 }
  0x1c   : > { %p1259_p8 = pnand %p1258_p7, %p1252_p2 }
  0x1e   : > { %1262 = shalt.err (!%p1259_p8)
}
  0x1f   : > { %s1331_s15 = smov [#allocation2]   ;;  %376 = sbr.rel (%p1444_p10) target bundleno = 1089 (0x441), region = 60 }
  0x20   : > { %1201 = dma.vmem_to_smem (!%p1199_p12), %s340_s13, 16, %s1331_s15, [#allocation4]  }
  0x26   : > { %1308 = dma.done.wait (%p1206_p9), [#allocation4], 16  }
  0x27   : > { %1310 = vsyncadd (%p1206_p9), [#allocation4], 4294967280 }
  0x28   : > { %382 = sfence }
  0x29   : > { %p432_p11 = scmp.lt.s32.totalorder %s1416_s21, 1  ;;  %vm460_vm0 = vcmask 523264   ;;  %s1783_s1 = sld [smem:[#allocation8_spill]] }
  0x2a   : > { %s1784_s2 = sld [smem:[#allocation9_spill]] }
  0x2b   : > { %s433_s16 = scalar_select %p432_p11, %s1416_s21, 1 }
  0x2d   : > { %s1463_s22 = sshll.u32 %s433_s16, 6 }
  0x2f   : > { %s441_s29 = scalar_lea.vmem %s1783_s1, %s1463_s22 }
  0x30   : > { %v452_v0 = vld [vmem:[%s441_s29] sm:$0xff]  ;;  %v453_v1 = vld [vmem:[%s441_s29 + $0x8] sm:$0xff]  ;;  %v454_v2 = vld [vmem:[%s441_s29 + $0x10] sm:$0xff]  ;;  %s446_s13 = scalar_lea.vmem %s1784_s2, %s1463_s22 }
  0x31   : > { %v455_v3 = vld [vmem:[%s441_s29 + $0x18] sm:$0xff]  ;;  %v461_v4 = vsel %vm460_vm0, %v452_v0, 0.0  ;;  %v462_v5 = vsel %vm460_vm0, %v453_v1, 0.0  ;;  %v464_v6 = vsel %vm460_vm0, %v454_v2, 0.0  ;;  %v456_v7 = vld [vmem:[%s441_s29 + $0x20] sm:$0xff]  ;;  %v457_v10 = vld [vmem:[%s441_s29 + $0x28] sm:$0xff] }
  0x32   : > { %v463_v8 = vadd.f32 %v462_v5, %v461_v4  ;;  %v466_v9 = vsel %vm460_vm0, %v455_v3, 0.0  ;;  %v468_v12 = vsel %vm460_vm0, %v456_v7, 0.0  ;;  %v458_v13 = vld [vmem:[%s441_s29 + $0x30] sm:$0xff]  ;;  %v470_v15 = vsel %vm460_vm0, %v457_v10, 0.0  ;;  %v459_v16 = vld [vmem:[%s441_s29 + $0x38] sm:$0xff]  ;;  %v1481_v23 = vld [vmem:[%s446_s13] sm:$0xff] }
  0x33   : > { %v472_v18 = vsel %vm460_vm0, %v458_v13, 0.0  ;;  %v474_v20 = vsel %vm460_vm0, %v459_v16, 0.0  ;;  %v1483_v24 = vld [vmem:[%s446_s13 + $0x8] sm:$0xff]  ;;  %v1485_v25 = vld [vmem:[%s446_s13 + $0x10] sm:$0xff]  ;;  %v1487_v26 = vld [vmem:[%s446_s13 + $0x18] sm:$0xff]  ;;  %v583_v27 = vsel %vm460_vm0, %v1481_v23, 0.0 }
  0x34   : > { %v465_v11 = vadd.f32 %v464_v6, %v463_v8  ;;  %v584_v28 = vsel %vm460_vm0, %v1483_v24, 0.0  ;;  %v586_v29 = vsel %vm460_vm0, %v1485_v25, 0.0  ;;  %v1495_v30 = vld [vmem:[%s446_s13 + $0x20] sm:$0xff]  ;;  %v588_v32 = vsel %vm460_vm0, %v1487_v26, 0.0  ;;  %v1499_v33 = vld [vmem:[%s446_s13 + $0x28] sm:$0xff]  ;;  %v1503_v36 = vld [vmem:[%s446_s13 + $0x30] sm:$0xff] }
  0x35   : > { %v585_v31 = vadd.f32 %v584_v28, %v583_v27  ;;  %v590_v35 = vsel %vm460_vm0, %v1495_v30, 0.0  ;;  %v592_v38 = vsel %vm460_vm0, %v1499_v33, 0.0  ;;  %v1507_v39 = vld [vmem:[%s446_s13 + $0x38] sm:$0xff]  ;;  %v594_v41 = vsel %vm460_vm0, %v1503_v36, 0.0 }
  0x36   : > { %v467_v14 = vadd.f32 %v466_v9, %v465_v11  ;;  %v596_v43 = vsel %vm460_vm0, %v1507_v39, 0.0 }
  0x37   : > { %v587_v34 = vadd.f32 %v586_v29, %v585_v31 }
  0x38   : > { %v469_v17 = vadd.f32 %v468_v12, %v467_v14 }
  0x39   : > { %v589_v37 = vadd.f32 %v588_v32, %v587_v34 }
  0x3a   : > { %v471_v19 = vadd.f32 %v470_v15, %v469_v17 }
  0x3b   : > { %v591_v40 = vadd.f32 %v590_v35, %v589_v37 }
  0x3c   : > { %v473_v21 = vadd.f32 %v472_v18, %v471_v19 }
  0x3d   : > { %v593_v42 = vadd.f32 %v592_v38, %v591_v40 }
  0x3e   : > { %v475_v22 = vadd.f32 %v474_v20, %v473_v21 }
  0x3f   : > { %v595_v44 = vadd.f32 %v594_v41, %v593_v42 }
  0x40   : > { %476 = vadd.xlane.f32.xlu0 %v475_v22 }
  0x41   : > { %v597_v45 = vadd.f32 %v596_v43, %v595_v44 }
  0x43   : > { %598 = vadd.xlane.f32.xlu1 %v597_v45 }
  0xcd   : > { %v477_v46 = vpop.xlane.xlu0 %476 }
  0xce   : > { %v478_v47 = vrot.slane %v477_v46, 4 }
  0xd0   : > { %v479_v48 = vadd.f32 %v478_v47, %v477_v46  ;;  %v599_v34 = vpop.xlane.xlu1 %598 }
  0xd1   : > { %v600_v35 = vrot.slane %v599_v34, 4 }
  0xd2   : > { %v480_v49 = vrot.slane %v479_v48, 2 }
  0xd3   : > { %v601_v37 = vadd.f32 %v600_v35, %v599_v34 }
  0xd4   : > { %v481_v50 = vadd.f32 %v480_v49, %v479_v48 }
  0xd5   : > { %v602_v38 = vrot.slane %v601_v37, 2 }
  0xd6   : > { %v482_v51 = vrot.slane %v481_v50, 1 }
  0xd7   : > { %v603_v41 = vadd.f32 %v602_v38, %v601_v37 }
  0xd8   : > { %v483_v52 = vadd.f32 %v482_v51, %v481_v50 }
  0xd9   : > { %v604_v42 = vrot.slane %v603_v41, 1 }
  0xda   : > { %1180 = vpush %v483_v52 }
  0xdb   : > { %v605_v44 = vadd.f32 %v604_v42, %v603_v41 }
 0x10b   : > { %s1181_s14 = spop %1180 }
 0x10c   : > { %s487_s15 = smul.f32 0.00024414063, %s1181_s14  ;;  %s422_s14 = sand.u32 1, %s1321_s18  }
 0x10d   : > { %s1710_s13 = scalar_lea.sflag [#allocation3], %s422_s14 }
 0x10e   : > { %v488_v53 = vstv %s487_s15 }
 0x10f   : > { %v1513_v54 = vsub.f32 %v452_v0, %v488_v53  ;;  %v1515_v55 = vsub.f32 %v453_v1, %v488_v53  ;;  %v1517_v56 = vsub.f32 %v454_v2, %v488_v53  ;;  %v1519_v57 = vsub.f32 %v455_v3, %v488_v53 }
 0x110   : > { %v1521_v58 = vsub.f32 %v456_v7, %v488_v53  ;;  %v1529_v62 = vsub.f32 %v457_v10, %v488_v53  ;;  %v1535_v3 = vsub.f32 %v458_v13, %v488_v53  ;;  %v1540_v7 = vsub.f32 %v459_v16, %v488_v53 }
 0x111   : > { %v497_v59 = vmul.f32 %v1513_v54, %v1513_v54  ;;  %v498_v60 = vmul.f32 %v1515_v55, %v1515_v55  ;;  %v499_v61 = vmul.f32 %v1517_v56, %v1517_v56  ;;  %v500_v63 = vmul.f32 %v1519_v57, %v1519_v57 }
 0x112   : > { %v501_v4 = vmul.f32 %v1521_v58, %v1521_v58  ;;  %v502_v8 = vmul.f32 %v1529_v62, %v1529_v62  ;;  %v503_v11 = vmul.f32 %v1535_v3, %v1535_v3  ;;  %v504_v14 = vmul.f32 %v1540_v7, %v1540_v7 }
 0x113   : > { %v505_v0 = vsel %vm460_vm0, %v497_v59, 0.0  ;;  %v506_v1 = vsel %vm460_vm0, %v498_v60, 0.0  ;;  %v508_v5 = vsel %vm460_vm0, %v499_v61, 0.0  ;;  %v510_v9 = vsel %vm460_vm0, %v500_v63, 0.0 }
 0x114   : > { %v507_v2 = vadd.f32 %v506_v1, %v505_v0  ;;  %v512_v12 = vsel %vm460_vm0, %v501_v4, 0.0  ;;  %v514_v15 = vsel %vm460_vm0, %v502_v8, 0.0  ;;  %v516_v16 = vsel %vm460_vm0, %v503_v11, 0.0 }
 0x115   : > { %v518_v19 = vsel %vm460_vm0, %v504_v14, 0.0  ;;  %v776_v14 = vld [vmem:[%s1773_s7 + $0x8] sm:$0xff] }
 0x116   : > { %v509_v6 = vadd.f32 %v508_v5, %v507_v2 }
 0x118   : > { %v511_v10 = vadd.f32 %v510_v9, %v509_v6 }
 0x11a   : > { %v513_v13 = vadd.f32 %v512_v12, %v511_v10 }
 0x11c   : > { %v515_v17 = vadd.f32 %v514_v15, %v513_v13  ;;  %v775_v13 = vld [vmem:[%s1773_s7] sm:$0xff] }
 0x11d   : > { %v1156_v15 = vpack.c.bf16 %v776_v14, %v775_v13 }
 0x11e   : > { %v517_v18 = vadd.f32 %v516_v16, %v515_v17 }
 0x11f   : > { %1157 = vmatprep.subr.bf16.mxu0 %v1156_v15  ;;  %1172 = vmatprep.subr.bf16.mxu1 %v1156_v15 }
 0x120   : > { %v519_v20 = vadd.f32 %v518_v19, %v517_v18  ;;  %1159 = vmatpush3.bf16.msra.mxu0 %v1156_v15  ;;  %1176 = vmatpush3.bf16.msra.mxu1 %v1156_v15  ;;  %v777_v18 = vld [vmem:[%s1773_s7 + $0x10] sm:$0xff]  ;;  %v778_v19 = vld [vmem:[%s1773_s7 + $0x18] sm:$0xff] }
 0x122   : > { %520 = vadd.xlane.f32.xlu0 %v519_v20 }
 0x1af   : > { %v521_v21 = vpop.xlane.xlu0 %520 }
 0x1b0   : > { %v522_v22 = vrot.slane %v521_v21, 4 }
 0x1b2   : > { %v523_v27 = vadd.f32 %v522_v22, %v521_v21  ;;  %v1160_v21 = vpack.c.bf16 %v778_v19, %v777_v18  ;;  %v779_v22 = vld [vmem:[%s1773_s7 + $0x20] sm:$0xff] }
 0x1b4   : > { %v524_v28 = vrot.slane %v523_v27, 2  ;;  %1161 = vmatprep.subr.bf16.mxu0 %v1160_v21  ;;  %1173 = vmatprep.subr.bf16.mxu1 %v1160_v21 }
 0x1b5   : > { %1163 = vmatpush3.bf16.msra.mxu0 %v1160_v21  ;;  %1177 = vmatpush3.bf16.msra.mxu1 %v1160_v21 }
 0x1b6   : > { %v525_v29 = vadd.f32 %v524_v28, %v523_v27  ;;  %v780_v27 = vld [vmem:[%s1773_s7 + $0x28] sm:$0xff] }
 0x1b7   : > { %v1164_v28 = vpack.c.bf16 %v780_v27, %v779_v22 }
 0x1b8   : > { %v526_v31 = vrot.slane %v525_v29, 1 }
 0x1b9   : > { %1165 = vmatprep.subr.bf16.mxu0 %v1164_v28  ;;  %1174 = vmatprep.subr.bf16.mxu1 %v1164_v28 }
 0x1ba   : > { %v527_v32 = vadd.f32 %v526_v31, %v525_v29  ;;  %v781_v29 = vld [vmem:[%s1773_s7 + $0x30] sm:$0xff]  ;;  %v782_v31 = vld [vmem:[%s1773_s7 + $0x38] sm:$0xff]  ;;  %1167 = vmatpush3.bf16.msra.mxu0 %v1164_v28  ;;  %1178 = vmatpush3.bf16.msra.mxu1 %v1164_v28 }
 0x1bb   : > { %v1168_v35 = vpack.c.bf16 %v782_v31, %v781_v29 }
 0x1bc   : > { %1182 = vpush %v527_v32 }
 0x1bd   : > { %1169 = vmatprep.subr.bf16.mxu0 %v1168_v35  ;;  %1175 = vmatprep.subr.bf16.mxu1 %v1168_v35 }
 0x1be   : > { %1171 = vmatpush3.bf16.msra.mxu0 %v1168_v35  ;;  %1179 = vmatpush3.bf16.msra.mxu1 %v1168_v35 }
 0x1ed   : > { %s1183_s16 = spop %1182 }
 0x1ee   : > { %s531_s24 = smul.f32 0.00024414063, %s1183_s16  ;;  %s1078_s16 = sshll.u32 %s422_s14, 6 }
 0x1f0   : > { %s532_s25 = sadd.f32 1e-08, %s531_s24  ;;  %s1665_s24 = scalar_lea.vmem [#allocation5], %s1078_s16 }
 0x1f2   : > { %v533_v40 = vstv %s532_s25  ;;  %s436_s25 = scalar_lea.vmem %s1766_s0, %s1463_s22 }
 0x1f3   : > { %1244 = vrsqrt.f32 %v533_v40  ;;  %v702_v13 = vld [vmem:[%s436_s25 + $0x28] sm:$0xff]  ;;  %v699_v14 = vld [vmem:[%s436_s25 + $0x10] sm:$0xff]  ;;  %v700_v19 = vld [vmem:[%s436_s25 + $0x18] sm:$0xff] }
 0x1f4   : > { %v703_v18 = vld [vmem:[%s436_s25 + $0x30] sm:$0xff]  ;;  %v704_v21 = vld [vmem:[%s436_s25 + $0x38] sm:$0xff] }
 0x1fd   : > { %v1245_v43 = vpop.eup %1244 }
 0x1fe   : > { %1184 = vpush %v1245_v43 }
 0x1ff   : > { %1186 = vpush %v605_v44 }
 0x22f   : > { %s1553_s29 = spop %1184 }
 0x230   : > { %s1187_s30 = spop %1186  ;;  %v536_v42 = vstv %s1553_s29 }
 0x231   : > { %s609_s12 = smul.f32 0.00024414063, %s1187_s30  ;;  %v538_v43 = vmul.f32 %v536_v42, %v1515_v55  ;;  %v539_v44 = vmul.f32 %v536_v42, %v1517_v56  ;;  %v544_v55 = vmul.f32 %v536_v42, %v1540_v7 }
 0x233   : > { %v610_v45 = vstv %s609_s12  ;;  %s705_s12 = sld [smem:[#allocation2]] }
 0x234   : > { %v1556_v46 = vsub.f32 %v1481_v23, %v610_v45  ;;  %v1559_v47 = vsub.f32 %v1483_v24, %v610_v45  ;;  %v1562_v48 = vsub.f32 %v1485_v25, %v610_v45  ;;  %v1565_v49 = vsub.f32 %v1487_v26, %v610_v45 }
 0x235   : > { %v1570_v51 = vsub.f32 %v1495_v30, %v610_v45  ;;  %v1578_v25 = vsub.f32 %v1499_v33, %v610_v45  ;;  %v1584_v30 = vsub.f32 %v1503_v36, %v610_v45  ;;  %v1590_v0 = vsub.f32 %v1507_v39, %v610_v45 }
 0x236   : > { %v619_v50 = vmul.f32 %v1556_v46, %v1556_v46  ;;  %v620_v52 = vmul.f32 %v1559_v47, %v1559_v47  ;;  %v621_v23 = vmul.f32 %v1562_v48, %v1562_v48  ;;  %v622_v26 = vmul.f32 %v1565_v49, %v1565_v49 }
 0x237   : > { %v623_v60 = vmul.f32 %v1570_v51, %v1570_v51  ;;  %v624_v33 = vmul.f32 %v1578_v25, %v1578_v25  ;;  %v625_v4 = vmul.f32 %v1584_v30, %v1584_v30  ;;  %v626_v6 = vmul.f32 %v1590_v0, %v1590_v0 }
 0x238   : > { %v627_v24 = vsel %vm460_vm0, %v619_v50, 0.0  ;;  %v628_v53 = vsel %vm460_vm0, %v620_v52, 0.0  ;;  %v630_v61 = vsel %vm460_vm0, %v621_v23, 0.0  ;;  %v632_v1 = vsel %vm460_vm0, %v622_v26, 0.0  ;;  %v1087_v26 = vld [vmem:[%s1769_s3] ss:$0 sm:$0xff] }
 0x239   : > { %v629_v59 = vadd.f32 %v628_v53, %v627_v24  ;;  %v634_v36 = vsel %vm460_vm0, %v623_v60, 0.0  ;;  %v636_v8 = vsel %vm460_vm0, %v624_v33, 0.0  ;;  %v638_v39 = vsel %vm460_vm0, %v625_v4, 0.0 }
 0x23a   : > { %v640_v11 = vsel %vm460_vm0, %v626_v6, 0.0  ;;  %v542_v45 = vmul.f32 %v536_v42, %v1529_v62  ;;  %v537_v50 = vmul.f32 %v536_v42, %v1513_v54  ;;  %v540_v52 = vmul.f32 %v536_v42, %v1519_v57  ;;  %v1088_v54 = vld [vmem:[%s1770_s4] ss:$0 sm:$0xff] }
 0x23b   : > { %v631_v63 = vadd.f32 %v630_v61, %v629_v59  ;;  %v541_v23 = vmul.f32 %v536_v42, %v1521_v58  ;;  %v543_v24 = vmul.f32 %v536_v42, %v1535_v3  ;;  %v553_v53 = vmul.f32 %v1087_v26, %v538_v43  ;;  %v697_v6 = vld [vmem:[%s436_s25] sm:$0xff] }
 0x23c   : > { %v554_v56 = vmul.f32 %v1087_v26, %v539_v44  ;;  %v557_v59 = vmul.f32 %v1087_v26, %v542_v45  ;;  %v555_v62 = vmul.f32 %v1087_v26, %v540_v52  ;;  %v552_v61 = vmul.f32 %v1087_v26, %v537_v50 }
 0x23d   : > { %v633_v2 = vadd.f32 %v632_v1, %v631_v63  ;;  %v558_v60 = vmul.f32 %v1087_v26, %v543_v24  ;;  %v556_v57 = vmul.f32 %v1087_v26, %v541_v23  ;;  %v559_v58 = vmul.f32 %v1087_v26, %v544_v55 }
 0x23e   : > { %v706_v3 = vstv %s705_s12  ;;  %v568_v63 = vadd.f32 %v1088_v54, %v553_v53  ;;  %v572_v33 = vadd.f32 %v1088_v54, %v557_v59  ;;  %v569_v1 = vadd.f32 %v1088_v54, %v554_v56 }
 0x23f   : > { %v635_v5 = vadd.f32 %v634_v36, %v633_v2  ;;  %v567_v7 = vadd.f32 %v1088_v54, %v552_v61  ;;  %v571_v2 = vadd.f32 %v1088_v54, %v556_v57  ;;  %v573_v4 = vadd.f32 %v1088_v54, %v558_v60 }
 0x240   : > { %v570_v36 = vadd.f32 %v1088_v54, %v555_v62 }
 0x241   : > { %v637_v9 = vadd.f32 %v636_v8, %v635_v5  ;;  %v574_v5 = vadd.f32 %v1088_v54, %v559_v58  ;;  %v708_v8 = vmul.f32 %v706_v3, %v568_v63  ;;  %v713_v15 = vmul.f32 %v706_v3, %v573_v4 }
 0x243   : > { %v639_v10 = vadd.f32 %v638_v39, %v637_v9  ;;  %v712_v9 = vmul.f32 %v706_v3, %v572_v33  ;;  %v709_v39 = vmul.f32 %v706_v3, %v569_v1 }
 0x245   : > { %v641_v12 = vadd.f32 %v640_v11, %v639_v10  ;;  %v707_v10 = vmul.f32 %v706_v3, %v567_v7  ;;  %v711_v11 = vmul.f32 %v706_v3, %v571_v2  ;;  %v720_v27 = vadd.f32 %v712_v9, %v702_v13 }
 0x246   : > { %v717_v28 = vadd.f32 %v709_v39, %v699_v14 }
 0x247   : > { %642 = vadd.xlane.f32.xlu1 %v641_v12  ;;  %v698_v12 = vld [vmem:[%s436_s25 + $0x8] sm:$0xff]  ;;  %v715_v29 = vadd.f32 %v707_v10, %v697_v6 }
 0x248   : > { %v716_v22 = vadd.f32 %v708_v8, %v698_v12 }
 0x2d4   : > { %v643_v17 = vpop.xlane.xlu1 %642 }
 0x2d5   : > { %v644_v16 = vrot.slane %v643_v17, 4 }
 0x2d7   : > { %v645_v20 = vadd.f32 %v644_v16, %v643_v17  ;;  %v710_v17 = vmul.f32 %v706_v3, %v570_v36  ;;  %v701_v16 = vld [vmem:[%s436_s25 + $0x20] sm:$0xff]  ;;  %s1111_s25 = sshll.u32 %s1416_s21, 10  ;;  %s1332_s21 = smov [#allocation5]  }
 0x2d8   : > { %v719_v31 = vadd.f32 %v711_v11, %v701_v16  ;;  %s1704_s12 = scalar_lea.hbm %s1776_s10, %s1111_s25  ;;  %s1267_s15 = sshll.u32 %s1332_s21, 4  ;;  %s1268_s15 = int_to_ptr.vmem [resolvable:$false] %s1267_s15 }
 0x2d9   : > { %v646_v32 = vrot.slane %v645_v20, 2  ;;  %s1269_s16 = scalar_lea.vmem %s1268_s15, 2048 }
 0x2db   : > { %v647_v34 = vadd.f32 %v646_v32, %v645_v20  ;;  %v714_v20 = vmul.f32 %v706_v3, %v574_v5  ;;  %v721_v32 = vadd.f32 %v713_v15, %v703_v18 }
 0x2dd   : > { %v648_v37 = vrot.slane %v647_v34, 1 }
 0x2df   : > { %v649_v38 = vadd.f32 %v648_v37, %v647_v34  ;;  %v718_v34 = vadd.f32 %v710_v17, %v700_v19  ;;  %v1089_v37 = vld [vmem:[%s1771_s5] ss:$0 sm:$0xff] }
 0x2e1   : > { %1188 = vpush %v649_v38 }
 0x312   : > { %s1189_s1 = spop %1188 }
 0x313   : > { %s653_s2 = smul.f32 0.00024414063, %s1189_s1  ;;  %s1091_s1 = sld [smem:[#allocation2 + $0x1]] }
 0x315   : > { %s654_s30 = sadd.f32 1e-08, %s653_s2  ;;  %s1092_s2 = sld [smem:[#allocation2 + $0x2]] }
 0x317   : > { %v655_v40 = vstv %s654_s30 }
 0x318   : > { %1246 = vrsqrt.f32 %v655_v40 }
 0x319   : > { %v724_v38 = vstv %s1091_s1  ;;  %s946_s1 = sshll.u32 %s1665_s24, 4  ;;  %s1706_s1 = int_to_ptr.vmem [resolvable:$true] %s946_s1 }
 0x31a   : > { %s1263_s29 = scalar_lea.vmem %s1706_s1, 1024  ;;  %p1270_p13 = scmp.lt.s32.totalorder %s1706_s1, %s1268_s15 }
 0x31b   : > { %v1649_v40 = vstv %s1092_s2  ;;  %p1264_p9 = scmp.ne.s32.totalorder %s1706_s1, %s1263_s29  ;;  %p1271_p0 = scmp.lt.s32.totalorder %s1269_s16, %s1263_s29 }
 0x31d   : > { %p1265_p10 = pnand %p1264_p9, %p1433_p5  ;;  %p1272_p1 = por %p1271_p0, %p1270_p13 }
 0x31f   : > { %p1266_p12 = pneg %p1265_p10 }
 0x321   : > { %p1273_p2 = pnand %p1272_p1, %p1266_p12 }
 0x322   : > { %v1247_v41 = vpop.eup %1246 }
 0x323   : > { %1190 = vpush %v1247_v41  ;;  %v722_v41 = vadd.f32 %v714_v20, %v704_v21 }
 0x354   : > { %s1191_s30 = spop %1190 }
 0x355   : > { %v658_v35 = vstv %s1191_s30 }
 0x356   : > { %v659_v42 = vmul.f32 %v658_v35, %v1556_v46  ;;  %v660_v43 = vmul.f32 %v658_v35, %v1559_v47  ;;  %v661_v44 = vmul.f32 %v658_v35, %v1562_v48  ;;  %v662_v45 = vmul.f32 %v658_v35, %v1565_v49  ;;  %v1090_v46 = vld [vmem:[%s1772_s6] ss:$0 sm:$0xff] }
 0x357   : > { %v663_v50 = vmul.f32 %v658_v35, %v1570_v51  ;;  %v664_v52 = vmul.f32 %v658_v35, %v1578_v25  ;;  %v665_v23 = vmul.f32 %v658_v35, %v1584_v30  ;;  %v666_v24 = vmul.f32 %v658_v35, %v1590_v0 }
 0x358   : > { %v674_v26 = vmul.f32 %v1089_v37, %v659_v42  ;;  %v675_v47 = vmul.f32 %v1089_v37, %v660_v43  ;;  %v676_v55 = vmul.f32 %v1089_v37, %v661_v44  ;;  %v677_v48 = vmul.f32 %v1089_v37, %v662_v45 }
 0x359   : > { %v678_v53 = vmul.f32 %v1089_v37, %v663_v50  ;;  %v679_v56 = vmul.f32 %v1089_v37, %v664_v52  ;;  %v680_v49 = vmul.f32 %v1089_v37, %v665_v23  ;;  %v681_v59 = vmul.f32 %v1089_v37, %v666_v24 }
 0x35a   : > { %v689_v51 = vadd.f32 %v1090_v46, %v674_v26  ;;  %v690_v25 = vadd.f32 %v1090_v46, %v675_v47  ;;  %v691_v30 = vadd.f32 %v1090_v46, %v676_v55  ;;  %v692_v62 = vadd.f32 %v1090_v46, %v677_v48 }
 0x35b   : > { %v693_v0 = vadd.f32 %v1090_v46, %v678_v53  ;;  %v694_v60 = vadd.f32 %v1090_v46, %v679_v56  ;;  %v695_v61 = vadd.f32 %v1090_v46, %v680_v49  ;;  %v696_v54 = vadd.f32 %v1090_v46, %v681_v59 }
 0x35c   : > { %v725_v57 = vmul.f32 %v724_v38, %v689_v51  ;;  %v726_v58 = vmul.f32 %v724_v38, %v690_v25  ;;  %v727_v3 = vmul.f32 %v724_v38, %v691_v30  ;;  %v728_v63 = vmul.f32 %v724_v38, %v692_v62 }
 0x35d   : > { %v729_v33 = vmul.f32 %v724_v38, %v693_v0  ;;  %v730_v1 = vmul.f32 %v724_v38, %v694_v60  ;;  %v731_v7 = vmul.f32 %v724_v38, %v695_v61  ;;  %v732_v2 = vmul.f32 %v724_v38, %v696_v54 }
 0x35e   : > { %v733_v4 = vadd.f32 %v725_v57, %v715_v29  ;;  %v734_v36 = vadd.f32 %v726_v58, %v716_v22  ;;  %v735_v5 = vadd.f32 %v727_v3, %v717_v28  ;;  %v736_v6 = vadd.f32 %v728_v63, %v718_v34 }
 0x35f   : > { %v737_v8 = vadd.f32 %v729_v33, %v719_v31  ;;  %v738_v9 = vadd.f32 %v730_v1, %v720_v27  ;;  %v739_v39 = vadd.f32 %v731_v7, %v721_v32  ;;  %v740_v10 = vadd.f32 %v732_v2, %v722_v41 }
 0x360   : > { %741 = vst.msk [vmem:[%s1665_s24] sm:$0xff] %vm460_vm0, %v733_v4  ;;  %vm749_vm1 = vcmp.ge.f32.partialorder %v733_v4, 0.0  ;;  %v759_v11 = vmul.f32 %v1649_v40, %v733_v4  ;;  %742 = vst.msk [vmem:[%s1665_s24 + $0x8] sm:$0xff] %vm460_vm0, %v734_v36  ;;  %vm750_vm2 = vcmp.ge.f32.partialorder %v734_v36, 0.0  ;;  %v760_v12 = vmul.f32 %v1649_v40, %v734_v36 }
 0x361   : > { %743 = vst.msk [vmem:[%s1665_s24 + $0x10] sm:$0xff] %vm460_vm0, %v735_v5  ;;  %744 = vst.msk [vmem:[%s1665_s24 + $0x18] sm:$0xff] %vm460_vm0, %v736_v6  ;;  %vm753_vm3 = vcmp.ge.f32.partialorder %v737_v8, 0.0  ;;  %v763_v13 = vmul.f32 %v1649_v40, %v737_v8  ;;  %vm754_vm4 = vcmp.ge.f32.partialorder %v738_v9, 0.0  ;;  %v764_v14 = vmul.f32 %v1649_v40, %v738_v9 }
 0x362   : > { %745 = vst.msk [vmem:[%s1665_s24 + $0x20] sm:$0xff] %vm460_vm0, %v737_v8  ;;  %746 = vst.msk [vmem:[%s1665_s24 + $0x28] sm:$0xff] %vm460_vm0, %v738_v9  ;;  %v767_v15 = vsel %vm749_vm1, %v733_v4, %v759_v11  ;;  %v768_v17 = vsel %vm750_vm2, %v734_v36, %v760_v12  ;;  %vm751_vm5 = vcmp.ge.f32.partialorder %v735_v5, 0.0  ;;  %v761_v16 = vmul.f32 %v1649_v40, %v735_v5 }
 0x363   : > { %747 = vst.msk [vmem:[%s1665_s24 + $0x30] sm:$0xff] %vm460_vm0, %v739_v39  ;;  %748 = vst.msk [vmem:[%s1665_s24 + $0x38] sm:$0xff] %vm460_vm0, %v740_v10  ;;  %1144 = vmatprep.mubr.msk.f32.mxu0 %vm460_vm0, %v767_v15  ;;  %v771_v18 = vsel %vm753_vm3, %v737_v8, %v763_v13  ;;  %v772_v19 = vsel %vm754_vm4, %v738_v9, %v764_v14  ;;  %vm755_vm6 = vcmp.ge.f32.partialorder %v739_v39, 0.0  ;;  %vm752_vm7 = vcmp.ge.f32.partialorder %v736_v6, 0.0 }
 0x364   : > { %v765_v20 = vmul.f32 %v1649_v40, %v739_v39  ;;  %1150 = vmatprep.mubr.msk.f32.mxu1 %vm460_vm0, %v771_v18  ;;  %1145 = vmatmul.mubr.msk.f32.vlgmr.msra.gmra.mrb[0].mxu0 %vm460_vm0, %v768_v17  ;;  %v769_v21 = vsel %vm751_vm5, %v735_v5, %v761_v16  ;;  %v762_v22 = vmul.f32 %v1649_v40, %v736_v6  ;;  %vm756_vm8 = vcmp.ge.f32.partialorder %v740_v10, 0.0 }
 0x365   : > { %1151 = vmatmul.mubr.msk.f32.vlgmr.msra.gmra.mrb[0].mxu1 %vm460_vm0, %v772_v19  ;;  %1147 = vmatprep.mubr.msk.f32.mxu0 %vm460_vm0, %v769_v21  ;;  %v766_v28 = vmul.f32 %v1649_v40, %v740_v10 }
 0x366   : > { %v773_v27 = vsel %vm755_vm6, %v739_v39, %v765_v20  ;;  %v770_v29 = vsel %vm752_vm7, %v736_v6, %v762_v22 }
 0x367   : > { %1153 = vmatprep.mubr.msk.f32.mxu1 %vm460_vm0, %v773_v27  ;;  %v774_v31 = vsel %vm756_vm8, %v740_v10, %v766_v28 }
 0x368   : > { %1148 = vmatmul.mubr.msk.f32.gmra.mrb[2].mxu0 %vm460_vm0, %v770_v29 }
 0x369   : > { %1154 = vmatmul.mubr.msk.f32.gmra.mrb[2].mxu1 %vm460_vm0, %v774_v31 }
 0x36a   : > { %1276 = shalt.err (!%p1273_p2)
}
 0x36b   : > { %s1277_s14 = scalar_lea.hbm %s1704_s12, 1024  ;;  %s1281_s2 = scalar_lea.hbm %s1776_s10, 2048 }
 0x36c   : > { %p1278_p3 = scmp.ne.s32.totalorder %s1704_s12, %s1277_s14  ;;  %p1282_p8 = scmp.lt.u32.totalorder %s1704_s12, %s1776_s10 }
 0x36d   : > { %p1283_p11 = scmp.lt.u32.totalorder %s1281_s2, %s1277_s14  ;;  %p1285_p10 = scmp.lt.u32.totalorder %s1277_s14, %s1704_s12 }
 0x36e   : > { %p1279_p4 = pnand %p1278_p3, %p1433_p5 }
 0x36f   : > { %p1284_p9 = por %p1283_p11, %p1282_p8 }
 0x370   : > { %p1280_p7 = pneg %p1279_p4 }
 0x371   : > { %p1286_p12 = por %p1285_p10, %p1284_p9 }
 0x373   : > { %p1287_p13 = pnand %p1286_p12, %p1280_p7 }
 0x375   : > { %1290 = shalt.err (!%p1287_p13)
}
 0x376   : > { %s1333_s29 = smov 128   ;;  %s1334_s15 = smov 8   ;;  %v1093_v32 = vld [vmem:[%s1774_s8] ss:$0 sm:$0xff] }
 0x377   : > { %1196 = dma.vmem_to_hbm [thread:$0]  (%p1433_p5), %s1706_s1, 1024, %s1704_s12, %s1710_s13, %s1333_s29, %s1333_s29, %s1334_s15  }
 0x378   : > { %s451_s14 = scalar_lea.vmem %s1777_s11, %s1463_s22 }
 0x437   : > { %v1146_v34 = vpop.f32.mrb[0].mxu0 }
 0x438   : > { %v886_v35 = vadd.f32 %v1146_v34, %v1093_v32  ;;  %v1152_v37 = vpop.f32.mrb[0].mxu1  ;;  %v880_v38 = vpop.f32.mrb[1].mxu0 }
 0x439   : > { %v906_v40 = vadd.f32 %v1152_v37, %v1093_v32  ;;  %v881_v41 = vadd.f32 %v1093_v32, %v880_v38  ;;  %v900_v42 = vpop.f32.mrb[1].mxu1 }
 0x43a   : > { %920 = vst.msk [vmem:[%s451_s14 + $0x8] sm:$0xff] %vm460_vm0, %v886_v35  ;;  %v901_v43 = vadd.f32 %v1093_v32, %v900_v42 }
 0x43b   : > { %924 = vst.msk [vmem:[%s451_s14 + $0x28] sm:$0xff] %vm460_vm0, %v906_v40  ;;  %919 = vst.msk [vmem:[%s451_s14] sm:$0xff] %vm460_vm0, %v881_v41  ;;  %v1149_v44 = vpop.f32.mrb[2].mxu0 }
 0x43c   : > { %923 = vst.msk [vmem:[%s451_s14 + $0x20] sm:$0xff] %vm460_vm0, %v901_v43  ;;  %v896_v45 = vadd.f32 %v1149_v44, %v1093_v32  ;;  %v1155_v50 = vpop.f32.mrb[2].mxu1  ;;  %v890_v52 = vpop.f32.mrb[3].mxu0 }
 0x43d   : > { %v916_v23 = vadd.f32 %v1155_v50, %v1093_v32  ;;  %v891_v24 = vadd.f32 %v1093_v32, %v890_v52  ;;  %v910_v46 = vpop.f32.mrb[3].mxu1 }
 0x43e   : > { %922 = vst.msk [vmem:[%s451_s14 + $0x18] sm:$0xff] %vm460_vm0, %v896_v45  ;;  %v911_v26 = vadd.f32 %v1093_v32, %v910_v46 }
 0x43f   : > { %926 = vst.msk [vmem:[%s451_s14 + $0x38] sm:$0xff] %vm460_vm0, %v916_v23  ;;  %921 = vst.msk [vmem:[%s451_s14 + $0x10] sm:$0xff] %vm460_vm0, %v891_v24 }
 0x440   : > { %925 = vst.msk [vmem:[%s451_s14 + $0x30] sm:$0xff] %vm460_vm0, %v911_v26 }
 0x441 PF: > { %p1208_p5 = scmp.ge.s32.totalorder %s1329_s20, 2  ;;  %s964_s27 = sand.u32 1, %s1317_s17  }
 0x442   : > { %s965_s22 = scalar_lea.sflag [#allocation3], %s964_s27 }
 0x443   : > { %p1203_p0 = pnand %p1208_p5, %p1437_p6 }
 0x445   : > { %1312 = dma.done.wait (!%p1203_p0), %s965_s22, 1024  }
 0x446   : > { %1314 = vsyncadd (!%p1203_p0), %s965_s22, 4294966272  ;;  %p23_p1 = scmp.ge.s32.totalorder %s1420_s23, 4   ;;  %s1785_s17 = smov %s1321_s18 }
 0x447   : > { %s1786_s18 = smov %s1325_s19  ;;  %s1787_s19 = smov %s1431_s26 }
 0x448   : > { %s1788_s20 = smov %s1420_s23  ;;  %25 = sbr.rel (!%p23_p1) target bundleno = 7 (0x7), region = 118 }
 0x44f   :  { %978 = vsyncpa [#allocation3], 1 }
 0x450   :  { %980 = vsyncpa [#allocation3 + $0x1], 1 }
 0x451   :  { %981 = vsyncpa [#allocation4], 1 }
 0x452   :  { %983 = vsyncpa [#allocation4 + $0x1], 1 }

// kernel: aia_transformer_forward.22
= control target key start
LH: loop header
LB: loop body
LE: loop exit
PB: predicated region body
PF: predicated region fallthrough
CT: control target
= control target key end

     0   :  { %vm206_vm0 = vcmask 130048   ;;  %v14000_v0 = vmov 0.0   ;;  %vm11927_vm1 = vmmov 0   ;;  %vm5071_vm2 = vcmask 64512   ;;  %s13996_s1 = inlined_call_operand.vmem [shape: f32[64,8,16], index: 1, kind: input, shape index: {}]   ;;  %s13997_s0 = inlined_call_operand.vmem [shape: f32[64,8,16], index: 0, kind: input, shape index: {}]   ;;  %s13998_s2 = inlined_call_operand.vmem [shape: f32[64,8,16], index: 2, kind: input, shape index: {}]   ;;  %s13999_s3 = inlined_call_operand.vmem [shape: f32[64,8,16], index: 3, kind: output, shape index: {}]  }
   0x1   :  { %11028 = vmatprep.subr.mxu0 %v14000_v0  ;;  %v142_v1 = vld [vmem:[%s13996_s1] sm:$0xff]  ;;  %11030 = vmatprep.mubr.msk.f32.mxu0 %vm11927_vm1, %v14000_v0  ;;  %v143_v3 = vld [vmem:[%s13996_s1 + $0x8] sm:$0xff]  ;;  %v16_v6 = vld [vmem:[%s13997_s0 + $0x10] sm:$0xff] }
   0x2   :  { %v14_v2 = vld [vmem:[%s13997_s0] sm:$0xff]  ;;  %11029 = vmatpush3.xpose.msk.msra.mxu0 %vm206_vm0, %v142_v1  ;;  %11033 = vmatprep.subr.mxu1 %v14000_v0  ;;  %v15_v5 = vld [vmem:[%s13997_s0 + $0x8] sm:$0xff]  ;;  %v144_v7 = vld [vmem:[%s13996_s1 + $0x10] sm:$0xff]  ;;  %v80_v10 = vmul.f32 0.25, %v16_v6 }
   0x3   :  { %v78_v4 = vmul.f32 0.25, %v14_v2  ;;  %11038 = vmatprep.subr.mxu0 %v14000_v0  ;;  %11034 = vmatpush3.xpose.msk.msra.mxu1 %vm206_vm0, %v143_v3  ;;  %v79_v8 = vmul.f32 0.25, %v15_v5  ;;  %v17_v9 = vld [vmem:[%s13997_s0 + $0x18] sm:$0xff]  ;;  %v18_v12 = vld [vmem:[%s13997_s0 + $0x20] sm:$0xff]  ;;  %v19_v15 = vld [vmem:[%s13997_s0 + $0x28] sm:$0xff] }
   0x4   :  { %11035 = vmatprep.mubr.msk.f32.mxu1 %vm11927_vm1, %v14000_v0  ;;  %11043 = vmatprep.subr.mxu1 %v14000_v0  ;;  %v145_v11 = vld [vmem:[%s13996_s1 + $0x18] sm:$0xff]  ;;  %v146_v13 = vld [vmem:[%s13996_s1 + $0x20] sm:$0xff]  ;;  %v81_v14 = vmul.f32 0.25, %v17_v9  ;;  %v82_v16 = vmul.f32 0.25, %v18_v12  ;;  %v147_v17 = vld [vmem:[%s13996_s1 + $0x28] sm:$0xff]  ;;  %v83_v20 = vmul.f32 0.25, %v19_v15 }
   0x5   :  { %11031 = vmatmul.mubr.msk.f32.vlgmr.msra.gmra.mrb[0].mxu0 %vm206_vm0, %v78_v4  ;;  %v20_v18 = vld [vmem:[%s13997_s0 + $0x30] sm:$0xff]  ;;  %v21_v21 = vld [vmem:[%s13997_s0 + $0x38] sm:$0xff]  ;;  %v22_v24 = vld [vmem:[%s13997_s0 + $0x40] sm:$0xff] }
   0x6   :  { %11039 = vmatpush3.xpose.msk.msra.mxu0 %vm206_vm0, %v144_v7  ;;  %11040 = vmatprep.mubr.msk.f32.mxu0 %vm11927_vm1, %v14000_v0  ;;  %v148_v19 = vld [vmem:[%s13996_s1 + $0x30] sm:$0xff]  ;;  %v84_v22 = vmul.f32 0.25, %v20_v18  ;;  %v149_v23 = vld [vmem:[%s13996_s1 + $0x38] sm:$0xff]  ;;  %v150_v25 = vld [vmem:[%s13996_s1 + $0x40] sm:$0xff]  ;;  %v85_v26 = vmul.f32 0.25, %v21_v21  ;;  %v86_v28 = vmul.f32 0.25, %v22_v24 }
   0x7   :  { %11036 = vmatmul.mubr.msk.f32.vlgmr.msra.gmra.mrb[0].mxu1 %vm206_vm0, %v79_v8  ;;  %11048 = vmatprep.subr.mxu0 %v14000_v0  ;;  %v23_v27 = vld [vmem:[%s13997_s0 + $0x48] sm:$0xff]  ;;  %v24_v30 = vld [vmem:[%s13997_s0 + $0x50] sm:$0xff]  ;;  %v25_v33 = vld [vmem:[%s13997_s0 + $0x58] sm:$0xff] }
   0x8   :  { %11044 = vmatpush3.xpose.msk.msra.mxu1 %vm206_vm0, %v145_v11  ;;  %11045 = vmatprep.mubr.msk.f32.mxu1 %vm11927_vm1, %v14000_v0  ;;  %v151_v29 = vld [vmem:[%s13996_s1 + $0x48] sm:$0xff]  ;;  %v152_v31 = vld [vmem:[%s13996_s1 + $0x50] sm:$0xff]  ;;  %v87_v32 = vmul.f32 0.25, %v23_v27  ;;  %v88_v34 = vmul.f32 0.25, %v24_v30  ;;  %v153_v35 = vld [vmem:[%s13996_s1 + $0x58] sm:$0xff]  ;;  %v89_v38 = vmul.f32 0.25, %v25_v33 }
   0x9   :  { %11041 = vmatmul.mubr.msk.f32.vlgmr.msra.gmra.mrb[2].mxu0 %vm206_vm0, %v80_v10  ;;  %11053 = vmatprep.subr.mxu1 %v14000_v0  ;;  %v26_v36 = vld [vmem:[%s13997_s0 + $0x60] sm:$0xff]  ;;  %v27_v39 = vld [vmem:[%s13997_s0 + $0x68] sm:$0xff]  ;;  %v28_v42 = vld [vmem:[%s13997_s0 + $0x70] sm:$0xff] }
   0xa   :  { %11049 = vmatpush3.xpose.msk.msra.mxu0 %vm206_vm0, %v146_v13  ;;  %11050 = vmatprep.mubr.msk.f32.mxu0 %vm11927_vm1, %v14000_v0  ;;  %v154_v37 = vld [vmem:[%s13996_s1 + $0x60] sm:$0xff]  ;;  %v90_v40 = vmul.f32 0.25, %v26_v36  ;;  %v155_v41 = vld [vmem:[%s13996_s1 + $0x68] sm:$0xff]  ;;  %v156_v43 = vld [vmem:[%s13996_s1 + $0x70] sm:$0xff]  ;;  %v91_v44 = vmul.f32 0.25, %v27_v39  ;;  %v92_v46 = vmul.f32 0.25, %v28_v42 }
   0xb   :  { %11046 = vmatmul.mubr.msk.f32.vlgmr.msra.gmra.mrb[2].mxu1 %vm206_vm0, %v81_v14  ;;  %11058 = vmatprep.subr.mxu0 %v14000_v0  ;;  %v29_v45 = vld [vmem:[%s13997_s0 + $0x78] sm:$0xff]  ;;  %v30_v48 = vld [vmem:[%s13997_s0 + $0x80] sm:$0xff]  ;;  %v31_v51 = vld [vmem:[%s13997_s0 + $0x88] sm:$0xff] }
   0xc   :  { %11054 = vmatpush3.xpose.msk.msra.mxu1 %vm206_vm0, %v147_v17  ;;  %11055 = vmatprep.mubr.msk.f32.mxu1 %vm11927_vm1, %v14000_v0  ;;  %v157_v47 = vld [vmem:[%s13996_s1 + $0x78] sm:$0xff]  ;;  %v158_v49 = vld [vmem:[%s13996_s1 + $0x80] sm:$0xff]  ;;  %v93_v50 = vmul.f32 0.25, %v29_v45  ;;  %v94_v52 = vmul.f32 0.25, %v30_v48  ;;  %v159_v53 = vld [vmem:[%s13996_s1 + $0x88] sm:$0xff]  ;;  %v95_v56 = vmul.f32 0.25, %v31_v51 }
   0xd   :  { %11051 = vmatmul.mubr.msk.f32.vlgmr.msra.gmra.mrb[4].mxu0 %vm206_vm0, %v82_v16  ;;  %11063 = vmatprep.subr.mxu1 %v14000_v0  ;;  %v32_v54 = vld [vmem:[%s13997_s0 + $0x90] sm:$0xff]  ;;  %v33_v57 = vld [vmem:[%s13997_s0 + $0x98] sm:$0xff]  ;;  %v34_v60 = vld [vmem:[%s13997_s0 + $0xa0] sm:$0xff] }
   0xe   :  { %11059 = vmatpush3.xpose.msk.msra.mxu0 %vm206_vm0, %v148_v19  ;;  %11060 = vmatprep.mubr.msk.f32.mxu0 %vm11927_vm1, %v14000_v0  ;;  %v160_v55 = vld [vmem:[%s13996_s1 + $0x90] sm:$0xff]  ;;  %v96_v58 = vmul.f32 0.25, %v32_v54  ;;  %v161_v59 = vld [vmem:[%s13996_s1 + $0x98] sm:$0xff]  ;;  %v162_v61 = vld [vmem:[%s13996_s1 + $0xa0] sm:$0xff]  ;;  %v97_v62 = vmul.f32 0.25, %v33_v57  ;;  %v98_v1 = vmul.f32 0.25, %v34_v60 }
   0xf   :  { %11056 = vmatmul.mubr.msk.f32.vlgmr.msra.gmra.mrb[4].mxu1 %vm206_vm0, %v83_v20  ;;  %11068 = vmatprep.subr.mxu0 %v14000_v0  ;;  %v35_v63 = vld [vmem:[%s13997_s0 + $0xa8] sm:$0xff]  ;;  %v36_v3 = vld [vmem:[%s13997_s0 + $0xb0] sm:$0xff]  ;;  %v37_v6 = vld [vmem:[%s13997_s0 + $0xb8] sm:$0xff] }
  0x10   :  { %11064 = vmatpush3.xpose.msk.msra.mxu1 %vm206_vm0, %v149_v23  ;;  %11065 = vmatprep.mubr.msk.f32.mxu1 %vm11927_vm1, %v14000_v0  ;;  %v163_v2 = vld [vmem:[%s13996_s1 + $0xa8] sm:$0xff]  ;;  %v164_v4 = vld [vmem:[%s13996_s1 + $0xb0] sm:$0xff]  ;;  %v99_v5 = vmul.f32 0.25, %v35_v63  ;;  %v100_v7 = vmul.f32 0.25, %v36_v3  ;;  %v165_v8 = vld [vmem:[%s13996_s1 + $0xb8] sm:$0xff]  ;;  %v101_v11 = vmul.f32 0.25, %v37_v6 }
  0x11   :  { %11061 = vmatmul.mubr.msk.f32.vlgmr.msra.gmra.mrb[6].mxu0 %vm206_vm0, %v84_v22  ;;  %11073 = vmatprep.subr.mxu1 %v14000_v0  ;;  %v38_v9 = vld [vmem:[%s13997_s0 + $0xc0] sm:$0xff]  ;;  %v39_v12 = vld [vmem:[%s13997_s0 + $0xc8] sm:$0xff]  ;;  %v40_v15 = vld [vmem:[%s13997_s0 + $0xd0] sm:$0xff] }
  0x12   :  { %11069 = vmatpush3.xpose.msk.msra.mxu0 %vm206_vm0, %v150_v25  ;;  %11070 = vmatprep.mubr.msk.f32.mxu0 %vm11927_vm1, %v14000_v0  ;;  %v166_v10 = vld [vmem:[%s13996_s1 + $0xc0] sm:$0xff]  ;;  %v102_v13 = vmul.f32 0.25, %v38_v9  ;;  %v167_v14 = vld [vmem:[%s13996_s1 + $0xc8] sm:$0xff]  ;;  %v168_v16 = vld [vmem:[%s13996_s1 + $0xd0] sm:$0xff]  ;;  %v103_v17 = vmul.f32 0.25, %v39_v12  ;;  %v104_v19 = vmul.f32 0.25, %v40_v15 }
  0x13   :  { %11066 = vmatmul.mubr.msk.f32.vlgmr.msra.gmra.mrb[6].mxu1 %vm206_vm0, %v85_v26  ;;  %11078 = vmatprep.subr.mxu0 %v14000_v0  ;;  %v41_v18 = vld [vmem:[%s13997_s0 + $0xd8] sm:$0xff]  ;;  %v42_v21 = vld [vmem:[%s13997_s0 + $0xe0] sm:$0xff]  ;;  %v43_v24 = vld [vmem:[%s13997_s0 + $0xe8] sm:$0xff] }
  0x14   :  { %11074 = vmatpush3.xpose.msk.msra.mxu1 %vm206_vm0, %v151_v29  ;;  %11075 = vmatprep.mubr.msk.f32.mxu1 %vm11927_vm1, %v14000_v0  ;;  %v169_v20 = vld [vmem:[%s13996_s1 + $0xd8] sm:$0xff]  ;;  %v170_v22 = vld [vmem:[%s13996_s1 + $0xe0] sm:$0xff]  ;;  %v105_v23 = vmul.f32 0.25, %v41_v18  ;;  %v106_v25 = vmul.f32 0.25, %v42_v21  ;;  %v171_v26 = vld [vmem:[%s13996_s1 + $0xe8] sm:$0xff]  ;;  %v107_v29 = vmul.f32 0.25, %v43_v24 }
  0x15   :  { %11071 = vmatmul.mubr.msk.f32.vlgmr.msra.gmra.mrb[8].mxu0 %vm206_vm0, %v86_v28  ;;  %11083 = vmatprep.subr.mxu1 %v14000_v0  ;;  %v44_v27 = vld [vmem:[%s13997_s0 + $0xf0] sm:$0xff]  ;;  %v45_v30 = vld [vmem:[%s13997_s0 + $0xf8] sm:$0xff]  ;;  %v46_v33 = vld [vmem:[%s13997_s0 + $0x100] sm:$0xff] }
  0x16   :  { %11079 = vmatpush3.xpose.msk.msra.mxu0 %vm206_vm0, %v152_v31  ;;  %11080 = vmatprep.mubr.msk.f32.mxu0 %vm11927_vm1, %v14000_v0  ;;  %v172_v28 = vld [vmem:[%s13996_s1 + $0xf0] sm:$0xff]  ;;  %v108_v31 = vmul.f32 0.25, %v44_v27  ;;  %v47_v36 = vld [vmem:[%s13997_s0 + $0x108] sm:$0xff]  ;;  %v49_v42 = vld [vmem:[%s13997_s0 + $0x118] sm:$0xff] }
  0x17   :  { %11076 = vmatmul.mubr.msk.f32.vlgmr.msra.gmra.mrb[8].mxu1 %vm206_vm0, %v87_v32  ;;  %11088 = vmatprep.subr.mxu0 %v14000_v0  ;;  %v173_v32 = vld [vmem:[%s13996_s1 + $0xf8] sm:$0xff]  ;;  %v48_v39 = vld [vmem:[%s13997_s0 + $0x110] sm:$0xff]  ;;  %v50_v45 = vld [vmem:[%s13997_s0 + $0x120] sm:$0xff] }
  0x18   :  { %11084 = vmatpush3.xpose.msk.msra.mxu1 %vm206_vm0, %v153_v35  ;;  %11085 = vmatprep.mubr.msk.f32.mxu1 %vm11927_vm1, %v14000_v0  ;;  %v109_v35 = vmul.f32 0.25, %v45_v30  ;;  %v51_v48 = vld [vmem:[%s13997_s0 + $0x128] sm:$0xff]  ;;  %v52_v51 = vld [vmem:[%s13997_s0 + $0x130] sm:$0xff]  ;;  %v53_v54 = vld [vmem:[%s13997_s0 + $0x138] sm:$0xff] }
  0x19   :  { %11081 = vmatmul.mubr.msk.f32.vlgmr.msra.gmra.mrb[10].mxu0 %vm206_vm0, %v88_v34  ;;  %11093 = vmatprep.subr.mxu1 %v14000_v0  ;;  %v174_v34 = vld [vmem:[%s13996_s1 + $0x100] sm:$0xff]  ;;  %v55_v60 = vld [vmem:[%s13997_s0 + $0x148] sm:$0xff]  ;;  %v56_v63 = vld [vmem:[%s13997_s0 + $0x150] sm:$0xff] }
  0x1a   :  { %11089 = vmatpush3.xpose.msk.msra.mxu0 %vm206_vm0, %v154_v37  ;;  %11090 = vmatprep.mubr.msk.f32.mxu0 %vm11927_vm1, %v14000_v0  ;;  %v110_v37 = vmul.f32 0.25, %v46_v33  ;;  %v54_v57 = vld [vmem:[%s13997_s0 + $0x140] sm:$0xff]  ;;  %v57_v3 = vld [vmem:[%s13997_s0 + $0x158] sm:$0xff]  ;;  %v59_v9 = vld [vmem:[%s13997_s0 + $0x168] sm:$0xff] }
  0x1b   :  { %11086 = vmatmul.mubr.msk.f32.vlgmr.msra.gmra.mrb[10].mxu1 %vm206_vm0, %v89_v38  ;;  %11098 = vmatprep.subr.mxu0 %v14000_v0  ;;  %v175_v38 = vld [vmem:[%s13996_s1 + $0x108] sm:$0xff]  ;;  %v58_v6 = vld [vmem:[%s13997_s0 + $0x160] sm:$0xff]  ;;  %v60_v12 = vld [vmem:[%s13997_s0 + $0x170] sm:$0xff] }
  0x1c   :  { %11094 = vmatpush3.xpose.msk.msra.mxu1 %vm206_vm0, %v155_v41  ;;  %11095 = vmatprep.mubr.msk.f32.mxu1 %vm11927_vm1, %v14000_v0  ;;  %v111_v41 = vmul.f32 0.25, %v47_v36  ;;  %v61_v15 = vld [vmem:[%s13997_s0 + $0x178] sm:$0xff]  ;;  %v62_v18 = vld [vmem:[%s13997_s0 + $0x180] sm:$0xff]  ;;  %v63_v21 = vld [vmem:[%s13997_s0 + $0x188] sm:$0xff] }
  0x1d   :  { %11091 = vmatmul.mubr.msk.f32.vlgmr.msra.gmra.mrb[12].mxu0 %vm206_vm0, %v90_v40  ;;  %11103 = vmatprep.subr.mxu1 %v14000_v0  ;;  %v176_v40 = vld [vmem:[%s13996_s1 + $0x110] sm:$0xff]  ;;  %v65_v27 = vld [vmem:[%s13997_s0 + $0x198] sm:$0xff]  ;;  %v66_v30 = vld [vmem:[%s13997_s0 + $0x1a0] sm:$0xff] }
  0x1e   :  { %11099 = vmatpush3.xpose.msk.msra.mxu0 %vm206_vm0, %v156_v43  ;;  %11100 = vmatprep.mubr.msk.f32.mxu0 %vm11927_vm1, %v14000_v0  ;;  %v112_v43 = vmul.f32 0.25, %v48_v39  ;;  %v64_v24 = vld [vmem:[%s13997_s0 + $0x190] sm:$0xff]  ;;  %v67_v33 = vld [vmem:[%s13997_s0 + $0x1a8] sm:$0xff]  ;;  %v69_v39 = vld [vmem:[%s13997_s0 + $0x1b8] sm:$0xff] }
  0x1f   :  { %11096 = vmatmul.mubr.msk.f32.vlgmr.msra.gmra.mrb[12].mxu1 %vm206_vm0, %v91_v44  ;;  %11108 = vmatprep.subr.mxu0 %v14000_v0  ;;  %v177_v44 = vld [vmem:[%s13996_s1 + $0x118] sm:$0xff]  ;;  %v68_v36 = vld [vmem:[%s13997_s0 + $0x1b0] sm:$0xff] }
  0x20   :  { %11104 = vmatpush3.xpose.msk.msra.mxu1 %vm206_vm0, %v157_v47  ;;  %11105 = vmatprep.mubr.msk.f32.mxu1 %vm11927_vm1, %v14000_v0  ;;  %v113_v47 = vmul.f32 0.25, %v49_v42  ;;  %v70_v42 = vld [vmem:[%s13997_s0 + $0x1c0] sm:$0xff] }
  0x21   :  { %11101 = vmatmul.mubr.msk.f32.vlgmr.msra.gmra.mrb[14].mxu0 %vm206_vm0, %v92_v46  ;;  %11113 = vmatprep.subr.mxu1 %v14000_v0  ;;  %v178_v46 = vld [vmem:[%s13996_s1 + $0x120] sm:$0xff] }
  0x22   :  { %11109 = vmatpush3.xpose.msk.msra.mxu0 %vm206_vm0, %v158_v49  ;;  %11110 = vmatprep.mubr.msk.f32.mxu0 %vm11927_vm1, %v14000_v0  ;;  %v114_v49 = vmul.f32 0.25, %v50_v45  ;;  %v71_v45 = vld [vmem:[%s13997_s0 + $0x1c8] sm:$0xff] }
  0x23   :  { %11106 = vmatmul.mubr.msk.f32.vlgmr.msra.gmra.mrb[14].mxu1 %vm206_vm0, %v93_v50  ;;  %11118 = vmatprep.subr.mxu0 %v14000_v0  ;;  %v179_v50 = vld [vmem:[%s13996_s1 + $0x128] sm:$0xff] }
  0x24   :  { %11114 = vmatpush3.xpose.msk.msra.mxu1 %vm206_vm0, %v159_v53  ;;  %11115 = vmatprep.mubr.msk.f32.mxu1 %vm11927_vm1, %v14000_v0  ;;  %v115_v53 = vmul.f32 0.25, %v51_v48  ;;  %v72_v48 = vld [vmem:[%s13997_s0 + $0x1d0] sm:$0xff] }
  0x25   :  { %11111 = vmatmul.mubr.msk.f32.vlgmr.msra.gmra.mrb[16].mxu0 %vm206_vm0, %v94_v52  ;;  %11123 = vmatprep.subr.mxu1 %v14000_v0  ;;  %v180_v52 = vld [vmem:[%s13996_s1 + $0x130] sm:$0xff] }
  0x26   :  { %11119 = vmatpush3.xpose.msk.msra.mxu0 %vm206_vm0, %v160_v55  ;;  %11120 = vmatprep.mubr.msk.f32.mxu0 %vm11927_vm1, %v14000_v0  ;;  %v116_v55 = vmul.f32 0.25, %v52_v51  ;;  %v73_v51 = vld [vmem:[%s13997_s0 + $0x1d8] sm:$0xff] }
  0x27   :  { %11116 = vmatmul.mubr.msk.f32.vlgmr.msra.gmra.mrb[16].mxu1 %vm206_vm0, %v95_v56  ;;  %11128 = vmatprep.subr.mxu0 %v14000_v0  ;;  %v181_v56 = vld [vmem:[%s13996_s1 + $0x138] sm:$0xff] }
  0x28   :  { %11124 = vmatpush3.xpose.msk.msra.mxu1 %vm206_vm0, %v161_v59  ;;  %11125 = vmatprep.mubr.msk.f32.mxu1 %vm11927_vm1, %v14000_v0  ;;  %v117_v59 = vmul.f32 0.25, %v53_v54  ;;  %v74_v54 = vld [vmem:[%s13997_s0 + $0x1e0] sm:$0xff] }
  0x29   :  { %11121 = vmatmul.mubr.msk.f32.vlgmr.msra.gmra.mrb[18].mxu0 %vm206_vm0, %v96_v58  ;;  %11133 = vmatprep.subr.mxu1 %v14000_v0  ;;  %v182_v58 = vld [vmem:[%s13996_s1 + $0x140] sm:$0xff] }
  0x2a   :  { %11129 = vmatpush3.xpose.msk.msra.mxu0 %vm206_vm0, %v162_v61  ;;  %11130 = vmatprep.mubr.msk.f32.mxu0 %vm11927_vm1, %v14000_v0  ;;  %v118_v61 = vmul.f32 0.25, %v54_v57  ;;  %v75_v57 = vld [vmem:[%s13997_s0 + $0x1e8] sm:$0xff] }
  0x2b   :  { %11126 = vmatmul.mubr.msk.f32.vlgmr.msra.gmra.mrb[18].mxu1 %vm206_vm0, %v97_v62  ;;  %11138 = vmatprep.subr.mxu0 %v14000_v0  ;;  %v183_v62 = vld [vmem:[%s13996_s1 + $0x148] sm:$0xff] }
  0x2c   :  { %11134 = vmatpush3.xpose.msk.msra.mxu1 %vm206_vm0, %v163_v2  ;;  %11135 = vmatprep.mubr.msk.f32.mxu1 %vm11927_vm1, %v14000_v0  ;;  %v119_v2 = vmul.f32 0.25, %v55_v60  ;;  %v76_v60 = vld [vmem:[%s13997_s0 + $0x1f0] sm:$0xff] }
  0x2d   :  { %11131 = vmatmul.mubr.msk.f32.vlgmr.msra.gmra.mrb[20].mxu0 %vm206_vm0, %v98_v1  ;;  %11143 = vmatprep.subr.mxu1 %v14000_v0  ;;  %v184_v1 = vld [vmem:[%s13996_s1 + $0x150] sm:$0xff] }
  0x2e   :  { %11139 = vmatpush3.xpose.msk.msra.mxu0 %vm206_vm0, %v164_v4  ;;  %11140 = vmatprep.mubr.msk.f32.mxu0 %vm11927_vm1, %v14000_v0  ;;  %v120_v4 = vmul.f32 0.25, %v56_v63  ;;  %v77_v63 = vld [vmem:[%s13997_s0 + $0x1f8] sm:$0xff] }
  0x2f   :  { %11136 = vmatmul.mubr.msk.f32.vlgmr.msra.gmra.mrb[20].mxu1 %vm206_vm0, %v99_v5  ;;  %11148 = vmatprep.subr.mxu0 %v14000_v0  ;;  %v185_v5 = vld [vmem:[%s13996_s1 + $0x158] sm:$0xff] }
  0x30   :  { %11144 = vmatpush3.xpose.msk.msra.mxu1 %vm206_vm0, %v165_v8  ;;  %11145 = vmatprep.mubr.msk.f32.mxu1 %vm11927_vm1, %v14000_v0  ;;  %v121_v8 = vmul.f32 0.25, %v57_v3  ;;  %v141_v3 = vmul.f32 0.25, %v77_v63 }
  0x31   :  { %11141 = vmatmul.mubr.msk.f32.vlgmr.msra.gmra.mrb[22].mxu0 %vm206_vm0, %v100_v7  ;;  %11153 = vmatprep.subr.mxu1 %v14000_v0  ;;  %v186_v7 = vld [vmem:[%s13996_s1 + $0x160] sm:$0xff] }
  0x32   :  { %11149 = vmatpush3.xpose.msk.msra.mxu0 %vm206_vm0, %v166_v10  ;;  %11150 = vmatprep.mubr.msk.f32.mxu0 %vm11927_vm1, %v14000_v0  ;;  %v122_v10 = vmul.f32 0.25, %v58_v6 }
  0x33   :  { %11146 = vmatmul.mubr.msk.f32.vlgmr.msra.gmra.mrb[22].mxu1 %vm206_vm0, %v101_v11  ;;  %11158 = vmatprep.subr.mxu0 %v14000_v0  ;;  %v187_v11 = vld [vmem:[%s13996_s1 + $0x168] sm:$0xff] }
  0x34   :  { %11154 = vmatpush3.xpose.msk.msra.mxu1 %vm206_vm0, %v167_v14  ;;  %11155 = vmatprep.mubr.msk.f32.mxu1 %vm11927_vm1, %v14000_v0  ;;  %v123_v14 = vmul.f32 0.25, %v59_v9 }
  0x35   :  { %11151 = vmatmul.mubr.msk.f32.vlgmr.msra.gmra.mrb[24].mxu0 %vm206_vm0, %v102_v13  ;;  %11163 = vmatprep.subr.mxu1 %v14000_v0  ;;  %v188_v13 = vld [vmem:[%s13996_s1 + $0x170] sm:$0xff] }
  0x36   :  { %11159 = vmatpush3.xpose.msk.msra.mxu0 %vm206_vm0, %v168_v16  ;;  %11160 = vmatprep.mubr.msk.f32.mxu0 %vm11927_vm1, %v14000_v0  ;;  %v124_v16 = vmul.f32 0.25, %v60_v12 }
  0x37   :  { %11156 = vmatmul.mubr.msk.f32.vlgmr.msra.gmra.mrb[24].mxu1 %vm206_vm0, %v103_v17  ;;  %11168 = vmatprep.subr.mxu0 %v14000_v0  ;;  %v189_v17 = vld [vmem:[%s13996_s1 + $0x178] sm:$0xff] }
  0x38   :  { %11164 = vmatpush3.xpose.msk.msra.mxu1 %vm206_vm0, %v169_v20  ;;  %11165 = vmatprep.mubr.msk.f32.mxu1 %vm11927_vm1, %v14000_v0  ;;  %v125_v20 = vmul.f32 0.25, %v61_v15 }
  0x39   :  { %11161 = vmatmul.mubr.msk.f32.vlgmr.msra.gmra.mrb[26].mxu0 %vm206_vm0, %v104_v19  ;;  %11173 = vmatprep.subr.mxu1 %v14000_v0  ;;  %v190_v19 = vld [vmem:[%s13996_s1 + $0x180] sm:$0xff] }
  0x3a   :  { %11169 = vmatpush3.xpose.msk.msra.mxu0 %vm206_vm0, %v170_v22  ;;  %11170 = vmatprep.mubr.msk.f32.mxu0 %vm11927_vm1, %v14000_v0  ;;  %v126_v22 = vmul.f32 0.25, %v62_v18 }
  0x3b   :  { %11166 = vmatmul.mubr.msk.f32.vlgmr.msra.gmra.mrb[26].mxu1 %vm206_vm0, %v105_v23  ;;  %11178 = vmatprep.subr.mxu0 %v14000_v0  ;;  %v191_v23 = vld [vmem:[%s13996_s1 + $0x188] sm:$0xff] }
  0x3c   :  { %11174 = vmatpush3.xpose.msk.msra.mxu1 %vm206_vm0, %v171_v26  ;;  %11175 = vmatprep.mubr.msk.f32.mxu1 %vm11927_vm1, %v14000_v0  ;;  %v127_v26 = vmul.f32 0.25, %v63_v21 }
  0x3d   :  { %11171 = vmatmul.mubr.msk.f32.vlgmr.msra.gmra.mrb[28].mxu0 %vm206_vm0, %v106_v25  ;;  %11183 = vmatprep.subr.mxu1 %v14000_v0  ;;  %v192_v25 = vld [vmem:[%s13996_s1 + $0x190] sm:$0xff] }
  0x3e   :  { %11179 = vmatpush3.xpose.msk.msra.mxu0 %vm206_vm0, %v172_v28  ;;  %11180 = vmatprep.mubr.msk.f32.mxu0 %vm11927_vm1, %v14000_v0  ;;  %v128_v28 = vmul.f32 0.25, %v64_v24 }
  0x3f   :  { %11176 = vmatmul.mubr.msk.f32.vlgmr.msra.gmra.mrb[28].mxu1 %vm206_vm0, %v107_v29  ;;  %11188 = vmatprep.subr.mxu0 %v14000_v0  ;;  %v193_v29 = vld [vmem:[%s13996_s1 + $0x198] sm:$0xff] }
  0x40   :  { %11184 = vmatpush3.xpose.msk.msra.mxu1 %vm206_vm0, %v173_v32  ;;  %11185 = vmatprep.mubr.msk.f32.mxu1 %vm11927_vm1, %v14000_v0  ;;  %v129_v32 = vmul.f32 0.25, %v65_v27 }
  0x41   :  { %11181 = vmatmul.mubr.msk.f32.vlgmr.msra.gmra.mrb[30].mxu0 %vm206_vm0, %v108_v31  ;;  %11193 = vmatprep.subr.mxu1 %v14000_v0  ;;  %v194_v31 = vld [vmem:[%s13996_s1 + $0x1a0] sm:$0xff] }
  0x42   :  { %11189 = vmatpush3.xpose.msk.msra.mxu0 %vm206_vm0, %v174_v34  ;;  %11190 = vmatprep.mubr.msk.f32.mxu0 %vm11927_vm1, %v14000_v0  ;;  %v130_v34 = vmul.f32 0.25, %v66_v30 }
  0x43   :  { %11186 = vmatmul.mubr.msk.f32.vlgmr.msra.gmra.mrb[30].mxu1 %vm206_vm0, %v109_v35  ;;  %11198 = vmatprep.subr.mxu0 %v14000_v0  ;;  %v195_v35 = vld [vmem:[%s13996_s1 + $0x1a8] sm:$0xff] }
  0x44   :  { %11194 = vmatpush3.xpose.msk.msra.mxu1 %vm206_vm0, %v175_v38  ;;  %11195 = vmatprep.mubr.msk.f32.mxu1 %vm11927_vm1, %v14000_v0  ;;  %v131_v38 = vmul.f32 0.25, %v67_v33 }
  0x45   :  { %11191 = vmatmul.mubr.msk.f32.vlgmr.msra.gmra.mrb[32].mxu0 %vm206_vm0, %v110_v37  ;;  %11203 = vmatprep.subr.mxu1 %v14000_v0  ;;  %v196_v37 = vld [vmem:[%s13996_s1 + $0x1b0] sm:$0xff] }
  0x46   :  { %11199 = vmatpush3.xpose.msk.msra.mxu0 %vm206_vm0, %v176_v40  ;;  %11200 = vmatprep.mubr.msk.f32.mxu0 %vm11927_vm1, %v14000_v0  ;;  %v132_v40 = vmul.f32 0.25, %v68_v36 }
  0x47   :  { %11196 = vmatmul.mubr.msk.f32.vlgmr.msra.gmra.mrb[32].mxu1 %vm206_vm0, %v111_v41  ;;  %11208 = vmatprep.subr.mxu0 %v14000_v0  ;;  %v197_v41 = vld [vmem:[%s13996_s1 + $0x1b8] sm:$0xff] }
  0x48   :  { %11204 = vmatpush3.xpose.msk.msra.mxu1 %vm206_vm0, %v177_v44  ;;  %11205 = vmatprep.mubr.msk.f32.mxu1 %vm11927_vm1, %v14000_v0  ;;  %v133_v44 = vmul.f32 0.25, %v69_v39 }
  0x49   :  { %11201 = vmatmul.mubr.msk.f32.vlgmr.msra.gmra.mrb[34].mxu0 %vm206_vm0, %v112_v43  ;;  %11213 = vmatprep.subr.mxu1 %v14000_v0  ;;  %v198_v43 = vld [vmem:[%s13996_s1 + $0x1c0] sm:$0xff] }
  0x4a   :  { %11209 = vmatpush3.xpose.msk.msra.mxu0 %vm206_vm0, %v178_v46  ;;  %11210 = vmatprep.mubr.msk.f32.mxu0 %vm11927_vm1, %v14000_v0  ;;  %v134_v46 = vmul.f32 0.25, %v70_v42 }
  0x4b   :  { %11206 = vmatmul.mubr.msk.f32.vlgmr.msra.gmra.mrb[34].mxu1 %vm206_vm0, %v113_v47  ;;  %11218 = vmatprep.subr.mxu0 %v14000_v0  ;;  %v199_v47 = vld [vmem:[%s13996_s1 + $0x1c8] sm:$0xff] }
  0x4c   :  { %11214 = vmatpush3.xpose.msk.msra.mxu1 %vm206_vm0, %v179_v50  ;;  %11215 = vmatprep.mubr.msk.f32.mxu1 %vm11927_vm1, %v14000_v0  ;;  %v135_v50 = vmul.f32 0.25, %v71_v45 }
  0x4d   :  { %11211 = vmatmul.mubr.msk.f32.vlgmr.msra.gmra.mrb[36].mxu0 %vm206_vm0, %v114_v49  ;;  %11223 = vmatprep.subr.mxu1 %v14000_v0  ;;  %v200_v49 = vld [vmem:[%s13996_s1 + $0x1d0] sm:$0xff] }
  0x4e   :  { %11219 = vmatpush3.xpose.msk.msra.mxu0 %vm206_vm0, %v180_v52  ;;  %11220 = vmatprep.mubr.msk.f32.mxu0 %vm11927_vm1, %v14000_v0  ;;  %v136_v52 = vmul.f32 0.25, %v72_v48 }
  0x4f   :  { %11216 = vmatmul.mubr.msk.f32.vlgmr.msra.gmra.mrb[36].mxu1 %vm206_vm0, %v115_v53  ;;  %11228 = vmatprep.subr.mxu0 %v14000_v0  ;;  %v201_v53 = vld [vmem:[%s13996_s1 + $0x1d8] sm:$0xff] }
  0x50   :  { %11224 = vmatpush3.xpose.msk.msra.mxu1 %vm206_vm0, %v181_v56  ;;  %11225 = vmatprep.mubr.msk.f32.mxu1 %vm11927_vm1, %v14000_v0  ;;  %v137_v56 = vmul.f32 0.25, %v73_v51 }
  0x51   :  { %11221 = vmatmul.mubr.msk.f32.vlgmr.msra.gmra.mrb[38].mxu0 %vm206_vm0, %v116_v55  ;;  %11233 = vmatprep.subr.mxu1 %v14000_v0  ;;  %v202_v55 = vld [vmem:[%s13996_s1 + $0x1e0] sm:$0xff] }
  0x52   :  { %11229 = vmatpush3.xpose.msk.msra.mxu0 %vm206_vm0, %v182_v58  ;;  %11230 = vmatprep.mubr.msk.f32.mxu0 %vm11927_vm1, %v14000_v0  ;;  %v138_v58 = vmul.f32 0.25, %v74_v54 }
  0x53   :  { %11226 = vmatmul.mubr.msk.f32.vlgmr.msra.gmra.mrb[38].mxu1 %vm206_vm0, %v117_v59  ;;  %11238 = vmatprep.subr.mxu0 %v14000_v0  ;;  %v203_v59 = vld [vmem:[%s13996_s1 + $0x1e8] sm:$0xff] }
  0x54   :  { %11234 = vmatpush3.xpose.msk.msra.mxu1 %vm206_vm0, %v183_v62  ;;  %11235 = vmatprep.mubr.msk.f32.mxu1 %vm11927_vm1, %v14000_v0  ;;  %v139_v62 = vmul.f32 0.25, %v75_v57 }
  0x55   :  { %11231 = vmatmul.mubr.msk.f32.vlgmr.msra.gmra.mrb[40].mxu0 %vm206_vm0, %v118_v61  ;;  %11243 = vmatprep.subr.mxu1 %v14000_v0  ;;  %v204_v61 = vld [vmem:[%s13996_s1 + $0x1f0] sm:$0xff] }
  0x56   :  { %11239 = vmatpush3.xpose.msk.msra.mxu0 %vm206_vm0, %v184_v1  ;;  %11240 = vmatprep.mubr.msk.f32.mxu0 %vm11927_vm1, %v14000_v0  ;;  %v140_v1 = vmul.f32 0.25, %v76_v60 }
  0x57   :  { %11236 = vmatmul.mubr.msk.f32.vlgmr.msra.gmra.mrb[40].mxu1 %vm206_vm0, %v119_v2  ;;  %11248 = vmatprep.subr.mxu0 %v14000_v0  ;;  %v205_v2 = vld [vmem:[%s13996_s1 + $0x1f8] sm:$0xff] }
  0x58   :  { %11244 = vmatpush3.xpose.msk.msra.mxu1 %vm206_vm0, %v185_v5  ;;  %11245 = vmatprep.mubr.msk.f32.mxu1 %vm11927_vm1, %v14000_v0 }
  0x59   :  { %11241 = vmatmul.mubr.msk.f32.vlgmr.msra.gmra.mrb[42].mxu0 %vm206_vm0, %v120_v4  ;;  %11253 = vmatprep.subr.mxu1 %v14000_v0 }
  0x5a   :  { %11249 = vmatpush3.xpose.msk.msra.mxu0 %vm206_vm0, %v186_v7  ;;  %11250 = vmatprep.mubr.msk.f32.mxu0 %vm11927_vm1, %v14000_v0 }
  0x5b   :  { %11246 = vmatmul.mubr.msk.f32.vlgmr.msra.gmra.mrb[42].mxu1 %vm206_vm0, %v121_v8  ;;  %11258 = vmatprep.subr.mxu0 %v14000_v0 }
  0x5c   :  { %11254 = vmatpush3.xpose.msk.msra.mxu1 %vm206_vm0, %v187_v11  ;;  %11255 = vmatprep.mubr.msk.f32.mxu1 %vm11927_vm1, %v14000_v0 }
  0x5d   :  { %11251 = vmatmul.mubr.msk.f32.vlgmr.msra.gmra.mrb[44].mxu0 %vm206_vm0, %v122_v10  ;;  %11263 = vmatprep.subr.mxu1 %v14000_v0 }
  0x5e   :  { %11259 = vmatpush3.xpose.msk.msra.mxu0 %vm206_vm0, %v188_v13  ;;  %11260 = vmatprep.mubr.msk.f32.mxu0 %vm11927_vm1, %v14000_v0 }
  0x5f   :  { %11256 = vmatmul.mubr.msk.f32.vlgmr.msra.gmra.mrb[44].mxu1 %vm206_vm0, %v123_v14  ;;  %11268 = vmatprep.subr.mxu0 %v14000_v0 }
  0x60   :  { %11264 = vmatpush3.xpose.msk.msra.mxu1 %vm206_vm0, %v189_v17  ;;  %11265 = vmatprep.mubr.msk.f32.mxu1 %vm11927_vm1, %v14000_v0 }
  0x61   :  { %11261 = vmatmul.mubr.msk.f32.vlgmr.msra.gmra.mrb[46].mxu0 %vm206_vm0, %v124_v16  ;;  %11273 = vmatprep.subr.mxu1 %v14000_v0 }
  0x62   :  { %11269 = vmatpush3.xpose.msk.msra.mxu0 %vm206_vm0, %v190_v19  ;;  %11270 = vmatprep.mubr.msk.f32.mxu0 %vm11927_vm1, %v14000_v0 }
  0x63   :  { %11266 = vmatmul.mubr.msk.f32.vlgmr.msra.gmra.mrb[46].mxu1 %vm206_vm0, %v125_v20  ;;  %11278 = vmatprep.subr.mxu0 %v14000_v0 }
  0x64   :  { %11274 = vmatpush3.xpose.msk.msra.mxu1 %vm206_vm0, %v191_v23  ;;  %11275 = vmatprep.mubr.msk.f32.mxu1 %vm11927_vm1, %v14000_v0 }
  0x65   :  { %11271 = vmatmul.mubr.msk.f32.vlgmr.msra.gmra.mrb[48].mxu0 %vm206_vm0, %v126_v22  ;;  %11283 = vmatprep.subr.mxu1 %v14000_v0 }
  0x66   :  { %11279 = vmatpush3.xpose.msk.msra.mxu0 %vm206_vm0, %v192_v25  ;;  %11280 = vmatprep.mubr.msk.f32.mxu0 %vm11927_vm1, %v14000_v0 }
  0x67   :  { %11276 = vmatmul.mubr.msk.f32.vlgmr.msra.gmra.mrb[48].mxu1 %vm206_vm0, %v127_v26  ;;  %11288 = vmatprep.subr.mxu0 %v14000_v0 }
  0x68   :  { %11284 = vmatpush3.xpose.msk.msra.mxu1 %vm206_vm0, %v193_v29  ;;  %11285 = vmatprep.mubr.msk.f32.mxu1 %vm11927_vm1, %v14000_v0 }
  0x69   :  { %11281 = vmatmul.mubr.msk.f32.vlgmr.msra.gmra.mrb[50].mxu0 %vm206_vm0, %v128_v28  ;;  %11293 = vmatprep.subr.mxu1 %v14000_v0 }
  0x6a   :  { %11289 = vmatpush3.xpose.msk.msra.mxu0 %vm206_vm0, %v194_v31  ;;  %11290 = vmatprep.mubr.msk.f32.mxu0 %vm11927_vm1, %v14000_v0 }
  0x6b   :  { %11286 = vmatmul.mubr.msk.f32.vlgmr.msra.gmra.mrb[50].mxu1 %vm206_vm0, %v129_v32  ;;  %11298 = vmatprep.subr.mxu0 %v14000_v0 }
  0x6c   :  { %11294 = vmatpush3.xpose.msk.msra.mxu1 %vm206_vm0, %v195_v35  ;;  %11295 = vmatprep.mubr.msk.f32.mxu1 %vm11927_vm1, %v14000_v0 }
  0x6d   :  { %11291 = vmatmul.mubr.msk.f32.vlgmr.msra.gmra.mrb[52].mxu0 %vm206_vm0, %v130_v34  ;;  %11303 = vmatprep.subr.mxu1 %v14000_v0 }
  0x6e   :  { %11299 = vmatpush3.xpose.msk.msra.mxu0 %vm206_vm0, %v196_v37  ;;  %11300 = vmatprep.mubr.msk.f32.mxu0 %vm11927_vm1, %v14000_v0 }
  0x6f   :  { %11296 = vmatmul.mubr.msk.f32.vlgmr.msra.gmra.mrb[52].mxu1 %vm206_vm0, %v131_v38  ;;  %11308 = vmatprep.subr.mxu0 %v14000_v0 }
  0x70   :  { %11304 = vmatpush3.xpose.msk.msra.mxu1 %vm206_vm0, %v197_v41  ;;  %11305 = vmatprep.mubr.msk.f32.mxu1 %vm11927_vm1, %v14000_v0 }
  0x71   :  { %11301 = vmatmul.mubr.msk.f32.vlgmr.msra.gmra.mrb[54].mxu0 %vm206_vm0, %v132_v40  ;;  %11313 = vmatprep.subr.mxu1 %v14000_v0 }
  0x72   :  { %11309 = vmatpush3.xpose.msk.msra.mxu0 %vm206_vm0, %v198_v43  ;;  %11310 = vmatprep.mubr.msk.f32.mxu0 %vm11927_vm1, %v14000_v0 }
  0x73   :  { %11306 = vmatmul.mubr.msk.f32.vlgmr.msra.gmra.mrb[54].mxu1 %vm206_vm0, %v133_v44  ;;  %11318 = vmatprep.subr.mxu0 %v14000_v0 }
  0x74   :  { %11314 = vmatpush3.xpose.msk.msra.mxu1 %vm206_vm0, %v199_v47  ;;  %11315 = vmatprep.mubr.msk.f32.mxu1 %vm11927_vm1, %v14000_v0 }
  0x75   :  { %11311 = vmatmul.mubr.msk.f32.vlgmr.msra.gmra.mrb[56].mxu0 %vm206_vm0, %v134_v46  ;;  %11323 = vmatprep.subr.mxu1 %v14000_v0 }
  0x76   :  { %11319 = vmatpush3.xpose.msk.msra.mxu0 %vm206_vm0, %v200_v49  ;;  %11320 = vmatprep.mubr.msk.f32.mxu0 %vm11927_vm1, %v14000_v0 }
  0x77   :  { %11316 = vmatmul.mubr.msk.f32.vlgmr.msra.gmra.mrb[56].mxu1 %vm206_vm0, %v135_v50  ;;  %11328 = vmatprep.subr.mxu0 %v14000_v0 }
  0x78   :  { %11324 = vmatpush3.xpose.msk.msra.mxu1 %vm206_vm0, %v201_v53  ;;  %11325 = vmatprep.mubr.msk.f32.mxu1 %vm11927_vm1, %v14000_v0 }
  0x79   :  { %11321 = vmatmul.mubr.msk.f32.vlgmr.msra.gmra.mrb[58].mxu0 %vm206_vm0, %v136_v52  ;;  %11333 = vmatprep.subr.mxu1 %v14000_v0 }
  0x7a   :  { %11329 = vmatpush3.xpose.msk.msra.mxu0 %vm206_vm0, %v202_v55  ;;  %11330 = vmatprep.mubr.msk.f32.mxu0 %vm11927_vm1, %v14000_v0 }
  0x7b   :  { %11326 = vmatmul.mubr.msk.f32.vlgmr.msra.gmra.mrb[58].mxu1 %vm206_vm0, %v137_v56  ;;  %11338 = vmatprep.subr.mxu0 %v14000_v0 }
  0x7c   :  { %11334 = vmatpush3.xpose.msk.msra.mxu1 %vm206_vm0, %v203_v59  ;;  %11335 = vmatprep.mubr.msk.f32.mxu1 %vm11927_vm1, %v14000_v0 }
  0x7d   :  { %11331 = vmatmul.mubr.msk.f32.vlgmr.msra.gmra.mrb[60].mxu0 %vm206_vm0, %v138_v58  ;;  %11343 = vmatprep.subr.mxu1 %v14000_v0 }
  0x7e   :  { %11339 = vmatpush3.xpose.msk.msra.mxu0 %vm206_vm0, %v204_v61  ;;  %11340 = vmatprep.mubr.msk.f32.mxu0 %vm11927_vm1, %v14000_v0 }
  0x7f   :  { %11336 = vmatmul.mubr.msk.f32.vlgmr.msra.gmra.mrb[60].mxu1 %vm206_vm0, %v139_v62  ;;  %11348 = vmatprep.subr.mxu0 %v14000_v0 }
  0x80   :  { %11344 = vmatpush3.xpose.msk.msra.mxu1 %vm206_vm0, %v205_v2  ;;  %11345 = vmatprep.mubr.msk.f32.mxu1 %vm11927_vm1, %v14000_v0 }
  0x81   :  { %11341 = vmatmul.mubr.msk.f32.vlgmr.msra.gmra.mrb[62].mxu0 %vm206_vm0, %v140_v1  ;;  %11353 = vmatprep.subr.mxu1 %v14000_v0 }
  0x82   :  { %11350 = vmatprep.mubr.msk.f32.mxu0 %vm11927_vm1, %v14000_v0 }
  0x83   :  { %11346 = vmatmul.mubr.msk.f32.vlgmr.msra.gmra.mrb[62].mxu1 %vm206_vm0, %v141_v3 }
  0x84   :  { %11355 = vmatprep.mubr.msk.f32.mxu1 %vm11927_vm1, %v14000_v0 }
  0xd8   :  { %v12658_v4 = vpop.f32.mrb[0].mxu0 }
  0xd9   :  { %v11032_v5 = vpop.f32.mrb[1].mxu0  ;;  %v5072_v6 = vsel %vm5071_vm2, %v12658_v4, -inf }
  0xda   :  { %5073 = vmax.xlane.f32.xlu0 %v5072_v6  ;;  %v12662_v7 = vpop.f32.mrb[0].mxu1 }
  0xdb   :  { %v11037_v8 = vpop.f32.mrb[1].mxu1  ;;  %v5075_v9 = vsel %vm5071_vm2, %v12662_v7, -inf }
  0xdc   :  { %v12666_v10 = vpop.f32.mrb[2].mxu0 }
  0xdd   :  { %v11042_v11 = vpop.f32.mrb[3].mxu0  ;;  %v5078_v12 = vsel %vm5071_vm2, %v12666_v10, -inf }
  0xde   :  { %5076 = vmax.xlane.f32.xlu0 %v5075_v9  ;;  %5079 = vmax.xlane.f32.xlu1 %v5078_v12  ;;  %v12670_v13 = vpop.f32.mrb[2].mxu1 }
  0xdf   :  { %v11047_v14 = vpop.f32.mrb[3].mxu1  ;;  %v5081_v15 = vsel %vm5071_vm2, %v12670_v13, -inf }
  0xe0   :  { %v12674_v16 = vpop.f32.mrb[4].mxu0 }
  0xe1   :  { %v5084_v17 = vsel %vm5071_vm2, %v12674_v16, -inf  ;;  %v11052_v18 = vpop.f32.mrb[5].mxu0 }
  0xe2   :  { %5082 = vmax.xlane.f32.xlu1 %v5081_v15  ;;  %5085 = vmax.xlane.f32.xlu0 %v5084_v17  ;;  %v12678_v19 = vpop.f32.mrb[4].mxu1 }
  0xe3   :  { %v11057_v20 = vpop.f32.mrb[5].mxu1  ;;  %v5087_v21 = vsel %vm5071_vm2, %v12678_v19, -inf }
  0xe4   :  { %v12682_v22 = vpop.f32.mrb[6].mxu0 }
  0xe5   :  { %v5090_v23 = vsel %vm5071_vm2, %v12682_v22, -inf  ;;  %v11062_v24 = vpop.f32.mrb[7].mxu0 }
  0xe6   :  { %5088 = vmax.xlane.f32.xlu1 %v5087_v21  ;;  %5091 = vmax.xlane.f32.xlu0 %v5090_v23  ;;  %v12686_v25 = vpop.f32.mrb[6].mxu1 }
  0xe7   :  { %v11067_v26 = vpop.f32.mrb[7].mxu1  ;;  %v5093_v27 = vsel %vm5071_vm2, %v12686_v25, -inf }
  0xe8   :  { %v12690_v28 = vpop.f32.mrb[8].mxu0 }
  0xe9   :  { %v5096_v29 = vsel %vm5071_vm2, %v12690_v28, -inf  ;;  %v11072_v30 = vpop.f32.mrb[9].mxu0 }
  0xea   :  { %5094 = vmax.xlane.f32.xlu1 %v5093_v27  ;;  %5097 = vmax.xlane.f32.xlu0 %v5096_v29  ;;  %v12694_v31 = vpop.f32.mrb[8].mxu1 }
  0xeb   :  { %v11077_v32 = vpop.f32.mrb[9].mxu1  ;;  %v5099_v33 = vsel %vm5071_vm2, %v12694_v31, -inf }
  0xec   :  { %v12698_v34 = vpop.f32.mrb[10].mxu0 }
  0xed   :  { %v5102_v35 = vsel %vm5071_vm2, %v12698_v34, -inf  ;;  %v11082_v36 = vpop.f32.mrb[11].mxu0 }
  0xee   :  { %5100 = vmax.xlane.f32.xlu1 %v5099_v33  ;;  %5103 = vmax.xlane.f32.xlu0 %v5102_v35  ;;  %v12702_v37 = vpop.f32.mrb[10].mxu1 }
  0xef   :  { %v11087_v38 = vpop.f32.mrb[11].mxu1  ;;  %v5105_v39 = vsel %vm5071_vm2, %v12702_v37, -inf }
  0xf0   :  { %v12706_v40 = vpop.f32.mrb[12].mxu0 }
  0xf1   :  { %v5108_v41 = vsel %vm5071_vm2, %v12706_v40, -inf  ;;  %v11092_v42 = vpop.f32.mrb[13].mxu0 }
  0xf2   :  { %5106 = vmax.xlane.f32.xlu1 %v5105_v39  ;;  %5109 = vmax.xlane.f32.xlu0 %v5108_v41  ;;  %v12710_v43 = vpop.f32.mrb[12].mxu1 }
  0xf3   :  { %v11097_v44 = vpop.f32.mrb[13].mxu1  ;;  %v5111_v45 = vsel %vm5071_vm2, %v12710_v43, -inf }
  0xf4   :  { %v12714_v46 = vpop.f32.mrb[14].mxu0 }
  0xf5   :  { %v5114_v47 = vsel %vm5071_vm2, %v12714_v46, -inf  ;;  %v11102_v48 = vpop.f32.mrb[15].mxu0 }
  0xf6   :  { %5112 = vmax.xlane.f32.xlu1 %v5111_v45  ;;  %5115 = vmax.xlane.f32.xlu0 %v5114_v47  ;;  %v12718_v49 = vpop.f32.mrb[14].mxu1 }
  0xf7   :  { %v11107_v50 = vpop.f32.mrb[15].mxu1  ;;  %v5117_v51 = vsel %vm5071_vm2, %v12718_v49, -inf }
  0xf8   :  { %v12722_v52 = vpop.f32.mrb[16].mxu0 }
  0xf9   :  { %v5120_v53 = vsel %vm5071_vm2, %v12722_v52, -inf  ;;  %v11112_v54 = vpop.f32.mrb[17].mxu0 }
  0xfa   :  { %5118 = vmax.xlane.f32.xlu1 %v5117_v51  ;;  %5121 = vmax.xlane.f32.xlu0 %v5120_v53  ;;  %v12726_v55 = vpop.f32.mrb[16].mxu1 }
  0xfb   :  { %v11117_v56 = vpop.f32.mrb[17].mxu1  ;;  %v5123_v57 = vsel %vm5071_vm2, %v12726_v55, -inf }
  0xfc   :  { %v12730_v58 = vpop.f32.mrb[18].mxu0 }
  0xfd   :  { %v5126_v59 = vsel %vm5071_vm2, %v12730_v58, -inf  ;;  %v11122_v60 = vpop.f32.mrb[19].mxu0 }
  0xfe   :  { %5124 = vmax.xlane.f32.xlu1 %v5123_v57  ;;  %5127 = vmax.xlane.f32.xlu0 %v5126_v59  ;;  %v12734_v61 = vpop.f32.mrb[18].mxu1 }
  0xff   :  { %v11127_v62 = vpop.f32.mrb[19].mxu1  ;;  %v5129_v63 = vsel %vm5071_vm2, %v12734_v61, -inf }
 0x100   :  { %v12738_v1 = vpop.f32.mrb[20].mxu0 }
 0x101   :  { %v5132_v2 = vsel %vm5071_vm2, %v12738_v1, -inf  ;;  %v11132_v3 = vpop.f32.mrb[21].mxu0 }
 0x102   :  { %5130 = vmax.xlane.f32.xlu1 %v5129_v63  ;;  %5133 = vmax.xlane.f32.xlu0 %v5132_v2  ;;  %v12742_v5 = vpop.f32.mrb[20].mxu1 }
 0x103   :  { %v11137_v6 = vpop.f32.mrb[21].mxu1  ;;  %v5135_v8 = vsel %vm5071_vm2, %v12742_v5, -inf }
 0x104   :  { %v12746_v9 = vpop.f32.mrb[22].mxu0 }
 0x105   :  { %v5138_v11 = vsel %vm5071_vm2, %v12746_v9, -inf  ;;  %v11142_v12 = vpop.f32.mrb[23].mxu0 }
 0x106   :  { %5136 = vmax.xlane.f32.xlu1 %v5135_v8  ;;  %5139 = vmax.xlane.f32.xlu0 %v5138_v11  ;;  %v12750_v14 = vpop.f32.mrb[22].mxu1 }
 0x107   :  { %v11147_v15 = vpop.f32.mrb[23].mxu1  ;;  %v5141_v17 = vsel %vm5071_vm2, %v12750_v14, -inf }
 0x108   :  { %v12754_v18 = vpop.f32.mrb[24].mxu0 }
 0x109   :  { %v5144_v20 = vsel %vm5071_vm2, %v12754_v18, -inf  ;;  %v11152_v21 = vpop.f32.mrb[25].mxu0 }
 0x10a   :  { %5142 = vmax.xlane.f32.xlu1 %v5141_v17  ;;  %5145 = vmax.xlane.f32.xlu0 %v5144_v20  ;;  %v12758_v23 = vpop.f32.mrb[24].mxu1 }
 0x10b   :  { %v11157_v24 = vpop.f32.mrb[25].mxu1  ;;  %v5147_v26 = vsel %vm5071_vm2, %v12758_v23, -inf }
 0x10c   :  { %v12762_v27 = vpop.f32.mrb[26].mxu0 }
 0x10d   :  { %v5150_v29 = vsel %vm5071_vm2, %v12762_v27, -inf  ;;  %v11162_v30 = vpop.f32.mrb[27].mxu0 }
 0x10e   :  { %5148 = vmax.xlane.f32.xlu1 %v5147_v26  ;;  %5151 = vmax.xlane.f32.xlu0 %v5150_v29  ;;  %v12766_v32 = vpop.f32.mrb[26].mxu1 }
 0x10f   :  { %v11167_v33 = vpop.f32.mrb[27].mxu1  ;;  %v5153_v35 = vsel %vm5071_vm2, %v12766_v32, -inf }
 0x110   :  { %v12770_v36 = vpop.f32.mrb[28].mxu0 }
 0x111   :  { %v5156_v38 = vsel %vm5071_vm2, %v12770_v36, -inf  ;;  %v11172_v39 = vpop.f32.mrb[29].mxu0 }
 0x112   :  { %5154 = vmax.xlane.f32.xlu1 %v5153_v35  ;;  %5157 = vmax.xlane.f32.xlu0 %v5156_v38  ;;  %v12774_v41 = vpop.f32.mrb[28].mxu1 }
 0x113   :  { %v11177_v42 = vpop.f32.mrb[29].mxu1  ;;  %v5159_v44 = vsel %vm5071_vm2, %v12774_v41, -inf }
 0x114   :  { %v12778_v45 = vpop.f32.mrb[30].mxu0 }
 0x115   :  { %v5162_v47 = vsel %vm5071_vm2, %v12778_v45, -inf  ;;  %v11182_v48 = vpop.f32.mrb[31].mxu0 }
 0x116   :  { %5160 = vmax.xlane.f32.xlu1 %v5159_v44  ;;  %5163 = vmax.xlane.f32.xlu0 %v5162_v47  ;;  %v12782_v50 = vpop.f32.mrb[30].mxu1 }
 0x117   :  { %v11187_v51 = vpop.f32.mrb[31].mxu1  ;;  %v5165_v53 = vsel %vm5071_vm2, %v12782_v50, -inf }
 0x118   :  { %v12786_v54 = vpop.f32.mrb[32].mxu0 }
 0x119   :  { %v5168_v56 = vsel %vm5071_vm2, %v12786_v54, -inf  ;;  %v11192_v57 = vpop.f32.mrb[33].mxu0 }
 0x11a   :  { %5166 = vmax.xlane.f32.xlu1 %v5165_v53  ;;  %5169 = vmax.xlane.f32.xlu0 %v5168_v56  ;;  %v12790_v59 = vpop.f32.mrb[32].mxu1 }
 0x11b   :  { %v11197_v60 = vpop.f32.mrb[33].mxu1  ;;  %v5171_v62 = vsel %vm5071_vm2, %v12790_v59, -inf }
 0x11c   :  { %v12794_v63 = vpop.f32.mrb[34].mxu0 }
 0x11d   :  { %v5174_v2 = vsel %vm5071_vm2, %v12794_v63, -inf  ;;  %v11202_v3 = vpop.f32.mrb[35].mxu0 }
 0x11e   :  { %5172 = vmax.xlane.f32.xlu1 %v5171_v62  ;;  %5175 = vmax.xlane.f32.xlu0 %v5174_v2  ;;  %v12798_v6 = vpop.f32.mrb[34].mxu1 }
 0x11f   :  { %v11207_v8 = vpop.f32.mrb[35].mxu1  ;;  %v5177_v11 = vsel %vm5071_vm2, %v12798_v6, -inf }
 0x120   :  { %v12802_v12 = vpop.f32.mrb[36].mxu0 }
 0x121   :  { %v5180_v15 = vsel %vm5071_vm2, %v12802_v12, -inf  ;;  %v11212_v17 = vpop.f32.mrb[37].mxu0 }
 0x122   :  { %5178 = vmax.xlane.f32.xlu1 %v5177_v11  ;;  %5181 = vmax.xlane.f32.xlu0 %v5180_v15  ;;  %v12806_v20 = vpop.f32.mrb[36].mxu1 }
 0x123   :  { %v11217_v21 = vpop.f32.mrb[37].mxu1  ;;  %v5183_v24 = vsel %vm5071_vm2, %v12806_v20, -inf }
 0x124   :  { %v12810_v26 = vpop.f32.mrb[38].mxu0 }
 0x125   :  { %v5186_v29 = vsel %vm5071_vm2, %v12810_v26, -inf  ;;  %v11222_v30 = vpop.f32.mrb[39].mxu0 }
 0x126   :  { %5184 = vmax.xlane.f32.xlu1 %v5183_v24  ;;  %5187 = vmax.xlane.f32.xlu0 %v5186_v29  ;;  %v12814_v33 = vpop.f32.mrb[38].mxu1 }
 0x127   :  { %v11227_v35 = vpop.f32.mrb[39].mxu1  ;;  %v5189_v38 = vsel %vm5071_vm2, %v12814_v33, -inf }
 0x128   :  { %v12818_v39 = vpop.f32.mrb[40].mxu0 }
 0x129   :  { %v5192_v42 = vsel %vm5071_vm2, %v12818_v39, -inf  ;;  %v11232_v44 = vpop.f32.mrb[41].mxu0 }
 0x12a   :  { %5190 = vmax.xlane.f32.xlu1 %v5189_v38  ;;  %5193 = vmax.xlane.f32.xlu0 %v5192_v42  ;;  %v12822_v47 = vpop.f32.mrb[40].mxu1 }
 0x12b   :  { %v11237_v48 = vpop.f32.mrb[41].mxu1  ;;  %v5195_v51 = vsel %vm5071_vm2, %v12822_v47, -inf }
 0x12c   :  { %v12826_v53 = vpop.f32.mrb[42].mxu0 }
 0x12d   :  { %v5198_v56 = vsel %vm5071_vm2, %v12826_v53, -inf  ;;  %v11242_v57 = vpop.f32.mrb[43].mxu0 }
 0x12e   :  { %5196 = vmax.xlane.f32.xlu1 %v5195_v51  ;;  %5199 = vmax.xlane.f32.xlu0 %v5198_v56  ;;  %v12830_v60 = vpop.f32.mrb[42].mxu1 }
 0x12f   :  { %v11247_v62 = vpop.f32.mrb[43].mxu1  ;;  %v5201_v2 = vsel %vm5071_vm2, %v12830_v60, -inf }
 0x130   :  { %v12834_v3 = vpop.f32.mrb[44].mxu0 }
 0x131   :  { %v5204_v8 = vsel %vm5071_vm2, %v12834_v3, -inf  ;;  %v11252_v11 = vpop.f32.mrb[45].mxu0 }
 0x132   :  { %5202 = vmax.xlane.f32.xlu1 %v5201_v2  ;;  %5205 = vmax.xlane.f32.xlu0 %v5204_v8  ;;  %v12838_v15 = vpop.f32.mrb[44].mxu1 }
 0x133   :  { %v11257_v17 = vpop.f32.mrb[45].mxu1  ;;  %v5207_v21 = vsel %vm5071_vm2, %v12838_v15, -inf }
 0x134   :  { %v12842_v24 = vpop.f32.mrb[46].mxu0 }
 0x135   :  { %v5210_v29 = vsel %vm5071_vm2, %v12842_v24, -inf  ;;  %v11262_v30 = vpop.f32.mrb[47].mxu0 }
 0x136   :  { %5208 = vmax.xlane.f32.xlu1 %v5207_v21  ;;  %5211 = vmax.xlane.f32.xlu0 %v5210_v29  ;;  %v12846_v35 = vpop.f32.mrb[46].mxu1 }
 0x137   :  { %v11267_v38 = vpop.f32.mrb[47].mxu1  ;;  %v5213_v42 = vsel %vm5071_vm2, %v12846_v35, -inf }
 0x138   :  { %v12850_v44 = vpop.f32.mrb[48].mxu0 }
 0x139   :  { %v5216_v48 = vsel %vm5071_vm2, %v12850_v44, -inf  ;;  %v11272_v51 = vpop.f32.mrb[49].mxu0 }
 0x13a   :  { %5214 = vmax.xlane.f32.xlu1 %v5213_v42  ;;  %5217 = vmax.xlane.f32.xlu0 %v5216_v48  ;;  %v12854_v56 = vpop.f32.mrb[48].mxu1 }
 0x13b   :  { %v11277_v57 = vpop.f32.mrb[49].mxu1  ;;  %v5219_v62 = vsel %vm5071_vm2, %v12854_v56, -inf }
 0x13c   :  { %v12858_v2 = vpop.f32.mrb[50].mxu0 }
 0x13d   :  { %14027 = vst [vmem:[#allocation2_spill] sm:$0xff] %v12858_v2  ;;  %v5222_v8 = vsel %vm5071_vm2, %v12858_v2, -inf  ;;  %v11282_v11 = vpop.f32.mrb[51].mxu0 }
 0x13e   :  { %5220 = vmax.xlane.f32.xlu1 %v5219_v62  ;;  %5223 = vmax.xlane.f32.xlu0 %v5222_v8  ;;  %v12862_v17 = vpop.f32.mrb[50].mxu1 }
 0x13f   :  { %14028 = vst [vmem:[#allocation3_spill] sm:$0xff] %v12862_v17  ;;  %v11287_v21 = vpop.f32.mrb[51].mxu1  ;;  %v5225_v29 = vsel %vm5071_vm2, %v12862_v17, -inf }
 0x140   :  { %v12866_v30 = vpop.f32.mrb[52].mxu0 }
 0x141   :  { %14029 = vst [vmem:[#allocation4_spill] sm:$0xff] %v12866_v30  ;;  %v5228_v38 = vsel %vm5071_vm2, %v12866_v30, -inf  ;;  %v11292_v42 = vpop.f32.mrb[53].mxu0 }
 0x142   :  { %5226 = vmax.xlane.f32.xlu1 %v5225_v29  ;;  %5229 = vmax.xlane.f32.xlu0 %v5228_v38  ;;  %v12870_v48 = vpop.f32.mrb[52].mxu1 }
 0x143   :  { %14030 = vst [vmem:[#allocation5_spill] sm:$0xff] %v12870_v48  ;;  %v11297_v51 = vpop.f32.mrb[53].mxu1  ;;  %v5231_v57 = vsel %vm5071_vm2, %v12870_v48, -inf }
 0x144   :  { %v12874_v62 = vpop.f32.mrb[54].mxu0 }
 0x145   :  { %14031 = vst [vmem:[#allocation6_spill] sm:$0xff] %v12874_v62  ;;  %v5234_v8 = vsel %vm5071_vm2, %v12874_v62, -inf  ;;  %v11302_v11 = vpop.f32.mrb[55].mxu0 }
 0x146   :  { %5232 = vmax.xlane.f32.xlu1 %v5231_v57  ;;  %5235 = vmax.xlane.f32.xlu0 %v5234_v8  ;;  %v12878_v21 = vpop.f32.mrb[54].mxu1 }
 0x147   :  { %14032 = vst [vmem:[#allocation7_spill] sm:$0xff] %v12878_v21  ;;  %v11307_v0 = vpop.f32.mrb[55].mxu1  ;;  %v5237_v29 = vsel %vm5071_vm2, %v12878_v21, -inf }
 0x148   :  { %v12882_v38 = vpop.f32.mrb[56].mxu0 }
 0x149   :  { %14033 = vst [vmem:[#allocation8_spill] sm:$0xff] %v12882_v38  ;;  %v5240_v42 = vsel %vm5071_vm2, %v12882_v38, -inf  ;;  %v11312_v51 = vpop.f32.mrb[57].mxu0 }
 0x14a   :  { %5238 = vmax.xlane.f32.xlu1 %v5237_v29  ;;  %5241 = vmax.xlane.f32.xlu0 %v5240_v42  ;;  %v12886_v48 = vpop.f32.mrb[56].mxu1 }
 0x14b   :  { %14034 = vst [vmem:[#allocation9_spill] sm:$0xff] %v12886_v48  ;;  %v11317_v62 = vpop.f32.mrb[57].mxu1  ;;  %v5243_v57 = vsel %vm5071_vm2, %v12886_v48, -inf }
 0x14c   :  { %v12890_v8 = vpop.f32.mrb[58].mxu0 }
 0x14d   :  { %14035 = vst [vmem:[#allocation10_spill] sm:$0xff] %v12890_v8  ;;  %v5246_v0 = vsel %vm5071_vm2, %v12890_v8, -inf  ;;  %v11322_v11 = vpop.f32.mrb[59].mxu0 }
 0x14e   :  { %5244 = vmax.xlane.f32.xlu1 %v5243_v57  ;;  %5247 = vmax.xlane.f32.xlu0 %v5246_v0  ;;  %v12894_v21 = vpop.f32.mrb[58].mxu1 }
 0x14f   :  { %14036 = vst [vmem:[#allocation11_spill] sm:$0xff] %v12894_v21  ;;  %v11327_v38 = vpop.f32.mrb[59].mxu1  ;;  %v5249_v29 = vsel %vm5071_vm2, %v12894_v21, -inf }
 0x150   :  { %v12898_v42 = vpop.f32.mrb[60].mxu0 }
 0x151   :  { %14037 = vst [vmem:[#allocation12_spill] sm:$0xff] %v12898_v42  ;;  %v5252_v62 = vsel %vm5071_vm2, %v12898_v42, -inf  ;;  %v11332_v51 = vpop.f32.mrb[61].mxu0 }
 0x152   :  { %5250 = vmax.xlane.f32.xlu1 %v5249_v29  ;;  %5253 = vmax.xlane.f32.xlu0 %v5252_v62  ;;  %v12902_v48 = vpop.f32.mrb[60].mxu1 }
 0x153   :  { %14038 = vst [vmem:[#allocation13_spill] sm:$0xff] %v12902_v48  ;;  %v11337_v8 = vpop.f32.mrb[61].mxu1  ;;  %v5255_v57 = vsel %vm5071_vm2, %v12902_v48, -inf }
 0x154   :  { %v12906_v0 = vpop.f32.mrb[62].mxu0 }
 0x155   :  { %14039 = vst [vmem:[#allocation14_spill] sm:$0xff] %v12906_v0  ;;  %v5258_v38 = vsel %vm5071_vm2, %v12906_v0, -inf  ;;  %v11342_v11 = vpop.f32.mrb[63].mxu0 }
 0x156   :  { %5256 = vmax.xlane.f32.xlu1 %v5255_v57  ;;  %5259 = vmax.xlane.f32.xlu0 %v5258_v38  ;;  %v12910_v21 = vpop.f32.mrb[62].mxu1 }
 0x157   :  { %14040 = vst [vmem:[#allocation15_spill] sm:$0xff] %v12910_v21  ;;  %v11347_v42 = vpop.f32.mrb[63].mxu1  ;;  %v5261_v29 = vsel %vm5071_vm2, %v12910_v21, -inf }
 0x15a   :  { %5262 = vmax.xlane.f32.xlu1 %v5261_v29 }
 0x167   :  { %v5074_v62 = vpop.xlane.xlu0 %5073 }
 0x168   :  { %v5264_v8 = vsub.f32 %v12658_v4, %v5074_v62 }
 0x16a   :  { %v5328_v51 = vmul.f32 1.442695, %v5264_v8 }
 0x16b   :  { %v5077_v48 = vpop.xlane.xlu0 %5076  ;;  %v5080_v30 = vpop.xlane.xlu1 %5079 }
 0x16c   :  { %11670 = vpow2.f32 %v5328_v51  ;;  %v5265_v17 = vsub.f32 %v12662_v7, %v5077_v48  ;;  %v5266_v11 = vsub.f32 %v12666_v10, %v5080_v30 }
 0x16e   :  { %v5330_v57 = vmul.f32 1.442695, %v5265_v17  ;;  %v5332_v38 = vmul.f32 1.442695, %v5266_v11 }
 0x16f   :  { %v5083_v0 = vpop.xlane.xlu1 %5082  ;;  %v5086_v2 = vpop.xlane.xlu0 %5085 }
 0x170   :  { %11672 = vpow2.f32 %v5330_v57  ;;  %v5267_v42 = vsub.f32 %v12670_v13, %v5083_v0  ;;  %v5268_v29 = vsub.f32 %v12674_v16, %v5086_v2 }
 0x171   :  { %11674 = vpow2.f32 %v5332_v38 }
 0x172   :  { %v5334_v21 = vmul.f32 1.442695, %v5267_v42  ;;  %v5336_v4 = vmul.f32 1.442695, %v5268_v29 }
 0x173   :  { %v5089_v62 = vpop.xlane.xlu1 %5088  ;;  %v5092_v8 = vpop.xlane.xlu0 %5091 }
 0x174   :  { %11676 = vpow2.f32 %v5334_v21  ;;  %v5269_v51 = vsub.f32 %v12678_v19, %v5089_v62  ;;  %v5270_v7 = vsub.f32 %v12682_v22, %v5092_v8 }
 0x175   :  { %11678 = vpow2.f32 %v5336_v4 }
 0x176   :  { %v12921_v10 = vpop.eup %11670  ;;  %v5338_v17 = vmul.f32 1.442695, %v5269_v51  ;;  %v5340_v30 = vmul.f32 1.442695, %v5270_v7 }
 0x177   :  { %v5095_v48 = vpop.xlane.xlu1 %5094  ;;  %v5098_v11 = vpop.xlane.xlu0 %5097  ;;  %v5456_v13 = vsel %vm5071_vm2, %v12921_v10, 0.0 }
 0x178   :  { %11680 = vpow2.f32 %v5338_v17  ;;  %v5271_v16 = vsub.f32 %v12686_v25, %v5095_v48  ;;  %v5272_v2 = vsub.f32 %v12690_v28, %v5098_v11  ;;  %5457 = vadd.xlane.f32.xlu0 %v5456_v13 }
 0x179   :  { %11682 = vpow2.f32 %v5340_v30 }
 0x17a   :  { %v12927_v19 = vpop.eup %11672  ;;  %v5342_v22 = vmul.f32 1.442695, %v5271_v16  ;;  %v5344_v21 = vmul.f32 1.442695, %v5272_v2 }
 0x17b   :  { %v12929_v0 = vpop.eup %11674  ;;  %v5101_v57 = vpop.xlane.xlu1 %5100  ;;  %v5459_v42 = vsel %vm5071_vm2, %v12927_v19, 0.0 }
 0x17c   :  { %v5104_v38 = vpop.xlane.xlu0 %5103  ;;  %11684 = vpow2.f32 %v5342_v22  ;;  %v5273_v29 = vsub.f32 %v12694_v31, %v5101_v57  ;;  %5460 = vadd.xlane.f32.xlu1 %v5459_v42  ;;  %v5462_v28 = vsel %vm5071_vm2, %v12929_v0, 0.0 }
 0x17d   :  { %v5274_v25 = vsub.f32 %v12698_v34, %v5104_v38  ;;  %11686 = vpow2.f32 %v5344_v21  ;;  %5463 = vadd.xlane.f32.xlu0 %v5462_v28 }
 0x17e   :  { %v12937_v4 = vpop.eup %11676  ;;  %v5346_v62 = vmul.f32 1.442695, %v5273_v29 }
 0x17f   :  { %v5348_v8 = vmul.f32 1.442695, %v5274_v25  ;;  %v12939_v51 = vpop.eup %11678  ;;  %v5107_v7 = vpop.xlane.xlu1 %5106  ;;  %v5465_v30 = vsel %vm5071_vm2, %v12937_v4, 0.0 }
 0x180   :  { %v5110_v17 = vpop.xlane.xlu0 %5109  ;;  %11688 = vpow2.f32 %v5346_v62  ;;  %v5275_v31 = vsub.f32 %v12702_v37, %v5107_v7  ;;  %5466 = vadd.xlane.f32.xlu1 %v5465_v30  ;;  %v5468_v48 = vsel %vm5071_vm2, %v12939_v51, 0.0 }
 0x181   :  { %v5276_v34 = vsub.f32 %v12706_v40, %v5110_v17  ;;  %11690 = vpow2.f32 %v5348_v8  ;;  %5469 = vadd.xlane.f32.xlu0 %v5468_v48 }
 0x182   :  { %v12947_v11 = vpop.eup %11680  ;;  %v5350_v13 = vmul.f32 1.442695, %v5275_v31 }
 0x183   :  { %v5352_v16 = vmul.f32 1.442695, %v5276_v34  ;;  %v12949_v2 = vpop.eup %11682  ;;  %v5113_v22 = vpop.xlane.xlu1 %5112  ;;  %v5471_v57 = vsel %vm5071_vm2, %v12947_v11, 0.0 }
 0x184   :  { %v5116_v21 = vpop.xlane.xlu0 %5115  ;;  %11692 = vpow2.f32 %v5350_v13  ;;  %v5277_v37 = vsub.f32 %v12710_v43, %v5113_v22  ;;  %5472 = vadd.xlane.f32.xlu1 %v5471_v57  ;;  %v5474_v38 = vsel %vm5071_vm2, %v12949_v2, 0.0 }
 0x185   :  { %v5278_v40 = vsub.f32 %v12714_v46, %v5116_v21  ;;  %11694 = vpow2.f32 %v5352_v16  ;;  %5475 = vadd.xlane.f32.xlu0 %v5474_v38 }
 0x186   :  { %v12957_v42 = vpop.eup %11684  ;;  %v5354_v29 = vmul.f32 1.442695, %v5277_v37 }
 0x187   :  { %v5356_v25 = vmul.f32 1.442695, %v5278_v40  ;;  %v12959_v28 = vpop.eup %11686  ;;  %v5119_v62 = vpop.xlane.xlu1 %5118  ;;  %v5477_v7 = vsel %vm5071_vm2, %v12957_v42, 0.0 }
 0x188   :  { %v5122_v8 = vpop.xlane.xlu0 %5121  ;;  %11696 = vpow2.f32 %v5354_v29  ;;  %v5279_v43 = vsub.f32 %v12718_v49, %v5119_v62  ;;  %5478 = vadd.xlane.f32.xlu1 %v5477_v7  ;;  %v5480_v17 = vsel %vm5071_vm2, %v12959_v28, 0.0 }
 0x189   :  { %v5280_v46 = vsub.f32 %v12722_v52, %v5122_v8  ;;  %11698 = vpow2.f32 %v5356_v25  ;;  %5481 = vadd.xlane.f32.xlu0 %v5480_v17  ;;  %v5776_v17 = vld [vmem:[%s13998_s2] sm:$0xff] }
 0x18a   :  { %v12967_v30 = vpop.eup %11688  ;;  %v5358_v31 = vmul.f32 1.442695, %v5279_v43  ;;  %11349 = vmatpush3.msra.mxu0 %v5776_v17 }
 0x18b   :  { %v5360_v34 = vmul.f32 1.442695, %v5280_v46  ;;  %v12969_v48 = vpop.eup %11690  ;;  %v5125_v13 = vpop.xlane.xlu1 %5124  ;;  %v5483_v22 = vsel %vm5071_vm2, %v12967_v30, 0.0 }
 0x18c   :  { %v5128_v16 = vpop.xlane.xlu0 %5127  ;;  %11700 = vpow2.f32 %v5358_v31  ;;  %v5281_v49 = vsub.f32 %v12726_v55, %v5125_v13  ;;  %5484 = vadd.xlane.f32.xlu1 %v5483_v22  ;;  %v5486_v21 = vsel %vm5071_vm2, %v12969_v48, 0.0 }
 0x18d   :  { %v5282_v52 = vsub.f32 %v12730_v58, %v5128_v16  ;;  %11702 = vpow2.f32 %v5360_v34  ;;  %5487 = vadd.xlane.f32.xlu0 %v5486_v21 }
 0x18e   :  { %v12977_v57 = vpop.eup %11692  ;;  %v5362_v37 = vmul.f32 1.442695, %v5281_v49  ;;  %v14041_v49 = vmov 0.0  }
 0x18f   :  { %v5364_v40 = vmul.f32 1.442695, %v5282_v52  ;;  %v12979_v38 = vpop.eup %11694  ;;  %v5131_v29 = vpop.xlane.xlu1 %5130  ;;  %v5489_v62 = vsel %vm5071_vm2, %v12977_v57, 0.0  ;;  %11358 = vmatprep.subr.mxu0 %v14041_v49 }
 0x190   :  { %v5134_v25 = vpop.xlane.xlu0 %5133  ;;  %11704 = vpow2.f32 %v5362_v37  ;;  %v5283_v55 = vsub.f32 %v12734_v61, %v5131_v29  ;;  %5490 = vadd.xlane.f32.xlu1 %v5489_v62  ;;  %v5492_v8 = vsel %vm5071_vm2, %v12979_v38, 0.0 }
 0x191   :  { %v5284_v58 = vsub.f32 %v12738_v1, %v5134_v25  ;;  %11706 = vpow2.f32 %v5364_v40  ;;  %5493 = vadd.xlane.f32.xlu0 %v5492_v8  ;;  %v5777_v40 = vld [vmem:[%s13998_s2 + $0x8] sm:$0xff] }
 0x192   :  { %v12987_v7 = vpop.eup %11696  ;;  %v5366_v43 = vmul.f32 1.442695, %v5283_v55  ;;  %11354 = vmatpush3.msra.mxu1 %v5777_v40 }
 0x193   :  { %v5368_v46 = vmul.f32 1.442695, %v5284_v58  ;;  %v12992_v31 = vpop.eup %11698  ;;  %v5137_v34 = vpop.xlane.xlu1 %5136  ;;  %v5495_v1 = vsel %vm5071_vm2, %v12987_v7, 0.0  ;;  %11363 = vmatprep.subr.mxu1 %v14041_v49 }
 0x194   :  { %v5140_v61 = vpop.xlane.xlu0 %5139  ;;  %11708 = vpow2.f32 %v5366_v43  ;;  %v5285_v13 = vsub.f32 %v12742_v5, %v5137_v34  ;;  %5496 = vadd.xlane.f32.xlu1 %v5495_v1  ;;  %v5498_v22 = vsel %vm5071_vm2, %v12992_v31, 0.0 }
 0x195   :  { %v5286_v16 = vsub.f32 %v12746_v9, %v5140_v61  ;;  %11710 = vpow2.f32 %v5368_v46  ;;  %5499 = vadd.xlane.f32.xlu0 %v5498_v22 }
 0x196   :  { %v13001_v52 = vpop.eup %11700  ;;  %v5370_v21 = vmul.f32 1.442695, %v5285_v13 }
 0x197   :  { %v5372_v37 = vmul.f32 1.442695, %v5286_v16  ;;  %v13006_v29 = vpop.eup %11702  ;;  %v5143_v5 = vpop.xlane.xlu1 %5142  ;;  %v5501_v25 = vsel %vm5071_vm2, %v13001_v52, 0.0 }
 0x198   :  { %v5146_v9 = vpop.xlane.xlu0 %5145  ;;  %11712 = vpow2.f32 %v5370_v21  ;;  %v5287_v62 = vsub.f32 %v12750_v14, %v5143_v5  ;;  %5502 = vadd.xlane.f32.xlu1 %v5501_v25  ;;  %v5504_v58 = vsel %vm5071_vm2, %v13006_v29, 0.0 }
 0x199   :  { %v5288_v55 = vsub.f32 %v12754_v18, %v5146_v9  ;;  %11714 = vpow2.f32 %v5372_v37  ;;  %5505 = vadd.xlane.f32.xlu0 %v5504_v58 }
 0x19a   :  { %v13015_v8 = vpop.eup %11704  ;;  %v5374_v43 = vmul.f32 1.442695, %v5287_v62 }
 0x19b   :  { %v5376_v46 = vmul.f32 1.442695, %v5288_v55  ;;  %v13017_v17 = vpop.eup %11706  ;;  %v5149_v34 = vpop.xlane.xlu1 %5148  ;;  %v5507_v14 = vsel %vm5071_vm2, %v13015_v8, 0.0 }
 0x19c   :  { %v5152_v61 = vpop.xlane.xlu0 %5151  ;;  %11716 = vpow2.f32 %v5374_v43  ;;  %v5289_v18 = vsub.f32 %v12758_v23, %v5149_v34  ;;  %5508 = vadd.xlane.f32.xlu1 %v5507_v14  ;;  %v5510_v13 = vsel %vm5071_vm2, %v13017_v17, 0.0 }
 0x19d   :  { %v5290_v1 = vsub.f32 %v12762_v27, %v5152_v61  ;;  %11718 = vpow2.f32 %v5376_v46  ;;  %5511 = vadd.xlane.f32.xlu0 %v5510_v13 }
 0x19e   :  { %v13025_v16 = vpop.eup %11708  ;;  %v5378_v22 = vmul.f32 1.442695, %v5289_v18 }
 0x19f   :  { %v5380_v21 = vmul.f32 1.442695, %v5290_v1  ;;  %v13027_v37 = vpop.eup %11710  ;;  %v5155_v40 = vpop.xlane.xlu1 %5154  ;;  %v5513_v9 = vsel %vm5071_vm2, %v13025_v16, 0.0 }
 0x1a0   :  { %v5158_v5 = vpop.xlane.xlu0 %5157  ;;  %11720 = vpow2.f32 %v5378_v22  ;;  %v5291_v23 = vsub.f32 %v12766_v32, %v5155_v40  ;;  %5514 = vadd.xlane.f32.xlu1 %v5513_v9  ;;  %v5516_v25 = vsel %vm5071_vm2, %v13027_v37, 0.0 }
 0x1a1   :  { %v5292_v27 = vsub.f32 %v12770_v36, %v5158_v5  ;;  %11722 = vpow2.f32 %v5380_v21  ;;  %5517 = vadd.xlane.f32.xlu0 %v5516_v25 }
 0x1a2   :  { %v13035_v62 = vpop.eup %11712  ;;  %v5382_v55 = vmul.f32 1.442695, %v5291_v23 }
 0x1a3   :  { %v5384_v58 = vmul.f32 1.442695, %v5292_v27  ;;  %v13037_v43 = vpop.eup %11714  ;;  %v5161_v46 = vpop.xlane.xlu1 %5160  ;;  %v5519_v61 = vsel %vm5071_vm2, %v13035_v62, 0.0 }
 0x1a4   :  { %v5164_v34 = vpop.xlane.xlu0 %5163  ;;  %11724 = vpow2.f32 %v5382_v55  ;;  %v5293_v32 = vsub.f32 %v12774_v41, %v5161_v46  ;;  %5520 = vadd.xlane.f32.xlu1 %v5519_v61  ;;  %v5522_v14 = vsel %vm5071_vm2, %v13037_v43, 0.0 }
 0x1a5   :  { %v5294_v36 = vsub.f32 %v12778_v45, %v5164_v34  ;;  %11726 = vpow2.f32 %v5384_v58  ;;  %5523 = vadd.xlane.f32.xlu0 %v5522_v14 }
 0x1a6   :  { %v13045_v18 = vpop.eup %11716  ;;  %v5386_v1 = vmul.f32 1.442695, %v5293_v32 }
 0x1a7   :  { %v5388_v13 = vmul.f32 1.442695, %v5294_v36  ;;  %v13047_v22 = vpop.eup %11718  ;;  %v5167_v21 = vpop.xlane.xlu1 %5166  ;;  %v5525_v5 = vsel %vm5071_vm2, %v13045_v18, 0.0 }
 0x1a8   :  { %v5170_v40 = vpop.xlane.xlu0 %5169  ;;  %11728 = vpow2.f32 %v5386_v1  ;;  %v5295_v41 = vsub.f32 %v12782_v50, %v5167_v21  ;;  %5526 = vadd.xlane.f32.xlu1 %v5525_v5  ;;  %v5528_v9 = vsel %vm5071_vm2, %v13047_v22, 0.0 }
 0x1a9   :  { %v5296_v45 = vsub.f32 %v12786_v54, %v5170_v40  ;;  %11730 = vpow2.f32 %v5388_v13  ;;  %5529 = vadd.xlane.f32.xlu0 %v5528_v9 }
 0x1aa   :  { %v13055_v23 = vpop.eup %11720  ;;  %v5390_v27 = vmul.f32 1.442695, %v5295_v41 }
 0x1ab   :  { %v5392_v25 = vmul.f32 1.442695, %v5296_v45  ;;  %v13057_v55 = vpop.eup %11722  ;;  %v5173_v58 = vpop.xlane.xlu1 %5172  ;;  %v5531_v34 = vsel %vm5071_vm2, %v13055_v23, 0.0 }
 0x1ac   :  { %v5176_v46 = vpop.xlane.xlu0 %5175  ;;  %11732 = vpow2.f32 %v5390_v27  ;;  %v5297_v50 = vsub.f32 %v12790_v59, %v5173_v58  ;;  %5532 = vadd.xlane.f32.xlu1 %v5531_v34  ;;  %v5534_v61 = vsel %vm5071_vm2, %v13057_v55, 0.0 }
 0x1ad   :  { %v5298_v54 = vsub.f32 %v12794_v63, %v5176_v46  ;;  %11734 = vpow2.f32 %v5392_v25  ;;  %5535 = vadd.xlane.f32.xlu0 %v5534_v61 }
 0x1ae   :  { %v13065_v32 = vpop.eup %11724  ;;  %v5394_v36 = vmul.f32 1.442695, %v5297_v50 }
 0x1af   :  { %v5396_v14 = vmul.f32 1.442695, %v5298_v54  ;;  %v13067_v1 = vpop.eup %11726  ;;  %v5179_v13 = vpop.xlane.xlu1 %5178  ;;  %v5537_v40 = vsel %vm5071_vm2, %v13065_v32, 0.0 }
 0x1b0   :  { %v5182_v21 = vpop.xlane.xlu0 %5181  ;;  %11736 = vpow2.f32 %v5394_v36  ;;  %v5299_v59 = vsub.f32 %v12798_v6, %v5179_v13  ;;  %5538 = vadd.xlane.f32.xlu1 %v5537_v40  ;;  %v5540_v5 = vsel %vm5071_vm2, %v13067_v1, 0.0 }
 0x1b1   :  { %v5300_v63 = vsub.f32 %v12802_v12, %v5182_v21  ;;  %11738 = vpow2.f32 %v5396_v14  ;;  %5541 = vadd.xlane.f32.xlu0 %v5540_v5 }
 0x1b2   :  { %v13075_v41 = vpop.eup %11728  ;;  %v5398_v45 = vmul.f32 1.442695, %v5299_v59 }
 0x1b3   :  { %v5400_v9 = vmul.f32 1.442695, %v5300_v63  ;;  %v13077_v27 = vpop.eup %11730  ;;  %v5185_v25 = vpop.xlane.xlu1 %5184  ;;  %v5543_v46 = vsel %vm5071_vm2, %v13075_v41, 0.0 }
 0x1b4   :  { %v5188_v58 = vpop.xlane.xlu0 %5187  ;;  %11740 = vpow2.f32 %v5398_v45  ;;  %v5301_v6 = vsub.f32 %v12806_v20, %v5185_v25  ;;  %5544 = vadd.xlane.f32.xlu1 %v5543_v46  ;;  %v5546_v34 = vsel %vm5071_vm2, %v13077_v27, 0.0 }
 0x1b5   :  { %v5302_v12 = vsub.f32 %v12810_v26, %v5188_v58  ;;  %11742 = vpow2.f32 %v5400_v9  ;;  %5547 = vadd.xlane.f32.xlu0 %v5546_v34 }
 0x1b6   :  { %v13085_v50 = vpop.eup %11732  ;;  %v5402_v54 = vmul.f32 1.442695, %v5301_v6 }
 0x1b7   :  { %v5404_v61 = vmul.f32 1.442695, %v5302_v12  ;;  %v13087_v36 = vpop.eup %11734  ;;  %v5191_v14 = vpop.xlane.xlu1 %5190  ;;  %v5549_v21 = vsel %vm5071_vm2, %v13085_v50, 0.0 }
 0x1b8   :  { %v5194_v13 = vpop.xlane.xlu0 %5193  ;;  %11744 = vpow2.f32 %v5402_v54  ;;  %v5303_v20 = vsub.f32 %v12814_v33, %v5191_v14  ;;  %5550 = vadd.xlane.f32.xlu1 %v5549_v21  ;;  %v5552_v40 = vsel %vm5071_vm2, %v13087_v36, 0.0 }
 0x1b9   :  { %v5304_v26 = vsub.f32 %v12818_v39, %v5194_v13  ;;  %11746 = vpow2.f32 %v5404_v61  ;;  %5553 = vadd.xlane.f32.xlu0 %v5552_v40 }
 0x1ba   :  { %v13095_v59 = vpop.eup %11736  ;;  %v5406_v63 = vmul.f32 1.442695, %v5303_v20 }
 0x1bb   :  { %v5408_v5 = vmul.f32 1.442695, %v5304_v26  ;;  %v13097_v45 = vpop.eup %11738  ;;  %v5197_v9 = vpop.xlane.xlu1 %5196  ;;  %v5555_v58 = vsel %vm5071_vm2, %v13095_v59, 0.0 }
 0x1bc   :  { %v5200_v25 = vpop.xlane.xlu0 %5199  ;;  %11748 = vpow2.f32 %v5406_v63  ;;  %v5305_v33 = vsub.f32 %v12822_v47, %v5197_v9  ;;  %5556 = vadd.xlane.f32.xlu1 %v5555_v58  ;;  %v5558_v46 = vsel %vm5071_vm2, %v13097_v45, 0.0 }
 0x1bd   :  { %v5306_v39 = vsub.f32 %v12826_v53, %v5200_v25  ;;  %11750 = vpow2.f32 %v5408_v5  ;;  %5559 = vadd.xlane.f32.xlu0 %v5558_v46 }
 0x1be   :  { %v13105_v6 = vpop.eup %11740  ;;  %v5410_v12 = vmul.f32 1.442695, %v5305_v33 }
 0x1bf   :  { %v5412_v34 = vmul.f32 1.442695, %v5306_v39  ;;  %v13107_v54 = vpop.eup %11742  ;;  %v5203_v61 = vpop.xlane.xlu1 %5202  ;;  %v5561_v13 = vsel %vm5071_vm2, %v13105_v6, 0.0 }
 0x1c0   :  { %v5206_v14 = vpop.xlane.xlu0 %5205  ;;  %11752 = vpow2.f32 %v5410_v12  ;;  %v5307_v47 = vsub.f32 %v12830_v60, %v5203_v61  ;;  %5562 = vadd.xlane.f32.xlu1 %v5561_v13  ;;  %v5564_v21 = vsel %vm5071_vm2, %v13107_v54, 0.0 }
 0x1c1   :  { %v5308_v53 = vsub.f32 %v12834_v3, %v5206_v14  ;;  %11754 = vpow2.f32 %v5412_v34  ;;  %5565 = vadd.xlane.f32.xlu0 %v5564_v21 }
 0x1c2   :  { %v13115_v20 = vpop.eup %11744  ;;  %v5414_v26 = vmul.f32 1.442695, %v5307_v47 }
 0x1c3   :  { %v5416_v40 = vmul.f32 1.442695, %v5308_v53  ;;  %v13117_v63 = vpop.eup %11746  ;;  %v5209_v5 = vpop.xlane.xlu1 %5208  ;;  %v5567_v25 = vsel %vm5071_vm2, %v13115_v20, 0.0 }
 0x1c4   :  { %v5212_v9 = vpop.xlane.xlu0 %5211  ;;  %11756 = vpow2.f32 %v5414_v26  ;;  %v5309_v60 = vsub.f32 %v12838_v15, %v5209_v5  ;;  %5568 = vadd.xlane.f32.xlu1 %v5567_v25  ;;  %v5570_v58 = vsel %vm5071_vm2, %v13117_v63, 0.0 }
 0x1c5   :  { %v5310_v3 = vsub.f32 %v12842_v24, %v5212_v9  ;;  %11758 = vpow2.f32 %v5416_v40  ;;  %5571 = vadd.xlane.f32.xlu0 %v5570_v58 }
 0x1c6   :  { %v13125_v33 = vpop.eup %11748  ;;  %v5418_v39 = vmul.f32 1.442695, %v5309_v60 }
 0x1c7   :  { %v5420_v46 = vmul.f32 1.442695, %v5310_v3  ;;  %v13127_v12 = vpop.eup %11750  ;;  %v5215_v34 = vpop.xlane.xlu1 %5214  ;;  %v5573_v14 = vsel %vm5071_vm2, %v13125_v33, 0.0 }
 0x1c8   :  { %v5218_v61 = vpop.xlane.xlu0 %5217  ;;  %11760 = vpow2.f32 %v5418_v39  ;;  %v5311_v15 = vsub.f32 %v12846_v35, %v5215_v34  ;;  %5574 = vadd.xlane.f32.xlu1 %v5573_v14  ;;  %v5576_v13 = vsel %vm5071_vm2, %v13127_v12, 0.0 }
 0x1c9   :  { %v5312_v24 = vsub.f32 %v12850_v44, %v5218_v61  ;;  %11762 = vpow2.f32 %v5420_v46  ;;  %5577 = vadd.xlane.f32.xlu0 %v5576_v13  ;;  %v14042_v44 = vld [vmem:[#allocation2_spill] sm:$0xff] }
 0x1ca   :  { %v13135_v47 = vpop.eup %11752  ;;  %v5422_v53 = vmul.f32 1.442695, %v5311_v15 }
 0x1cb   :  { %v5424_v21 = vmul.f32 1.442695, %v5312_v24  ;;  %v13137_v26 = vpop.eup %11754  ;;  %v5221_v40 = vpop.xlane.xlu1 %5220  ;;  %v5579_v9 = vsel %vm5071_vm2, %v13135_v47, 0.0  ;;  %v14044_v24 = vld [vmem:[#allocation4_spill] sm:$0xff] }
 0x1cc   :  { %v5224_v5 = vpop.xlane.xlu0 %5223  ;;  %11764 = vpow2.f32 %v5422_v53  ;;  %v5313_v35 = vsub.f32 %v12854_v56, %v5221_v40  ;;  %5580 = vadd.xlane.f32.xlu1 %v5579_v9  ;;  %v5582_v60 = vsel %vm5071_vm2, %v13137_v26, 0.0  ;;  %v14043_v56 = vld [vmem:[#allocation3_spill] sm:$0xff] }
 0x1cd   :  { %v5314_v25 = vsub.f32 %v14042_v44, %v5224_v5  ;;  %11766 = vpow2.f32 %v5424_v21  ;;  %5583 = vadd.xlane.f32.xlu0 %v5582_v60  ;;  %v14047_v60 = vld [vmem:[#allocation5_spill] sm:$0xff] }
 0x1ce   :  { %v13145_v3 = vpop.eup %11756  ;;  %v5426_v58 = vmul.f32 1.442695, %v5313_v35 }
 0x1cf   :  { %v5428_v39 = vmul.f32 1.442695, %v5314_v25  ;;  %v13147_v46 = vpop.eup %11758  ;;  %v5227_v34 = vpop.xlane.xlu1 %5226  ;;  %v5585_v14 = vsel %vm5071_vm2, %v13145_v3, 0.0 }
 0x1d0   :  { %v5230_v61 = vpop.xlane.xlu0 %5229  ;;  %11768 = vpow2.f32 %v5426_v58  ;;  %v5315_v15 = vsub.f32 %v14043_v56, %v5227_v34  ;;  %5586 = vadd.xlane.f32.xlu1 %v5585_v14  ;;  %v5588_v53 = vsel %vm5071_vm2, %v13147_v46, 0.0  ;;  %v14048_v34 = vld [vmem:[#allocation6_spill] sm:$0xff] }
 0x1d1   :  { %v5316_v13 = vsub.f32 %v14044_v24, %v5230_v61  ;;  %11770 = vpow2.f32 %v5428_v39  ;;  %5589 = vadd.xlane.f32.xlu0 %v5588_v53 }
 0x1d2   :  { %v13155_v21 = vpop.eup %11760  ;;  %v5430_v40 = vmul.f32 1.442695, %v5315_v15 }
 0x1d3   :  { %14045 = vst [vmem:[#allocation2_spill] sm:$0xff] %v13155_v21  ;;  %v5432_v5 = vmul.f32 1.442695, %v5316_v13  ;;  %v13157_v9 = vpop.eup %11762  ;;  %v5233_v35 = vpop.xlane.xlu1 %5232  ;;  %v5591_v25 = vsel %vm5071_vm2, %v13155_v21, 0.0 }
 0x1d4   :  { %14046 = vst [vmem:[#allocation3_spill] sm:$0xff] %v13157_v9  ;;  %v5236_v44 = vpop.xlane.xlu0 %5235  ;;  %11772 = vpow2.f32 %v5430_v40  ;;  %v5317_v58 = vsub.f32 %v14047_v60, %v5233_v35  ;;  %5592 = vadd.xlane.f32.xlu1 %v5591_v25  ;;  %v5594_v39 = vsel %vm5071_vm2, %v13157_v9, 0.0  ;;  %v14051_v35 = vld [vmem:[#allocation7_spill] sm:$0xff]  ;;  %v14052_v25 = vld [vmem:[#allocation8_spill] sm:$0xff] }
 0x1d5   :  { %v5318_v61 = vsub.f32 %v14048_v34, %v5236_v44  ;;  %11774 = vpow2.f32 %v5432_v5  ;;  %5595 = vadd.xlane.f32.xlu0 %v5594_v39 }
 0x1d6   :  { %v13165_v14 = vpop.eup %11764  ;;  %v5434_v56 = vmul.f32 1.442695, %v5317_v58 }
 0x1d7   :  { %14049 = vst [vmem:[#allocation4_spill] sm:$0xff] %v13165_v14  ;;  %v5436_v15 = vmul.f32 1.442695, %v5318_v61  ;;  %v13167_v24 = vpop.eup %11766  ;;  %v5239_v13 = vpop.xlane.xlu1 %5238  ;;  %v5597_v40 = vsel %vm5071_vm2, %v13165_v14, 0.0 }
 0x1d8   :  { %14050 = vst [vmem:[#allocation5_spill] sm:$0xff] %v13167_v24  ;;  %v5242_v53 = vpop.xlane.xlu0 %5241  ;;  %11776 = vpow2.f32 %v5434_v56  ;;  %v5319_v44 = vsub.f32 %v14051_v35, %v5239_v13  ;;  %5598 = vadd.xlane.f32.xlu1 %v5597_v40  ;;  %v5600_v5 = vsel %vm5071_vm2, %v13167_v24, 0.0  ;;  %v14055_v13 = vld [vmem:[#allocation9_spill] sm:$0xff]  ;;  %v14056_v40 = vld [vmem:[#allocation10_spill] sm:$0xff] }
 0x1d9   :  { %v5320_v60 = vsub.f32 %v14052_v25, %v5242_v53  ;;  %11778 = vpow2.f32 %v5436_v15  ;;  %5601 = vadd.xlane.f32.xlu0 %v5600_v5 }
 0x1da   :  { %v13175_v58 = vpop.eup %11768  ;;  %v5438_v34 = vmul.f32 1.442695, %v5319_v44 }
 0x1db   :  { %14053 = vst [vmem:[#allocation6_spill] sm:$0xff] %v13175_v58  ;;  %v5440_v61 = vmul.f32 1.442695, %v5320_v60  ;;  %v13177_v39 = vpop.eup %11770  ;;  %v5245_v9 = vpop.xlane.xlu1 %5244  ;;  %v5603_v56 = vsel %vm5071_vm2, %v13175_v58, 0.0 }
 0x1dc   :  { %14054 = vst [vmem:[#allocation7_spill] sm:$0xff] %v13177_v39  ;;  %v5248_v21 = vpop.xlane.xlu0 %5247  ;;  %11780 = vpow2.f32 %v5438_v34  ;;  %v5321_v53 = vsub.f32 %v14055_v13, %v5245_v9  ;;  %5604 = vadd.xlane.f32.xlu1 %v5603_v56  ;;  %v5606_v15 = vsel %vm5071_vm2, %v13177_v39, 0.0  ;;  %v14058_v9 = vld [vmem:[#allocation11_spill] sm:$0xff]  ;;  %v14059_v56 = vld [vmem:[#allocation12_spill] sm:$0xff] }
 0x1dd   :  { %v5322_v35 = vsub.f32 %v14056_v40, %v5248_v21  ;;  %11782 = vpow2.f32 %v5440_v61  ;;  %5607 = vadd.xlane.f32.xlu0 %v5606_v15 }
 0x1de   :  { %v13185_v44 = vpop.eup %11772  ;;  %v5442_v25 = vmul.f32 1.442695, %v5321_v53 }
 0x1df   :  { %v5444_v60 = vmul.f32 1.442695, %v5322_v35  ;;  %v13187_v5 = vpop.eup %11774  ;;  %v5251_v24 = vpop.xlane.xlu1 %5250  ;;  %v5609_v34 = vsel %vm5071_vm2, %v13185_v44, 0.0 }
 0x1e0   :  { %14057 = vst [vmem:[#allocation8_spill] sm:$0xff] %v13187_v5  ;;  %v5254_v14 = vpop.xlane.xlu0 %5253  ;;  %11784 = vpow2.f32 %v5442_v25  ;;  %v5323_v21 = vsub.f32 %v14058_v9, %v5251_v24  ;;  %5610 = vadd.xlane.f32.xlu1 %v5609_v34  ;;  %v5612_v61 = vsel %vm5071_vm2, %v13187_v5, 0.0  ;;  %v14060_v24 = vld [vmem:[#allocation13_spill] sm:$0xff]  ;;  %v14061_v34 = vld [vmem:[#allocation14_spill] sm:$0xff] }
 0x1e1   :  { %v5324_v13 = vsub.f32 %v14059_v56, %v5254_v14  ;;  %11786 = vpow2.f32 %v5444_v60  ;;  %5613 = vadd.xlane.f32.xlu0 %v5612_v61 }
 0x1e2   :  { %v13195_v53 = vpop.eup %11776  ;;  %v5446_v40 = vmul.f32 1.442695, %v5323_v21 }
 0x1e3   :  { %v5448_v35 = vmul.f32 1.442695, %v5324_v13  ;;  %v13197_v15 = vpop.eup %11778  ;;  %v5257_v39 = vpop.xlane.xlu1 %5256  ;;  %v5615_v25 = vsel %vm5071_vm2, %v13195_v53, 0.0 }
 0x1e4   :  { %v5260_v58 = vpop.xlane.xlu0 %5259  ;;  %11788 = vpow2.f32 %v5446_v40  ;;  %v5325_v14 = vsub.f32 %v14060_v24, %v5257_v39  ;;  %5616 = vadd.xlane.f32.xlu1 %v5615_v25  ;;  %v5618_v60 = vsel %vm5071_vm2, %v13197_v15, 0.0  ;;  %v14062_v39 = vld [vmem:[#allocation15_spill] sm:$0xff] }
 0x1e5   :  { %v5326_v9 = vsub.f32 %v14061_v34, %v5260_v58  ;;  %11790 = vpow2.f32 %v5448_v35  ;;  %5619 = vadd.xlane.f32.xlu0 %v5618_v60 }
 0x1e6   :  { %v13205_v21 = vpop.eup %11780  ;;  %v5450_v56 = vmul.f32 1.442695, %v5325_v14 }
 0x1e7   :  { %v5452_v13 = vmul.f32 1.442695, %v5326_v9  ;;  %v13207_v61 = vpop.eup %11782  ;;  %v5263_v5 = vpop.xlane.xlu1 %5262  ;;  %v5621_v40 = vsel %vm5071_vm2, %v13205_v21, 0.0 }
 0x1e8   :  { %11792 = vpow2.f32 %v5450_v56  ;;  %v5327_v24 = vsub.f32 %v14062_v39, %v5263_v5  ;;  %5622 = vadd.xlane.f32.xlu1 %v5621_v40  ;;  %v5624_v58 = vsel %vm5071_vm2, %v13207_v61, 0.0 }
 0x1e9   :  { %11794 = vpow2.f32 %v5452_v13  ;;  %5625 = vadd.xlane.f32.xlu0 %v5624_v58 }
 0x1ea   :  { %v13214_v35 = vpop.eup %11784  ;;  %v5454_v25 = vmul.f32 1.442695, %v5327_v24 }
 0x1eb   :  { %v13216_v14 = vpop.eup %11786  ;;  %v5627_v34 = vsel %vm5071_vm2, %v13214_v35, 0.0 }
 0x1ec   :  { %11796 = vpow2.f32 %v5454_v25  ;;  %5628 = vadd.xlane.f32.xlu1 %v5627_v34  ;;  %v5630_v9 = vsel %vm5071_vm2, %v13216_v14, 0.0 }
 0x1ed   :  { %5631 = vadd.xlane.f32.xlu0 %v5630_v9 }
 0x1ee   :  { %v13222_v5 = vpop.eup %11788 }
 0x1ef   :  { %14063 = vst [vmem:[#allocation9_spill] sm:$0xff] %v13222_v5  ;;  %v13224_v60 = vpop.eup %11790  ;;  %v5633_v56 = vsel %vm5071_vm2, %v13222_v5, 0.0  ;;  %v5778_v5 = vld [vmem:[%s13998_s2 + $0x10] sm:$0xff] }
 0x1f0   :  { %14064 = vst [vmem:[#allocation10_spill] sm:$0xff] %v13224_v60  ;;  %5634 = vadd.xlane.f32.xlu1 %v5633_v56  ;;  %v5636_v13 = vsel %vm5071_vm2, %v13224_v60, 0.0 }
 0x1f1   :  { %5637 = vadd.xlane.f32.xlu0 %v5636_v13 }
 0x1f2   :  { %v13230_v40 = vpop.eup %11792 }
 0x1f3   :  { %14065 = vst [vmem:[#allocation11_spill] sm:$0xff] %v13230_v40  ;;  %v13232_v39 = vpop.eup %11794  ;;  %v5639_v24 = vsel %vm5071_vm2, %v13230_v40, 0.0 }
 0x1f4   :  { %14066 = vst [vmem:[#allocation12_spill] sm:$0xff] %v13232_v39  ;;  %5640 = vadd.xlane.f32.xlu1 %v5639_v24  ;;  %v5642_v58 = vsel %vm5071_vm2, %v13232_v39, 0.0 }
 0x1f5   :  { %5643 = vadd.xlane.f32.xlu0 %v5642_v58 }
 0x1f6   :  { %v13238_v25 = vpop.eup %11796 }
 0x1f7   :  { %v5645_v34 = vsel %vm5071_vm2, %v13238_v25, 0.0 }
 0x1f8   :  { %5646 = vadd.xlane.f32.xlu1 %v5645_v34 }
 0x205   :  { %v5458_v9 = vpop.xlane.xlu0 %5457 }
 0x206   :  { %11798 = vrcp.f32 %v5458_v9 }
 0x209   :  { %v5461_v56 = vpop.xlane.xlu1 %5460 }
 0x20a   :  { %11800 = vrcp.f32 %v5461_v56  ;;  %v5464_v13 = vpop.xlane.xlu0 %5463 }
 0x20b   :  { %11802 = vrcp.f32 %v5464_v13 }
 0x20d   :  { %v5467_v60 = vpop.xlane.xlu1 %5466 }
 0x20e   :  { %11804 = vrcp.f32 %v5467_v60  ;;  %v5470_v40 = vpop.xlane.xlu0 %5469 }
 0x20f   :  { %11806 = vrcp.f32 %v5470_v40 }
 0x210   :  { %v11799_v24 = vpop.eup %11798 }
 0x211   :  { %v5712_v39 = vmul.f32 %v11799_v24, %v12921_v10  ;;  %v5473_v58 = vpop.xlane.xlu1 %5472  ;;  %v5779_v10 = vld [vmem:[%s13998_s2 + $0x18] sm:$0xff] }
 0x212   :  { %11808 = vrcp.f32 %v5473_v58  ;;  %v5476_v34 = vpop.xlane.xlu0 %5475 }
 0x213   :  { %11810 = vrcp.f32 %v5476_v34  ;;  %11351 = vmatmul.mubr.msk.f32.vlgmr.msra.gmra.mrb[64].mxu0 %vm5071_vm2, %v5712_v39 }
 0x214   :  { %v11801_v9 = vpop.eup %11800  ;;  %11359 = vmatpush3.msra.mxu0 %v5778_v5  ;;  %11360 = vmatprep.mubr.msk.f32.mxu0 %vm11927_vm1, %v14041_v49  ;;  %v5780_v5 = vld [vmem:[%s13998_s2 + $0x20] sm:$0xff] }
 0x215   :  { %v11803_v60 = vpop.eup %11802  ;;  %v5713_v40 = vmul.f32 %v11801_v9, %v12927_v19  ;;  %v5479_v56 = vpop.xlane.xlu1 %5478  ;;  %11368 = vmatprep.subr.mxu0 %v14041_v49 }
 0x216   :  { %v5714_v13 = vmul.f32 %v11803_v60, %v12929_v0  ;;  %11812 = vrcp.f32 %v5479_v56  ;;  %v5482_v24 = vpop.xlane.xlu0 %5481  ;;  %v5781_v0 = vld [vmem:[%s13998_s2 + $0x28] sm:$0xff] }
 0x217   :  { %11814 = vrcp.f32 %v5482_v24  ;;  %11356 = vmatmul.mubr.msk.f32.vlgmr.msra.gmra.mrb[64].mxu1 %vm5071_vm2, %v5713_v40 }
 0x218   :  { %v11805_v39 = vpop.eup %11804  ;;  %11361 = vmatmul.mubr.msk.f32.vlgmr.msra.gmra.mrb[66].mxu0 %vm5071_vm2, %v5714_v13  ;;  %11364 = vmatpush3.msra.mxu1 %v5779_v10  ;;  %v5783_v13 = vld [vmem:[%s13998_s2 + $0x38] sm:$0xff] }
 0x219   :  { %v11807_v19 = vpop.eup %11806  ;;  %v5715_v58 = vmul.f32 %v11805_v39, %v12937_v4  ;;  %v5485_v34 = vpop.xlane.xlu1 %5484  ;;  %11365 = vmatprep.mubr.msk.f32.mxu1 %vm11927_vm1, %v14041_v49  ;;  %11369 = vmatpush3.msra.mxu0 %v5780_v5  ;;  %v5782_v4 = vld [vmem:[%s13998_s2 + $0x30] sm:$0xff] }
 0x21a   :  { %v5716_v9 = vmul.f32 %v11807_v19, %v12939_v51  ;;  %11816 = vrcp.f32 %v5485_v34  ;;  %v5488_v60 = vpop.xlane.xlu0 %5487  ;;  %11370 = vmatprep.mubr.msk.f32.mxu0 %vm11927_vm1, %v14041_v49  ;;  %11373 = vmatprep.subr.mxu1 %v14041_v49  ;;  %v5785_v34 = vld [vmem:[%s13998_s2 + $0x48] sm:$0xff] }
 0x21b   :  { %11818 = vrcp.f32 %v5488_v60  ;;  %11366 = vmatmul.mubr.msk.f32.vlgmr.msra.gmra.mrb[66].mxu1 %vm5071_vm2, %v5715_v58  ;;  %11378 = vmatprep.subr.mxu0 %v14041_v49 }
 0x21c   :  { %v11809_v40 = vpop.eup %11808  ;;  %11371 = vmatmul.mubr.msk.f32.vlgmr.msra.gmra.mrb[68].mxu0 %vm5071_vm2, %v5716_v9  ;;  %11374 = vmatpush3.msra.mxu1 %v5781_v0 }
 0x21d   :  { %v11811_v51 = vpop.eup %11810  ;;  %v5717_v56 = vmul.f32 %v11809_v40, %v12947_v11  ;;  %v5491_v10 = vpop.xlane.xlu1 %5490  ;;  %11375 = vmatprep.mubr.msk.f32.mxu1 %vm11927_vm1, %v14041_v49  ;;  %11379 = vmatpush3.msra.mxu0 %v5782_v4  ;;  %v5784_v11 = vld [vmem:[%s13998_s2 + $0x40] sm:$0xff] }
 0x21e   :  { %v5718_v24 = vmul.f32 %v11811_v51, %v12949_v2  ;;  %11820 = vrcp.f32 %v5491_v10  ;;  %v5494_v5 = vpop.xlane.xlu0 %5493  ;;  %11380 = vmatprep.mubr.msk.f32.mxu0 %vm11927_vm1, %v14041_v49  ;;  %11383 = vmatprep.subr.mxu1 %v14041_v49  ;;  %v5787_v51 = vld [vmem:[%s13998_s2 + $0x58] sm:$0xff] }
 0x21f   :  { %11822 = vrcp.f32 %v5494_v5  ;;  %11376 = vmatmul.mubr.msk.f32.vlgmr.msra.gmra.mrb[68].mxu1 %vm5071_vm2, %v5717_v56  ;;  %11388 = vmatprep.subr.mxu0 %v14041_v49 }
 0x220   :  { %v11813_v39 = vpop.eup %11812  ;;  %11381 = vmatmul.mubr.msk.f32.vlgmr.msra.gmra.mrb[70].mxu0 %vm5071_vm2, %v5718_v24  ;;  %11384 = vmatpush3.msra.mxu1 %v5783_v13 }
 0x221   :  { %v11815_v2 = vpop.eup %11814  ;;  %v5719_v19 = vmul.f32 %v11813_v39, %v12957_v42  ;;  %v5497_v58 = vpop.xlane.xlu1 %5496  ;;  %11385 = vmatprep.mubr.msk.f32.mxu1 %vm11927_vm1, %v14041_v49  ;;  %11389 = vmatpush3.msra.mxu0 %v5784_v11  ;;  %v5786_v42 = vld [vmem:[%s13998_s2 + $0x50] sm:$0xff]  ;;  %v5789_v11 = vld [vmem:[%s13998_s2 + $0x68] sm:$0xff] }
 0x222   :  { %v5720_v0 = vmul.f32 %v11815_v2, %v12959_v28  ;;  %11824 = vrcp.f32 %v5497_v58  ;;  %v5500_v9 = vpop.xlane.xlu0 %5499  ;;  %11390 = vmatprep.mubr.msk.f32.mxu0 %vm11927_vm1, %v14041_v49  ;;  %11393 = vmatprep.subr.mxu1 %v14041_v49 }
 0x223   :  { %11826 = vrcp.f32 %v5500_v9  ;;  %11386 = vmatmul.mubr.msk.f32.vlgmr.msra.gmra.mrb[70].mxu1 %vm5071_vm2, %v5719_v19  ;;  %11398 = vmatprep.subr.mxu0 %v14041_v49 }
 0x224   :  { %v11817_v60 = vpop.eup %11816  ;;  %11391 = vmatmul.mubr.msk.f32.vlgmr.msra.gmra.mrb[72].mxu0 %vm5071_vm2, %v5720_v0  ;;  %11394 = vmatpush3.msra.mxu1 %v5785_v34  ;;  %v5791_v0 = vld [vmem:[%s13998_s2 + $0x78] sm:$0xff] }
 0x225   :  { %v11819_v28 = vpop.eup %11818  ;;  %v5721_v4 = vmul.f32 %v11817_v60, %v12967_v30  ;;  %v5503_v40 = vpop.xlane.xlu1 %5502  ;;  %11395 = vmatprep.mubr.msk.f32.mxu1 %vm11927_vm1, %v14041_v49  ;;  %11399 = vmatpush3.msra.mxu0 %v5786_v42  ;;  %v5788_v30 = vld [vmem:[%s13998_s2 + $0x60] sm:$0xff] }
 0x226   :  { %v5722_v56 = vmul.f32 %v11819_v28, %v12969_v48  ;;  %11828 = vrcp.f32 %v5503_v40  ;;  %v5506_v10 = vpop.xlane.xlu0 %5505  ;;  %11400 = vmatprep.mubr.msk.f32.mxu0 %vm11927_vm1, %v14041_v49  ;;  %11403 = vmatprep.subr.mxu1 %v14041_v49  ;;  %v5793_v40 = vld [vmem:[%s13998_s2 + $0x88] sm:$0xff] }
 0x227   :  { %11830 = vrcp.f32 %v5506_v10  ;;  %11396 = vmatmul.mubr.msk.f32.vlgmr.msra.gmra.mrb[72].mxu1 %vm5071_vm2, %v5721_v4  ;;  %11408 = vmatprep.subr.mxu0 %v14041_v49 }
 0x228   :  { %v11821_v13 = vpop.eup %11820  ;;  %11401 = vmatmul.mubr.msk.f32.vlgmr.msra.gmra.mrb[74].mxu0 %vm5071_vm2, %v5722_v56  ;;  %11404 = vmatpush3.msra.mxu1 %v5787_v51 }
 0x229   :  { %v11823_v48 = vpop.eup %11822  ;;  %v5723_v24 = vmul.f32 %v11821_v13, %v12977_v57  ;;  %v5509_v5 = vpop.xlane.xlu1 %5508  ;;  %11405 = vmatprep.mubr.msk.f32.mxu1 %vm11927_vm1, %v14041_v49  ;;  %11409 = vmatpush3.msra.mxu0 %v5788_v30  ;;  %v5790_v57 = vld [vmem:[%s13998_s2 + $0x70] sm:$0xff] }
 0x22a   :  { %v5724_v39 = vmul.f32 %v11823_v48, %v12979_v38  ;;  %11832 = vrcp.f32 %v5509_v5  ;;  %v5512_v2 = vpop.xlane.xlu0 %5511  ;;  %11410 = vmatprep.mubr.msk.f32.mxu0 %vm11927_vm1, %v14041_v49  ;;  %11413 = vmatprep.subr.mxu1 %v14041_v49  ;;  %v5795_v48 = vld [vmem:[%s13998_s2 + $0x98] sm:$0xff] }
 0x22b   :  { %11834 = vrcp.f32 %v5512_v2  ;;  %11406 = vmatmul.mubr.msk.f32.vlgmr.msra.gmra.mrb[74].mxu1 %vm5071_vm2, %v5723_v24  ;;  %11418 = vmatprep.subr.mxu0 %v14041_v49 }
 0x22c   :  { %v11825_v19 = vpop.eup %11824  ;;  %11411 = vmatmul.mubr.msk.f32.vlgmr.msra.gmra.mrb[76].mxu0 %vm5071_vm2, %v5724_v39  ;;  %11414 = vmatpush3.msra.mxu1 %v5789_v11 }
 0x22d   :  { %v11827_v38 = vpop.eup %11826  ;;  %v5725_v58 = vmul.f32 %v11825_v19, %v12987_v7  ;;  %v5515_v34 = vpop.xlane.xlu1 %5514  ;;  %11415 = vmatprep.mubr.msk.f32.mxu1 %vm11927_vm1, %v14041_v49  ;;  %11419 = vmatpush3.msra.mxu0 %v5790_v57  ;;  %v5792_v7 = vld [vmem:[%s13998_s2 + $0x80] sm:$0xff]  ;;  %v5797_v57 = vld [vmem:[%s13998_s2 + $0xa8] sm:$0xff] }
 0x22e   :  { %v5726_v9 = vmul.f32 %v11827_v38, %v12992_v31  ;;  %11836 = vrcp.f32 %v5515_v34  ;;  %v5518_v42 = vpop.xlane.xlu0 %5517  ;;  %11420 = vmatprep.mubr.msk.f32.mxu0 %vm11927_vm1, %v14041_v49  ;;  %11423 = vmatprep.subr.mxu1 %v14041_v49 }
 0x22f   :  { %11838 = vrcp.f32 %v5518_v42  ;;  %11416 = vmatmul.mubr.msk.f32.vlgmr.msra.gmra.mrb[76].mxu1 %vm5071_vm2, %v5725_v58  ;;  %11428 = vmatprep.subr.mxu0 %v14041_v49 }
 0x230   :  { %v11829_v60 = vpop.eup %11828  ;;  %11421 = vmatmul.mubr.msk.f32.vlgmr.msra.gmra.mrb[78].mxu0 %vm5071_vm2, %v5726_v9  ;;  %11424 = vmatpush3.msra.mxu1 %v5791_v0  ;;  %v5799_v9 = vld [vmem:[%s13998_s2 + $0xb8] sm:$0xff] }
 0x231   :  { %v11831_v31 = vpop.eup %11830  ;;  %v5727_v28 = vmul.f32 %v11829_v60, %v13001_v52  ;;  %v5521_v4 = vpop.xlane.xlu1 %5520  ;;  %11425 = vmatprep.mubr.msk.f32.mxu1 %vm11927_vm1, %v14041_v49  ;;  %11429 = vmatpush3.msra.mxu0 %v5792_v7  ;;  %v5794_v52 = vld [vmem:[%s13998_s2 + $0x90] sm:$0xff] }
 0x232   :  { %v5728_v51 = vmul.f32 %v11831_v31, %v13006_v29  ;;  %11840 = vrcp.f32 %v5521_v4  ;;  %v5524_v56 = vpop.xlane.xlu0 %5523  ;;  %11430 = vmatprep.mubr.msk.f32.mxu0 %vm11927_vm1, %v14041_v49  ;;  %11433 = vmatprep.subr.mxu1 %v14041_v49  ;;  %v5801_v4 = vld [vmem:[%s13998_s2 + $0xc8] sm:$0xff] }
 0x233   :  { %11842 = vrcp.f32 %v5524_v56  ;;  %11426 = vmatmul.mubr.msk.f32.vlgmr.msra.gmra.mrb[78].mxu1 %vm5071_vm2, %v5727_v28  ;;  %11438 = vmatprep.subr.mxu0 %v14041_v49 }
 0x234   :  { %v11833_v10 = vpop.eup %11832  ;;  %11431 = vmatmul.mubr.msk.f32.vlgmr.msra.gmra.mrb[80].mxu0 %vm5071_vm2, %v5728_v51  ;;  %11434 = vmatpush3.msra.mxu1 %v5793_v40 }
 0x235   :  { %v11835_v29 = vpop.eup %11834  ;;  %v5729_v30 = vmul.f32 %v11833_v10, %v13015_v8  ;;  %v5527_v13 = vpop.xlane.xlu1 %5526  ;;  %11435 = vmatprep.mubr.msk.f32.mxu1 %vm11927_vm1, %v14041_v49  ;;  %11439 = vmatpush3.msra.mxu0 %v5794_v52  ;;  %v5796_v8 = vld [vmem:[%s13998_s2 + $0xa0] sm:$0xff] }
 0x236   :  { %v5730_v24 = vmul.f32 %v11835_v29, %v13017_v17  ;;  %11844 = vrcp.f32 %v5527_v13  ;;  %v5530_v5 = vpop.xlane.xlu0 %5529  ;;  %11440 = vmatprep.mubr.msk.f32.mxu0 %vm11927_vm1, %v14041_v49  ;;  %11443 = vmatprep.subr.mxu1 %v14041_v49  ;;  %v5803_v29 = vld [vmem:[%s13998_s2 + $0xd8] sm:$0xff] }
 0x237   :  { %11846 = vrcp.f32 %v5530_v5  ;;  %11436 = vmatmul.mubr.msk.f32.vlgmr.msra.gmra.mrb[80].mxu1 %vm5071_vm2, %v5729_v30  ;;  %11448 = vmatprep.subr.mxu0 %v14041_v49 }
 0x238   :  { %v11837_v11 = vpop.eup %11836  ;;  %11441 = vmatmul.mubr.msk.f32.vlgmr.msra.gmra.mrb[82].mxu0 %vm5071_vm2, %v5730_v24  ;;  %11444 = vmatpush3.msra.mxu1 %v5795_v48 }
 0x239   :  { %v11839_v17 = vpop.eup %11838  ;;  %v5731_v39 = vmul.f32 %v11837_v11, %v13025_v16  ;;  %v5533_v2 = vpop.xlane.xlu1 %5532  ;;  %11445 = vmatprep.mubr.msk.f32.mxu1 %vm11927_vm1, %v14041_v49  ;;  %11449 = vmatpush3.msra.mxu0 %v5796_v8  ;;  %v5798_v16 = vld [vmem:[%s13998_s2 + $0xb0] sm:$0xff]  ;;  %v5805_v8 = vld [vmem:[%s13998_s2 + $0xe8] sm:$0xff] }
 0x23a   :  { %v5732_v19 = vmul.f32 %v11839_v17, %v13027_v37  ;;  %11848 = vrcp.f32 %v5533_v2  ;;  %v5536_v38 = vpop.xlane.xlu0 %5535  ;;  %11450 = vmatprep.mubr.msk.f32.mxu0 %vm11927_vm1, %v14041_v49  ;;  %11453 = vmatprep.subr.mxu1 %v14041_v49 }
 0x23b   :  { %11850 = vrcp.f32 %v5536_v38  ;;  %11446 = vmatmul.mubr.msk.f32.vlgmr.msra.gmra.mrb[82].mxu1 %vm5071_vm2, %v5731_v39  ;;  %11458 = vmatprep.subr.mxu0 %v14041_v49 }
 0x23c   :  { %v11841_v58 = vpop.eup %11840  ;;  %11451 = vmatmul.mubr.msk.f32.vlgmr.msra.gmra.mrb[84].mxu0 %vm5071_vm2, %v5732_v19  ;;  %11454 = vmatpush3.msra.mxu1 %v5797_v57  ;;  %v5807_v19 = vld [vmem:[%s13998_s2 + $0xf8] sm:$0xff] }
 0x23d   :  { %v11843_v37 = vpop.eup %11842  ;;  %v5733_v34 = vmul.f32 %v11841_v58, %v13035_v62  ;;  %v5539_v0 = vpop.xlane.xlu1 %5538  ;;  %11455 = vmatprep.mubr.msk.f32.mxu1 %vm11927_vm1, %v14041_v49  ;;  %11459 = vmatpush3.msra.mxu0 %v5798_v16  ;;  %v5800_v62 = vld [vmem:[%s13998_s2 + $0xc0] sm:$0xff] }
 0x23e   :  { %v5734_v42 = vmul.f32 %v11843_v37, %v13037_v43  ;;  %11852 = vrcp.f32 %v5539_v0  ;;  %v5542_v7 = vpop.xlane.xlu0 %5541  ;;  %11460 = vmatprep.mubr.msk.f32.mxu0 %vm11927_vm1, %v14041_v49  ;;  %11463 = vmatprep.subr.mxu1 %v14041_v49  ;;  %v5809_v0 = vld [vmem:[%s13998_s2 + $0x108] sm:$0xff] }
 0x23f   :  { %11854 = vrcp.f32 %v5542_v7  ;;  %11456 = vmatmul.mubr.msk.f32.vlgmr.msra.gmra.mrb[84].mxu1 %vm5071_vm2, %v5733_v34  ;;  %11468 = vmatprep.subr.mxu0 %v14041_v49 }
 0x240   :  { %v11845_v60 = vpop.eup %11844  ;;  %11461 = vmatmul.mubr.msk.f32.vlgmr.msra.gmra.mrb[86].mxu0 %vm5071_vm2, %v5734_v42  ;;  %11464 = vmatpush3.msra.mxu1 %v5799_v9 }
 0x241   :  { %v11847_v43 = vpop.eup %11846  ;;  %v5735_v31 = vmul.f32 %v11845_v60, %v13045_v18  ;;  %v5545_v28 = vpop.xlane.xlu1 %5544  ;;  %11465 = vmatprep.mubr.msk.f32.mxu1 %vm11927_vm1, %v14041_v49  ;;  %11469 = vmatpush3.msra.mxu0 %v5800_v62  ;;  %v5802_v18 = vld [vmem:[%s13998_s2 + $0xd0] sm:$0xff] }
 0x242   :  { %v5736_v40 = vmul.f32 %v11847_v43, %v13047_v22  ;;  %11856 = vrcp.f32 %v5545_v28  ;;  %v5548_v51 = vpop.xlane.xlu0 %5547  ;;  %11470 = vmatprep.mubr.msk.f32.mxu0 %vm11927_vm1, %v14041_v49  ;;  %11473 = vmatprep.subr.mxu1 %v14041_v49  ;;  %v5811_v43 = vld [vmem:[%s13998_s2 + $0x118] sm:$0xff] }
 0x243   :  { %11858 = vrcp.f32 %v5548_v51  ;;  %11466 = vmatmul.mubr.msk.f32.vlgmr.msra.gmra.mrb[86].mxu1 %vm5071_vm2, %v5735_v31  ;;  %11478 = vmatprep.subr.mxu0 %v14041_v49 }
 0x244   :  { %v11849_v56 = vpop.eup %11848  ;;  %11471 = vmatmul.mubr.msk.f32.vlgmr.msra.gmra.mrb[88].mxu0 %vm5071_vm2, %v5736_v40  ;;  %11474 = vmatpush3.msra.mxu1 %v5801_v4 }
 0x245   :  { %v11851_v22 = vpop.eup %11850  ;;  %v5737_v52 = vmul.f32 %v11849_v56, %v13055_v23  ;;  %v5551_v10 = vpop.xlane.xlu1 %5550  ;;  %11475 = vmatprep.mubr.msk.f32.mxu1 %vm11927_vm1, %v14041_v49  ;;  %11479 = vmatpush3.msra.mxu0 %v5802_v18  ;;  %v5804_v23 = vld [vmem:[%s13998_s2 + $0xe0] sm:$0xff]  ;;  %v5813_v18 = vld [vmem:[%s13998_s2 + $0x128] sm:$0xff] }
 0x246   :  { %v5738_v30 = vmul.f32 %v11851_v22, %v13057_v55  ;;  %11860 = vrcp.f32 %v5551_v10  ;;  %v5554_v13 = vpop.xlane.xlu0 %5553  ;;  %11480 = vmatprep.mubr.msk.f32.mxu0 %vm11927_vm1, %v14041_v49  ;;  %11483 = vmatprep.subr.mxu1 %v14041_v49 }
 0x247   :  { %11862 = vrcp.f32 %v5554_v13  ;;  %11476 = vmatmul.mubr.msk.f32.vlgmr.msra.gmra.mrb[88].mxu1 %vm5071_vm2, %v5737_v52  ;;  %11488 = vmatprep.subr.mxu0 %v14041_v49 }
 0x248   :  { %v11853_v48 = vpop.eup %11852  ;;  %11481 = vmatmul.mubr.msk.f32.vlgmr.msra.gmra.mrb[90].mxu0 %vm5071_vm2, %v5738_v30  ;;  %11484 = vmatpush3.msra.mxu1 %v5803_v29  ;;  %v5815_v30 = vld [vmem:[%s13998_s2 + $0x138] sm:$0xff] }
 0x249   :  { %v11855_v55 = vpop.eup %11854  ;;  %v5739_v24 = vmul.f32 %v11853_v48, %v13065_v32  ;;  %v5557_v5 = vpop.xlane.xlu1 %5556  ;;  %11485 = vmatprep.mubr.msk.f32.mxu1 %vm11927_vm1, %v14041_v49  ;;  %11489 = vmatpush3.msra.mxu0 %v5804_v23  ;;  %v5806_v32 = vld [vmem:[%s13998_s2 + $0xf0] sm:$0xff] }
 0x24a   :  { %v5740_v11 = vmul.f32 %v11855_v55, %v13067_v1  ;;  %11864 = vrcp.f32 %v5557_v5  ;;  %v5560_v17 = vpop.xlane.xlu0 %5559  ;;  %11490 = vmatprep.mubr.msk.f32.mxu0 %vm11927_vm1, %v14041_v49  ;;  %11493 = vmatprep.subr.mxu1 %v14041_v49  ;;  %v5817_v5 = vld [vmem:[%s13998_s2 + $0x148] sm:$0xff] }
 0x24b   :  { %11866 = vrcp.f32 %v5560_v17  ;;  %11486 = vmatmul.mubr.msk.f32.vlgmr.msra.gmra.mrb[90].mxu1 %vm5071_vm2, %v5739_v24  ;;  %11498 = vmatprep.subr.mxu0 %v14041_v49 }
 0x24c   :  { %v11857_v39 = vpop.eup %11856  ;;  %11491 = vmatmul.mubr.msk.f32.vlgmr.msra.gmra.mrb[92].mxu0 %vm5071_vm2, %v5740_v11  ;;  %11494 = vmatpush3.msra.mxu1 %v5805_v8 }
 0x24d   :  { %v11859_v1 = vpop.eup %11858  ;;  %v5741_v2 = vmul.f32 %v11857_v39, %v13075_v41  ;;  %v5563_v57 = vpop.xlane.xlu1 %5562  ;;  %11495 = vmatprep.mubr.msk.f32.mxu1 %vm11927_vm1, %v14041_v49  ;;  %11499 = vmatpush3.msra.mxu0 %v5806_v32  ;;  %v5808_v41 = vld [vmem:[%s13998_s2 + $0x100] sm:$0xff] }
 0x24e   :  { %v5742_v38 = vmul.f32 %v11859_v1, %v13077_v27  ;;  %11868 = vrcp.f32 %v5563_v57  ;;  %v5566_v16 = vpop.xlane.xlu0 %5565  ;;  %11500 = vmatprep.mubr.msk.f32.mxu0 %vm11927_vm1, %v14041_v49  ;;  %11503 = vmatprep.subr.mxu1 %v14041_v49  ;;  %v5819_v1 = vld [vmem:[%s13998_s2 + $0x158] sm:$0xff] }
 0x24f   :  { %11870 = vrcp.f32 %v5566_v16  ;;  %11496 = vmatmul.mubr.msk.f32.vlgmr.msra.gmra.mrb[92].mxu1 %vm5071_vm2, %v5741_v2  ;;  %11508 = vmatprep.subr.mxu0 %v14041_v49 }
 0x250   :  { %v11861_v58 = vpop.eup %11860  ;;  %11501 = vmatmul.mubr.msk.f32.vlgmr.msra.gmra.mrb[94].mxu0 %vm5071_vm2, %v5742_v38  ;;  %11504 = vmatpush3.msra.mxu1 %v5807_v19 }
 0x251   :  { %v11863_v27 = vpop.eup %11862  ;;  %v5743_v37 = vmul.f32 %v11861_v58, %v13085_v50  ;;  %v5569_v34 = vpop.xlane.xlu1 %5568  ;;  %11505 = vmatprep.mubr.msk.f32.mxu1 %vm11927_vm1, %v14041_v49  ;;  %11509 = vmatpush3.msra.mxu0 %v5808_v41  ;;  %v5810_v50 = vld [vmem:[%s13998_s2 + $0x110] sm:$0xff]  ;;  %v5821_v41 = vld [vmem:[%s13998_s2 + $0x168] sm:$0xff] }
 0x252   :  { %v5744_v9 = vmul.f32 %v11863_v27, %v13087_v36  ;;  %11872 = vrcp.f32 %v5569_v34  ;;  %v5572_v42 = vpop.xlane.xlu0 %5571  ;;  %11510 = vmatprep.mubr.msk.f32.mxu0 %vm11927_vm1, %v14041_v49  ;;  %11513 = vmatprep.subr.mxu1 %v14041_v49  ;;  %v14067_v34 = vld [vmem:[#allocation2_spill] sm:$0xff] }
 0x253   :  { %11874 = vrcp.f32 %v5572_v42  ;;  %11506 = vmatmul.mubr.msk.f32.vlgmr.msra.gmra.mrb[94].mxu1 %vm5071_vm2, %v5743_v37  ;;  %11518 = vmatprep.subr.mxu0 %v14041_v49  ;;  %v5823_v42 = vld [vmem:[%s13998_s2 + $0x178] sm:$0xff] }
 0x254   :  { %v11865_v7 = vpop.eup %11864  ;;  %11511 = vmatmul.mubr.msk.f32.vlgmr.msra.gmra.mrb[96].mxu0 %vm5071_vm2, %v5744_v9  ;;  %11514 = vmatpush3.msra.mxu1 %v5809_v0 }
 0x255   :  { %v11867_v36 = vpop.eup %11866  ;;  %v5745_v62 = vmul.f32 %v11865_v7, %v13095_v59  ;;  %v5575_v60 = vpop.xlane.xlu1 %5574  ;;  %11515 = vmatprep.mubr.msk.f32.mxu1 %vm11927_vm1, %v14041_v49  ;;  %11519 = vmatpush3.msra.mxu0 %v5810_v50  ;;  %v5812_v59 = vld [vmem:[%s13998_s2 + $0x120] sm:$0xff]  ;;  %v14068_v50 = vld [vmem:[#allocation3_spill] sm:$0xff] }
 0x256   :  { %v5746_v31 = vmul.f32 %v11867_v36, %v13097_v45  ;;  %11876 = vrcp.f32 %v5575_v60  ;;  %v5578_v28 = vpop.xlane.xlu0 %5577  ;;  %11520 = vmatprep.mubr.msk.f32.mxu0 %vm11927_vm1, %v14041_v49  ;;  %11523 = vmatprep.subr.mxu1 %v14041_v49 }
 0x257   :  { %11878 = vrcp.f32 %v5578_v28  ;;  %11516 = vmatmul.mubr.msk.f32.vlgmr.msra.gmra.mrb[96].mxu1 %vm5071_vm2, %v5745_v62  ;;  %11528 = vmatprep.subr.mxu0 %v14041_v49  ;;  %v5824_v62 = vld [vmem:[%s13998_s2 + $0x180] sm:$0xff] }
 0x258   :  { %v11869_v4 = vpop.eup %11868  ;;  %11521 = vmatmul.mubr.msk.f32.vlgmr.msra.gmra.mrb[98].mxu0 %vm5071_vm2, %v5746_v31  ;;  %11524 = vmatpush3.msra.mxu1 %v5811_v43  ;;  %v14069_v31 = vld [vmem:[#allocation4_spill] sm:$0xff] }
 0x259   :  { %v11871_v45 = vpop.eup %11870  ;;  %v5747_v40 = vmul.f32 %v11869_v4, %v13105_v6  ;;  %v5581_v51 = vpop.xlane.xlu1 %5580  ;;  %11525 = vmatprep.mubr.msk.f32.mxu1 %vm11927_vm1, %v14041_v49  ;;  %11529 = vmatpush3.msra.mxu0 %v5812_v59  ;;  %v5814_v6 = vld [vmem:[%s13998_s2 + $0x130] sm:$0xff]  ;;  %v5825_v4 = vld [vmem:[%s13998_s2 + $0x188] sm:$0xff] }
 0x25a   :  { %v5748_v56 = vmul.f32 %v11871_v45, %v13107_v54  ;;  %11880 = vrcp.f32 %v5581_v51  ;;  %v5584_v22 = vpop.xlane.xlu0 %5583  ;;  %11530 = vmatprep.mubr.msk.f32.mxu0 %vm11927_vm1, %v14041_v49  ;;  %11533 = vmatprep.subr.mxu1 %v14041_v49  ;;  %v14070_v45 = vld [vmem:[#allocation5_spill] sm:$0xff] }
 0x25b   :  { %11882 = vrcp.f32 %v5584_v22  ;;  %11526 = vmatmul.mubr.msk.f32.vlgmr.msra.gmra.mrb[98].mxu1 %vm5071_vm2, %v5747_v40  ;;  %11538 = vmatprep.subr.mxu0 %v14041_v49 }
 0x25c   :  { %v11873_v52 = vpop.eup %11872  ;;  %11531 = vmatmul.mubr.msk.f32.vlgmr.msra.gmra.mrb[100].mxu0 %vm5071_vm2, %v5748_v56  ;;  %11534 = vmatpush3.msra.mxu1 %v5813_v18  ;;  %v5826_v18 = vld [vmem:[%s13998_s2 + $0x190] sm:$0xff] }
 0x25d   :  { %v11875_v54 = vpop.eup %11874  ;;  %v5749_v10 = vmul.f32 %v11873_v52, %v13115_v20  ;;  %v5587_v29 = vpop.xlane.xlu1 %5586  ;;  %11535 = vmatprep.mubr.msk.f32.mxu1 %vm11927_vm1, %v14041_v49  ;;  %11539 = vmatpush3.msra.mxu0 %v5814_v6  ;;  %v5816_v20 = vld [vmem:[%s13998_s2 + $0x140] sm:$0xff] }
 0x25e   :  { %v5750_v13 = vmul.f32 %v11875_v54, %v13117_v63  ;;  %11884 = vrcp.f32 %v5587_v29  ;;  %v5590_v23 = vpop.xlane.xlu0 %5589  ;;  %11540 = vmatprep.mubr.msk.f32.mxu0 %vm11927_vm1, %v14041_v49  ;;  %11543 = vmatprep.subr.mxu1 %v14041_v49  ;;  %v14071_v6 = vld [vmem:[#allocation6_spill] sm:$0xff]  ;;  %v14072_v29 = vld [vmem:[#allocation7_spill] sm:$0xff] }
 0x25f   :  { %11886 = vrcp.f32 %v5590_v23  ;;  %11536 = vmatmul.mubr.msk.f32.vlgmr.msra.gmra.mrb[100].mxu1 %vm5071_vm2, %v5749_v10  ;;  %11548 = vmatprep.subr.mxu0 %v14041_v49  ;;  %v5827_v10 = vld [vmem:[%s13998_s2 + $0x198] sm:$0xff]  ;;  %v5828_v23 = vld [vmem:[%s13998_s2 + $0x1a0] sm:$0xff] }
 0x260   :  { %v11877_v48 = vpop.eup %11876  ;;  %11541 = vmatmul.mubr.msk.f32.vlgmr.msra.gmra.mrb[102].mxu0 %vm5071_vm2, %v5750_v13  ;;  %11544 = vmatpush3.msra.mxu1 %v5815_v30 }
 0x261   :  { %v11879_v63 = vpop.eup %11878  ;;  %v5751_v55 = vmul.f32 %v11877_v48, %v13125_v33  ;;  %v5593_v24 = vpop.xlane.xlu1 %5592  ;;  %11545 = vmatprep.mubr.msk.f32.mxu1 %vm11927_vm1, %v14041_v49  ;;  %11549 = vmatpush3.msra.mxu0 %v5816_v20  ;;  %v5818_v33 = vld [vmem:[%s13998_s2 + $0x150] sm:$0xff] }
 0x262   :  { %v5752_v8 = vmul.f32 %v11879_v63, %v13127_v12  ;;  %11888 = vrcp.f32 %v5593_v24  ;;  %v5596_v11 = vpop.xlane.xlu0 %5595  ;;  %11550 = vmatprep.mubr.msk.f32.mxu0 %vm11927_vm1, %v14041_v49  ;;  %11553 = vmatprep.subr.mxu1 %v14041_v49  ;;  %v5829_v24 = vld [vmem:[%s13998_s2 + $0x1a8] sm:$0xff] }
 0x263   :  { %11890 = vrcp.f32 %v5596_v11  ;;  %11546 = vmatmul.mubr.msk.f32.vlgmr.msra.gmra.mrb[102].mxu1 %vm5071_vm2, %v5751_v55  ;;  %11558 = vmatprep.subr.mxu0 %v14041_v49 }
 0x264   :  { %v11881_v17 = vpop.eup %11880  ;;  %11551 = vmatmul.mubr.msk.f32.vlgmr.msra.gmra.mrb[104].mxu0 %vm5071_vm2, %v5752_v8  ;;  %11554 = vmatpush3.msra.mxu1 %v5817_v5  ;;  %v14073_v5 = vld [vmem:[#allocation8_spill] sm:$0xff] }
 0x265   :  { %v11883_v12 = vpop.eup %11882  ;;  %v5753_v32 = vmul.f32 %v11881_v17, %v13135_v47  ;;  %v5599_v39 = vpop.xlane.xlu1 %5598  ;;  %11555 = vmatprep.mubr.msk.f32.mxu1 %vm11927_vm1, %v14041_v49  ;;  %11559 = vmatpush3.msra.mxu0 %v5818_v33  ;;  %v5820_v47 = vld [vmem:[%s13998_s2 + $0x160] sm:$0xff] }
 0x266   :  { %v5754_v2 = vmul.f32 %v11883_v12, %v13137_v26  ;;  %11892 = vrcp.f32 %v5599_v39  ;;  %v5602_v57 = vpop.xlane.xlu0 %5601  ;;  %11560 = vmatprep.mubr.msk.f32.mxu0 %vm11927_vm1, %v14041_v49  ;;  %11563 = vmatprep.subr.mxu1 %v14041_v49  ;;  %v5831_v39 = vld [vmem:[%s13998_s2 + $0x1b8] sm:$0xff] }
 0x267   :  { %11894 = vrcp.f32 %v5602_v57  ;;  %11556 = vmatmul.mubr.msk.f32.vlgmr.msra.gmra.mrb[104].mxu1 %vm5071_vm2, %v5753_v32  ;;  %11568 = vmatprep.subr.mxu0 %v14041_v49 }
 0x268   :  { %v11885_v19 = vpop.eup %11884  ;;  %11561 = vmatmul.mubr.msk.f32.vlgmr.msra.gmra.mrb[106].mxu0 %vm5071_vm2, %v5754_v2  ;;  %11564 = vmatpush3.msra.mxu1 %v5819_v1 }
 0x269   :  { %v11887_v26 = vpop.eup %11886  ;;  %v5755_v38 = vmul.f32 %v11885_v19, %v13145_v3  ;;  %v5605_v16 = vpop.xlane.xlu1 %5604  ;;  %11565 = vmatprep.mubr.msk.f32.mxu1 %vm11927_vm1, %v14041_v49  ;;  %11569 = vmatpush3.msra.mxu0 %v5820_v47  ;;  %v5822_v3 = vld [vmem:[%s13998_s2 + $0x170] sm:$0xff] }
 0x26a   :  { %v5756_v58 = vmul.f32 %v11887_v26, %v13147_v46  ;;  %11896 = vrcp.f32 %v5605_v16  ;;  %v5608_v27 = vpop.xlane.xlu0 %5607  ;;  %11570 = vmatprep.mubr.msk.f32.mxu0 %vm11927_vm1, %v14041_v49  ;;  %11573 = vmatprep.subr.mxu1 %v14041_v49  ;;  %v5833_v26 = vld [vmem:[%s13998_s2 + $0x1c8] sm:$0xff] }
 0x26b   :  { %11898 = vrcp.f32 %v5608_v27  ;;  %11566 = vmatmul.mubr.msk.f32.vlgmr.msra.gmra.mrb[106].mxu1 %vm5071_vm2, %v5755_v38  ;;  %11578 = vmatprep.subr.mxu0 %v14041_v49 }
 0x26c   :  { %v11889_v37 = vpop.eup %11888  ;;  %11571 = vmatmul.mubr.msk.f32.vlgmr.msra.gmra.mrb[108].mxu0 %vm5071_vm2, %v5756_v58  ;;  %11574 = vmatpush3.msra.mxu1 %v5821_v41 }
 0x26d   :  { %v11891_v46 = vpop.eup %11890  ;;  %v5757_v0 = vmul.f32 %v11889_v37, %v14067_v34  ;;  %v5611_v9 = vpop.xlane.xlu1 %5610  ;;  %11575 = vmatprep.mubr.msk.f32.mxu1 %vm11927_vm1, %v14041_v49  ;;  %11579 = vmatpush3.msra.mxu0 %v5822_v3  ;;  %v5835_v3 = vld [vmem:[%s13998_s2 + $0x1d8] sm:$0xff] }
 0x26e   :  { %v5758_v7 = vmul.f32 %v11891_v46, %v14068_v50  ;;  %11900 = vrcp.f32 %v5611_v9  ;;  %v5614_v36 = vpop.xlane.xlu0 %5613  ;;  %11580 = vmatprep.mubr.msk.f32.mxu0 %vm11927_vm1, %v14041_v49  ;;  %11583 = vmatprep.subr.mxu1 %v14041_v49  ;;  %v5837_v9 = vld [vmem:[%s13998_s2 + $0x1e8] sm:$0xff] }
 0x26f   :  { %11902 = vrcp.f32 %v5614_v36  ;;  %11576 = vmatmul.mubr.msk.f32.vlgmr.msra.gmra.mrb[108].mxu1 %vm5071_vm2, %v5757_v0  ;;  %11588 = vmatprep.subr.mxu0 %v14041_v49 }
 0x270   :  { %v11893_v60 = vpop.eup %11892  ;;  %11581 = vmatmul.mubr.msk.f32.vlgmr.msra.gmra.mrb[110].mxu0 %vm5071_vm2, %v5758_v7  ;;  %11584 = vmatpush3.msra.mxu1 %v5823_v42  ;;  %v14075_v42 = vld [vmem:[#allocation10_spill] sm:$0xff]  ;;  %v5838_v7 = vld [vmem:[%s13998_s2 + $0x1f0] sm:$0xff] }
 0x271   :  { %v11895_v43 = vpop.eup %11894  ;;  %v5759_v28 = vmul.f32 %v11893_v60, %v14069_v31  ;;  %v5617_v59 = vpop.xlane.xlu1 %5616  ;;  %11585 = vmatprep.mubr.msk.f32.mxu1 %vm11927_vm1, %v14041_v49  ;;  %11589 = vmatpush3.msra.mxu0 %v5824_v62  ;;  %v14076_v60 = vld [vmem:[#allocation11_spill] sm:$0xff]  ;;  %v5839_v31 = vld [vmem:[%s13998_s2 + $0x1f8] sm:$0xff] }
 0x272   :  { %v5760_v40 = vmul.f32 %v11895_v43, %v14070_v45  ;;  %11904 = vrcp.f32 %v5617_v59  ;;  %v5620_v51 = vpop.xlane.xlu0 %5619  ;;  %11590 = vmatprep.mubr.msk.f32.mxu0 %vm11927_vm1, %v14041_v49  ;;  %11593 = vmatprep.subr.mxu1 %v14041_v49 }
 0x273   :  { %11906 = vrcp.f32 %v5620_v51  ;;  %11586 = vmatmul.mubr.msk.f32.vlgmr.msra.gmra.mrb[110].mxu1 %vm5071_vm2, %v5759_v28  ;;  %11598 = vmatprep.subr.mxu0 %v14041_v49  ;;  %v14077_v28 = vld [vmem:[#allocation12_spill] sm:$0xff] }
 0x274   :  { %v11897_v56 = vpop.eup %11896  ;;  %11591 = vmatmul.mubr.msk.f32.vlgmr.msra.gmra.mrb[112].mxu0 %vm5071_vm2, %v5760_v40  ;;  %11594 = vmatpush3.msra.mxu1 %v5825_v4 }
 0x275   :  { %v11899_v22 = vpop.eup %11898  ;;  %v5761_v52 = vmul.f32 %v11897_v56, %v14071_v6  ;;  %v5623_v54 = vpop.xlane.xlu1 %5622  ;;  %11595 = vmatprep.mubr.msk.f32.mxu1 %vm11927_vm1, %v14041_v49  ;;  %11599 = vmatpush3.msra.mxu0 %v5826_v18 }
 0x276   :  { %v5762_v30 = vmul.f32 %v11899_v22, %v14072_v29  ;;  %11908 = vrcp.f32 %v5623_v54  ;;  %v5626_v13 = vpop.xlane.xlu0 %5625  ;;  %11600 = vmatprep.mubr.msk.f32.mxu0 %vm11927_vm1, %v14041_v49  ;;  %11603 = vmatprep.subr.mxu1 %v14041_v49 }
 0x277   :  { %11910 = vrcp.f32 %v5626_v13  ;;  %11596 = vmatmul.mubr.msk.f32.vlgmr.msra.gmra.mrb[112].mxu1 %vm5071_vm2, %v5761_v52  ;;  %11608 = vmatprep.subr.mxu0 %v14041_v49 }
 0x278   :  { %v11901_v20 = vpop.eup %11900  ;;  %11601 = vmatmul.mubr.msk.f32.vlgmr.msra.gmra.mrb[114].mxu0 %vm5071_vm2, %v5762_v30  ;;  %11604 = vmatpush3.msra.mxu1 %v5827_v10 }
 0x279   :  { %v11903_v48 = vpop.eup %11902  ;;  %v5763_v63 = vmul.f32 %v11901_v20, %v13185_v44  ;;  %v5629_v55 = vpop.xlane.xlu1 %5628  ;;  %11605 = vmatprep.mubr.msk.f32.mxu1 %vm11927_vm1, %v14041_v49  ;;  %11609 = vmatpush3.msra.mxu0 %v5828_v23  ;;  %v5830_v44 = vld [vmem:[%s13998_s2 + $0x1b0] sm:$0xff] }
 0x27a   :  { %v5764_v8 = vmul.f32 %v11903_v48, %v14073_v5  ;;  %11912 = vrcp.f32 %v5629_v55  ;;  %v5632_v11 = vpop.xlane.xlu0 %5631  ;;  %11610 = vmatprep.mubr.msk.f32.mxu0 %vm11927_vm1, %v14041_v49  ;;  %11613 = vmatprep.subr.mxu1 %v14041_v49 }
 0x27b   :  { %11914 = vrcp.f32 %v5632_v11  ;;  %11606 = vmatmul.mubr.msk.f32.vlgmr.msra.gmra.mrb[114].mxu1 %vm5071_vm2, %v5763_v63  ;;  %11618 = vmatprep.subr.mxu0 %v14041_v49 }
 0x27c   :  { %v11905_v33 = vpop.eup %11904  ;;  %11611 = vmatmul.mubr.msk.f32.vlgmr.msra.gmra.mrb[116].mxu0 %vm5071_vm2, %v5764_v8  ;;  %11614 = vmatpush3.msra.mxu1 %v5829_v24 }
 0x27d   :  { %v11907_v17 = vpop.eup %11906  ;;  %v5765_v12 = vmul.f32 %v11905_v33, %v13195_v53  ;;  %v5635_v32 = vpop.xlane.xlu1 %5634  ;;  %11615 = vmatprep.mubr.msk.f32.mxu1 %vm11927_vm1, %v14041_v49  ;;  %11619 = vmatpush3.msra.mxu0 %v5830_v44  ;;  %v5832_v53 = vld [vmem:[%s13998_s2 + $0x1c0] sm:$0xff] }
 0x27e   :  { %v5766_v1 = vmul.f32 %v11907_v17, %v13197_v15  ;;  %11916 = vrcp.f32 %v5635_v32  ;;  %v5638_v2 = vpop.xlane.xlu0 %5637  ;;  %11620 = vmatprep.mubr.msk.f32.mxu0 %vm11927_vm1, %v14041_v49  ;;  %11623 = vmatprep.subr.mxu1 %v14041_v49 }
 0x27f   :  { %11918 = vrcp.f32 %v5638_v2  ;;  %11616 = vmatmul.mubr.msk.f32.vlgmr.msra.gmra.mrb[116].mxu1 %vm5071_vm2, %v5765_v12  ;;  %11628 = vmatprep.subr.mxu0 %v14041_v49 }
 0x280   :  { %v11909_v57 = vpop.eup %11908  ;;  %11621 = vmatmul.mubr.msk.f32.vlgmr.msra.gmra.mrb[118].mxu0 %vm5071_vm2, %v5766_v1  ;;  %11624 = vmatpush3.msra.mxu1 %v5831_v39 }
 0x281   :  { %v11911_v15 = vpop.eup %11910  ;;  %v5767_v47 = vmul.f32 %v11909_v57, %v13205_v21  ;;  %v5641_v19 = vpop.xlane.xlu1 %5640  ;;  %11625 = vmatprep.mubr.msk.f32.mxu1 %vm11927_vm1, %v14041_v49  ;;  %11629 = vmatpush3.msra.mxu0 %v5832_v53  ;;  %v5834_v21 = vld [vmem:[%s13998_s2 + $0x1d0] sm:$0xff] }
 0x282   :  { %v5768_v38 = vmul.f32 %v11911_v15, %v13207_v61  ;;  %11920 = vrcp.f32 %v5641_v19  ;;  %v5644_v16 = vpop.xlane.xlu0 %5643  ;;  %11630 = vmatprep.mubr.msk.f32.mxu0 %vm11927_vm1, %v14041_v49  ;;  %11633 = vmatprep.subr.mxu1 %v14041_v49 }
 0x283   :  { %11922 = vrcp.f32 %v5644_v16  ;;  %11626 = vmatmul.mubr.msk.f32.vlgmr.msra.gmra.mrb[118].mxu1 %vm5071_vm2, %v5767_v47  ;;  %11638 = vmatprep.subr.mxu0 %v14041_v49 }
 0x284   :  { %v11913_v41 = vpop.eup %11912  ;;  %11631 = vmatmul.mubr.msk.f32.vlgmr.msra.gmra.mrb[120].mxu0 %vm5071_vm2, %v5768_v38  ;;  %11634 = vmatpush3.msra.mxu1 %v5833_v26 }
 0x285   :  { %v11915_v61 = vpop.eup %11914  ;;  %v5769_v58 = vmul.f32 %v11913_v41, %v13214_v35  ;;  %v5647_v27 = vpop.xlane.xlu1 %5646  ;;  %11635 = vmatprep.mubr.msk.f32.mxu1 %vm11927_vm1, %v14041_v49  ;;  %11639 = vmatpush3.msra.mxu0 %v5834_v21  ;;  %v5836_v35 = vld [vmem:[%s13998_s2 + $0x1e0] sm:$0xff] }
 0x286   :  { %v5770_v37 = vmul.f32 %v11915_v61, %v13216_v14  ;;  %11924 = vrcp.f32 %v5647_v27  ;;  %11640 = vmatprep.mubr.msk.f32.mxu0 %vm11927_vm1, %v14041_v49  ;;  %11643 = vmatprep.subr.mxu1 %v14041_v49  ;;  %v14074_v14 = vld [vmem:[#allocation9_spill] sm:$0xff] }
 0x287   :  { %11636 = vmatmul.mubr.msk.f32.vlgmr.msra.gmra.mrb[120].mxu1 %vm5071_vm2, %v5769_v58  ;;  %11648 = vmatprep.subr.mxu0 %v14041_v49 }
 0x288   :  { %v11917_v46 = vpop.eup %11916  ;;  %11641 = vmatmul.mubr.msk.f32.vlgmr.msra.gmra.mrb[122].mxu0 %vm5071_vm2, %v5770_v37  ;;  %11644 = vmatpush3.msra.mxu1 %v5835_v3 }
 0x289   :  { %v11919_v34 = vpop.eup %11918  ;;  %v5771_v0 = vmul.f32 %v11917_v46, %v14074_v14  ;;  %11645 = vmatprep.mubr.msk.f32.mxu1 %vm11927_vm1, %v14041_v49  ;;  %11649 = vmatpush3.msra.mxu0 %v5836_v35 }
 0x28a   :  { %v5772_v50 = vmul.f32 %v11919_v34, %v14075_v42  ;;  %11650 = vmatprep.mubr.msk.f32.mxu0 %vm11927_vm1, %v14041_v49  ;;  %11653 = vmatprep.subr.mxu1 %v14041_v49 }
 0x28b   :  { %11646 = vmatmul.mubr.msk.f32.vlgmr.msra.gmra.mrb[122].mxu1 %vm5071_vm2, %v5771_v0  ;;  %11658 = vmatprep.subr.mxu0 %v14041_v49 }
 0x28c   :  { %v11921_v36 = vpop.eup %11920  ;;  %11651 = vmatmul.mubr.msk.f32.vlgmr.msra.gmra.mrb[124].mxu0 %vm5071_vm2, %v5772_v50  ;;  %11654 = vmatpush3.msra.mxu1 %v5837_v9 }
 0x28d   :  { %v11923_v62 = vpop.eup %11922  ;;  %v5773_v43 = vmul.f32 %v11921_v36, %v14076_v60  ;;  %11655 = vmatprep.mubr.msk.f32.mxu1 %vm11927_vm1, %v14041_v49  ;;  %11659 = vmatpush3.msra.mxu0 %v5838_v7 }
 0x28e   :  { %v5774_v59 = vmul.f32 %v11923_v62, %v14077_v28  ;;  %11660 = vmatprep.mubr.msk.f32.mxu0 %vm11927_vm1, %v14041_v49  ;;  %11663 = vmatprep.subr.mxu1 %v14041_v49 }
 0x28f   :  { %11656 = vmatmul.mubr.msk.f32.vlgmr.msra.gmra.mrb[124].mxu1 %vm5071_vm2, %v5773_v43 }
 0x290   :  { %v11925_v4 = vpop.eup %11924  ;;  %11661 = vmatmul.mubr.msk.f32.vlgmr.msra.gmra.mrb[126].mxu0 %vm5071_vm2, %v5774_v59  ;;  %11664 = vmatpush3.msra.mxu1 %v5839_v31 }
 0x291   :  { %v5775_v45 = vmul.f32 %v11925_v4, %v13238_v25  ;;  %11665 = vmatprep.mubr.msk.f32.mxu1 %vm11927_vm1, %v14041_v49 }
 0x293   :  { %11666 = vmatmul.mubr.msk.f32.vlgmr.msra.gmra.mrb[126].mxu1 %vm5071_vm2, %v5775_v45 }
 0x2e6   :  { %v5909_v40 = vpop.f32.mrb[64].mxu0 }
 0x2e7   :  { %10512 = vst.msk [vmem:[%s13999_s3] sm:$0xff] %vm206_vm0, %v5909_v40  ;;  %v11352_v51 = vpop.f32.mrb[65].mxu0 }
 0x2ea   :  { %v5982_v18 = vpop.f32.mrb[64].mxu1 }
 0x2eb   :  { %10513 = vst.msk [vmem:[%s13999_s3 + $0x8] sm:$0xff] %vm206_vm0, %v5982_v18  ;;  %v6055_v56 = vpop.f32.mrb[66].mxu0  ;;  %v11357_v25 = vpop.f32.mrb[65].mxu1 }
 0x2ec   :  { %10514 = vst.msk [vmem:[%s13999_s3 + $0x10] sm:$0xff] %vm206_vm0, %v6055_v56  ;;  %v11362_v49 = vpop.f32.mrb[67].mxu0 }
 0x2ee   :  { %v6128_v22 = vpop.f32.mrb[66].mxu1 }
 0x2ef   :  { %10515 = vst.msk [vmem:[%s13999_s3 + $0x18] sm:$0xff] %vm206_vm0, %v6128_v22  ;;  %v6201_v6 = vpop.f32.mrb[68].mxu0  ;;  %v11367_v52 = vpop.f32.mrb[67].mxu1 }
 0x2f0   :  { %10516 = vst.msk [vmem:[%s13999_s3 + $0x20] sm:$0xff] %vm206_vm0, %v6201_v6  ;;  %v11372_v54 = vpop.f32.mrb[69].mxu0 }
 0x2f2   :  { %v6274_v10 = vpop.f32.mrb[68].mxu1 }
 0x2f3   :  { %10517 = vst.msk [vmem:[%s13999_s3 + $0x28] sm:$0xff] %vm206_vm0, %v6274_v10  ;;  %v6347_v29 = vpop.f32.mrb[70].mxu0  ;;  %v11377_v30 = vpop.f32.mrb[69].mxu1 }
 0x2f4   :  { %10518 = vst.msk [vmem:[%s13999_s3 + $0x30] sm:$0xff] %vm206_vm0, %v6347_v29  ;;  %v11382_v13 = vpop.f32.mrb[71].mxu0 }
 0x2f6   :  { %v6420_v23 = vpop.f32.mrb[70].mxu1 }
 0x2f7   :  { %10519 = vst.msk [vmem:[%s13999_s3 + $0x38] sm:$0xff] %vm206_vm0, %v6420_v23  ;;  %v6493_v20 = vpop.f32.mrb[72].mxu0  ;;  %v11387_v48 = vpop.f32.mrb[71].mxu1 }
 0x2f8   :  { %10520 = vst.msk [vmem:[%s13999_s3 + $0x40] sm:$0xff] %vm206_vm0, %v6493_v20  ;;  %v11392_v63 = vpop.f32.mrb[73].mxu0 }
 0x2fa   :  { %v6566_v55 = vpop.f32.mrb[72].mxu1 }
 0x2fb   :  { %10521 = vst.msk [vmem:[%s13999_s3 + $0x48] sm:$0xff] %vm206_vm0, %v6566_v55  ;;  %v6639_v24 = vpop.f32.mrb[74].mxu0  ;;  %v11397_v5 = vpop.f32.mrb[73].mxu1 }
 0x2fc   :  { %10522 = vst.msk [vmem:[%s13999_s3 + $0x50] sm:$0xff] %vm206_vm0, %v6639_v24  ;;  %v11402_v8 = vpop.f32.mrb[75].mxu0 }
 0x2fe   :  { %v6712_v11 = vpop.f32.mrb[74].mxu1 }
 0x2ff   :  { %10523 = vst.msk [vmem:[%s13999_s3 + $0x58] sm:$0xff] %vm206_vm0, %v6712_v11  ;;  %v6785_v44 = vpop.f32.mrb[76].mxu0  ;;  %v11407_v33 = vpop.f32.mrb[75].mxu1 }
 0x300   :  { %10524 = vst.msk [vmem:[%s13999_s3 + $0x60] sm:$0xff] %vm206_vm0, %v6785_v44  ;;  %v11412_v17 = vpop.f32.mrb[77].mxu0 }
 0x302   :  { %v6858_v12 = vpop.f32.mrb[76].mxu1 }
 0x303   :  { %10525 = vst.msk [vmem:[%s13999_s3 + $0x68] sm:$0xff] %vm206_vm0, %v6858_v12  ;;  %v6931_v32 = vpop.f32.mrb[78].mxu0  ;;  %v11417_v39 = vpop.f32.mrb[77].mxu1 }
 0x304   :  { %10526 = vst.msk [vmem:[%s13999_s3 + $0x70] sm:$0xff] %vm206_vm0, %v6931_v32  ;;  %v11422_v1 = vpop.f32.mrb[79].mxu0 }
 0x306   :  { %v7004_v2 = vpop.f32.mrb[78].mxu1 }
 0x307   :  { %10527 = vst.msk [vmem:[%s13999_s3 + $0x78] sm:$0xff] %vm206_vm0, %v7004_v2  ;;  %v7077_v53 = vpop.f32.mrb[80].mxu0  ;;  %v11427_v57 = vpop.f32.mrb[79].mxu1 }
 0x308   :  { %10528 = vst.msk [vmem:[%s13999_s3 + $0x80] sm:$0xff] %vm206_vm0, %v7077_v53  ;;  %v11432_v15 = vpop.f32.mrb[81].mxu0 }
 0x30a   :  { %v7150_v47 = vpop.f32.mrb[80].mxu1 }
 0x30b   :  { %10529 = vst.msk [vmem:[%s13999_s3 + $0x88] sm:$0xff] %vm206_vm0, %v7150_v47  ;;  %v7223_v19 = vpop.f32.mrb[82].mxu0  ;;  %v11437_v26 = vpop.f32.mrb[81].mxu1 }
 0x30c   :  { %10530 = vst.msk [vmem:[%s13999_s3 + $0x90] sm:$0xff] %vm206_vm0, %v7223_v19  ;;  %v11442_v38 = vpop.f32.mrb[83].mxu0 }
 0x30e   :  { %v7296_v16 = vpop.f32.mrb[82].mxu1 }
 0x30f   :  { %10531 = vst.msk [vmem:[%s13999_s3 + $0x98] sm:$0xff] %vm206_vm0, %v7296_v16  ;;  %v7369_v21 = vpop.f32.mrb[84].mxu0  ;;  %v11447_v41 = vpop.f32.mrb[83].mxu1 }
 0x310   :  { %10532 = vst.msk [vmem:[%s13999_s3 + $0xa0] sm:$0xff] %vm206_vm0, %v7369_v21  ;;  %v11452_v61 = vpop.f32.mrb[85].mxu0 }
 0x312   :  { %v7442_v58 = vpop.f32.mrb[84].mxu1 }
 0x313   :  { %10533 = vst.msk [vmem:[%s13999_s3 + $0xa8] sm:$0xff] %vm206_vm0, %v7442_v58  ;;  %v7515_v27 = vpop.f32.mrb[86].mxu0  ;;  %v11457_v3 = vpop.f32.mrb[85].mxu1 }
 0x314   :  { %10534 = vst.msk [vmem:[%s13999_s3 + $0xb0] sm:$0xff] %vm206_vm0, %v7515_v27  ;;  %v11462_v37 = vpop.f32.mrb[87].mxu0 }
 0x316   :  { %v7588_v35 = vpop.f32.mrb[86].mxu1 }
 0x317   :  { %10535 = vst.msk [vmem:[%s13999_s3 + $0xb8] sm:$0xff] %vm206_vm0, %v7588_v35  ;;  %v7661_v46 = vpop.f32.mrb[88].mxu0  ;;  %v11467_v34 = vpop.f32.mrb[87].mxu1 }
 0x318   :  { %10536 = vst.msk [vmem:[%s13999_s3 + $0xc0] sm:$0xff] %vm206_vm0, %v7661_v46  ;;  %v11472_v14 = vpop.f32.mrb[89].mxu0 }
 0x31a   :  { %v7734_v0 = vpop.f32.mrb[88].mxu1 }
 0x31b   :  { %10537 = vst.msk [vmem:[%s13999_s3 + $0xc8] sm:$0xff] %vm206_vm0, %v7734_v0  ;;  %v7807_v9 = vpop.f32.mrb[90].mxu0  ;;  %v11477_v42 = vpop.f32.mrb[89].mxu1 }
 0x31c   :  { %10538 = vst.msk [vmem:[%s13999_s3 + $0xd0] sm:$0xff] %vm206_vm0, %v7807_v9  ;;  %v11482_v50 = vpop.f32.mrb[91].mxu0 }
 0x31e   :  { %v7880_v7 = vpop.f32.mrb[90].mxu1 }
 0x31f   :  { %10539 = vst.msk [vmem:[%s13999_s3 + $0xd8] sm:$0xff] %vm206_vm0, %v7880_v7  ;;  %v7953_v36 = vpop.f32.mrb[92].mxu0  ;;  %v11487_v62 = vpop.f32.mrb[91].mxu1 }
 0x320   :  { %10540 = vst.msk [vmem:[%s13999_s3 + $0xe0] sm:$0xff] %vm206_vm0, %v7953_v36  ;;  %v11492_v60 = vpop.f32.mrb[93].mxu0 }
 0x322   :  { %v8026_v43 = vpop.f32.mrb[92].mxu1 }
 0x323   :  { %10541 = vst.msk [vmem:[%s13999_s3 + $0xe8] sm:$0xff] %vm206_vm0, %v8026_v43  ;;  %v8099_v31 = vpop.f32.mrb[94].mxu0  ;;  %v11497_v28 = vpop.f32.mrb[93].mxu1 }
 0x324   :  { %10542 = vst.msk [vmem:[%s13999_s3 + $0xf0] sm:$0xff] %vm206_vm0, %v8099_v31  ;;  %v11502_v59 = vpop.f32.mrb[95].mxu0 }
 0x326   :  { %v8172_v4 = vpop.f32.mrb[94].mxu1 }
 0x327   :  { %10543 = vst.msk [vmem:[%s13999_s3 + $0xf8] sm:$0xff] %vm206_vm0, %v8172_v4  ;;  %v8245_v45 = vpop.f32.mrb[96].mxu0  ;;  %v11507_v40 = vpop.f32.mrb[95].mxu1 }
 0x328   :  { %10544 = vst.msk [vmem:[%s13999_s3 + $0x100] sm:$0xff] %vm206_vm0, %v8245_v45  ;;  %v11512_v51 = vpop.f32.mrb[97].mxu0 }
 0x32a   :  { %v8318_v18 = vpop.f32.mrb[96].mxu1 }
 0x32b   :  { %10545 = vst.msk [vmem:[%s13999_s3 + $0x108] sm:$0xff] %vm206_vm0, %v8318_v18  ;;  %v8391_v56 = vpop.f32.mrb[98].mxu0  ;;  %v11517_v25 = vpop.f32.mrb[97].mxu1 }
 0x32c   :  { %10546 = vst.msk [vmem:[%s13999_s3 + $0x110] sm:$0xff] %vm206_vm0, %v8391_v56  ;;  %v11522_v49 = vpop.f32.mrb[99].mxu0 }
 0x32e   :  { %v8464_v22 = vpop.f32.mrb[98].mxu1 }
 0x32f   :  { %10547 = vst.msk [vmem:[%s13999_s3 + $0x118] sm:$0xff] %vm206_vm0, %v8464_v22  ;;  %v8537_v6 = vpop.f32.mrb[100].mxu0  ;;  %v11527_v52 = vpop.f32.mrb[99].mxu1 }
 0x330   :  { %10548 = vst.msk [vmem:[%s13999_s3 + $0x120] sm:$0xff] %vm206_vm0, %v8537_v6  ;;  %v11532_v54 = vpop.f32.mrb[101].mxu0 }
 0x332   :  { %v8610_v10 = vpop.f32.mrb[100].mxu1 }
 0x333   :  { %10549 = vst.msk [vmem:[%s13999_s3 + $0x128] sm:$0xff] %vm206_vm0, %v8610_v10  ;;  %v8683_v29 = vpop.f32.mrb[102].mxu0  ;;  %v11537_v30 = vpop.f32.mrb[101].mxu1 }
 0x334   :  { %10550 = vst.msk [vmem:[%s13999_s3 + $0x130] sm:$0xff] %vm206_vm0, %v8683_v29  ;;  %v11542_v13 = vpop.f32.mrb[103].mxu0 }
 0x336   :  { %v8756_v23 = vpop.f32.mrb[102].mxu1 }
 0x337   :  { %10551 = vst.msk [vmem:[%s13999_s3 + $0x138] sm:$0xff] %vm206_vm0, %v8756_v23  ;;  %v8829_v20 = vpop.f32.mrb[104].mxu0  ;;  %v11547_v48 = vpop.f32.mrb[103].mxu1 }
 0x338   :  { %10552 = vst.msk [vmem:[%s13999_s3 + $0x140] sm:$0xff] %vm206_vm0, %v8829_v20  ;;  %v11552_v63 = vpop.f32.mrb[105].mxu0 }
 0x33a   :  { %v8902_v55 = vpop.f32.mrb[104].mxu1 }
 0x33b   :  { %10553 = vst.msk [vmem:[%s13999_s3 + $0x148] sm:$0xff] %vm206_vm0, %v8902_v55  ;;  %v8975_v24 = vpop.f32.mrb[106].mxu0  ;;  %v11557_v5 = vpop.f32.mrb[105].mxu1 }
 0x33c   :  { %10554 = vst.msk [vmem:[%s13999_s3 + $0x150] sm:$0xff] %vm206_vm0, %v8975_v24  ;;  %v11562_v8 = vpop.f32.mrb[107].mxu0 }
 0x33e   :  { %v9048_v11 = vpop.f32.mrb[106].mxu1 }
 0x33f   :  { %10555 = vst.msk [vmem:[%s13999_s3 + $0x158] sm:$0xff] %vm206_vm0, %v9048_v11  ;;  %v9121_v44 = vpop.f32.mrb[108].mxu0  ;;  %v11567_v33 = vpop.f32.mrb[107].mxu1 }
 0x340   :  { %10556 = vst.msk [vmem:[%s13999_s3 + $0x160] sm:$0xff] %vm206_vm0, %v9121_v44  ;;  %v11572_v17 = vpop.f32.mrb[109].mxu0 }
 0x342   :  { %v9194_v12 = vpop.f32.mrb[108].mxu1 }
 0x343   :  { %10557 = vst.msk [vmem:[%s13999_s3 + $0x168] sm:$0xff] %vm206_vm0, %v9194_v12  ;;  %v9267_v32 = vpop.f32.mrb[110].mxu0  ;;  %v11577_v39 = vpop.f32.mrb[109].mxu1 }
 0x344   :  { %10558 = vst.msk [vmem:[%s13999_s3 + $0x170] sm:$0xff] %vm206_vm0, %v9267_v32  ;;  %v11582_v1 = vpop.f32.mrb[111].mxu0 }
 0x346   :  { %v9340_v2 = vpop.f32.mrb[110].mxu1 }
 0x347   :  { %10559 = vst.msk [vmem:[%s13999_s3 + $0x178] sm:$0xff] %vm206_vm0, %v9340_v2  ;;  %v9413_v53 = vpop.f32.mrb[112].mxu0  ;;  %v11587_v57 = vpop.f32.mrb[111].mxu1 }
 0x348   :  { %10560 = vst.msk [vmem:[%s13999_s3 + $0x180] sm:$0xff] %vm206_vm0, %v9413_v53  ;;  %v11592_v15 = vpop.f32.mrb[113].mxu0 }
 0x34a   :  { %v9486_v47 = vpop.f32.mrb[112].mxu1 }
 0x34b   :  { %10561 = vst.msk [vmem:[%s13999_s3 + $0x188] sm:$0xff] %vm206_vm0, %v9486_v47  ;;  %v9559_v19 = vpop.f32.mrb[114].mxu0  ;;  %v11597_v26 = vpop.f32.mrb[113].mxu1 }
 0x34c   :  { %10562 = vst.msk [vmem:[%s13999_s3 + $0x190] sm:$0xff] %vm206_vm0, %v9559_v19  ;;  %v11602_v38 = vpop.f32.mrb[115].mxu0 }
 0x34e   :  { %v9632_v16 = vpop.f32.mrb[114].mxu1 }
 0x34f   :  { %10563 = vst.msk [vmem:[%s13999_s3 + $0x198] sm:$0xff] %vm206_vm0, %v9632_v16  ;;  %v9705_v21 = vpop.f32.mrb[116].mxu0  ;;  %v11607_v41 = vpop.f32.mrb[115].mxu1 }
 0x350   :  { %10564 = vst.msk [vmem:[%s13999_s3 + $0x1a0] sm:$0xff] %vm206_vm0, %v9705_v21  ;;  %v11612_v61 = vpop.f32.mrb[117].mxu0 }
 0x352   :  { %v9778_v58 = vpop.f32.mrb[116].mxu1 }
 0x353   :  { %10565 = vst.msk [vmem:[%s13999_s3 + $0x1a8] sm:$0xff] %vm206_vm0, %v9778_v58  ;;  %v9851_v27 = vpop.f32.mrb[118].mxu0  ;;  %v11617_v3 = vpop.f32.mrb[117].mxu1 }
 0x354   :  { %10566 = vst.msk [vmem:[%s13999_s3 + $0x1b0] sm:$0xff] %vm206_vm0, %v9851_v27  ;;  %v11622_v37 = vpop.f32.mrb[119].mxu0 }
 0x356   :  { %v9924_v35 = vpop.f32.mrb[118].mxu1 }
 0x357   :  { %10567 = vst.msk [vmem:[%s13999_s3 + $0x1b8] sm:$0xff] %vm206_vm0, %v9924_v35  ;;  %v9997_v46 = vpop.f32.mrb[120].mxu0  ;;  %v11627_v34 = vpop.f32.mrb[119].mxu1 }
 0x358   :  { %10568 = vst.msk [vmem:[%s13999_s3 + $0x1c0] sm:$0xff] %vm206_vm0, %v9997_v46  ;;  %v11632_v14 = vpop.f32.mrb[121].mxu0 }
 0x35a   :  { %v10070_v0 = vpop.f32.mrb[120].mxu1 }
 0x35b   :  { %10569 = vst.msk [vmem:[%s13999_s3 + $0x1c8] sm:$0xff] %vm206_vm0, %v10070_v0  ;;  %v10143_v9 = vpop.f32.mrb[122].mxu0  ;;  %v11637_v42 = vpop.f32.mrb[121].mxu1 }
 0x35c   :  { %10570 = vst.msk [vmem:[%s13999_s3 + $0x1d0] sm:$0xff] %vm206_vm0, %v10143_v9  ;;  %v11642_v50 = vpop.f32.mrb[123].mxu0 }
 0x35e   :  { %v10216_v7 = vpop.f32.mrb[122].mxu1 }
 0x35f   :  { %10571 = vst.msk [vmem:[%s13999_s3 + $0x1d8] sm:$0xff] %vm206_vm0, %v10216_v7  ;;  %v10289_v36 = vpop.f32.mrb[124].mxu0  ;;  %v11647_v62 = vpop.f32.mrb[123].mxu1 }
 0x360   :  { %10572 = vst.msk [vmem:[%s13999_s3 + $0x1e0] sm:$0xff] %vm206_vm0, %v10289_v36  ;;  %v11652_v60 = vpop.f32.mrb[125].mxu0 }
 0x362   :  { %v10362_v43 = vpop.f32.mrb[124].mxu1 }
 0x363   :  { %10573 = vst.msk [vmem:[%s13999_s3 + $0x1e8] sm:$0xff] %vm206_vm0, %v10362_v43  ;;  %v10435_v31 = vpop.f32.mrb[126].mxu0  ;;  %v11657_v28 = vpop.f32.mrb[125].mxu1 }
 0x364   :  { %10574 = vst.msk [vmem:[%s13999_s3 + $0x1f0] sm:$0xff] %vm206_vm0, %v10435_v31  ;;  %v11662_v59 = vpop.f32.mrb[127].mxu0 }
 0x366   :  { %v10508_v4 = vpop.f32.mrb[126].mxu1 }
 0x367   :  { %10575 = vst.msk [vmem:[%s13999_s3 + $0x1f8] sm:$0xff] %vm206_vm0, %v10508_v4  ;;  %v11667_v45 = vpop.f32.mrb[127].mxu1 }

</bundles_post_ra>
